<compile_context>
chip_gen: v7x
topology: tpu7x:2x2x1
jax: 0.10.0
libtpu: 0.0.40
codegen_flags: <defaults>
</compile_context>

<pallas_src>
import functools

import jax
import jax.numpy as jnp
from jax.experimental import pallas as pl
from jax.experimental.pallas import tpu as pltpu

NEG_SLOPE = 0.1
MEAN = (0.429, 0.431, 0.397)      # trans_forward subtracts, trans_backward adds
INTERP_RATIO = 4

# Pixel-axis tile sizes (lane dim).  Raise toward 512-1024 on v6e at real
# resolutions; use roughly half on v7x (64 MiB VMEM, 32 MiB scoped default).
MM_TILE_M = 256
ELEM_TILE_M = 512


def _round_up(x, m):
    return (x + m - 1) // m * m


def _lane_tiles(m, tm):
    """Pick a lane tile (multiple of 128) and the padded pixel count."""
    mp = _round_up(m, 128)
    tm_e = min(tm, mp)
    mp = _round_up(mp, tm_e)
    return mp, tm_e


# ----------------------------------------------------------------------------
# Pallas kernels
# ----------------------------------------------------------------------------
def _mm_bias_act_kernel(w_ref, a_ref, b_ref, o_ref, *, act):
    # (Cout, K)bf16 @ (K, tm)bf16 -> f32 accumulate on the MXU; fused bias+act.
    acc = jnp.dot(w_ref[...], a_ref[...], preferred_element_type=jnp.float32)
    acc = acc + b_ref[...]                       # (Cout, 1) broadcast over lanes
    if act == "leaky":
        acc = jnp.where(acc >= 0.0, acc, NEG_SLOPE * acc)
    o_ref[...] = acc.astype(o_ref.dtype)


def mm_bias_act(w, a, b, act="leaky", tm=MM_TILE_M):
    """Fused W @ A + b (+ leaky ReLU).  w:(Cout,K) bf16, a:(K,M) bf16, b:(Cout,).

    Output (Cout, M) f32.  Lane dim = M (pixels) -> lane-dense stores; grid over
    M tiles with parallel semantics (megacore split on v7x).
    """
    cout, k = w.shape
    _, m = a.shape
    mp, tm_e = _lane_tiles(m, tm)
    if mp != m:
        a = jnp.pad(a, ((0, 0), (0, mp - m)))
    out = pl.pallas_call(
        functools.partial(_mm_bias_act_kernel, act=act),
        out_shape=jax.ShapeDtypeStruct((cout, mp), jnp.float32),
        grid=(mp // tm_e,),
        in_specs=[
            pl.BlockSpec((cout, k), lambda i: (0, 0)),      # weight (resident)
            pl.BlockSpec((k, tm_e), lambda i: (0, i)),      # patch tile
            pl.BlockSpec((cout, 1), lambda i: (0, 0)),      # bias
        ],
        out_specs=pl.BlockSpec((cout, tm_e), lambda i: (0, i)),
        compiler_params=pltpu.CompilerParams(
            dimension_semantics=("parallel",)),
    )(w.astype(jnp.bfloat16), a.astype(jnp.bfloat16), b.reshape(cout, 1))
    return out[:, :m]


def _flow_comb_kernel(c_ref, f01_ref, f10_ref, ft0_ref, ft1_ref):
    f01 = f01_ref[...]
    f10 = f10_ref[...]
    ft0_ref[...] = c_ref[0] * f01 + c_ref[1] * f10
    ft1_ref[...] = c_ref[2] * f01 + c_ref[3] * f10


def flow_combine(f01, f10, coeffs):
    """ft0 = c0*f01 + c1*f10 ; ft1 = c2*f01 + c3*f10.  Channel-major, lane-dense."""
    _, n, h, w = f01.shape
    m = n * h * w
    mp, tm_e = _lane_tiles(m, ELEM_TILE_M)
    a = f01.reshape(2, m)
    b = f10.reshape(2, m)
    if mp != m:
        a = jnp.pad(a, ((0, 0), (0, mp - m)))
        b = jnp.pad(b, ((0, 0), (0, mp - m)))
    ft0, ft1 = pl.pallas_call(
        _flow_comb_kernel,
        out_shape=(jax.ShapeDtypeStruct((2, mp), jnp.float32),
                   jax.ShapeDtypeStruct((2, mp), jnp.float32)),
        grid=(mp // tm_e,),
        in_specs=[
            pl.BlockSpec(memory_space=pltpu.MemorySpace.SMEM),   # coeffs (4,)
            pl.BlockSpec((2, tm_e), lambda i: (0, i)),
            pl.BlockSpec((2, tm_e), lambda i: (0, i)),
        ],
        out_specs=(pl.BlockSpec((2, tm_e), lambda i: (0, i)),
                   pl.BlockSpec((2, tm_e), lambda i: (0, i))),
        compiler_params=pltpu.CompilerParams(
            dimension_semantics=("parallel",)),
    )(coeffs, a, b)
    return ft0[:, :m].reshape(2, n, h, w), ft1[:, :m].reshape(2, n, h, w)


def _blend_kernel(t_ref, mean_ref, v_ref, g0_ref, g1_ref, o_ref):
    t = t_ref[0]
    vt0 = jax.nn.sigmoid(v_ref[...])             # (1, tm)
    vt1 = 1.0 - vt0
    w0 = (1.0 - t) * vt0
    w1 = t * vt1
    # TODO(synk): pl.reciprocal(w0 + w1, approx=True) would move this divide to
    # the EUP slot on the Mosaic path.
    ft_p = (w0 * g0_ref[...] + w1 * g1_ref[...]) / (w0 + w1)
    o_ref[...] = ft_p + mean_ref[...]            # trans_backward: add mean back


def blend_frame(vt0_logit, g0, g1, t, mean_col):
    """Visibility-gated blend + de-normalization.  Channel-major, lane-dense."""
    c, n, h, w = g0.shape
    m = n * h * w
    mp, tm_e = _lane_tiles(m, ELEM_TILE_M)
    v = vt0_logit.reshape(1, m)
    a = g0.reshape(c, m)
    b = g1.reshape(c, m)
    if mp != m:
        v = jnp.pad(v, ((0, 0), (0, mp - m)))
        a = jnp.pad(a, ((0, 0), (0, mp - m)))
        b = jnp.pad(b, ((0, 0), (0, mp - m)))
    t_arr = jnp.full((1,), t, jnp.float32)
    out = pl.pallas_call(
        _blend_kernel,
        out_shape=jax.ShapeDtypeStruct((c, mp), jnp.float32),
        grid=(mp // tm_e,),
        in_specs=[
            pl.BlockSpec(memory_space=pltpu.MemorySpace.SMEM),   # t (1,)
            pl.BlockSpec((c, 1), lambda i: (0, 0)),              # mean (3,1)
            pl.BlockSpec((1, tm_e), lambda i: (0, i)),
            pl.BlockSpec((c, tm_e), lambda i: (0, i)),
            pl.BlockSpec((c, tm_e), lambda i: (0, i)),
        ],
        out_specs=pl.BlockSpec((c, tm_e), lambda i: (0, i)),
        compiler_params=pltpu.CompilerParams(
            dimension_semantics=("parallel",)),
    )(t_arr, mean_col, v, a, b)
    return out[:, :m].reshape(c, n, h, w)


# ----------------------------------------------------------------------------
# JAX glue: channel-major conv wrapper, pooling, upsampling, backWarp
# ----------------------------------------------------------------------------
def conv2d_cm(inputs, w, b, act="leaky"):
    """Same-padded stride-1 conv, channel-major.

    inputs: tuple of (Ci, N, H, W) tensors (implicit channel concat: UNet skip
            concats are fused into the GEMM instead of being materialized).
    w: (Cout, kh*kw*sum(Ci)) bf16, K ordered (tap-major, then input order).
    """
    n, h, wd = inputs[0].shape[1:]
    cin = sum(x.shape[0] for x in inputs)
    cout, ktot = w.shape
    khw = ktot // cin
    kh = kw = int(round(khw ** 0.5))
    assert kh * kw * cin == ktot
    ph, pw = (kh - 1) // 2, (kw - 1) // 2
    padded = [jnp.pad(x.astype(jnp.bfloat16), ((0, 0), (0, 0), (ph, ph), (pw, pw)))
              for x in inputs]
    # TODO(synk): this im2col still materializes kh*kw shifted copies in HBM;
    # folding the taps into a reduction grid axis (element-offset BlockSpecs or
    # manual DMA from the padded image) would remove that traffic.
    taps = []
    for i in range(kh):
        for j in range(kw):
            for xp in padded:
                taps.append(xp[:, :, i:i + h, j:j + wd])
    patches = jnp.concatenate(taps, axis=0).reshape(ktot, n * h * wd)
    out = mm_bias_act(w, patches, b, act=act)          # (Cout, M) f32
    return out.reshape(cout, n, h, wd)


def avg_pool2(x):                                       # x: (C, N, H, W)
    c, n, h, w = x.shape
    return x.reshape(c, n, h // 2, 2, w // 2, 2).mean(axis=(3, 5))


def upsample2(x):                                       # bilinear 2x (align_corners=False)
    c, n, h, w = x.shape
    return jax.image.resize(x, (c, n, 2 * h, 2 * w), method="bilinear")


def back_warp(img, flow):
    """Backward warp (F.grid_sample bilinear, zero padding, align_corners=False).

    img: (C, N, H, W), flow: (2, N, H, W) with flow[0]=u (x-disp), flow[1]=v.
    """
    # TODO(synk): data-dependent bilinear gather stays in plain JAX; a tiled
    # Pallas gather (img kept in HBM via memory_space=pl.ANY + per-tile DMA)
    # is the next step at real resolutions.
    c, n, h, w = img.shape
    u = flow[0]
    v = flow[1]
    gx = jnp.arange(w, dtype=jnp.float32)[None, None, :]
    gy = jnp.arange(h, dtype=jnp.float32)[None, :, None]
    sx = gx + u - 0.5
    sy = gy + v - 0.5
    x0 = jnp.floor(sx)
    y0 = jnp.floor(sy)
    wx1 = sx - x0
    wy1 = sy - y0
    wx0 = 1.0 - wx1
    wy0 = 1.0 - wy1
    x0i = x0.astype(jnp.int32)
    y0i = y0.astype(jnp.int32)
    flat = img.reshape(c, n, h * w)

    def gather(yi, xi):
        valid = (xi >= 0) & (xi < w) & (yi >= 0) & (yi < h)
        xc = jnp.clip(xi, 0, w - 1)
        yc = jnp.clip(yi, 0, h - 1)
        idx = (yc * w + xc).reshape(1, n, h * w)
        g = jnp.take_along_axis(flat, jnp.broadcast_to(idx, (c, n, h * w)), axis=2)
        return g.reshape(c, n, h, w) * valid[None].astype(img.dtype)

    return (gather(y0i, x0i) * (wy0 * wx0)[None]
            + gather(y0i, x0i + 1) * (wy0 * wx1)[None]
            + gather(y0i + 1, x0i) * (wy1 * wx0)[None]
            + gather(y0i + 1, x0i + 1) * (wy1 * wx1)[None])


# ----------------------------------------------------------------------------
# UNet (structurally faithful, width/depth-reduced synthetic version)
# ----------------------------------------------------------------------------
def _init_conv(key, ksize, cin, cout):
    k1, k2 = jax.random.split(key)
    kk = ksize * ksize * cin
    w = (jax.random.normal(k1, (cout, kk), jnp.float32) / jnp.sqrt(kk)).astype(jnp.bfloat16)
    b = 0.01 * jax.random.normal(k2, (cout,), jnp.float32)
    return {"w": w, "b": b}


def init_unet(key, in_ch, out_ch, base=8):
    c0, c1, c2 = base, 2 * base, 4 * base
    ks = jax.random.split(key, 11)
    return {
        "conv1": _init_conv(ks[0], 7, in_ch, c0),
        "conv2": _init_conv(ks[1], 7, c0, c0),
        "down1_conv1": _init_conv(ks[2], 5, c0, c1),
        "down1_conv2": _init_conv(ks[3], 5, c1, c1),
        "down2_conv1": _init_conv(ks[4], 3, c1, c2),
        "down2_conv2": _init_conv(ks[5], 3, c2, c2),
        "up1_conv1": _init_conv(ks[6], 3, c2, c1),
        "up1_conv2": _init_conv(ks[7], 3, 2 * c1, c1),
        "up2_conv1": _init_conv(ks[8], 3, c1, c0),
        "up2_conv2": _init_conv(ks[9], 3, 2 * c0, c0),
        "conv3": _init_conv(ks[10], 3, c0, out_ch),
    }


def unet_forward(x, p):
    def conv(inp, name):
        prm = p[name]
        inp = inp if isinstance(inp, tuple) else (inp,)
        return conv2d_cm(inp, prm["w"], prm["b"], act="leaky")

    x = conv(x, "conv1")              # x may itself be a tuple (fused input concat)
    s1 = conv(x, "conv2")
    x = avg_pool2(s1)
    x = conv(x, "down1_conv1")
    s2 = conv(x, "down1_conv2")
    x = avg_pool2(s2)
    x = conv(x, "down2_conv1")
    x = conv(x, "down2_conv2")
    x = upsample2(x)
    x = conv(x, "up1_conv1")
    x = conv((x, s2), "up1_conv2")    # skip concat fused into the GEMM
    x = upsample2(x)
    x = conv(x, "up2_conv1")
    x = conv((x, s1), "up2_conv2")    # skip concat fused into the GEMM
    x = conv(x, "conv3")
    return x


# ----------------------------------------------------------------------------
# SuperSlomo forward
# ----------------------------------------------------------------------------
def super_slomo_forward(frame0, frame1, params, interp_ratio=INTERP_RATIO):
    """frame0/frame1: NCHW float32 in [0,1]. Returns list of NCHW frames."""
    mean_4d = jnp.array(MEAN, jnp.float32).reshape(3, 1, 1, 1)
    mean_col = jnp.array(MEAN, jnp.float32).reshape(3, 1)
    # go channel-major: (N,C,H,W) -> (C,N,H,W)
    i0 = jnp.transpose(frame0, (1, 0, 2, 3)) - mean_4d      # trans_forward (std=1)
    i1 = jnp.transpose(frame1, (1, 0, 2, 3)) - mean_4d

    flow_out = unet_forward((i0, i1), params["flow"])        # (4, N, H, W)
    f01 = flow_out[0:2]
    f10 = flow_out[2:4]

    frame_buffer = []
    for i in range(1, interp_ratio):
        t = i / interp_ratio
        temp = -t * (1 - t)
        coeffs = jnp.array([temp, t * t, (1 - t) * (1 - t), temp], jnp.float32)
        ft0, ft1 = flow_combine(f01, f10, coeffs)
        gi0ft0 = back_warp(i0, ft0)
        gi1ft1 = back_warp(i1, ft1)
        # 20-channel input concat fused into the interp UNet's first conv
        io = unet_forward((i0, i1, f01, f10, ft1, ft0, gi1ft1, gi0ft0),
                          params["interp"])                  # (5, N, H, W)
        ft0f = io[0:2] + ft0
        ft1f = io[2:4] + ft1
        vt0_logit = io[4:5]
        gi0ft0f = back_warp(i0, ft0f)
        gi1ft1f = back_warp(i1, ft1f)
        ft_p = blend_frame(vt0_logit, gi0ft0f, gi1ft1f, t, mean_col)  # (3,N,H,W)
        frame_buffer.append(jnp.transpose(ft_p, (1, 0, 2, 3)))        # back to NCHW
    return frame_buffer


# ----------------------------------------------------------------------------
if __name__ == "__main__":
    key = jax.random.PRNGKey(0)
    k0, k1, kflow, kinterp = jax.random.split(key, 4)

    N, C, H, W = 2, 3, 16, 16
    frame0 = jax.random.uniform(k0, (N, C, H, W), jnp.float32)
    frame1 = jax.random.uniform(k1, (N, C, H, W), jnp.float32)

    params = {
        "flow": init_unet(kflow, in_ch=6, out_ch=4, base=8),
        "interp": init_unet(kinterp, in_ch=20, out_ch=5, base=8),
    }

    fwd = jax.jit(lambda a, b, p: super_slomo_forward(a, b, p, INTERP_RATIO))
    frames = fwd(frame0, frame1, params)
    for f in frames:
        jax.block_until_ready(f)
    assert len(frames) == INTERP_RATIO - 1
    assert all(f.shape == (N, C, H, W) for f in frames)
    assert all(bool(jnp.all(jnp.isfinite(f))) for f in frames)
    print("KERNEL_OK")
</pallas_src>

<mosaic_0001>
module attributes {stable_mosaic.version = 11 : i64} {
  func.func private @main(%arg0: i32) attributes {dimension_semantics = [#tpu.dimension_semantics<core_parallel>], iteration_bounds = array<i64: 2>, tpu.core_type = #tpu.core_type<sc_scalar_subcore>, window_params = []} {
    return
  }
}

module attributes {stable_mosaic.version = 11 : i64} {
  func.func private @main(%arg0: i32) attributes {dimension_semantics = [#tpu.dimension_semantics<core_parallel>], iteration_bounds = array<i64: 2>, tpu.core_type = #tpu.core_type<sc_scalar_subcore>, window_params = []} {
    return
  }
}

module attributes {stable_mosaic.version = 11 : i64} {
  func.func @_mm_bias_act_kernel(%arg0: i32, %arg1: memref<8x294xbf16, #tpu.memory_space<vmem>>, %arg2: memref<294x256xbf16, #tpu.memory_space<vmem>>, %arg3: memref<8x1xf32, #tpu.memory_space<vmem>>, %arg4: memref<8x256xf32, #tpu.memory_space<vmem>>) attributes {dimension_semantics = [#tpu.dimension_semantics<parallel>], iteration_bounds = array<i64: 2>, scalar_prefetch = 0 : i64, scratch_operands = 0 : i64, tpu.core_type = #tpu.core_type<tc>, window_params = [{pipeline_mode = #tpu.pipeline_mode<synchronous>, transform_indices = @transform_0, window_bounds = array<i64: 8, 294>}, {transform_indices = @transform_1, window_bounds = array<i64: 294, 256>}, {pipeline_mode = #tpu.pipeline_mode<synchronous>, transform_indices = @transform_2, window_bounds = array<i64: 8, 1>}, {transform_indices = @transform_3, window_bounds = array<i64: 8, 256>}]} {
    %c0 = arith.constant 0 : index
    %c0_0 = arith.constant 0 : index
    %0 = vector.load %arg1[%c0, %c0_0] : memref<8x294xbf16, #tpu.memory_space<vmem>>, vector<8x294xbf16>
    %c0_1 = arith.constant 0 : index
    %c0_2 = arith.constant 0 : index
    %1 = vector.load %arg2[%c0_1, %c0_2] : memref<294x256xbf16, #tpu.memory_space<vmem>>, vector<294x256xbf16>
    %cst = arith.constant dense<0.000000e+00> : vector<8x256xf32>
    %2 = tpu.matmul %0, %1, %cst {dimension_numbers = #tpu.dot_dimension_numbers<[1], [0], [0], [1], [0, 0, 1, 1], [], []>} : vector<8x294xbf16>, vector<294x256xbf16>, vector<8x256xf32> -> vector<8x256xf32>
    %c0_3 = arith.constant 0 : index
    %c0_4 = arith.constant 0 : index
    %3 = vector.load %arg3[%c0_3, %c0_4] : memref<8x1xf32, #tpu.memory_space<vmem>>, vector<8x1xf32>
    %4 = vector.broadcast %3 : vector<8x1xf32> to vector<8x256xf32>
    %5 = arith.addf %2, %4 : vector<8x256xf32>
    %cst_5 = arith.constant 0.000000e+00 : f32
    %6 = vector.broadcast %cst_5 : f32 to vector<8x256xf32>
    %7 = arith.cmpf oge, %5, %6 : vector<8x256xf32>
    %cst_6 = arith.constant 1.000000e-01 : f32
    %8 = vector.broadcast %cst_6 : f32 to vector<8x256xf32>
    %9 = arith.mulf %8, %5 : vector<8x256xf32>
    %10 = arith.select %7, %5, %9 : vector<8x256xi1>, vector<8x256xf32>
    %c0_7 = arith.constant 0 : index
    %c0_8 = arith.constant 0 : index
    %11 = vector.load %arg4[%c0_7, %c0_8] : memref<8x256xf32, #tpu.memory_space<vmem>>, vector<8x256xf32>
    tpu.vector_store %arg4[%c0_7, %c0_8], %10 {strides = array<i32>} : memref<8x256xf32, #tpu.memory_space<vmem>>, vector<8x256xf32>,
    return
  }
  func.func @transform_0(%arg0: i32) -> (i32, i32) {
    %c0_i32 = arith.constant 0 : i32
    %c0_i32_0 = arith.constant 0 : i32
    %c0_i32_1 = arith.constant 0 : i32
    return %c0_i32, %c0_i32_0 : i32, i32
  }
  func.func @transform_1(%arg0: i32) -> (i32, i32) {
    %c0_i32 = arith.constant 0 : i32
    %c0_i32_0 = arith.constant 0 : i32
    return %c0_i32, %arg0 : i32, i32
  }
  func.func @transform_2(%arg0: i32) -> (i32, i32) {
    %c0_i32 = arith.constant 0 : i32
    %c0_i32_0 = arith.constant 0 : i32
    %c0_i32_1 = arith.constant 0 : i32
    return %c0_i32, %c0_i32_0 : i32, i32
  }
  func.func @transform_3(%arg0: i32) -> (i32, i32) {
    %c0_i32 = arith.constant 0 : i32
    %c0_i32_0 = arith.constant 0 : i32
    return %c0_i32, %arg0 : i32, i32
  }
}

module attributes {stable_mosaic.version = 11 : i64} {
  func.func @_mm_bias_act_kernel(%arg0: i32, %arg1: memref<8x392xbf16, #tpu.memory_space<vmem>>, %arg2: memref<392x256xbf16, #tpu.memory_space<vmem>>, %arg3: memref<8x1xf32, #tpu.memory_space<vmem>>, %arg4: memref<8x256xf32, #tpu.memory_space<vmem>>) attributes {dimension_semantics = [#tpu.dimension_semantics<parallel>], iteration_bounds = array<i64: 2>, scalar_prefetch = 0 : i64, scratch_operands = 0 : i64, tpu.core_type = #tpu.core_type<tc>, window_params = [{pipeline_mode = #tpu.pipeline_mode<synchronous>, transform_indices = @transform_0, window_bounds = array<i64: 8, 392>}, {transform_indices = @transform_1, window_bounds = array<i64: 392, 256>}, {pipeline_mode = #tpu.pipeline_mode<synchronous>, transform_indices = @transform_2, window_bounds = array<i64: 8, 1>}, {transform_indices = @transform_3, window_bounds = array<i64: 8, 256>}]} {
    %c0 = arith.constant 0 : index
    %c0_0 = arith.constant 0 : index
    %0 = vector.load %arg1[%c0, %c0_0] : memref<8x392xbf16, #tpu.memory_space<vmem>>, vector<8x392xbf16>
    %c0_1 = arith.constant 0 : index
    %c0_2 = arith.constant 0 : index
    %1 = vector.load %arg2[%c0_1, %c0_2] : memref<392x256xbf16, #tpu.memory_space<vmem>>, vector<392x256xbf16>
    %cst = arith.constant dense<0.000000e+00> : vector<8x256xf32>
    %2 = tpu.matmul %0, %1, %cst {dimension_numbers = #tpu.dot_dimension_numbers<[1], [0], [0], [1], [0, 0, 1, 1], [], []>} : vector<8x392xbf16>, vector<392x256xbf16>, vector<8x256xf32> -> vector<8x256xf32>
    %c0_3 = arith.constant 0 : index
    %c0_4 = arith.constant 0 : index
    %3 = vector.load %arg3[%c0_3, %c0_4] : memref<8x1xf32, #tpu.memory_space<vmem>>, vector<8x1xf32>
    %4 = vector.broadcast %3 : vector<8x1xf32> to vector<8x256xf32>
    %5 = arith.addf %2, %4 : vector<8x256xf32>
    %cst_5 = arith.constant 0.000000e+00 : f32
    %6 = vector.broadcast %cst_5 : f32 to vector<8x256xf32>
    %7 = arith.cmpf oge, %5, %6 : vector<8x256xf32>
    %cst_6 = arith.constant 1.000000e-01 : f32
    %8 = vector.broadcast %cst_6 : f32 to vector<8x256xf32>
    %9 = arith.mulf %8, %5 : vector<8x256xf32>
    %10 = arith.select %7, %5, %9 : vector<8x256xi1>, vector<8x256xf32>
    %c0_7 = arith.constant 0 : index
    %c0_8 = arith.constant 0 : index
    %11 = vector.load %arg4[%c0_7, %c0_8] : memref<8x256xf32, #tpu.memory_space<vmem>>, vector<8x256xf32>
    tpu.vector_store %arg4[%c0_7, %c0_8], %10 {strides = array<i32>} : memref<8x256xf32, #tpu.memory_space<vmem>>, vector<8x256xf32>,
    return
  }
  func.func @transform_0(%arg0: i32) -> (i32, i32) {
    %c0_i32 = arith.constant 0 : i32
    %c0_i32_0 = arith.constant 0 : i32
    %c0_i32_1 = arith.constant 0 : i32
    return %c0_i32, %c0_i32_0 : i32, i32
  }
  func.func @transform_1(%arg0: i32) -> (i32, i32) {
    %c0_i32 = arith.constant 0 : i32
    %c0_i32_0 = arith.constant 0 : i32
    return %c0_i32, %arg0 : i32, i32
  }
  func.func @transform_2(%arg0: i32) -> (i32, i32) {
    %c0_i32 = arith.constant 0 : i32
    %c0_i32_0 = arith.constant 0 : i32
    %c0_i32_1 = arith.constant 0 : i32
    return %c0_i32, %c0_i32_0 : i32, i32
  }
  func.func @transform_3(%arg0: i32) -> (i32, i32) {
    %c0_i32 = arith.constant 0 : i32
    %c0_i32_0 = arith.constant 0 : i32
    return %c0_i32, %arg0 : i32, i32
  }
}

module attributes {stable_mosaic.version = 11 : i64} {
  func.func @_mm_bias_act_kernel(%arg0: i32, %arg1: memref<16x200xbf16, #tpu.memory_space<vmem>>, %arg2: memref<200x128xbf16, #tpu.memory_space<vmem>>, %arg3: memref<16x1xf32, #tpu.memory_space<vmem>>, %arg4: memref<16x128xf32, #tpu.memory_space<vmem>>) attributes {dimension_semantics = [#tpu.dimension_semantics<parallel>], iteration_bounds = array<i64: 1>, scalar_prefetch = 0 : i64, scratch_operands = 0 : i64, tpu.core_type = #tpu.core_type<tc>, window_params = [{pipeline_mode = #tpu.pipeline_mode<synchronous>, transform_indices = @transform_0, window_bounds = array<i64: 16, 200>}, {transform_indices = @transform_1, window_bounds = array<i64: 200, 128>}, {pipeline_mode = #tpu.pipeline_mode<synchronous>, transform_indices = @transform_2, window_bounds = array<i64: 16, 1>}, {transform_indices = @transform_3, window_bounds = array<i64: 16, 128>}]} {
    %c0 = arith.constant 0 : index
    %c0_0 = arith.constant 0 : index
    %0 = vector.load %arg1[%c0, %c0_0] : memref<16x200xbf16, #tpu.memory_space<vmem>>, vector<16x200xbf16>
    %c0_1 = arith.constant 0 : index
    %c0_2 = arith.constant 0 : index
    %1 = vector.load %arg2[%c0_1, %c0_2] : memref<200x128xbf16, #tpu.memory_space<vmem>>, vector<200x128xbf16>
    %cst = arith.constant dense<0.000000e+00> : vector<16x128xf32>
    %2 = tpu.matmul %0, %1, %cst {dimension_numbers = #tpu.dot_dimension_numbers<[1], [0], [0], [1], [0, 0, 1, 1], [], []>} : vector<16x200xbf16>, vector<200x128xbf16>, vector<16x128xf32> -> vector<16x128xf32>
    %c0_3 = arith.constant 0 : index
    %c0_4 = arith.constant 0 : index
    %3 = vector.load %arg3[%c0_3, %c0_4] : memref<16x1xf32, #tpu.memory_space<vmem>>, vector<16x1xf32>
    %4 = vector.broadcast %3 : vector<16x1xf32> to vector<16x128xf32>
    %5 = arith.addf %2, %4 : vector<16x128xf32>
    %cst_5 = arith.constant 0.000000e+00 : f32
    %6 = vector.broadcast %cst_5 : f32 to vector<16x128xf32>
    %7 = arith.cmpf oge, %5, %6 : vector<16x128xf32>
    %cst_6 = arith.constant 1.000000e-01 : f32
    %8 = vector.broadcast %cst_6 : f32 to vector<16x128xf32>
    %9 = arith.mulf %8, %5 : vector<16x128xf32>
    %10 = arith.select %7, %5, %9 : vector<16x128xi1>, vector<16x128xf32>
    %c0_7 = arith.constant 0 : index
    %c0_8 = arith.constant 0 : index
    %11 = vector.load %arg4[%c0_7, %c0_8] : memref<16x128xf32, #tpu.memory_space<vmem>>, vector<16x128xf32>
    tpu.vector_store %arg4[%c0_7, %c0_8], %10 {strides = array<i32>} : memref<16x128xf32, #tpu.memory_space<vmem>>, vector<16x128xf32>,
    return
  }
  func.func @transform_0(%arg0: i32) -> (i32, i32) {
    %c0_i32 = arith.constant 0 : i32
    %c0_i32_0 = arith.constant 0 : i32
    %c0_i32_1 = arith.constant 0 : i32
    return %c0_i32, %c0_i32_0 : i32, i32
  }
  func.func @transform_1(%arg0: i32) -> (i32, i32) {
    %c0_i32 = arith.constant 0 : i32
    %c0_i32_0 = arith.constant 0 : i32
    return %c0_i32, %arg0 : i32, i32
  }
  func.func @transform_2(%arg0: i32) -> (i32, i32) {
    %c0_i32 = arith.constant 0 : i32
    %c0_i32_0 = arith.constant 0 : i32
    %c0_i32_1 = arith.constant 0 : i32
    return %c0_i32, %c0_i32_0 : i32, i32
  }
  func.func @transform_3(%arg0: i32) -> (i32, i32) {
    %c0_i32 = arith.constant 0 : i32
    %c0_i32_0 = arith.constant 0 : i32
    return %c0_i32, %arg0 : i32, i32
  }
}

module attributes {stable_mosaic.version = 11 : i64} {
  func.func @_mm_bias_act_kernel(%arg0: i32, %arg1: memref<16x400xbf16, #tpu.memory_space<vmem>>, %arg2: memref<400x128xbf16, #tpu.memory_space<vmem>>, %arg3: memref<16x1xf32, #tpu.memory_space<vmem>>, %arg4: memref<16x128xf32, #tpu.memory_space<vmem>>) attributes {dimension_semantics = [#tpu.dimension_semantics<parallel>], iteration_bounds = array<i64: 1>, scalar_prefetch = 0 : i64, scratch_operands = 0 : i64, tpu.core_type = #tpu.core_type<tc>, window_params = [{pipeline_mode = #tpu.pipeline_mode<synchronous>, transform_indices = @transform_0, window_bounds = array<i64: 16, 400>}, {transform_indices = @transform_1, window_bounds = array<i64: 400, 128>}, {pipeline_mode = #tpu.pipeline_mode<synchronous>, transform_indices = @transform_2, window_bounds = array<i64: 16, 1>}, {transform_indices = @transform_3, window_bounds = array<i64: 16, 128>}]} {
    %c0 = arith.constant 0 : index
    %c0_0 = arith.constant 0 : index
    %0 = vector.load %arg1[%c0, %c0_0] : memref<16x400xbf16, #tpu.memory_space<vmem>>, vector<16x400xbf16>
    %c0_1 = arith.constant 0 : index
    %c0_2 = arith.constant 0 : index
    %1 = vector.load %arg2[%c0_1, %c0_2] : memref<400x128xbf16, #tpu.memory_space<vmem>>, vector<400x128xbf16>
    %cst = arith.constant dense<0.000000e+00> : vector<16x128xf32>
    %2 = tpu.matmul %0, %1, %cst {dimension_numbers = #tpu.dot_dimension_numbers<[1], [0], [0], [1], [0, 0, 1, 1], [], []>} : vector<16x400xbf16>, vector<400x128xbf16>, vector<16x128xf32> -> vector<16x128xf32>
    %c0_3 = arith.constant 0 : index
    %c0_4 = arith.constant 0 : index
    %3 = vector.load %arg3[%c0_3, %c0_4] : memref<16x1xf32, #tpu.memory_space<vmem>>, vector<16x1xf32>
    %4 = vector.broadcast %3 : vector<16x1xf32> to vector<16x128xf32>
    %5 = arith.addf %2, %4 : vector<16x128xf32>
    %cst_5 = arith.constant 0.000000e+00 : f32
    %6 = vector.broadcast %cst_5 : f32 to vector<16x128xf32>
    %7 = arith.cmpf oge, %5, %6 : vector<16x128xf32>
    %cst_6 = arith.constant 1.000000e-01 : f32
    %8 = vector.broadcast %cst_6 : f32 to vector<16x128xf32>
    %9 = arith.mulf %8, %5 : vector<16x128xf32>
    %10 = arith.select %7, %5, %9 : vector<16x128xi1>, vector<16x128xf32>
    %c0_7 = arith.constant 0 : index
    %c0_8 = arith.constant 0 : index
    %11 = vector.load %arg4[%c0_7, %c0_8] : memref<16x128xf32, #tpu.memory_space<vmem>>, vector<16x128xf32>
    tpu.vector_store %arg4[%c0_7, %c0_8], %10 {strides = array<i32>} : memref<16x128xf32, #tpu.memory_space<vmem>>, vector<16x128xf32>,
    return
  }
  func.func @transform_0(%arg0: i32) -> (i32, i32) {
    %c0_i32 = arith.constant 0 : i32
    %c0_i32_0 = arith.constant 0 : i32
    %c0_i32_1 = arith.constant 0 : i32
    return %c0_i32, %c0_i32_0 : i32, i32
  }
  func.func @transform_1(%arg0: i32) -> (i32, i32) {
    %c0_i32 = arith.constant 0 : i32
    %c0_i32_0 = arith.constant 0 : i32
    return %c0_i32, %arg0 : i32, i32
  }
  func.func @transform_2(%arg0: i32) -> (i32, i32) {
    %c0_i32 = arith.constant 0 : i32
    %c0_i32_0 = arith.constant 0 : i32
    %c0_i32_1 = arith.constant 0 : i32
    return %c0_i32, %c0_i32_0 : i32, i32
  }
  func.func @transform_3(%arg0: i32) -> (i32, i32) {
    %c0_i32 = arith.constant 0 : i32
    %c0_i32_0 = arith.constant 0 : i32
    return %c0_i32, %arg0 : i32, i32
  }
}

module attributes {stable_mosaic.version = 11 : i64} {
  func.func @_mm_bias_act_kernel(%arg0: i32, %arg1: memref<32x144xbf16, #tpu.memory_space<vmem>>, %arg2: memref<144x128xbf16, #tpu.memory_space<vmem>>, %arg3: memref<32x1xf32, #tpu.memory_space<vmem>>, %arg4: memref<32x128xf32, #tpu.memory_space<vmem>>) attributes {dimension_semantics = [#tpu.dimension_semantics<parallel>], iteration_bounds = array<i64: 1>, scalar_prefetch = 0 : i64, scratch_operands = 0 : i64, tpu.core_type = #tpu.core_type<tc>, window_params = [{pipeline_mode = #tpu.pipeline_mode<synchronous>, transform_indices = @transform_0, window_bounds = array<i64: 32, 144>}, {transform_indices = @transform_1, window_bounds = array<i64: 144, 128>}, {pipeline_mode = #tpu.pipeline_mode<synchronous>, transform_indices = @transform_2, window_bounds = array<i64: 32, 1>}, {transform_indices = @transform_3, window_bounds = array<i64: 32, 128>}]} {
    %c0 = arith.constant 0 : index
    %c0_0 = arith.constant 0 : index
    %0 = vector.load %arg1[%c0, %c0_0] : memref<32x144xbf16, #tpu.memory_space<vmem>>, vector<32x144xbf16>
    %c0_1 = arith.constant 0 : index
    %c0_2 = arith.constant 0 : index
    %1 = vector.load %arg2[%c0_1, %c0_2] : memref<144x128xbf16, #tpu.memory_space<vmem>>, vector<144x128xbf16>
    %cst = arith.constant dense<0.000000e+00> : vector<32x128xf32>
    %2 = tpu.matmul %0, %1, %cst {dimension_numbers = #tpu.dot_dimension_numbers<[1], [0], [0], [1], [0, 0, 1, 1], [], []>} : vector<32x144xbf16>, vector<144x128xbf16>, vector<32x128xf32> -> vector<32x128xf32>
    %c0_3 = arith.constant 0 : index
    %c0_4 = arith.constant 0 : index
    %3 = vector.load %arg3[%c0_3, %c0_4] : memref<32x1xf32, #tpu.memory_space<vmem>>, vector<32x1xf32>
    %4 = vector.broadcast %3 : vector<32x1xf32> to vector<32x128xf32>
    %5 = arith.addf %2, %4 : vector<32x128xf32>
    %cst_5 = arith.constant 0.000000e+00 : f32
    %6 = vector.broadcast %cst_5 : f32 to vector<32x128xf32>
    %7 = arith.cmpf oge, %5, %6 : vector<32x128xf32>
    %cst_6 = arith.constant 1.000000e-01 : f32
    %8 = vector.broadcast %cst_6 : f32 to vector<32x128xf32>
    %9 = arith.mulf %8, %5 : vector<32x128xf32>
    %10 = arith.select %7, %5, %9 : vector<32x128xi1>, vector<32x128xf32>
    %c0_7 = arith.constant 0 : index
    %c0_8 = arith.constant 0 : index
    %11 = vector.load %arg4[%c0_7, %c0_8] : memref<32x128xf32, #tpu.memory_space<vmem>>, vector<32x128xf32>
    tpu.vector_store %arg4[%c0_7, %c0_8], %10 {strides = array<i32>} : memref<32x128xf32, #tpu.memory_space<vmem>>, vector<32x128xf32>,
    return
  }
  func.func @transform_0(%arg0: i32) -> (i32, i32) {
    %c0_i32 = arith.constant 0 : i32
    %c0_i32_0 = arith.constant 0 : i32
    %c0_i32_1 = arith.constant 0 : i32
    return %c0_i32, %c0_i32_0 : i32, i32
  }
  func.func @transform_1(%arg0: i32) -> (i32, i32) {
    %c0_i32 = arith.constant 0 : i32
    %c0_i32_0 = arith.constant 0 : i32
    return %c0_i32, %arg0 : i32, i32
  }
  func.func @transform_2(%arg0: i32) -> (i32, i32) {
    %c0_i32 = arith.constant 0 : i32
    %c0_i32_0 = arith.constant 0 : i32
    %c0_i32_1 = arith.constant 0 : i32
    return %c0_i32, %c0_i32_0 : i32, i32
  }
  func.func @transform_3(%arg0: i32) -> (i32, i32) {
    %c0_i32 = arith.constant 0 : i32
    %c0_i32_0 = arith.constant 0 : i32
    return %c0_i32, %arg0 : i32, i32
  }
}

module attributes {stable_mosaic.version = 11 : i64} {
  func.func @_mm_bias_act_kernel(%arg0: i32, %arg1: memref<32x288xbf16, #tpu.memory_space<vmem>>, %arg2: memref<288x128xbf16, #tpu.memory_space<vmem>>, %arg3: memref<32x1xf32, #tpu.memory_space<vmem>>, %arg4: memref<32x128xf32, #tpu.memory_space<vmem>>) attributes {dimension_semantics = [#tpu.dimension_semantics<parallel>], iteration_bounds = array<i64: 1>, scalar_prefetch = 0 : i64, scratch_operands = 0 : i64, tpu.core_type = #tpu.core_type<tc>, window_params = [{pipeline_mode = #tpu.pipeline_mode<synchronous>, transform_indices = @transform_0, window_bounds = array<i64: 32, 288>}, {transform_indices = @transform_1, window_bounds = array<i64: 288, 128>}, {pipeline_mode = #tpu.pipeline_mode<synchronous>, transform_indices = @transform_2, window_bounds = array<i64: 32, 1>}, {transform_indices = @transform_3, window_bounds = array<i64: 32, 128>}]} {
    %c0 = arith.constant 0 : index
    %c0_0 = arith.constant 0 : index
    %0 = vector.load %arg1[%c0, %c0_0] : memref<32x288xbf16, #tpu.memory_space<vmem>>, vector<32x288xbf16>
    %c0_1 = arith.constant 0 : index
    %c0_2 = arith.constant 0 : index
    %1 = vector.load %arg2[%c0_1, %c0_2] : memref<288x128xbf16, #tpu.memory_space<vmem>>, vector<288x128xbf16>
    %cst = arith.constant dense<0.000000e+00> : vector<32x128xf32>
    %2 = tpu.matmul %0, %1, %cst {dimension_numbers = #tpu.dot_dimension_numbers<[1], [0], [0], [1], [0, 0, 1, 1], [], []>} : vector<32x288xbf16>, vector<288x128xbf16>, vector<32x128xf32> -> vector<32x128xf32>
    %c0_3 = arith.constant 0 : index
    %c0_4 = arith.constant 0 : index
    %3 = vector.load %arg3[%c0_3, %c0_4] : memref<32x1xf32, #tpu.memory_space<vmem>>, vector<32x1xf32>
    %4 = vector.broadcast %3 : vector<32x1xf32> to vector<32x128xf32>
    %5 = arith.addf %2, %4 : vector<32x128xf32>
    %cst_5 = arith.constant 0.000000e+00 : f32
    %6 = vector.broadcast %cst_5 : f32 to vector<32x128xf32>
    %7 = arith.cmpf oge, %5, %6 : vector<32x128xf32>
    %cst_6 = arith.constant 1.000000e-01 : f32
    %8 = vector.broadcast %cst_6 : f32 to vector<32x128xf32>
    %9 = arith.mulf %8, %5 : vector<32x128xf32>
    %10 = arith.select %7, %5, %9 : vector<32x128xi1>, vector<32x128xf32>
    %c0_7 = arith.constant 0 : index
    %c0_8 = arith.constant 0 : index
    %11 = vector.load %arg4[%c0_7, %c0_8] : memref<32x128xf32, #tpu.memory_space<vmem>>, vector<32x128xf32>
    tpu.vector_store %arg4[%c0_7, %c0_8], %10 {strides = array<i32>} : memref<32x128xf32, #tpu.memory_space<vmem>>, vector<32x128xf32>,
    return
  }
  func.func @transform_0(%arg0: i32) -> (i32, i32) {
    %c0_i32 = arith.constant 0 : i32
    %c0_i32_0 = arith.constant 0 : i32
    %c0_i32_1 = arith.constant 0 : i32
    return %c0_i32, %c0_i32_0 : i32, i32
  }
  func.func @transform_1(%arg0: i32) -> (i32, i32) {
    %c0_i32 = arith.constant 0 : i32
    %c0_i32_0 = arith.constant 0 : i32
    return %c0_i32, %arg0 : i32, i32
  }
  func.func @transform_2(%arg0: i32) -> (i32, i32) {
    %c0_i32 = arith.constant 0 : i32
    %c0_i32_0 = arith.constant 0 : i32
    %c0_i32_1 = arith.constant 0 : i32
    return %c0_i32, %c0_i32_0 : i32, i32
  }
  func.func @transform_3(%arg0: i32) -> (i32, i32) {
    %c0_i32 = arith.constant 0 : i32
    %c0_i32_0 = arith.constant 0 : i32
    return %c0_i32, %arg0 : i32, i32
  }
}

module attributes {stable_mosaic.version = 11 : i64} {
  func.func @_mm_bias_act_kernel(%arg0: i32, %arg1: memref<16x288xbf16, #tpu.memory_space<vmem>>, %arg2: memref<288x128xbf16, #tpu.memory_space<vmem>>, %arg3: memref<16x1xf32, #tpu.memory_space<vmem>>, %arg4: memref<16x128xf32, #tpu.memory_space<vmem>>) attributes {dimension_semantics = [#tpu.dimension_semantics<parallel>], iteration_bounds = array<i64: 1>, scalar_prefetch = 0 : i64, scratch_operands = 0 : i64, tpu.core_type = #tpu.core_type<tc>, window_params = [{pipeline_mode = #tpu.pipeline_mode<synchronous>, transform_indices = @transform_0, window_bounds = array<i64: 16, 288>}, {transform_indices = @transform_1, window_bounds = array<i64: 288, 128>}, {pipeline_mode = #tpu.pipeline_mode<synchronous>, transform_indices = @transform_2, window_bounds = array<i64: 16, 1>}, {transform_indices = @transform_3, window_bounds = array<i64: 16, 128>}]} {
    %c0 = arith.constant 0 : index
    %c0_0 = arith.constant 0 : index
    %0 = vector.load %arg1[%c0, %c0_0] : memref<16x288xbf16, #tpu.memory_space<vmem>>, vector<16x288xbf16>
    %c0_1 = arith.constant 0 : index
    %c0_2 = arith.constant 0 : index
    %1 = vector.load %arg2[%c0_1, %c0_2] : memref<288x128xbf16, #tpu.memory_space<vmem>>, vector<288x128xbf16>
    %cst = arith.constant dense<0.000000e+00> : vector<16x128xf32>
    %2 = tpu.matmul %0, %1, %cst {dimension_numbers = #tpu.dot_dimension_numbers<[1], [0], [0], [1], [0, 0, 1, 1], [], []>} : vector<16x288xbf16>, vector<288x128xbf16>, vector<16x128xf32> -> vector<16x128xf32>
    %c0_3 = arith.constant 0 : index
    %c0_4 = arith.constant 0 : index
    %3 = vector.load %arg3[%c0_3, %c0_4] : memref<16x1xf32, #tpu.memory_space<vmem>>, vector<16x1xf32>
    %4 = vector.broadcast %3 : vector<16x1xf32> to vector<16x128xf32>
    %5 = arith.addf %2, %4 : vector<16x128xf32>
    %cst_5 = arith.constant 0.000000e+00 : f32
    %6 = vector.broadcast %cst_5 : f32 to vector<16x128xf32>
    %7 = arith.cmpf oge, %5, %6 : vector<16x128xf32>
    %cst_6 = arith.constant 1.000000e-01 : f32
    %8 = vector.broadcast %cst_6 : f32 to vector<16x128xf32>
    %9 = arith.mulf %8, %5 : vector<16x128xf32>
    %10 = arith.select %7, %5, %9 : vector<16x128xi1>, vector<16x128xf32>
    %c0_7 = arith.constant 0 : index
    %c0_8 = arith.constant 0 : index
    %11 = vector.load %arg4[%c0_7, %c0_8] : memref<16x128xf32, #tpu.memory_space<vmem>>, vector<16x128xf32>
    tpu.vector_store %arg4[%c0_7, %c0_8], %10 {strides = array<i32>} : memref<16x128xf32, #tpu.memory_space<vmem>>, vector<16x128xf32>,
    return
  }
  func.func @transform_0(%arg0: i32) -> (i32, i32) {
    %c0_i32 = arith.constant 0 : i32
    %c0_i32_0 = arith.constant 0 : i32
    %c0_i32_1 = arith.constant 0 : i32
    return %c0_i32, %c0_i32_0 : i32, i32
  }
  func.func @transform_1(%arg0: i32) -> (i32, i32) {
    %c0_i32 = arith.constant 0 : i32
    %c0_i32_0 = arith.constant 0 : i32
    return %c0_i32, %arg0 : i32, i32
  }
  func.func @transform_2(%arg0: i32) -> (i32, i32) {
    %c0_i32 = arith.constant 0 : i32
    %c0_i32_0 = arith.constant 0 : i32
    %c0_i32_1 = arith.constant 0 : i32
    return %c0_i32, %c0_i32_0 : i32, i32
  }
  func.func @transform_3(%arg0: i32) -> (i32, i32) {
    %c0_i32 = arith.constant 0 : i32
    %c0_i32_0 = arith.constant 0 : i32
    return %c0_i32, %arg0 : i32, i32
  }
}

module attributes {stable_mosaic.version = 11 : i64} {
  func.func @_mm_bias_act_kernel(%arg0: i32, %arg1: memref<8x144xbf16, #tpu.memory_space<vmem>>, %arg2: memref<144x256xbf16, #tpu.memory_space<vmem>>, %arg3: memref<8x1xf32, #tpu.memory_space<vmem>>, %arg4: memref<8x256xf32, #tpu.memory_space<vmem>>) attributes {dimension_semantics = [#tpu.dimension_semantics<parallel>], iteration_bounds = array<i64: 2>, scalar_prefetch = 0 : i64, scratch_operands = 0 : i64, tpu.core_type = #tpu.core_type<tc>, window_params = [{pipeline_mode = #tpu.pipeline_mode<synchronous>, transform_indices = @transform_0, window_bounds = array<i64: 8, 144>}, {transform_indices = @transform_1, window_bounds = array<i64: 144, 256>}, {pipeline_mode = #tpu.pipeline_mode<synchronous>, transform_indices = @transform_2, window_bounds = array<i64: 8, 1>}, {transform_indices = @transform_3, window_bounds = array<i64: 8, 256>}]} {
    %c0 = arith.constant 0 : index
    %c0_0 = arith.constant 0 : index
    %0 = vector.load %arg1[%c0, %c0_0] : memref<8x144xbf16, #tpu.memory_space<vmem>>, vector<8x144xbf16>
    %c0_1 = arith.constant 0 : index
    %c0_2 = arith.constant 0 : index
    %1 = vector.load %arg2[%c0_1, %c0_2] : memref<144x256xbf16, #tpu.memory_space<vmem>>, vector<144x256xbf16>
    %cst = arith.constant dense<0.000000e+00> : vector<8x256xf32>
    %2 = tpu.matmul %0, %1, %cst {dimension_numbers = #tpu.dot_dimension_numbers<[1], [0], [0], [1], [0, 0, 1, 1], [], []>} : vector<8x144xbf16>, vector<144x256xbf16>, vector<8x256xf32> -> vector<8x256xf32>
    %c0_3 = arith.constant 0 : index
    %c0_4 = arith.constant 0 : index
    %3 = vector.load %arg3[%c0_3, %c0_4] : memref<8x1xf32, #tpu.memory_space<vmem>>, vector<8x1xf32>
    %4 = vector.broadcast %3 : vector<8x1xf32> to vector<8x256xf32>
    %5 = arith.addf %2, %4 : vector<8x256xf32>
    %cst_5 = arith.constant 0.000000e+00 : f32
    %6 = vector.broadcast %cst_5 : f32 to vector<8x256xf32>
    %7 = arith.cmpf oge, %5, %6 : vector<8x256xf32>
    %cst_6 = arith.constant 1.000000e-01 : f32
    %8 = vector.broadcast %cst_6 : f32 to vector<8x256xf32>
    %9 = arith.mulf %8, %5 : vector<8x256xf32>
    %10 = arith.select %7, %5, %9 : vector<8x256xi1>, vector<8x256xf32>
    %c0_7 = arith.constant 0 : index
    %c0_8 = arith.constant 0 : index
    %11 = vector.load %arg4[%c0_7, %c0_8] : memref<8x256xf32, #tpu.memory_space<vmem>>, vector<8x256xf32>
    tpu.vector_store %arg4[%c0_7, %c0_8], %10 {strides = array<i32>} : memref<8x256xf32, #tpu.memory_space<vmem>>, vector<8x256xf32>,
    return
  }
  func.func @transform_0(%arg0: i32) -> (i32, i32) {
    %c0_i32 = arith.constant 0 : i32
    %c0_i32_0 = arith.constant 0 : i32
    %c0_i32_1 = arith.constant 0 : i32
    return %c0_i32, %c0_i32_0 : i32, i32
  }
  func.func @transform_1(%arg0: i32) -> (i32, i32) {
    %c0_i32 = arith.constant 0 : i32
    %c0_i32_0 = arith.constant 0 : i32
    return %c0_i32, %arg0 : i32, i32
  }
  func.func @transform_2(%arg0: i32) -> (i32, i32) {
    %c0_i32 = arith.constant 0 : i32
    %c0_i32_0 = arith.constant 0 : i32
    %c0_i32_1 = arith.constant 0 : i32
    return %c0_i32, %c0_i32_0 : i32, i32
  }
  func.func @transform_3(%arg0: i32) -> (i32, i32) {
    %c0_i32 = arith.constant 0 : i32
    %c0_i32_0 = arith.constant 0 : i32
    return %c0_i32, %arg0 : i32, i32
  }
}

module attributes {stable_mosaic.version = 11 : i64} {
  func.func @_mm_bias_act_kernel(%arg0: i32, %arg1: memref<4x72xbf16, #tpu.memory_space<vmem>>, %arg2: memref<72x256xbf16, #tpu.memory_space<vmem>>, %arg3: memref<4x1xf32, #tpu.memory_space<vmem>>, %arg4: memref<4x256xf32, #tpu.memory_space<vmem>>) attributes {dimension_semantics = [#tpu.dimension_semantics<parallel>], iteration_bounds = array<i64: 2>, scalar_prefetch = 0 : i64, scratch_operands = 0 : i64, tpu.core_type = #tpu.core_type<tc>, window_params = [{pipeline_mode = #tpu.pipeline_mode<synchronous>, transform_indices = @transform_0, window_bounds = array<i64: 4, 72>}, {transform_indices = @transform_1, window_bounds = array<i64: 72, 256>}, {pipeline_mode = #tpu.pipeline_mode<synchronous>, transform_indices = @transform_2, window_bounds = array<i64: 4, 1>}, {transform_indices = @transform_3, window_bounds = array<i64: 4, 256>}]} {
    %c0 = arith.constant 0 : index
    %c0_0 = arith.constant 0 : index
    %0 = vector.load %arg1[%c0, %c0_0] : memref<4x72xbf16, #tpu.memory_space<vmem>>, vector<4x72xbf16>
    %c0_1 = arith.constant 0 : index
    %c0_2 = arith.constant 0 : index
    %1 = vector.load %arg2[%c0_1, %c0_2] : memref<72x256xbf16, #tpu.memory_space<vmem>>, vector<72x256xbf16>
    %cst = arith.constant dense<0.000000e+00> : vector<4x256xf32>
    %2 = tpu.matmul %0, %1, %cst {dimension_numbers = #tpu.dot_dimension_numbers<[1], [0], [0], [1], [0, 0, 1, 1], [], []>} : vector<4x72xbf16>, vector<72x256xbf16>, vector<4x256xf32> -> vector<4x256xf32>
    %c0_3 = arith.constant 0 : index
    %c0_4 = arith.constant 0 : index
    %3 = vector.load %arg3[%c0_3, %c0_4] : memref<4x1xf32, #tpu.memory_space<vmem>>, vector<4x1xf32>
    %4 = vector.broadcast %3 : vector<4x1xf32> to vector<4x256xf32>
    %5 = arith.addf %2, %4 : vector<4x256xf32>
    %cst_5 = arith.constant 0.000000e+00 : f32
    %6 = vector.broadcast %cst_5 : f32 to vector<4x256xf32>
    %7 = arith.cmpf oge, %5, %6 : vector<4x256xf32>
    %cst_6 = arith.constant 1.000000e-01 : f32
    %8 = vector.broadcast %cst_6 : f32 to vector<4x256xf32>
    %9 = arith.mulf %8, %5 : vector<4x256xf32>
    %10 = arith.select %7, %5, %9 : vector<4x256xi1>, vector<4x256xf32>
    %c0_7 = arith.constant 0 : index
    %c0_8 = arith.constant 0 : index
    %11 = vector.load %arg4[%c0_7, %c0_8] : memref<4x256xf32, #tpu.memory_space<vmem>>, vector<4x256xf32>
    tpu.vector_store %arg4[%c0_7, %c0_8], %10 {strides = array<i32>} : memref<4x256xf32, #tpu.memory_space<vmem>>, vector<4x256xf32>,
    return
  }
  func.func @transform_0(%arg0: i32) -> (i32, i32) {
    %c0_i32 = arith.constant 0 : i32
    %c0_i32_0 = arith.constant 0 : i32
    %c0_i32_1 = arith.constant 0 : i32
    return %c0_i32, %c0_i32_0 : i32, i32
  }
  func.func @transform_1(%arg0: i32) -> (i32, i32) {
    %c0_i32 = arith.constant 0 : i32
    %c0_i32_0 = arith.constant 0 : i32
    return %c0_i32, %arg0 : i32, i32
  }
  func.func @transform_2(%arg0: i32) -> (i32, i32) {
    %c0_i32 = arith.constant 0 : i32
    %c0_i32_0 = arith.constant 0 : i32
    %c0_i32_1 = arith.constant 0 : i32
    return %c0_i32, %c0_i32_0 : i32, i32
  }
  func.func @transform_3(%arg0: i32) -> (i32, i32) {
    %c0_i32 = arith.constant 0 : i32
    %c0_i32_0 = arith.constant 0 : i32
    return %c0_i32, %arg0 : i32, i32
  }
}

module attributes {stable_mosaic.version = 11 : i64} {
  func.func @_flow_comb_kernel(%arg0: i32, %arg1: memref<4xf32, #tpu.memory_space<smem>>, %arg2: memref<2x512xf32, #tpu.memory_space<vmem>>, %arg3: memref<2x512xf32, #tpu.memory_space<vmem>>, %arg4: memref<2x512xf32, #tpu.memory_space<vmem>>, %arg5: memref<2x512xf32, #tpu.memory_space<vmem>>) attributes {dimension_semantics = [#tpu.dimension_semantics<parallel>], iteration_bounds = array<i64: 1>, scalar_prefetch = 0 : i64, scratch_operands = 0 : i64, tpu.core_type = #tpu.core_type<tc>, window_params = [{transform_indices = @transform_0, window_bounds = array<i64: 4>}, {transform_indices = @transform_1, window_bounds = array<i64: 2, 512>}, {transform_indices = @transform_2, window_bounds = array<i64: 2, 512>}, {transform_indices = @transform_3, window_bounds = array<i64: 2, 512>}, {transform_indices = @transform_4, window_bounds = array<i64: 2, 512>}]} {
    %c0 = arith.constant 0 : index
    %c0_0 = arith.constant 0 : index
    %0 = vector.load %arg2[%c0, %c0_0] : memref<2x512xf32, #tpu.memory_space<vmem>>, vector<2x512xf32>
    %c0_1 = arith.constant 0 : index
    %c0_2 = arith.constant 0 : index
    %1 = vector.load %arg3[%c0_1, %c0_2] : memref<2x512xf32, #tpu.memory_space<vmem>>, vector<2x512xf32>
    %c0_3 = arith.constant 0 : index
    %2 = memref.load %arg1[%c0_3] : memref<4xf32, #tpu.memory_space<smem>>
    %3 = vector.broadcast %2 : f32 to vector<2x512xf32>
    %4 = arith.mulf %3, %0 : vector<2x512xf32>
    %c1 = arith.constant 1 : index
    %5 = memref.load %arg1[%c1] : memref<4xf32, #tpu.memory_space<smem>>
    %6 = vector.broadcast %5 : f32 to vector<2x512xf32>
    %7 = arith.mulf %6, %1 : vector<2x512xf32>
    %8 = arith.addf %4, %7 : vector<2x512xf32>
    %c0_4 = arith.constant 0 : index
    %c0_5 = arith.constant 0 : index
    %9 = vector.load %arg4[%c0_4, %c0_5] : memref<2x512xf32, #tpu.memory_space<vmem>>, vector<2x512xf32>
    tpu.vector_store %arg4[%c0_4, %c0_5], %8 {strides = array<i32>} : memref<2x512xf32, #tpu.memory_space<vmem>>, vector<2x512xf32>,
    %c2 = arith.constant 2 : index
    %10 = memref.load %arg1[%c2] : memref<4xf32, #tpu.memory_space<smem>>
    %11 = vector.broadcast %10 : f32 to vector<2x512xf32>
    %12 = arith.mulf %11, %0 : vector<2x512xf32>
    %c3 = arith.constant 3 : index
    %13 = memref.load %arg1[%c3] : memref<4xf32, #tpu.memory_space<smem>>
    %14 = vector.broadcast %13 : f32 to vector<2x512xf32>
    %15 = arith.mulf %14, %1 : vector<2x512xf32>
    %16 = arith.addf %12, %15 : vector<2x512xf32>
    %c0_6 = arith.constant 0 : index
    %c0_7 = arith.constant 0 : index
    %17 = vector.load %arg5[%c0_6, %c0_7] : memref<2x512xf32, #tpu.memory_space<vmem>>, vector<2x512xf32>
    tpu.vector_store %arg5[%c0_6, %c0_7], %16 {strides = array<i32>} : memref<2x512xf32, #tpu.memory_space<vmem>>, vector<2x512xf32>,
    return
  }
  func.func @transform_0(%arg0: i32) -> i32 {
    %c0_i32 = arith.constant 0 : i32
    %c0_i32_0 = arith.constant 0 : i32
    return %c0_i32 : i32
  }
  func.func @transform_1(%arg0: i32) -> (i32, i32) {
    %c0_i32 = arith.constant 0 : i32
    %c0_i32_0 = arith.constant 0 : i32
    return %c0_i32, %arg0 : i32, i32
  }
  func.func @transform_2(%arg0: i32) -> (i32, i32) {
    %c0_i32 = arith.constant 0 : i32
    %c0_i32_0 = arith.constant 0 : i32
    return %c0_i32, %arg0 : i32, i32
  }
  func.func @transform_3(%arg0: i32) -> (i32, i32) {
    %c0_i32 = arith.constant 0 : i32
    %c0_i32_0 = arith.constant 0 : i32
    return %c0_i32, %arg0 : i32, i32
  }
  func.func @transform_4(%arg0: i32) -> (i32, i32) {
    %c0_i32 = arith.constant 0 : i32
    %c0_i32_0 = arith.constant 0 : i32
    return %c0_i32, %arg0 : i32, i32
  }
}

module attributes {stable_mosaic.version = 11 : i64} {
  func.func @_mm_bias_act_kernel(%arg0: i32, %arg1: memref<8x980xbf16, #tpu.memory_space<vmem>>, %arg2: memref<980x256xbf16, #tpu.memory_space<vmem>>, %arg3: memref<8x1xf32, #tpu.memory_space<vmem>>, %arg4: memref<8x256xf32, #tpu.memory_space<vmem>>) attributes {dimension_semantics = [#tpu.dimension_semantics<parallel>], iteration_bounds = array<i64: 2>, scalar_prefetch = 0 : i64, scratch_operands = 0 : i64, tpu.core_type = #tpu.core_type<tc>, window_params = [{pipeline_mode = #tpu.pipeline_mode<synchronous>, transform_indices = @transform_0, window_bounds = array<i64: 8, 980>}, {transform_indices = @transform_1, window_bounds = array<i64: 980, 256>}, {pipeline_mode = #tpu.pipeline_mode<synchronous>, transform_indices = @transform_2, window_bounds = array<i64: 8, 1>}, {transform_indices = @transform_3, window_bounds = array<i64: 8, 256>}]} {
    %c0 = arith.constant 0 : index
    %c0_0 = arith.constant 0 : index
    %0 = vector.load %arg1[%c0, %c0_0] : memref<8x980xbf16, #tpu.memory_space<vmem>>, vector<8x980xbf16>
    %c0_1 = arith.constant 0 : index
    %c0_2 = arith.constant 0 : index
    %1 = vector.load %arg2[%c0_1, %c0_2] : memref<980x256xbf16, #tpu.memory_space<vmem>>, vector<980x256xbf16>
    %cst = arith.constant dense<0.000000e+00> : vector<8x256xf32>
    %2 = tpu.matmul %0, %1, %cst {dimension_numbers = #tpu.dot_dimension_numbers<[1], [0], [0], [1], [0, 0, 1, 1], [], []>} : vector<8x980xbf16>, vector<980x256xbf16>, vector<8x256xf32> -> vector<8x256xf32>
    %c0_3 = arith.constant 0 : index
    %c0_4 = arith.constant 0 : index
    %3 = vector.load %arg3[%c0_3, %c0_4] : memref<8x1xf32, #tpu.memory_space<vmem>>, vector<8x1xf32>
    %4 = vector.broadcast %3 : vector<8x1xf32> to vector<8x256xf32>
    %5 = arith.addf %2, %4 : vector<8x256xf32>
    %cst_5 = arith.constant 0.000000e+00 : f32
    %6 = vector.broadcast %cst_5 : f32 to vector<8x256xf32>
    %7 = arith.cmpf oge, %5, %6 : vector<8x256xf32>
    %cst_6 = arith.constant 1.000000e-01 : f32
    %8 = vector.broadcast %cst_6 : f32 to vector<8x256xf32>
    %9 = arith.mulf %8, %5 : vector<8x256xf32>
    %10 = arith.select %7, %5, %9 : vector<8x256xi1>, vector<8x256xf32>
    %c0_7 = arith.constant 0 : index
    %c0_8 = arith.constant 0 : index
    %11 = vector.load %arg4[%c0_7, %c0_8] : memref<8x256xf32, #tpu.memory_space<vmem>>, vector<8x256xf32>
    tpu.vector_store %arg4[%c0_7, %c0_8], %10 {strides = array<i32>} : memref<8x256xf32, #tpu.memory_space<vmem>>, vector<8x256xf32>,
    return
  }
  func.func @transform_0(%arg0: i32) -> (i32, i32) {
    %c0_i32 = arith.constant 0 : i32
    %c0_i32_0 = arith.constant 0 : i32
    %c0_i32_1 = arith.constant 0 : i32
    return %c0_i32, %c0_i32_0 : i32, i32
  }
  func.func @transform_1(%arg0: i32) -> (i32, i32) {
    %c0_i32 = arith.constant 0 : i32
    %c0_i32_0 = arith.constant 0 : i32
    return %c0_i32, %arg0 : i32, i32
  }
  func.func @transform_2(%arg0: i32) -> (i32, i32) {
    %c0_i32 = arith.constant 0 : i32
    %c0_i32_0 = arith.constant 0 : i32
    %c0_i32_1 = arith.constant 0 : i32
    return %c0_i32, %c0_i32_0 : i32, i32
  }
  func.func @transform_3(%arg0: i32) -> (i32, i32) {
    %c0_i32 = arith.constant 0 : i32
    %c0_i32_0 = arith.constant 0 : i32
    return %c0_i32, %arg0 : i32, i32
  }
}

module attributes {stable_mosaic.version = 11 : i64} {
  func.func @_mm_bias_act_kernel(%arg0: i32, %arg1: memref<8x392xbf16, #tpu.memory_space<vmem>>, %arg2: memref<392x256xbf16, #tpu.memory_space<vmem>>, %arg3: memref<8x1xf32, #tpu.memory_space<vmem>>, %arg4: memref<8x256xf32, #tpu.memory_space<vmem>>) attributes {dimension_semantics = [#tpu.dimension_semantics<parallel>], iteration_bounds = array<i64: 2>, scalar_prefetch = 0 : i64, scratch_operands = 0 : i64, tpu.core_type = #tpu.core_type<tc>, window_params = [{pipeline_mode = #tpu.pipeline_mode<synchronous>, transform_indices = @transform_0, window_bounds = array<i64: 8, 392>}, {transform_indices = @transform_1, window_bounds = array<i64: 392, 256>}, {pipeline_mode = #tpu.pipeline_mode<synchronous>, transform_indices = @transform_2, window_bounds = array<i64: 8, 1>}, {transform_indices = @transform_3, window_bounds = array<i64: 8, 256>}]} {
    %c0 = arith.constant 0 : index
    %c0_0 = arith.constant 0 : index
    %0 = vector.load %arg1[%c0, %c0_0] : memref<8x392xbf16, #tpu.memory_space<vmem>>, vector<8x392xbf16>
    %c0_1 = arith.constant 0 : index
    %c0_2 = arith.constant 0 : index
    %1 = vector.load %arg2[%c0_1, %c0_2] : memref<392x256xbf16, #tpu.memory_space<vmem>>, vector<392x256xbf16>
    %cst = arith.constant dense<0.000000e+00> : vector<8x256xf32>
    %2 = tpu.matmul %0, %1, %cst {dimension_numbers = #tpu.dot_dimension_numbers<[1], [0], [0], [1], [0, 0, 1, 1], [], []>} : vector<8x392xbf16>, vector<392x256xbf16>, vector<8x256xf32> -> vector<8x256xf32>
    %c0_3 = arith.constant 0 : index
    %c0_4 = arith.constant 0 : index
    %3 = vector.load %arg3[%c0_3, %c0_4] : memref<8x1xf32, #tpu.memory_space<vmem>>, vector<8x1xf32>
    %4 = vector.broadcast %3 : vector<8x1xf32> to vector<8x256xf32>
    %5 = arith.addf %2, %4 : vector<8x256xf32>
    %cst_5 = arith.constant 0.000000e+00 : f32
    %6 = vector.broadcast %cst_5 : f32 to vector<8x256xf32>
    %7 = arith.cmpf oge, %5, %6 : vector<8x256xf32>
    %cst_6 = arith.constant 1.000000e-01 : f32
    %8 = vector.broadcast %cst_6 : f32 to vector<8x256xf32>
    %9 = arith.mulf %8, %5 : vector<8x256xf32>
    %10 = arith.select %7, %5, %9 : vector<8x256xi1>, vector<8x256xf32>
    %c0_7 = arith.constant 0 : index
    %c0_8 = arith.constant 0 : index
    %11 = vector.load %arg4[%c0_7, %c0_8] : memref<8x256xf32, #tpu.memory_space<vmem>>, vector<8x256xf32>
    tpu.vector_store %arg4[%c0_7, %c0_8], %10 {strides = array<i32>} : memref<8x256xf32, #tpu.memory_space<vmem>>, vector<8x256xf32>,
    return
  }
  func.func @transform_0(%arg0: i32) -> (i32, i32) {
    %c0_i32 = arith.constant 0 : i32
    %c0_i32_0 = arith.constant 0 : i32
    %c0_i32_1 = arith.constant 0 : i32
    return %c0_i32, %c0_i32_0 : i32, i32
  }
  func.func @transform_1(%arg0: i32) -> (i32, i32) {
    %c0_i32 = arith.constant 0 : i32
    %c0_i32_0 = arith.constant 0 : i32
    return %c0_i32, %arg0 : i32, i32
  }
  func.func @transform_2(%arg0: i32) -> (i32, i32) {
    %c0_i32 = arith.constant 0 : i32
    %c0_i32_0 = arith.constant 0 : i32
    %c0_i32_1 = arith.constant 0 : i32
    return %c0_i32, %c0_i32_0 : i32, i32
  }
  func.func @transform_3(%arg0: i32) -> (i32, i32) {
    %c0_i32 = arith.constant 0 : i32
    %c0_i32_0 = arith.constant 0 : i32
    return %c0_i32, %arg0 : i32, i32
  }
}

module attributes {stable_mosaic.version = 11 : i64} {
  func.func @_mm_bias_act_kernel(%arg0: i32, %arg1: memref<16x200xbf16, #tpu.memory_space<vmem>>, %arg2: memref<200x128xbf16, #tpu.memory_space<vmem>>, %arg3: memref<16x1xf32, #tpu.memory_space<vmem>>, %arg4: memref<16x128xf32, #tpu.memory_space<vmem>>) attributes {dimension_semantics = [#tpu.dimension_semantics<parallel>], iteration_bounds = array<i64: 1>, scalar_prefetch = 0 : i64, scratch_operands = 0 : i64, tpu.core_type = #tpu.core_type<tc>, window_params = [{pipeline_mode = #tpu.pipeline_mode<synchronous>, transform_indices = @transform_0, window_bounds = array<i64: 16, 200>}, {transform_indices = @transform_1, window_bounds = array<i64: 200, 128>}, {pipeline_mode = #tpu.pipeline_mode<synchronous>, transform_indices = @transform_2, window_bounds = array<i64: 16, 1>}, {transform_indices = @transform_3, window_bounds = array<i64: 16, 128>}]} {
    %c0 = arith.constant 0 : index
    %c0_0 = arith.constant 0 : index
    %0 = vector.load %arg1[%c0, %c0_0] : memref<16x200xbf16, #tpu.memory_space<vmem>>, vector<16x200xbf16>
    %c0_1 = arith.constant 0 : index
    %c0_2 = arith.constant 0 : index
    %1 = vector.load %arg2[%c0_1, %c0_2] : memref<200x128xbf16, #tpu.memory_space<vmem>>, vector<200x128xbf16>
    %cst = arith.constant dense<0.000000e+00> : vector<16x128xf32>
    %2 = tpu.matmul %0, %1, %cst {dimension_numbers = #tpu.dot_dimension_numbers<[1], [0], [0], [1], [0, 0, 1, 1], [], []>} : vector<16x200xbf16>, vector<200x128xbf16>, vector<16x128xf32> -> vector<16x128xf32>
    %c0_3 = arith.constant 0 : index
    %c0_4 = arith.constant 0 : index
    %3 = vector.load %arg3[%c0_3, %c0_4] : memref<16x1xf32, #tpu.memory_space<vmem>>, vector<16x1xf32>
    %4 = vector.broadcast %3 : vector<16x1xf32> to vector<16x128xf32>
    %5 = arith.addf %2, %4 : vector<16x128xf32>
    %cst_5 = arith.constant 0.000000e+00 : f32
    %6 = vector.broadcast %cst_5 : f32 to vector<16x128xf32>
    %7 = arith.cmpf oge, %5, %6 : vector<16x128xf32>
    %cst_6 = arith.constant 1.000000e-01 : f32
    %8 = vector.broadcast %cst_6 : f32 to vector<16x128xf32>
    %9 = arith.mulf %8, %5 : vector<16x128xf32>
    %10 = arith.select %7, %5, %9 : vector<16x128xi1>, vector<16x128xf32>
    %c0_7 = arith.constant 0 : index
    %c0_8 = arith.constant 0 : index
    %11 = vector.load %arg4[%c0_7, %c0_8] : memref<16x128xf32, #tpu.memory_space<vmem>>, vector<16x128xf32>
    tpu.vector_store %arg4[%c0_7, %c0_8], %10 {strides = array<i32>} : memref<16x128xf32, #tpu.memory_space<vmem>>, vector<16x128xf32>,
    return
  }
  func.func @transform_0(%arg0: i32) -> (i32, i32) {
    %c0_i32 = arith.constant 0 : i32
    %c0_i32_0 = arith.constant 0 : i32
    %c0_i32_1 = arith.constant 0 : i32
    return %c0_i32, %c0_i32_0 : i32, i32
  }
  func.func @transform_1(%arg0: i32) -> (i32, i32) {
    %c0_i32 = arith.constant 0 : i32
    %c0_i32_0 = arith.constant 0 : i32
    return %c0_i32, %arg0 : i32, i32
  }
  func.func @transform_2(%arg0: i32) -> (i32, i32) {
    %c0_i32 = arith.constant 0 : i32
    %c0_i32_0 = arith.constant 0 : i32
    %c0_i32_1 = arith.constant 0 : i32
    return %c0_i32, %c0_i32_0 : i32, i32
  }
  func.func @transform_3(%arg0: i32) -> (i32, i32) {
    %c0_i32 = arith.constant 0 : i32
    %c0_i32_0 = arith.constant 0 : i32
    return %c0_i32, %arg0 : i32, i32
  }
}

module attributes {stable_mosaic.version = 11 : i64} {
  func.func @_mm_bias_act_kernel(%arg0: i32, %arg1: memref<16x400xbf16, #tpu.memory_space<vmem>>, %arg2: memref<400x128xbf16, #tpu.memory_space<vmem>>, %arg3: memref<16x1xf32, #tpu.memory_space<vmem>>, %arg4: memref<16x128xf32, #tpu.memory_space<vmem>>) attributes {dimension_semantics = [#tpu.dimension_semantics<parallel>], iteration_bounds = array<i64: 1>, scalar_prefetch = 0 : i64, scratch_operands = 0 : i64, tpu.core_type = #tpu.core_type<tc>, window_params = [{pipeline_mode = #tpu.pipeline_mode<synchronous>, transform_indices = @transform_0, window_bounds = array<i64: 16, 400>}, {transform_indices = @transform_1, window_bounds = array<i64: 400, 128>}, {pipeline_mode = #tpu.pipeline_mode<synchronous>, transform_indices = @transform_2, window_bounds = array<i64: 16, 1>}, {transform_indices = @transform_3, window_bounds = array<i64: 16, 128>}]} {
    %c0 = arith.constant 0 : index
    %c0_0 = arith.constant 0 : index
    %0 = vector.load %arg1[%c0, %c0_0] : memref<16x400xbf16, #tpu.memory_space<vmem>>, vector<16x400xbf16>
    %c0_1 = arith.constant 0 : index
    %c0_2 = arith.constant 0 : index
    %1 = vector.load %arg2[%c0_1, %c0_2] : memref<400x128xbf16, #tpu.memory_space<vmem>>, vector<400x128xbf16>
    %cst = arith.constant dense<0.000000e+00> : vector<16x128xf32>
    %2 = tpu.matmul %0, %1, %cst {dimension_numbers = #tpu.dot_dimension_numbers<[1], [0], [0], [1], [0, 0, 1, 1], [], []>} : vector<16x400xbf16>, vector<400x128xbf16>, vector<16x128xf32> -> vector<16x128xf32>
    %c0_3 = arith.constant 0 : index
    %c0_4 = arith.constant 0 : index
    %3 = vector.load %arg3[%c0_3, %c0_4] : memref<16x1xf32, #tpu.memory_space<vmem>>, vector<16x1xf32>
    %4 = vector.broadcast %3 : vector<16x1xf32> to vector<16x128xf32>
    %5 = arith.addf %2, %4 : vector<16x128xf32>
    %cst_5 = arith.constant 0.000000e+00 : f32
    %6 = vector.broadcast %cst_5 : f32 to vector<16x128xf32>
    %7 = arith.cmpf oge, %5, %6 : vector<16x128xf32>
    %cst_6 = arith.constant 1.000000e-01 : f32
    %8 = vector.broadcast %cst_6 : f32 to vector<16x128xf32>
    %9 = arith.mulf %8, %5 : vector<16x128xf32>
    %10 = arith.select %7, %5, %9 : vector<16x128xi1>, vector<16x128xf32>
    %c0_7 = arith.constant 0 : index
    %c0_8 = arith.constant 0 : index
    %11 = vector.load %arg4[%c0_7, %c0_8] : memref<16x128xf32, #tpu.memory_space<vmem>>, vector<16x128xf32>
    tpu.vector_store %arg4[%c0_7, %c0_8], %10 {strides = array<i32>} : memref<16x128xf32, #tpu.memory_space<vmem>>, vector<16x128xf32>,
    return
  }
  func.func @transform_0(%arg0: i32) -> (i32, i32) {
    %c0_i32 = arith.constant 0 : i32
    %c0_i32_0 = arith.constant 0 : i32
    %c0_i32_1 = arith.constant 0 : i32
    return %c0_i32, %c0_i32_0 : i32, i32
  }
  func.func @transform_1(%arg0: i32) -> (i32, i32) {
    %c0_i32 = arith.constant 0 : i32
    %c0_i32_0 = arith.constant 0 : i32
    return %c0_i32, %arg0 : i32, i32
  }
  func.func @transform_2(%arg0: i32) -> (i32, i32) {
    %c0_i32 = arith.constant 0 : i32
    %c0_i32_0 = arith.constant 0 : i32
    %c0_i32_1 = arith.constant 0 : i32
    return %c0_i32, %c0_i32_0 : i32, i32
  }
  func.func @transform_3(%arg0: i32) -> (i32, i32) {
    %c0_i32 = arith.constant 0 : i32
    %c0_i32_0 = arith.constant 0 : i32
    return %c0_i32, %arg0 : i32, i32
  }
}

module attributes {stable_mosaic.version = 11 : i64} {
  func.func @_mm_bias_act_kernel(%arg0: i32, %arg1: memref<32x144xbf16, #tpu.memory_space<vmem>>, %arg2: memref<144x128xbf16, #tpu.memory_space<vmem>>, %arg3: memref<32x1xf32, #tpu.memory_space<vmem>>, %arg4: memref<32x128xf32, #tpu.memory_space<vmem>>) attributes {dimension_semantics = [#tpu.dimension_semantics<parallel>], iteration_bounds = array<i64: 1>, scalar_prefetch = 0 : i64, scratch_operands = 0 : i64, tpu.core_type = #tpu.core_type<tc>, window_params = [{pipeline_mode = #tpu.pipeline_mode<synchronous>, transform_indices = @transform_0, window_bounds = array<i64: 32, 144>}, {transform_indices = @transform_1, window_bounds = array<i64: 144, 128>}, {pipeline_mode = #tpu.pipeline_mode<synchronous>, transform_indices = @transform_2, window_bounds = array<i64: 32, 1>}, {transform_indices = @transform_3, window_bounds = array<i64: 32, 128>}]} {
    %c0 = arith.constant 0 : index
    %c0_0 = arith.constant 0 : index
    %0 = vector.load %arg1[%c0, %c0_0] : memref<32x144xbf16, #tpu.memory_space<vmem>>, vector<32x144xbf16>
    %c0_1 = arith.constant 0 : index
    %c0_2 = arith.constant 0 : index
    %1 = vector.load %arg2[%c0_1, %c0_2] : memref<144x128xbf16, #tpu.memory_space<vmem>>, vector<144x128xbf16>
    %cst = arith.constant dense<0.000000e+00> : vector<32x128xf32>
    %2 = tpu.matmul %0, %1, %cst {dimension_numbers = #tpu.dot_dimension_numbers<[1], [0], [0], [1], [0, 0, 1, 1], [], []>} : vector<32x144xbf16>, vector<144x128xbf16>, vector<32x128xf32> -> vector<32x128xf32>
    %c0_3 = arith.constant 0 : index
    %c0_4 = arith.constant 0 : index
    %3 = vector.load %arg3[%c0_3, %c0_4] : memref<32x1xf32, #tpu.memory_space<vmem>>, vector<32x1xf32>
    %4 = vector.broadcast %3 : vector<32x1xf32> to vector<32x128xf32>
    %5 = arith.addf %2, %4 : vector<32x128xf32>
    %cst_5 = arith.constant 0.000000e+00 : f32
    %6 = vector.broadcast %cst_5 : f32 to vector<32x128xf32>
    %7 = arith.cmpf oge, %5, %6 : vector<32x128xf32>
    %cst_6 = arith.constant 1.000000e-01 : f32
    %8 = vector.broadcast %cst_6 : f32 to vector<32x128xf32>
    %9 = arith.mulf %8, %5 : vector<32x128xf32>
    %10 = arith.select %7, %5, %9 : vector<32x128xi1>, vector<32x128xf32>
    %c0_7 = arith.constant 0 : index
    %c0_8 = arith.constant 0 : index
    %11 = vector.load %arg4[%c0_7, %c0_8] : memref<32x128xf32, #tpu.memory_space<vmem>>, vector<32x128xf32>
    tpu.vector_store %arg4[%c0_7, %c0_8], %10 {strides = array<i32>} : memref<32x128xf32, #tpu.memory_space<vmem>>, vector<32x128xf32>,
    return
  }
  func.func @transform_0(%arg0: i32) -> (i32, i32) {
    %c0_i32 = arith.constant 0 : i32
    %c0_i32_0 = arith.constant 0 : i32
    %c0_i32_1 = arith.constant 0 : i32
    return %c0_i32, %c0_i32_0 : i32, i32
  }
  func.func @transform_1(%arg0: i32) -> (i32, i32) {
    %c0_i32 = arith.constant 0 : i32
    %c0_i32_0 = arith.constant 0 : i32
    return %c0_i32, %arg0 : i32, i32
  }
  func.func @transform_2(%arg0: i32) -> (i32, i32) {
    %c0_i32 = arith.constant 0 : i32
    %c0_i32_0 = arith.constant 0 : i32
    %c0_i32_1 = arith.constant 0 : i32
    return %c0_i32, %c0_i32_0 : i32, i32
  }
  func.func @transform_3(%arg0: i32) -> (i32, i32) {
    %c0_i32 = arith.constant 0 : i32
    %c0_i32_0 = arith.constant 0 : i32
    return %c0_i32, %arg0 : i32, i32
  }
}

module attributes {stable_mosaic.version = 11 : i64} {
  func.func @_mm_bias_act_kernel(%arg0: i32, %arg1: memref<32x288xbf16, #tpu.memory_space<vmem>>, %arg2: memref<288x128xbf16, #tpu.memory_space<vmem>>, %arg3: memref<32x1xf32, #tpu.memory_space<vmem>>, %arg4: memref<32x128xf32, #tpu.memory_space<vmem>>) attributes {dimension_semantics = [#tpu.dimension_semantics<parallel>], iteration_bounds = array<i64: 1>, scalar_prefetch = 0 : i64, scratch_operands = 0 : i64, tpu.core_type = #tpu.core_type<tc>, window_params = [{pipeline_mode = #tpu.pipeline_mode<synchronous>, transform_indices = @transform_0, window_bounds = array<i64: 32, 288>}, {transform_indices = @transform_1, window_bounds = array<i64: 288, 128>}, {pipeline_mode = #tpu.pipeline_mode<synchronous>, transform_indices = @transform_2, window_bounds = array<i64: 32, 1>}, {transform_indices = @transform_3, window_bounds = array<i64: 32, 128>}]} {
    %c0 = arith.constant 0 : index
    %c0_0 = arith.constant 0 : index
    %0 = vector.load %arg1[%c0, %c0_0] : memref<32x288xbf16, #tpu.memory_space<vmem>>, vector<32x288xbf16>
    %c0_1 = arith.constant 0 : index
    %c0_2 = arith.constant 0 : index
    %1 = vector.load %arg2[%c0_1, %c0_2] : memref<288x128xbf16, #tpu.memory_space<vmem>>, vector<288x128xbf16>
    %cst = arith.constant dense<0.000000e+00> : vector<32x128xf32>
    %2 = tpu.matmul %0, %1, %cst {dimension_numbers = #tpu.dot_dimension_numbers<[1], [0], [0], [1], [0, 0, 1, 1], [], []>} : vector<32x288xbf16>, vector<288x128xbf16>, vector<32x128xf32> -> vector<32x128xf32>
    %c0_3 = arith.constant 0 : index
    %c0_4 = arith.constant 0 : index
    %3 = vector.load %arg3[%c0_3, %c0_4] : memref<32x1xf32, #tpu.memory_space<vmem>>, vector<32x1xf32>
    %4 = vector.broadcast %3 : vector<32x1xf32> to vector<32x128xf32>
    %5 = arith.addf %2, %4 : vector<32x128xf32>
    %cst_5 = arith.constant 0.000000e+00 : f32
    %6 = vector.broadcast %cst_5 : f32 to vector<32x128xf32>
    %7 = arith.cmpf oge, %5, %6 : vector<32x128xf32>
    %cst_6 = arith.constant 1.000000e-01 : f32
    %8 = vector.broadcast %cst_6 : f32 to vector<32x128xf32>
    %9 = arith.mulf %8, %5 : vector<32x128xf32>
    %10 = arith.select %7, %5, %9 : vector<32x128xi1>, vector<32x128xf32>
    %c0_7 = arith.constant 0 : index
    %c0_8 = arith.constant 0 : index
    %11 = vector.load %arg4[%c0_7, %c0_8] : memref<32x128xf32, #tpu.memory_space<vmem>>, vector<32x128xf32>
    tpu.vector_store %arg4[%c0_7, %c0_8], %10 {strides = array<i32>} : memref<32x128xf32, #tpu.memory_space<vmem>>, vector<32x128xf32>,
    return
  }
  func.func @transform_0(%arg0: i32) -> (i32, i32) {
    %c0_i32 = arith.constant 0 : i32
    %c0_i32_0 = arith.constant 0 : i32
    %c0_i32_1 = arith.constant 0 : i32
    return %c0_i32, %c0_i32_0 : i32, i32
  }
  func.func @transform_1(%arg0: i32) -> (i32, i32) {
    %c0_i32 = arith.constant 0 : i32
    %c0_i32_0 = arith.constant 0 : i32
    return %c0_i32, %arg0 : i32, i32
  }
  func.func @transform_2(%arg0: i32) -> (i32, i32) {
    %c0_i32 = arith.constant 0 : i32
    %c0_i32_0 = arith.constant 0 : i32
    %c0_i32_1 = arith.constant 0 : i32
    return %c0_i32, %c0_i32_0 : i32, i32
  }
  func.func @transform_3(%arg0: i32) -> (i32, i32) {
    %c0_i32 = arith.constant 0 : i32
    %c0_i32_0 = arith.constant 0 : i32
    return %c0_i32, %arg0 : i32, i32
  }
}

module attributes {stable_mosaic.version = 11 : i64} {
  func.func @_mm_bias_act_kernel(%arg0: i32, %arg1: memref<16x288xbf16, #tpu.memory_space<vmem>>, %arg2: memref<288x128xbf16, #tpu.memory_space<vmem>>, %arg3: memref<16x1xf32, #tpu.memory_space<vmem>>, %arg4: memref<16x128xf32, #tpu.memory_space<vmem>>) attributes {dimension_semantics = [#tpu.dimension_semantics<parallel>], iteration_bounds = array<i64: 1>, scalar_prefetch = 0 : i64, scratch_operands = 0 : i64, tpu.core_type = #tpu.core_type<tc>, window_params = [{pipeline_mode = #tpu.pipeline_mode<synchronous>, transform_indices = @transform_0, window_bounds = array<i64: 16, 288>}, {transform_indices = @transform_1, window_bounds = array<i64: 288, 128>}, {pipeline_mode = #tpu.pipeline_mode<synchronous>, transform_indices = @transform_2, window_bounds = array<i64: 16, 1>}, {transform_indices = @transform_3, window_bounds = array<i64: 16, 128>}]} {
    %c0 = arith.constant 0 : index
    %c0_0 = arith.constant 0 : index
    %0 = vector.load %arg1[%c0, %c0_0] : memref<16x288xbf16, #tpu.memory_space<vmem>>, vector<16x288xbf16>
    %c0_1 = arith.constant 0 : index
    %c0_2 = arith.constant 0 : index
    %1 = vector.load %arg2[%c0_1, %c0_2] : memref<288x128xbf16, #tpu.memory_space<vmem>>, vector<288x128xbf16>
    %cst = arith.constant dense<0.000000e+00> : vector<16x128xf32>
    %2 = tpu.matmul %0, %1, %cst {dimension_numbers = #tpu.dot_dimension_numbers<[1], [0], [0], [1], [0, 0, 1, 1], [], []>} : vector<16x288xbf16>, vector<288x128xbf16>, vector<16x128xf32> -> vector<16x128xf32>
    %c0_3 = arith.constant 0 : index
    %c0_4 = arith.constant 0 : index
    %3 = vector.load %arg3[%c0_3, %c0_4] : memref<16x1xf32, #tpu.memory_space<vmem>>, vector<16x1xf32>
    %4 = vector.broadcast %3 : vector<16x1xf32> to vector<16x128xf32>
    %5 = arith.addf %2, %4 : vector<16x128xf32>
    %cst_5 = arith.constant 0.000000e+00 : f32
    %6 = vector.broadcast %cst_5 : f32 to vector<16x128xf32>
    %7 = arith.cmpf oge, %5, %6 : vector<16x128xf32>
    %cst_6 = arith.constant 1.000000e-01 : f32
    %8 = vector.broadcast %cst_6 : f32 to vector<16x128xf32>
    %9 = arith.mulf %8, %5 : vector<16x128xf32>
    %10 = arith.select %7, %5, %9 : vector<16x128xi1>, vector<16x128xf32>
    %c0_7 = arith.constant 0 : index
    %c0_8 = arith.constant 0 : index
    %11 = vector.load %arg4[%c0_7, %c0_8] : memref<16x128xf32, #tpu.memory_space<vmem>>, vector<16x128xf32>
    tpu.vector_store %arg4[%c0_7, %c0_8], %10 {strides = array<i32>} : memref<16x128xf32, #tpu.memory_space<vmem>>, vector<16x128xf32>,
    return
  }
  func.func @transform_0(%arg0: i32) -> (i32, i32) {
    %c0_i32 = arith.constant 0 : i32
    %c0_i32_0 = arith.constant 0 : i32
    %c0_i32_1 = arith.constant 0 : i32
    return %c0_i32, %c0_i32_0 : i32, i32
  }
  func.func @transform_1(%arg0: i32) -> (i32, i32) {
    %c0_i32 = arith.constant 0 : i32
    %c0_i32_0 = arith.constant 0 : i32
    return %c0_i32, %arg0 : i32, i32
  }
  func.func @transform_2(%arg0: i32) -> (i32, i32) {
    %c0_i32 = arith.constant 0 : i32
    %c0_i32_0 = arith.constant 0 : i32
    %c0_i32_1 = arith.constant 0 : i32
    return %c0_i32, %c0_i32_0 : i32, i32
  }
  func.func @transform_3(%arg0: i32) -> (i32, i32) {
    %c0_i32 = arith.constant 0 : i32
    %c0_i32_0 = arith.constant 0 : i32
    return %c0_i32, %arg0 : i32, i32
  }
}

module attributes {stable_mosaic.version = 11 : i64} {
  func.func @_mm_bias_act_kernel(%arg0: i32, %arg1: memref<8x144xbf16, #tpu.memory_space<vmem>>, %arg2: memref<144x256xbf16, #tpu.memory_space<vmem>>, %arg3: memref<8x1xf32, #tpu.memory_space<vmem>>, %arg4: memref<8x256xf32, #tpu.memory_space<vmem>>) attributes {dimension_semantics = [#tpu.dimension_semantics<parallel>], iteration_bounds = array<i64: 2>, scalar_prefetch = 0 : i64, scratch_operands = 0 : i64, tpu.core_type = #tpu.core_type<tc>, window_params = [{pipeline_mode = #tpu.pipeline_mode<synchronous>, transform_indices = @transform_0, window_bounds = array<i64: 8, 144>}, {transform_indices = @transform_1, window_bounds = array<i64: 144, 256>}, {pipeline_mode = #tpu.pipeline_mode<synchronous>, transform_indices = @transform_2, window_bounds = array<i64: 8, 1>}, {transform_indices = @transform_3, window_bounds = array<i64: 8, 256>}]} {
    %c0 = arith.constant 0 : index
    %c0_0 = arith.constant 0 : index
    %0 = vector.load %arg1[%c0, %c0_0] : memref<8x144xbf16, #tpu.memory_space<vmem>>, vector<8x144xbf16>
    %c0_1 = arith.constant 0 : index
    %c0_2 = arith.constant 0 : index
    %1 = vector.load %arg2[%c0_1, %c0_2] : memref<144x256xbf16, #tpu.memory_space<vmem>>, vector<144x256xbf16>
    %cst = arith.constant dense<0.000000e+00> : vector<8x256xf32>
    %2 = tpu.matmul %0, %1, %cst {dimension_numbers = #tpu.dot_dimension_numbers<[1], [0], [0], [1], [0, 0, 1, 1], [], []>} : vector<8x144xbf16>, vector<144x256xbf16>, vector<8x256xf32> -> vector<8x256xf32>
    %c0_3 = arith.constant 0 : index
    %c0_4 = arith.constant 0 : index
    %3 = vector.load %arg3[%c0_3, %c0_4] : memref<8x1xf32, #tpu.memory_space<vmem>>, vector<8x1xf32>
    %4 = vector.broadcast %3 : vector<8x1xf32> to vector<8x256xf32>
    %5 = arith.addf %2, %4 : vector<8x256xf32>
    %cst_5 = arith.constant 0.000000e+00 : f32
    %6 = vector.broadcast %cst_5 : f32 to vector<8x256xf32>
    %7 = arith.cmpf oge, %5, %6 : vector<8x256xf32>
    %cst_6 = arith.constant 1.000000e-01 : f32
    %8 = vector.broadcast %cst_6 : f32 to vector<8x256xf32>
    %9 = arith.mulf %8, %5 : vector<8x256xf32>
    %10 = arith.select %7, %5, %9 : vector<8x256xi1>, vector<8x256xf32>
    %c0_7 = arith.constant 0 : index
    %c0_8 = arith.constant 0 : index
    %11 = vector.load %arg4[%c0_7, %c0_8] : memref<8x256xf32, #tpu.memory_space<vmem>>, vector<8x256xf32>
    tpu.vector_store %arg4[%c0_7, %c0_8], %10 {strides = array<i32>} : memref<8x256xf32, #tpu.memory_space<vmem>>, vector<8x256xf32>,
    return
  }
  func.func @transform_0(%arg0: i32) -> (i32, i32) {
    %c0_i32 = arith.constant 0 : i32
    %c0_i32_0 = arith.constant 0 : i32
    %c0_i32_1 = arith.constant 0 : i32
    return %c0_i32, %c0_i32_0 : i32, i32
  }
  func.func @transform_1(%arg0: i32) -> (i32, i32) {
    %c0_i32 = arith.constant 0 : i32
    %c0_i32_0 = arith.constant 0 : i32
    return %c0_i32, %arg0 : i32, i32
  }
  func.func @transform_2(%arg0: i32) -> (i32, i32) {
    %c0_i32 = arith.constant 0 : i32
    %c0_i32_0 = arith.constant 0 : i32
    %c0_i32_1 = arith.constant 0 : i32
    return %c0_i32, %c0_i32_0 : i32, i32
  }
  func.func @transform_3(%arg0: i32) -> (i32, i32) {
    %c0_i32 = arith.constant 0 : i32
    %c0_i32_0 = arith.constant 0 : i32
    return %c0_i32, %arg0 : i32, i32
  }
}

module attributes {stable_mosaic.version = 11 : i64} {
  func.func @_mm_bias_act_kernel(%arg0: i32, %arg1: memref<5x72xbf16, #tpu.memory_space<vmem>>, %arg2: memref<72x256xbf16, #tpu.memory_space<vmem>>, %arg3: memref<5x1xf32, #tpu.memory_space<vmem>>, %arg4: memref<5x256xf32, #tpu.memory_space<vmem>>) attributes {dimension_semantics = [#tpu.dimension_semantics<parallel>], iteration_bounds = array<i64: 2>, scalar_prefetch = 0 : i64, scratch_operands = 0 : i64, tpu.core_type = #tpu.core_type<tc>, window_params = [{pipeline_mode = #tpu.pipeline_mode<synchronous>, transform_indices = @transform_0, window_bounds = array<i64: 5, 72>}, {transform_indices = @transform_1, window_bounds = array<i64: 72, 256>}, {pipeline_mode = #tpu.pipeline_mode<synchronous>, transform_indices = @transform_2, window_bounds = array<i64: 5, 1>}, {transform_indices = @transform_3, window_bounds = array<i64: 5, 256>}]} {
    %c0 = arith.constant 0 : index
    %c0_0 = arith.constant 0 : index
    %0 = vector.load %arg1[%c0, %c0_0] : memref<5x72xbf16, #tpu.memory_space<vmem>>, vector<5x72xbf16>
    %c0_1 = arith.constant 0 : index
    %c0_2 = arith.constant 0 : index
    %1 = vector.load %arg2[%c0_1, %c0_2] : memref<72x256xbf16, #tpu.memory_space<vmem>>, vector<72x256xbf16>
    %cst = arith.constant dense<0.000000e+00> : vector<5x256xf32>
    %2 = tpu.matmul %0, %1, %cst {dimension_numbers = #tpu.dot_dimension_numbers<[1], [0], [0], [1], [0, 0, 1, 1], [], []>} : vector<5x72xbf16>, vector<72x256xbf16>, vector<5x256xf32> -> vector<5x256xf32>
    %c0_3 = arith.constant 0 : index
    %c0_4 = arith.constant 0 : index
    %3 = vector.load %arg3[%c0_3, %c0_4] : memref<5x1xf32, #tpu.memory_space<vmem>>, vector<5x1xf32>
    %4 = vector.broadcast %3 : vector<5x1xf32> to vector<5x256xf32>
    %5 = arith.addf %2, %4 : vector<5x256xf32>
    %cst_5 = arith.constant 0.000000e+00 : f32
    %6 = vector.broadcast %cst_5 : f32 to vector<5x256xf32>
    %7 = arith.cmpf oge, %5, %6 : vector<5x256xf32>
    %cst_6 = arith.constant 1.000000e-01 : f32
    %8 = vector.broadcast %cst_6 : f32 to vector<5x256xf32>
    %9 = arith.mulf %8, %5 : vector<5x256xf32>
    %10 = arith.select %7, %5, %9 : vector<5x256xi1>, vector<5x256xf32>
    %c0_7 = arith.constant 0 : index
    %c0_8 = arith.constant 0 : index
    %11 = vector.load %arg4[%c0_7, %c0_8] : memref<5x256xf32, #tpu.memory_space<vmem>>, vector<5x256xf32>
    tpu.vector_store %arg4[%c0_7, %c0_8], %10 {strides = array<i32>} : memref<5x256xf32, #tpu.memory_space<vmem>>, vector<5x256xf32>,
    return
  }
  func.func @transform_0(%arg0: i32) -> (i32, i32) {
    %c0_i32 = arith.constant 0 : i32
    %c0_i32_0 = arith.constant 0 : i32
    %c0_i32_1 = arith.constant 0 : i32
    return %c0_i32, %c0_i32_0 : i32, i32
  }
  func.func @transform_1(%arg0: i32) -> (i32, i32) {
    %c0_i32 = arith.constant 0 : i32
    %c0_i32_0 = arith.constant 0 : i32
    return %c0_i32, %arg0 : i32, i32
  }
  func.func @transform_2(%arg0: i32) -> (i32, i32) {
    %c0_i32 = arith.constant 0 : i32
    %c0_i32_0 = arith.constant 0 : i32
    %c0_i32_1 = arith.constant 0 : i32
    return %c0_i32, %c0_i32_0 : i32, i32
  }
  func.func @transform_3(%arg0: i32) -> (i32, i32) {
    %c0_i32 = arith.constant 0 : i32
    %c0_i32_0 = arith.constant 0 : i32
    return %c0_i32, %arg0 : i32, i32
  }
}

module attributes {stable_mosaic.version = 11 : i64} {
  func.func @_blend_kernel(%arg0: i32, %arg1: memref<1xf32, #tpu.memory_space<smem>>, %arg2: memref<3x1xf32, #tpu.memory_space<vmem>>, %arg3: memref<1x512xf32, #tpu.memory_space<vmem>>, %arg4: memref<3x512xf32, #tpu.memory_space<vmem>>, %arg5: memref<3x512xf32, #tpu.memory_space<vmem>>, %arg6: memref<3x512xf32, #tpu.memory_space<vmem>>) attributes {dimension_semantics = [#tpu.dimension_semantics<parallel>], iteration_bounds = array<i64: 1>, scalar_prefetch = 0 : i64, scratch_operands = 0 : i64, tpu.core_type = #tpu.core_type<tc>, window_params = [{transform_indices = @transform_0, window_bounds = array<i64: 1>}, {pipeline_mode = #tpu.pipeline_mode<synchronous>, transform_indices = @transform_1, window_bounds = array<i64: 3, 1>}, {transform_indices = @transform_2, window_bounds = array<i64: 1, 512>}, {transform_indices = @transform_3, window_bounds = array<i64: 3, 512>}, {transform_indices = @transform_4, window_bounds = array<i64: 3, 512>}, {transform_indices = @transform_5, window_bounds = array<i64: 3, 512>}]} {
    %c0 = arith.constant 0 : index
    %0 = memref.load %arg1[%c0] : memref<1xf32, #tpu.memory_space<smem>>
    %c0_0 = arith.constant 0 : index
    %c0_1 = arith.constant 0 : index
    %1 = vector.load %arg3[%c0_0, %c0_1] : memref<1x512xf32, #tpu.memory_space<vmem>>, vector<1x512xf32>
    %2 = arith.negf %1 : vector<1x512xf32>
    %3 = math.exp %2 : vector<1x512xf32>
    %cst = arith.constant 1.000000e+00 : f32
    %4 = vector.broadcast %cst : f32 to vector<1x512xf32>
    %5 = arith.addf %4, %3 : vector<1x512xf32>
    %6 = arith.divf %4, %5 : vector<1x512xf32>
    %cst_2 = arith.constant 1.000000e+00 : f32
    %7 = vector.broadcast %cst_2 : f32 to vector<1x512xf32>
    %8 = arith.subf %7, %6 : vector<1x512xf32>
    %cst_3 = arith.constant 1.000000e+00 : f32
    %9 = arith.subf %cst_3, %0 : f32
    %10 = vector.broadcast %9 : f32 to vector<1x512xf32>
    %11 = arith.mulf %10, %6 : vector<1x512xf32>
    %12 = vector.broadcast %0 : f32 to vector<1x512xf32>
    %13 = arith.mulf %12, %8 : vector<1x512xf32>
    %c0_4 = arith.constant 0 : index
    %c0_5 = arith.constant 0 : index
    %14 = vector.load %arg4[%c0_4, %c0_5] : memref<3x512xf32, #tpu.memory_space<vmem>>, vector<3x512xf32>
    %15 = vector.broadcast %11 : vector<1x512xf32> to vector<3x512xf32>
    %16 = arith.mulf %15, %14 : vector<3x512xf32>
    %c0_6 = arith.constant 0 : index
    %c0_7 = arith.constant 0 : index
    %17 = vector.load %arg5[%c0_6, %c0_7] : memref<3x512xf32, #tpu.memory_space<vmem>>, vector<3x512xf32>
    %18 = vector.broadcast %13 : vector<1x512xf32> to vector<3x512xf32>
    %19 = arith.mulf %18, %17 : vector<3x512xf32>
    %20 = arith.addf %16, %19 : vector<3x512xf32>
    %21 = arith.addf %11, %13 : vector<1x512xf32>
    %22 = vector.broadcast %21 : vector<1x512xf32> to vector<3x512xf32>
    %23 = arith.divf %20, %22 : vector<3x512xf32>
    %c0_8 = arith.constant 0 : index
    %c0_9 = arith.constant 0 : index
    %24 = vector.load %arg2[%c0_8, %c0_9] : memref<3x1xf32, #tpu.memory_space<vmem>>, vector<3x1xf32>
    %25 = vector.broadcast %24 : vector<3x1xf32> to vector<3x512xf32>
    %26 = arith.addf %23, %25 : vector<3x512xf32>
    %c0_10 = arith.constant 0 : index
    %c0_11 = arith.constant 0 : index
    %27 = vector.load %arg6[%c0_10, %c0_11] : memref<3x512xf32, #tpu.memory_space<vmem>>, vector<3x512xf32>
    tpu.vector_store %arg6[%c0_10, %c0_11], %26 {strides = array<i32>} : memref<3x512xf32, #tpu.memory_space<vmem>>, vector<3x512xf32>,
    return
  }
  func.func @transform_0(%arg0: i32) -> i32 {
    %c0_i32 = arith.constant 0 : i32
    %c0_i32_0 = arith.constant 0 : i32
    return %c0_i32 : i32
  }
  func.func @transform_1(%arg0: i32) -> (i32, i32) {
    %c0_i32 = arith.constant 0 : i32
    %c0_i32_0 = arith.constant 0 : i32
    %c0_i32_1 = arith.constant 0 : i32
    return %c0_i32, %c0_i32_0 : i32, i32
  }
  func.func @transform_2(%arg0: i32) -> (i32, i32) {
    %c0_i32 = arith.constant 0 : i32
    %c0_i32_0 = arith.constant 0 : i32
    return %c0_i32, %arg0 : i32, i32
  }
  func.func @transform_3(%arg0: i32) -> (i32, i32) {
    %c0_i32 = arith.constant 0 : i32
    %c0_i32_0 = arith.constant 0 : i32
    return %c0_i32, %arg0 : i32, i32
  }
  func.func @transform_4(%arg0: i32) -> (i32, i32) {
    %c0_i32 = arith.constant 0 : i32
    %c0_i32_0 = arith.constant 0 : i32
    return %c0_i32, %arg0 : i32, i32
  }
  func.func @transform_5(%arg0: i32) -> (i32, i32) {
    %c0_i32 = arith.constant 0 : i32
    %c0_i32_0 = arith.constant 0 : i32
    return %c0_i32, %arg0 : i32, i32
  }
}

</mosaic_0001>

<bundles_post_ra>
// kernel: _lambda_.50
= control target key start
LH: loop header
LB: loop body
LE: loop exit
PB: predicated region body
PF: predicated region fallthrough
CT: control target
= control target key end

     0   :  { %s947_s12 = smov 0   ;;  %s949_s13 = smov 0   ;;  %s1131_s0 = inlined_call_operand.vmem [shape: bf16[8,294], index: 0, kind: input, shape index: {}]   ;;  %s1132_s1 = inlined_call_operand.vmem [shape: bf16[294,512], index: 1, kind: input, shape index: {}]   ;;  %s1133_s2 = inlined_call_operand.vmem [shape: f32[8,1], index: 2, kind: input, shape index: {}]   ;;  %s1134_s3 = inlined_call_operand.vmem [shape: f32[8,512], index: 3, kind: output, shape index: {}]  }
   0x1   :  { %s951_s14 = smov 0  }
   0x2 LB: > { %s756_s15 = sadd.s32 4294967295, %s924_s14   ;;  %s964_s16 = sadd.s32 1, %s924_s14   ;;  %s924_s14 = sphi %s951_s14, %s1137_s14   ;;  %s920_s13 = sphi %s949_s13, %s1136_s13   ;;  %s916_s12 = sphi %s947_s12, %s1135_s12  }
   0x3   : > { %s38_s17 = ssub.s32 %s924_s14, %s964_s16  ;;  %s41_s18 = sadd.s32 1, %s920_s13 }
   0x4   : > { %p39_p0 = scmp.eq.s32.totalorder %s38_s17, 0  ;;  %p48_p1 = scmp.ne.s32.totalorder %s920_s13, %s916_s12 }
   0x5   : > { %p49_p2 = scmp.eq.s32.totalorder %s924_s14, 0  ;;  %p759_p4 = scmp.ge.s32.totalorder %s924_s14, 2 }
   0x6   : > { %s973_s19 = scalar_select %p39_p0, %s920_s13, %s41_s18  }
   0x7   : > { %p50_p3 = por %p49_p2, %p48_p1  ;;  %127 = sbr.rel (%p759_p4) target bundleno = 37 (0x25), region = 24 }
   0xe   : > { %130 = sbr.rel (!%p50_p3) target bundleno = 37 (0x25), region = 28  ;;  %s132_s20 = sand.u32 (%p50_p3), 1, %s920_s13  }
   0xf   : > { %s810_s21 = sshll.u32 (%p50_p3), %s924_s14, 3  ;;  %s815_s22 = smul.u32 (%p50_p3), 296, %s132_s20 }
  0x10   : > { %s981_s25 = scalar_lea.vmem (%p50_p3), %s1132_s1, %s810_s21 }
  0x11   : > { %v237_v0 = vld [vmem:[%s981_s25] sm:$0xff] (%p50_p3)  ;;  %v239_v1 = vld [vmem:[%s981_s25 + $0x10] sm:$0xff] (%p50_p3)  ;;  %s989_s26 = scalar_lea.vmem (%p50_p3), [#allocation2], %s815_s22 }
  0x12   : > { %v241_v2 = vld [vmem:[%s981_s25 + $0x20] sm:$0xff] (%p50_p3)  ;;  %v243_v3 = vld [vmem:[%s981_s25 + $0x30] sm:$0xff] (%p50_p3)  ;;  %238 = vst [vmem:[%s989_s26] sm:$0xff] (%p50_p3), %v237_v0  ;;  %240 = vst [vmem:[%s989_s26 + $0x8] sm:$0xff] (%p50_p3), %v239_v1 }
  0x13   : > { %v245_v4 = vld [vmem:[%s981_s25 + $0x40] sm:$0xff] (%p50_p3)  ;;  %v247_v5 = vld [vmem:[%s981_s25 + $0x50] sm:$0xff] (%p50_p3)  ;;  %242 = vst [vmem:[%s989_s26 + $0x10] sm:$0xff] (%p50_p3), %v241_v2  ;;  %244 = vst [vmem:[%s989_s26 + $0x18] sm:$0xff] (%p50_p3), %v243_v3 }
  0x14   : > { %246 = vst [vmem:[%s989_s26 + $0x20] sm:$0xff] (%p50_p3), %v245_v4  ;;  %248 = vst [vmem:[%s989_s26 + $0x28] sm:$0xff] (%p50_p3), %v247_v5  ;;  %v249_v6 = vld [vmem:[%s981_s25 + $0x60] sm:$0xff] (%p50_p3)  ;;  %v251_v7 = vld [vmem:[%s981_s25 + $0x70] sm:$0xff] (%p50_p3) }
  0x15   : > { %v253_v8 = vld [vmem:[%s981_s25 + $0x80] sm:$0xff]  ;;  %250 = vst [vmem:[%s989_s26 + $0x30] sm:$0xff] %v249_v6  ;;  %252 = vst [vmem:[%s989_s26 + $0x38] sm:$0xff] %v251_v7  ;;  %v255_v9 = vld [vmem:[%s981_s25 + $0x90] sm:$0xff] }
  0x16   : > { %254 = vst [vmem:[%s989_s26 + $0x40] sm:$0xff] %v253_v8  ;;  %v257_v10 = vld [vmem:[%s981_s25 + $0xa0] sm:$0xff]  ;;  %v259_v11 = vld [vmem:[%s981_s25 + $0xb0] sm:$0xff]  ;;  %256 = vst [vmem:[%s989_s26 + $0x48] sm:$0xff] %v255_v9 }
  0x17   : > { %258 = vst [vmem:[%s989_s26 + $0x50] sm:$0xff] %v257_v10  ;;  %260 = vst [vmem:[%s989_s26 + $0x58] sm:$0xff] %v259_v11  ;;  %v261_v12 = vld [vmem:[%s981_s25 + $0xc0] sm:$0xff]  ;;  %v263_v13 = vld [vmem:[%s981_s25 + $0xd0] sm:$0xff] }
  0x18   : > { %v265_v14 = vld [vmem:[%s981_s25 + $0xe0] sm:$0xff]  ;;  %262 = vst [vmem:[%s989_s26 + $0x60] sm:$0xff] %v261_v12  ;;  %264 = vst [vmem:[%s989_s26 + $0x68] sm:$0xff] %v263_v13  ;;  %v267_v15 = vld [vmem:[%s981_s25 + $0xf0] sm:$0xff] }
  0x19   : > { %266 = vst [vmem:[%s989_s26 + $0x70] sm:$0xff] %v265_v14  ;;  %v269_v16 = vld [vmem:[%s981_s25 + $0x100] sm:$0xff]  ;;  %v271_v17 = vld [vmem:[%s981_s25 + $0x110] sm:$0xff]  ;;  %268 = vst [vmem:[%s989_s26 + $0x78] sm:$0xff] %v267_v15 }
  0x1a   : > { %270 = vst [vmem:[%s989_s26 + $0x80] sm:$0xff] %v269_v16  ;;  %272 = vst [vmem:[%s989_s26 + $0x88] sm:$0xff] %v271_v17  ;;  %v273_v18 = vld [vmem:[%s981_s25 + $0x120] sm:$0xff]  ;;  %v275_v19 = vld [vmem:[%s981_s25 + $0x130] sm:$0xff] }
  0x1b   : > { %v277_v20 = vld [vmem:[%s981_s25 + $0x140] sm:$0xff]  ;;  %274 = vst [vmem:[%s989_s26 + $0x90] sm:$0xff] %v273_v18  ;;  %276 = vst [vmem:[%s989_s26 + $0x98] sm:$0xff] %v275_v19  ;;  %v279_v21 = vld [vmem:[%s981_s25 + $0x150] sm:$0xff] }
  0x1c   : > { %278 = vst [vmem:[%s989_s26 + $0xa0] sm:$0xff] %v277_v20  ;;  %v281_v22 = vld [vmem:[%s981_s25 + $0x160] sm:$0xff]  ;;  %v283_v23 = vld [vmem:[%s981_s25 + $0x170] sm:$0xff]  ;;  %280 = vst [vmem:[%s989_s26 + $0xa8] sm:$0xff] %v279_v21 }
  0x1d   : > { %282 = vst [vmem:[%s989_s26 + $0xb0] sm:$0xff] %v281_v22  ;;  %284 = vst [vmem:[%s989_s26 + $0xb8] sm:$0xff] %v283_v23  ;;  %v285_v24 = vld [vmem:[%s981_s25 + $0x180] sm:$0xff]  ;;  %v287_v25 = vld [vmem:[%s981_s25 + $0x190] sm:$0xff] }
  0x1e   : > { %v289_v26 = vld [vmem:[%s981_s25 + $0x1a0] sm:$0xff]  ;;  %286 = vst [vmem:[%s989_s26 + $0xc0] sm:$0xff] %v285_v24  ;;  %288 = vst [vmem:[%s989_s26 + $0xc8] sm:$0xff] %v287_v25  ;;  %v291_v27 = vld [vmem:[%s981_s25 + $0x1b0] sm:$0xff] }
  0x1f   : > { %290 = vst [vmem:[%s989_s26 + $0xd0] sm:$0xff] %v289_v26  ;;  %v293_v28 = vld [vmem:[%s981_s25 + $0x1c0] sm:$0xff]  ;;  %v295_v29 = vld [vmem:[%s981_s25 + $0x1d0] sm:$0xff]  ;;  %292 = vst [vmem:[%s989_s26 + $0xd8] sm:$0xff] %v291_v27 }
  0x20   : > { %294 = vst [vmem:[%s989_s26 + $0xe0] sm:$0xff] %v293_v28  ;;  %296 = vst [vmem:[%s989_s26 + $0xe8] sm:$0xff] %v295_v29  ;;  %v297_v30 = vld [vmem:[%s981_s25 + $0x1e0] sm:$0xff]  ;;  %v299_v31 = vld [vmem:[%s981_s25 + $0x1f0] sm:$0xff] }
  0x21   : > { %v301_v32 = vld [vmem:[%s981_s25 + $0x200] sm:$0xff]  ;;  %298 = vst [vmem:[%s989_s26 + $0xf0] sm:$0xff] %v297_v30  ;;  %300 = vst [vmem:[%s989_s26 + $0xf8] sm:$0xff] %v299_v31  ;;  %v303_v33 = vld [vmem:[%s981_s25 + $0x210] sm:$0xff] }
  0x22   : > { %302 = vst [vmem:[%s989_s26 + $0x100] sm:$0xff] %v301_v32  ;;  %v305_v34 = vld [vmem:[%s981_s25 + $0x220] sm:$0xff]  ;;  %v307_v35 = vld [vmem:[%s981_s25 + $0x230] sm:$0xff]  ;;  %304 = vst [vmem:[%s989_s26 + $0x108] sm:$0xff] %v303_v33 }
  0x23   : > { %306 = vst [vmem:[%s989_s26 + $0x110] sm:$0xff] %v305_v34  ;;  %308 = vst [vmem:[%s989_s26 + $0x118] sm:$0xff] %v307_v35  ;;  %v309_v36 = vld [vmem:[%s981_s25 + $0x240] sm:$0xff] }
  0x24   : > { %310 = vst [vmem:[%s989_s26 + $0x120] sm:$0xff] %v309_v36 }
  0x25 PF: > { %p762_p5 = scmp.ge.s32.totalorder %s924_s14, 1  ;;  %p315_p6 = scmp.lt.s32.totalorder %s924_s14, 3 }
  0x27   : > { %p316_p7 = pnand %p762_p5, %p315_p6 }
  0x28   : > { %s322_s27 = sand.u32 (!%p316_p7), 1, %s916_s12   ;;  %v1065_v37 = vld [vmem:[%s1131_s0] sm:$0xff] (!%p316_p7)  ;;  %v926_v38 = vmov (!%p316_p7), 0   ;;  %vm597_vm0 = vcmask (!%p316_p7), 1042432   ;;  %v901_v2 = vld [vmem:[%s1131_s0 + $0x8] ss:$0 sps:$4 sm:$0xff] (!%p316_p7)  }
  0x29   : > { %319 = sbr.rel (%p316_p7) target bundleno = 331 (0x14b), region = 66  ;;  %677 = vmatprep.mubr.bf16.mxu0 (!%p316_p7), %v926_v38  ;;  %v766_v39 = vcombine.high (!%p316_p7), %v1065_v37, %v1065_v37  ;;  %842 = vset.pattern.permute.xlu0 (!%p316_p7), %v926_v38  ;;  %v392_v40 = vld [vmem:[%s1133_s2] sm:$0xff] (!%p316_p7)  ;;  %vm593_vm1 = vcmask (!%p316_p7), 310272   ;;  %v765_v18 = vcombine.low (!%p316_p7), %v1065_v37, %v1065_v37  ;;  %s763_s9 = sshll.u32 (!%p316_p7), %s756_s15, 1 }
  0x2a   : > { %s816_s30 = smul.u32 (!%p316_p7), 296, %s322_s27  ;;  %395 = vperm.xlu0 (!%p316_p7), %842, %v392_v40   ;;  %p347_p8 = scmp.lt.s32.totalorder (!%p316_p7), %s763_s9, 3 }
  0x2b   : > { %636 = vmatprep.mubr.bf16.mxu1 (!%p316_p7), %v766_v39 }
  0x2c   : > { %s1072_s6 = scalar_lea.vmem (!%p316_p7), [#allocation2], %s816_s30 }
  0x2d   : > { %v843_v41 = vld [vmem:[%s1072_s6 + $0x4] ss:$8 sps:$4 sm:$0xff] (!%p316_p7)   ;;  %v845_v42 = vld [vmem:[%s1072_s6] ss:$8 sps:$4 sm:$0xff] (!%p316_p7)   ;;  %v846_v43 = vld [vmem:[%s1072_s6 + $0x14] ss:$8 sps:$4 sm:$0xff] (!%p316_p7)  }
  0x2e   : > { %604 = vmatprep.subr.bf16.mxu1 (!%p316_p7), %v843_v41  ;;  %v848_v44 = vld [vmem:[%s1072_s6 + $0x10] ss:$8 sps:$4 sm:$0xff] (!%p316_p7)   ;;  %v849_v45 = vld [vmem:[%s1072_s6 + $0x24] ss:$8 sps:$4 sm:$0xff] (!%p316_p7)   ;;  %v851_v46 = vld [vmem:[%s1072_s6 + $0x20] ss:$8 sps:$4 sm:$0xff] (!%p316_p7)  }
  0x2f   : > { %605 = vmatpush1.bf16.msra.mxu1 (!%p316_p7), %v845_v42  ;;  %v852_v47 = vld [vmem:[%s1072_s6 + $0x34] ss:$8 sps:$4 sm:$0xff] (!%p316_p7)   ;;  %v854_v48 = vld [vmem:[%s1072_s6 + $0x30] ss:$8 sps:$4 sm:$0xff] (!%p316_p7)   ;;  %v855_v49 = vld [vmem:[%s1072_s6 + $0x44] ss:$8 sps:$4 sm:$0xff] (!%p316_p7)  }
  0x30   : > { %606 = vmatprep.subr.bf16.mxu1 %v846_v43  ;;  %v857_v50 = vld [vmem:[%s1072_s6 + $0x40] ss:$8 sps:$4 sm:$0xff]   ;;  %v858_v51 = vld [vmem:[%s1072_s6 + $0x54] ss:$8 sps:$4 sm:$0xff]   ;;  %v882_v52 = vld [vmem:[%s1072_s6 + $0x104] ss:$8 sps:$4 sm:$0xff]  }
  0x31   : > { %v860_v53 = vld [vmem:[%s1072_s6 + $0x50] ss:$8 sps:$4 sm:$0xff]   ;;  %v861_v54 = vld [vmem:[%s1072_s6 + $0x64] ss:$8 sps:$4 sm:$0xff]   ;;  %v886_v55 = vld [vmem:[%s1072_s6 + $0x100] ss:$8 sps:$4 sm:$0xff]   ;;  %645 = vmatprep.subr.bf16.mxu0 %v882_v52 }
  0x32   : > { %v888_v56 = vld [vmem:[%s1072_s6 + $0x114] ss:$8 sps:$4 sm:$0xff]   ;;  %646 = vmatpush1.bf16.msra.mxu0 %v886_v55  ;;  %v892_v57 = vld [vmem:[%s1072_s6 + $0x110] ss:$8 sps:$4 sm:$0xff]   ;;  %v391_v58 = vld [vmem:[%s1072_s6 + $0x120] sm:$0x77] }
  0x33   : > { %607 = vmatpush1.bf16.msra.mxu1 %v848_v44  ;;  %647 = vmatprep.subr.bf16.mxu0 %v888_v56  ;;  %v863_v59 = vld [vmem:[%s1072_s6 + $0x60] ss:$8 sps:$4 sm:$0xff]   ;;  %v805_v60 = vcombine.high %v391_v58, %v391_v58  ;;  %v804_v61 = vcombine.low %v391_v58, %v391_v58  ;;  %v864_v62 = vld [vmem:[%s1072_s6 + $0x74] ss:$8 sps:$4 sm:$0xff]   ;;  %v866_v0 = vld [vmem:[%s1072_s6 + $0x70] ss:$8 sps:$4 sm:$0xff]  }
  0x34   : > { %608 = vmatprep.subr.bf16.mxu1 %v849_v45  ;;  %v867_v1 = vld [vmem:[%s1072_s6 + $0x84] ss:$8 sps:$4 sm:$0xff]   ;;  %v869_v3 = vld [vmem:[%s1072_s6 + $0x80] ss:$8 sps:$4 sm:$0xff]   ;;  %v870_v4 = vld [vmem:[%s1072_s6 + $0x94] ss:$8 sps:$4 sm:$0xff]  }
  0x35   : > { %v599_v63 = vsel %vm597_vm0, %v804_v61, 0  ;;  %v872_v5 = vld [vmem:[%s1072_s6 + $0x90] ss:$8 sps:$4 sm:$0xff]   ;;  %v873_v6 = vld [vmem:[%s1072_s6 + $0xa4] ss:$8 sps:$4 sm:$0xff]   ;;  %s1139_s9 = smov (!%p347_p8, %s763_s9), 3 }
  0x36   : > { %648 = vmatpush1.bf16.msra.mxu0 %v892_v57  ;;  %v875_v7 = vld [vmem:[%s1072_s6 + $0xa0] ss:$8 sps:$4 sm:$0xff]   ;;  %v876_v8 = vld [vmem:[%s1072_s6 + $0xb4] ss:$8 sps:$4 sm:$0xff]   ;;  %v878_v9 = vld [vmem:[%s1072_s6 + $0xb0] ss:$8 sps:$4 sm:$0xff]  }
  0x37   : > { %609 = vmatpush1.bf16.msra.mxu1 %v851_v46  ;;  %806 = vmatprep.subr.msk.bf16.mxu0 %vm597_vm0, %v805_v60  ;;  %v879_v10 = vld [vmem:[%s1072_s6 + $0xc4] ss:$8 sps:$4 sm:$0xff]   ;;  %v881_v11 = vld [vmem:[%s1072_s6 + $0xc0] ss:$8 sps:$4 sm:$0xff]   ;;  %v884_v12 = vld [vmem:[%s1072_s6 + $0xd4] ss:$8 sps:$4 sm:$0xff]  }
  0x38   : > { %610 = vmatprep.subr.bf16.mxu1 %v852_v47  ;;  %v887_v13 = vld [vmem:[%s1072_s6 + $0xd0] ss:$8 sps:$4 sm:$0xff]   ;;  %v890_v14 = vld [vmem:[%s1072_s6 + $0xe4] ss:$8 sps:$4 sm:$0xff]   ;;  %v893_v15 = vld [vmem:[%s1072_s6 + $0xe0] ss:$8 sps:$4 sm:$0xff]  }
  0x39   : > { %v895_v16 = vld [vmem:[%s1072_s6 + $0xf4] ss:$8 sps:$4 sm:$0xff]   ;;  %v898_v17 = vld [vmem:[%s1072_s6 + $0xf0] ss:$8 sps:$4 sm:$0xff]   ;;  %s764_s10 = sshll.u32 %s1139_s9, 3 }
  0x3a   : > { %650 = vmatpush1.bf16.msra.mxu0 %v599_v63  ;;  %s350_s17 = scalar_lea.vmem %s1134_s3, %s764_s10 }
  0x3b   : > { %611 = vmatpush1.bf16.msra.mxu1 %v854_v48 }
  0x3c   : > { %612 = vmatprep.subr.bf16.mxu1 %v855_v49 }
  0x3d   : > { %807 = vmatmul.mubr.msk.bf16.vlgmr.msra.gmra.mrb[0].mxu0 %vm593_vm1, %v901_v2 }
  0x3f   : > { %613 = vmatpush1.bf16.msra.mxu1 %v857_v50 }
  0x40   : > { %614 = vmatprep.subr.bf16.mxu1 %v858_v51 }
  0x43   : > { %615 = vmatpush1.bf16.msra.mxu1 %v860_v53 }
  0x44   : > { %616 = vmatprep.subr.bf16.mxu1 %v861_v54 }
  0x47   : > { %617 = vmatpush1.bf16.msra.mxu1 %v863_v59 }
  0x48   : > { %618 = vmatprep.subr.bf16.mxu1 %v864_v62 }
  0x4b   : > { %619 = vmatpush1.bf16.msra.mxu1 %v866_v0 }
  0x4c   : > { %620 = vmatprep.subr.bf16.mxu1 %v867_v1 }
  0x4f   : > { %621 = vmatpush1.bf16.msra.mxu1 %v869_v3 }
  0x50   : > { %622 = vmatprep.subr.bf16.mxu1 %v870_v4 }
  0x53   : > { %623 = vmatpush1.bf16.msra.mxu1 %v872_v5 }
  0x54   : > { %624 = vmatprep.subr.bf16.mxu1 %v873_v6 }
  0x57   : > { %625 = vmatpush1.bf16.msra.mxu1 %v875_v7 }
  0x58   : > { %626 = vmatprep.subr.bf16.mxu1 %v876_v8 }
  0x5b   : > { %627 = vmatpush1.bf16.msra.mxu1 %v878_v9 }
  0x5c   : > { %628 = vmatprep.subr.bf16.mxu1 %v879_v10 }
  0x5f   : > { %629 = vmatpush1.bf16.msra.mxu1 %v881_v11 }
  0x60   : > { %630 = vmatprep.subr.bf16.mxu1 %v884_v12 }
  0x63   : > { %631 = vmatpush1.bf16.msra.mxu1 %v887_v13 }
  0x64   : > { %632 = vmatprep.subr.bf16.mxu1 %v890_v14 }
  0x67   : > { %633 = vmatpush1.bf16.msra.mxu1 %v893_v15 }
  0x68   : > { %634 = vmatprep.subr.bf16.mxu1 %v895_v16 }
  0x6b   : > { %635 = vmatpush1.bf16.msra.mxu1 %v898_v17 }
  0x6e   : > { %637 = vmatmul.mubr.bf16.vlgmr.msra.gmra.mrb[0].mxu1 %v765_v18 }
  0xa9   : > { %v396_v23 = vpop.permute.xlu0 %395 }
 0x110   : > { %v679_v19 = vpop.f32.mrb[0].mxu0 }
 0x111   : > { %v681_v20 = vpop.f32.mrb[1].mxu0 }
 0x112   : > { %v683_v21 = vpop.f32.mrb[2].mxu0 }
 0x113   : > { %v684_v22 = vpop.f32.mrb[3].mxu0 }
 0x141   : > { %v638_v24 = vpop.f32.mrb[0].mxu1 }
 0x142   : > { %v639_v25 = vadd.f32 %v638_v24, %v396_v23  ;;  %v640_v26 = vpop.f32.mrb[1].mxu1 }
 0x143   : > { %v641_v27 = vadd.f32 %v640_v26, %v396_v23  ;;  %v642_v28 = vpop.f32.mrb[2].mxu1 }
 0x144   : > { %v680_v29 = vadd.f32 %v679_v19, %v639_v25  ;;  %v643_v30 = vpop.f32.mrb[3].mxu1 }
 0x145   : > { %v682_v31 = vadd.f32 %v681_v20, %v641_v27 }
 0x146   : > { %vm686_vm2 = vcmp.ge.f32.partialorder %v680_v29, 0.0  ;;  %v688_v32 = vmul.f32 0.1, %v680_v29 }
 0x147   : > { %vm687_vm3 = vcmp.ge.f32.partialorder %v682_v31, 0.0  ;;  %v689_v33 = vmul.f32 0.1, %v682_v31 }
 0x148   : > { %v690_v34 = vsel %vm686_vm2, %v680_v29, %v688_v32 }
 0x149   : > { %692 = vst [vmem:[%s350_s17] sm:$0xff] %v690_v34  ;;  %v691_v35 = vsel %vm687_vm3, %v682_v31, %v689_v33 }
 0x14a   : > { %693 = vst [vmem:[%s350_s17 + $0x8] sm:$0xff] %v691_v35 }
 0x14b PF: > { %p10_p9 = scmp.ge.s32.totalorder %s964_s16, 4   ;;  %s1135_s12 = smov %s920_s13 }
 0x14c   : > { %s1136_s13 = smov %s973_s19  ;;  %s1137_s14 = smov %s964_s16 }
 0x14d   :  { %12 = sbr.rel (!%p10_p9) target bundleno = 2 (0x2), region = 105 }

// kernel: _lambda_.51
= control target key start
LH: loop header
LB: loop body
LE: loop exit
PB: predicated region body
PF: predicated region fallthrough
CT: control target
= control target key end

     0   :  { %s1102_s12 = smov 0   ;;  %s1104_s13 = smov 0   ;;  %s1328_s0 = inlined_call_operand.vmem [shape: bf16[8,392], index: 0, kind: input, shape index: {}]   ;;  %s1329_s1 = inlined_call_operand.vmem [shape: bf16[392,512], index: 1, kind: input, shape index: {}]   ;;  %s1330_s2 = inlined_call_operand.vmem [shape: f32[8,1], index: 2, kind: input, shape index: {}]   ;;  %s1331_s3 = inlined_call_operand.vmem [shape: f32[8,512], index: 3, kind: output, shape index: {}]  }
   0x1   :  { %s1106_s14 = smov 0  }
   0x2 LB: > { %s879_s15 = sadd.s32 4294967295, %s1079_s14   ;;  %s1119_s16 = sadd.s32 1, %s1079_s14   ;;  %s1079_s14 = sphi %s1106_s14, %s1334_s14   ;;  %s1075_s13 = sphi %s1104_s13, %s1333_s13   ;;  %s1071_s12 = sphi %s1102_s12, %s1332_s12  }
   0x3   : > { %s38_s17 = ssub.s32 %s1079_s14, %s1119_s16  ;;  %s41_s18 = sadd.s32 1, %s1075_s13 }
   0x4   : > { %p39_p0 = scmp.eq.s32.totalorder %s38_s17, 0  ;;  %p48_p1 = scmp.ne.s32.totalorder %s1075_s13, %s1071_s12 }
   0x5   : > { %p49_p2 = scmp.eq.s32.totalorder %s1079_s14, 0  ;;  %p882_p4 = scmp.ge.s32.totalorder %s1079_s14, 2 }
   0x6   : > { %s1128_s19 = scalar_select %p39_p0, %s1075_s13, %s41_s18  }
   0x7   : > { %p50_p3 = por %p49_p2, %p48_p1  ;;  %127 = sbr.rel (%p882_p4) target bundleno = 43 (0x2b), region = 24 }
   0xe   : > { %130 = sbr.rel (!%p50_p3) target bundleno = 43 (0x2b), region = 28  ;;  %s132_s20 = sand.u32 (%p50_p3), 1, %s1075_s13  }
   0xf   : > { %s946_s21 = sshll.u32 (%p50_p3), %s1079_s14, 3  ;;  %s951_s22 = smul.u32 (%p50_p3), 392, %s132_s20 }
  0x10   : > { %s1136_s25 = scalar_lea.vmem (%p50_p3), %s1329_s1, %s946_s21 }
  0x11   : > { %v261_v0 = vld [vmem:[%s1136_s25] sm:$0xff] (%p50_p3)  ;;  %v263_v1 = vld [vmem:[%s1136_s25 + $0x10] sm:$0xff] (%p50_p3)  ;;  %s1144_s26 = scalar_lea.vmem (%p50_p3), [#allocation2], %s951_s22 }
  0x12   : > { %v265_v2 = vld [vmem:[%s1136_s25 + $0x20] sm:$0xff] (%p50_p3)  ;;  %v267_v3 = vld [vmem:[%s1136_s25 + $0x30] sm:$0xff] (%p50_p3)  ;;  %262 = vst [vmem:[%s1144_s26] sm:$0xff] (%p50_p3), %v261_v0  ;;  %264 = vst [vmem:[%s1144_s26 + $0x8] sm:$0xff] (%p50_p3), %v263_v1 }
  0x13   : > { %v269_v4 = vld [vmem:[%s1136_s25 + $0x40] sm:$0xff] (%p50_p3)  ;;  %v271_v5 = vld [vmem:[%s1136_s25 + $0x50] sm:$0xff] (%p50_p3)  ;;  %266 = vst [vmem:[%s1144_s26 + $0x10] sm:$0xff] (%p50_p3), %v265_v2  ;;  %268 = vst [vmem:[%s1144_s26 + $0x18] sm:$0xff] (%p50_p3), %v267_v3 }
  0x14   : > { %270 = vst [vmem:[%s1144_s26 + $0x20] sm:$0xff] (%p50_p3), %v269_v4  ;;  %272 = vst [vmem:[%s1144_s26 + $0x28] sm:$0xff] (%p50_p3), %v271_v5  ;;  %v273_v6 = vld [vmem:[%s1136_s25 + $0x60] sm:$0xff] (%p50_p3)  ;;  %v275_v7 = vld [vmem:[%s1136_s25 + $0x70] sm:$0xff] (%p50_p3) }
  0x15   : > { %v277_v8 = vld [vmem:[%s1136_s25 + $0x80] sm:$0xff]  ;;  %274 = vst [vmem:[%s1144_s26 + $0x30] sm:$0xff] %v273_v6  ;;  %276 = vst [vmem:[%s1144_s26 + $0x38] sm:$0xff] %v275_v7  ;;  %v279_v9 = vld [vmem:[%s1136_s25 + $0x90] sm:$0xff] }
  0x16   : > { %278 = vst [vmem:[%s1144_s26 + $0x40] sm:$0xff] %v277_v8  ;;  %v281_v10 = vld [vmem:[%s1136_s25 + $0xa0] sm:$0xff]  ;;  %v283_v11 = vld [vmem:[%s1136_s25 + $0xb0] sm:$0xff]  ;;  %280 = vst [vmem:[%s1144_s26 + $0x48] sm:$0xff] %v279_v9 }
  0x17   : > { %282 = vst [vmem:[%s1144_s26 + $0x50] sm:$0xff] %v281_v10  ;;  %284 = vst [vmem:[%s1144_s26 + $0x58] sm:$0xff] %v283_v11  ;;  %v285_v12 = vld [vmem:[%s1136_s25 + $0xc0] sm:$0xff]  ;;  %v287_v13 = vld [vmem:[%s1136_s25 + $0xd0] sm:$0xff] }
  0x18   : > { %v289_v14 = vld [vmem:[%s1136_s25 + $0xe0] sm:$0xff]  ;;  %286 = vst [vmem:[%s1144_s26 + $0x60] sm:$0xff] %v285_v12  ;;  %288 = vst [vmem:[%s1144_s26 + $0x68] sm:$0xff] %v287_v13  ;;  %v291_v15 = vld [vmem:[%s1136_s25 + $0xf0] sm:$0xff] }
  0x19   : > { %290 = vst [vmem:[%s1144_s26 + $0x70] sm:$0xff] %v289_v14  ;;  %v293_v16 = vld [vmem:[%s1136_s25 + $0x100] sm:$0xff]  ;;  %v295_v17 = vld [vmem:[%s1136_s25 + $0x110] sm:$0xff]  ;;  %292 = vst [vmem:[%s1144_s26 + $0x78] sm:$0xff] %v291_v15 }
  0x1a   : > { %294 = vst [vmem:[%s1144_s26 + $0x80] sm:$0xff] %v293_v16  ;;  %296 = vst [vmem:[%s1144_s26 + $0x88] sm:$0xff] %v295_v17  ;;  %v297_v18 = vld [vmem:[%s1136_s25 + $0x120] sm:$0xff]  ;;  %v299_v19 = vld [vmem:[%s1136_s25 + $0x130] sm:$0xff] }
  0x1b   : > { %v301_v20 = vld [vmem:[%s1136_s25 + $0x140] sm:$0xff]  ;;  %298 = vst [vmem:[%s1144_s26 + $0x90] sm:$0xff] %v297_v18  ;;  %300 = vst [vmem:[%s1144_s26 + $0x98] sm:$0xff] %v299_v19  ;;  %v303_v21 = vld [vmem:[%s1136_s25 + $0x150] sm:$0xff] }
  0x1c   : > { %302 = vst [vmem:[%s1144_s26 + $0xa0] sm:$0xff] %v301_v20  ;;  %v305_v22 = vld [vmem:[%s1136_s25 + $0x160] sm:$0xff]  ;;  %v307_v23 = vld [vmem:[%s1136_s25 + $0x170] sm:$0xff]  ;;  %304 = vst [vmem:[%s1144_s26 + $0xa8] sm:$0xff] %v303_v21 }
  0x1d   : > { %306 = vst [vmem:[%s1144_s26 + $0xb0] sm:$0xff] %v305_v22  ;;  %308 = vst [vmem:[%s1144_s26 + $0xb8] sm:$0xff] %v307_v23  ;;  %v309_v24 = vld [vmem:[%s1136_s25 + $0x180] sm:$0xff]  ;;  %v311_v25 = vld [vmem:[%s1136_s25 + $0x190] sm:$0xff] }
  0x1e   : > { %v313_v26 = vld [vmem:[%s1136_s25 + $0x1a0] sm:$0xff]  ;;  %310 = vst [vmem:[%s1144_s26 + $0xc0] sm:$0xff] %v309_v24  ;;  %312 = vst [vmem:[%s1144_s26 + $0xc8] sm:$0xff] %v311_v25  ;;  %v315_v27 = vld [vmem:[%s1136_s25 + $0x1b0] sm:$0xff] }
  0x1f   : > { %314 = vst [vmem:[%s1144_s26 + $0xd0] sm:$0xff] %v313_v26  ;;  %v317_v28 = vld [vmem:[%s1136_s25 + $0x1c0] sm:$0xff]  ;;  %v319_v29 = vld [vmem:[%s1136_s25 + $0x1d0] sm:$0xff]  ;;  %316 = vst [vmem:[%s1144_s26 + $0xd8] sm:$0xff] %v315_v27 }
  0x20   : > { %318 = vst [vmem:[%s1144_s26 + $0xe0] sm:$0xff] %v317_v28  ;;  %320 = vst [vmem:[%s1144_s26 + $0xe8] sm:$0xff] %v319_v29  ;;  %v321_v30 = vld [vmem:[%s1136_s25 + $0x1e0] sm:$0xff]  ;;  %v323_v31 = vld [vmem:[%s1136_s25 + $0x1f0] sm:$0xff] }
  0x21   : > { %v325_v32 = vld [vmem:[%s1136_s25 + $0x200] sm:$0xff]  ;;  %322 = vst [vmem:[%s1144_s26 + $0xf0] sm:$0xff] %v321_v30  ;;  %324 = vst [vmem:[%s1144_s26 + $0xf8] sm:$0xff] %v323_v31  ;;  %v327_v33 = vld [vmem:[%s1136_s25 + $0x210] sm:$0xff] }
  0x22   : > { %326 = vst [vmem:[%s1144_s26 + $0x100] sm:$0xff] %v325_v32  ;;  %v329_v34 = vld [vmem:[%s1136_s25 + $0x220] sm:$0xff]  ;;  %v331_v35 = vld [vmem:[%s1136_s25 + $0x230] sm:$0xff]  ;;  %328 = vst [vmem:[%s1144_s26 + $0x108] sm:$0xff] %v327_v33 }
  0x23   : > { %330 = vst [vmem:[%s1144_s26 + $0x110] sm:$0xff] %v329_v34  ;;  %332 = vst [vmem:[%s1144_s26 + $0x118] sm:$0xff] %v331_v35  ;;  %v333_v36 = vld [vmem:[%s1136_s25 + $0x240] sm:$0xff]  ;;  %v335_v37 = vld [vmem:[%s1136_s25 + $0x250] sm:$0xff] }
  0x24   : > { %v337_v38 = vld [vmem:[%s1136_s25 + $0x260] sm:$0xff]  ;;  %334 = vst [vmem:[%s1144_s26 + $0x120] sm:$0xff] %v333_v36  ;;  %336 = vst [vmem:[%s1144_s26 + $0x128] sm:$0xff] %v335_v37  ;;  %v339_v39 = vld [vmem:[%s1136_s25 + $0x270] sm:$0xff] }
  0x25   : > { %338 = vst [vmem:[%s1144_s26 + $0x130] sm:$0xff] %v337_v38  ;;  %v341_v40 = vld [vmem:[%s1136_s25 + $0x280] sm:$0xff]  ;;  %v343_v41 = vld [vmem:[%s1136_s25 + $0x290] sm:$0xff]  ;;  %340 = vst [vmem:[%s1144_s26 + $0x138] sm:$0xff] %v339_v39 }
  0x26   : > { %342 = vst [vmem:[%s1144_s26 + $0x140] sm:$0xff] %v341_v40  ;;  %344 = vst [vmem:[%s1144_s26 + $0x148] sm:$0xff] %v343_v41  ;;  %v345_v42 = vld [vmem:[%s1136_s25 + $0x2a0] sm:$0xff]  ;;  %v347_v43 = vld [vmem:[%s1136_s25 + $0x2b0] sm:$0xff] }
  0x27   : > { %v349_v44 = vld [vmem:[%s1136_s25 + $0x2c0] sm:$0xff]  ;;  %346 = vst [vmem:[%s1144_s26 + $0x150] sm:$0xff] %v345_v42  ;;  %348 = vst [vmem:[%s1144_s26 + $0x158] sm:$0xff] %v347_v43  ;;  %v351_v45 = vld [vmem:[%s1136_s25 + $0x2d0] sm:$0xff] }
  0x28   : > { %350 = vst [vmem:[%s1144_s26 + $0x160] sm:$0xff] %v349_v44  ;;  %v353_v46 = vld [vmem:[%s1136_s25 + $0x2e0] sm:$0xff]  ;;  %v355_v47 = vld [vmem:[%s1136_s25 + $0x2f0] sm:$0xff]  ;;  %352 = vst [vmem:[%s1144_s26 + $0x168] sm:$0xff] %v351_v45 }
  0x29   : > { %354 = vst [vmem:[%s1144_s26 + $0x170] sm:$0xff] %v353_v46  ;;  %356 = vst [vmem:[%s1144_s26 + $0x178] sm:$0xff] %v355_v47  ;;  %v357_v48 = vld [vmem:[%s1136_s25 + $0x300] sm:$0xff] }
  0x2a   : > { %358 = vst [vmem:[%s1144_s26 + $0x180] sm:$0xff] %v357_v48 }
  0x2b PF: > { %p885_p5 = scmp.ge.s32.totalorder %s1079_s14, 1  ;;  %p363_p6 = scmp.lt.s32.totalorder %s1079_s14, 3 }
  0x2d   : > { %p364_p7 = pnand %p885_p5, %p363_p6 }
  0x2e   : > { %s370_s27 = sand.u32 (!%p364_p7), 1, %s1071_s12   ;;  %v1244_v49 = vld [vmem:[%s1328_s0 + $0x8] sm:$0xff] (!%p364_p7)  ;;  %vm716_vm0 = vcmask (!%p364_p7), 64512   ;;  %v1249_v50 = vld [vmem:[%s1328_s0] sm:$0xff] (!%p364_p7)  ;;  %v1081_v53 = vmov (!%p364_p7), 0   ;;  %vm720_vm1 = vcmask (!%p364_p7), 1043456  }
  0x2f   : > { %367 = sbr.rel (%p364_p7) target bundleno = 337 (0x151), region = 66  ;;  %v891_v51 = vcombine.high (!%p364_p7), %v1244_v49, %v1244_v49  ;;  %v889_v52 = vcombine.high (!%p364_p7), %v1249_v50, %v1249_v50  ;;  %978 = vset.pattern.permute.xlu0 (!%p364_p7), %v1081_v53  ;;  %v452_v54 = vld [vmem:[%s1330_s2] sm:$0xff] (!%p364_p7)  ;;  %v890_v36 = vcombine.low (!%p364_p7), %v1244_v49, %v1244_v49  ;;  %v888_v44 = vcombine.low (!%p364_p7), %v1249_v50, %v1249_v50  ;;  %s886_s9 = sshll.u32 (!%p364_p7), %s879_s15, 1 }
  0x30   : > { %s952_s5 = smul.u32 (!%p364_p7), 392, %s370_s27  ;;  %455 = vperm.xlu0 (!%p364_p7), %978, %v452_v54   ;;  %p395_p8 = scmp.lt.s32.totalorder (!%p364_p7), %s886_s9, 3 }
  0x31   : > { %943 = vmatprep.mubr.msk.bf16.mxu0 (!%p364_p7), %vm716_vm0, %v891_v51  ;;  %759 = vmatprep.mubr.bf16.mxu1 (!%p364_p7), %v889_v52 }
  0x32   : > { %s1258_s8 = scalar_lea.vmem (!%p364_p7), [#allocation2], %s952_s5 }
  0x33   : > { %v979_v55 = vld [vmem:[%s1258_s8 + $0x4] ss:$8 sps:$4 sm:$0xff] (!%p364_p7)   ;;  %v981_v56 = vld [vmem:[%s1258_s8] ss:$8 sps:$4 sm:$0xff] (!%p364_p7)   ;;  %v982_v57 = vld [vmem:[%s1258_s8 + $0x14] ss:$8 sps:$4 sm:$0xff] (!%p364_p7)  }
  0x34   : > { %727 = vmatprep.subr.bf16.mxu1 (!%p364_p7), %v979_v55  ;;  %v984_v58 = vld [vmem:[%s1258_s8 + $0x10] ss:$8 sps:$4 sm:$0xff] (!%p364_p7)   ;;  %v985_v59 = vld [vmem:[%s1258_s8 + $0x24] ss:$8 sps:$4 sm:$0xff] (!%p364_p7)   ;;  %v987_v60 = vld [vmem:[%s1258_s8 + $0x20] ss:$8 sps:$4 sm:$0xff] (!%p364_p7)  }
  0x35   : > { %728 = vmatpush1.bf16.msra.mxu1 (!%p364_p7), %v981_v56  ;;  %v988_v61 = vld [vmem:[%s1258_s8 + $0x34] ss:$8 sps:$4 sm:$0xff] (!%p364_p7)   ;;  %v1000_v62 = vld [vmem:[%s1258_s8 + $0x104] ss:$8 sps:$4 sm:$0xff] (!%p364_p7)   ;;  %v990_v63 = vld [vmem:[%s1258_s8 + $0x30] ss:$8 sps:$4 sm:$0xff] (!%p364_p7)  }
  0x36   : > { %729 = vmatprep.subr.bf16.mxu1 %v982_v57  ;;  %v991_v0 = vld [vmem:[%s1258_s8 + $0x44] ss:$8 sps:$4 sm:$0xff]   ;;  %v1004_v1 = vld [vmem:[%s1258_s8 + $0x100] ss:$8 sps:$4 sm:$0xff]   ;;  %768 = vmatprep.subr.bf16.mxu0 %v1000_v62  ;;  %v1006_v2 = vld [vmem:[%s1258_s8 + $0x114] ss:$8 sps:$4 sm:$0xff]  }
  0x37   : > { %769 = vmatpush1.bf16.msra.mxu0 %v1004_v1  ;;  %v993_v3 = vld [vmem:[%s1258_s8 + $0x40] ss:$8 sps:$4 sm:$0xff]   ;;  %v1010_v4 = vld [vmem:[%s1258_s8 + $0x110] ss:$8 sps:$4 sm:$0xff]   ;;  %v1012_v5 = vld [vmem:[%s1258_s8 + $0x124] ss:$8 sps:$4 sm:$0xff]  }
  0x38   : > { %770 = vmatprep.subr.bf16.mxu0 %v1006_v2  ;;  %v994_v6 = vld [vmem:[%s1258_s8 + $0x54] ss:$8 sps:$4 sm:$0xff]   ;;  %v1016_v7 = vld [vmem:[%s1258_s8 + $0x120] ss:$8 sps:$4 sm:$0xff]   ;;  %v996_v9 = vld [vmem:[%s1258_s8 + $0x50] ss:$8 sps:$4 sm:$0xff]  }
  0x39   : > { %730 = vmatpush1.bf16.msra.mxu1 %v984_v58  ;;  %v1018_v8 = vld [vmem:[%s1258_s8 + $0x134] ss:$8 sps:$4 sm:$0xff]   ;;  %v997_v10 = vld [vmem:[%s1258_s8 + $0x64] ss:$8 sps:$4 sm:$0xff]   ;;  %v1022_v11 = vld [vmem:[%s1258_s8 + $0x130] ss:$8 sps:$4 sm:$0xff]  }
  0x3a   : > { %731 = vmatprep.subr.bf16.mxu1 %v985_v59  ;;  %v1024_v12 = vld [vmem:[%s1258_s8 + $0x144] ss:$8 sps:$4 sm:$0xff]   ;;  %v999_v13 = vld [vmem:[%s1258_s8 + $0x60] ss:$8 sps:$4 sm:$0xff]   ;;  %v1002_v14 = vld [vmem:[%s1258_s8 + $0x74] ss:$8 sps:$4 sm:$0xff]  }
  0x3b   : > { %771 = vmatpush1.bf16.msra.mxu0 %v1010_v4  ;;  %v1028_v15 = vld [vmem:[%s1258_s8 + $0x140] ss:$8 sps:$4 sm:$0xff]   ;;  %v1030_v16 = vld [vmem:[%s1258_s8 + $0x154] ss:$8 sps:$4 sm:$0xff]   ;;  %v1005_v17 = vld [vmem:[%s1258_s8 + $0x70] ss:$8 sps:$4 sm:$0xff]  }
  0x3c   : > { %772 = vmatprep.subr.bf16.mxu0 %v1012_v5  ;;  %v1008_v18 = vld [vmem:[%s1258_s8 + $0x84] ss:$8 sps:$4 sm:$0xff]   ;;  %v1034_v19 = vld [vmem:[%s1258_s8 + $0x150] ss:$8 sps:$4 sm:$0xff]   ;;  %v1011_v21 = vld [vmem:[%s1258_s8 + $0x80] ss:$8 sps:$4 sm:$0xff]  }
  0x3d   : > { %732 = vmatpush1.bf16.msra.mxu1 %v987_v60  ;;  %v1036_v20 = vld [vmem:[%s1258_s8 + $0x164] ss:$8 sps:$4 sm:$0xff]   ;;  %v1014_v22 = vld [vmem:[%s1258_s8 + $0x94] ss:$8 sps:$4 sm:$0xff]   ;;  %v1040_v23 = vld [vmem:[%s1258_s8 + $0x160] ss:$8 sps:$4 sm:$0xff]  }
  0x3e   : > { %733 = vmatprep.subr.bf16.mxu1 %v988_v61  ;;  %v1042_v24 = vld [vmem:[%s1258_s8 + $0x174] ss:$8 sps:$4 sm:$0xff]   ;;  %v1017_v25 = vld [vmem:[%s1258_s8 + $0x90] ss:$8 sps:$4 sm:$0xff]   ;;  %v451_v26 = vld [vmem:[%s1258_s8 + $0x180] sm:$0xff]  ;;  %s1336_s9 = smov (!%p395_p8, %s886_s9), 3 }
  0x3f   : > { %773 = vmatpush1.bf16.msra.mxu0 %v1016_v7  ;;  %v1020_v27 = vld [vmem:[%s1258_s8 + $0xa4] ss:$8 sps:$4 sm:$0xff]   ;;  %v1046_v28 = vld [vmem:[%s1258_s8 + $0x170] ss:$8 sps:$4 sm:$0xff]   ;;  %v941_v29 = vcombine.high %v451_v26, %v451_v26  ;;  %v940_v30 = vcombine.low %v451_v26, %v451_v26  ;;  %v1023_v31 = vld [vmem:[%s1258_s8 + $0xa0] ss:$8 sps:$4 sm:$0xff]  }
  0x40   : > { %774 = vmatprep.subr.bf16.mxu0 %v1018_v8  ;;  %v1026_v32 = vld [vmem:[%s1258_s8 + $0xb4] ss:$8 sps:$4 sm:$0xff]   ;;  %v1029_v34 = vld [vmem:[%s1258_s8 + $0xb0] ss:$8 sps:$4 sm:$0xff]   ;;  %v1032_v35 = vld [vmem:[%s1258_s8 + $0xc4] ss:$8 sps:$4 sm:$0xff]  }
  0x41   : > { %734 = vmatpush1.bf16.msra.mxu1 %v990_v63  ;;  %v722_v33 = vsel %vm720_vm1, %v940_v30, 0  ;;  %v1035_v37 = vld [vmem:[%s1258_s8 + $0xc0] ss:$8 sps:$4 sm:$0xff]   ;;  %v1038_v38 = vld [vmem:[%s1258_s8 + $0xd4] ss:$8 sps:$4 sm:$0xff]   ;;  %s887_s10 = sshll.u32 %s1336_s9, 3 }
  0x42   : > { %735 = vmatprep.subr.bf16.mxu1 %v991_v0  ;;  %v1041_v39 = vld [vmem:[%s1258_s8 + $0xd0] ss:$8 sps:$4 sm:$0xff]   ;;  %v1044_v40 = vld [vmem:[%s1258_s8 + $0xe4] ss:$8 sps:$4 sm:$0xff]   ;;  %v1047_v41 = vld [vmem:[%s1258_s8 + $0xe0] ss:$8 sps:$4 sm:$0xff]   ;;  %s398_s17 = scalar_lea.vmem %s1331_s3, %s887_s10 }
  0x43   : > { %775 = vmatpush1.bf16.msra.mxu0 %v1022_v11  ;;  %v1049_v42 = vld [vmem:[%s1258_s8 + $0xf4] ss:$8 sps:$4 sm:$0xff]   ;;  %v1052_v43 = vld [vmem:[%s1258_s8 + $0xf0] ss:$8 sps:$4 sm:$0xff]  }
  0x44   : > { %776 = vmatprep.subr.bf16.mxu0 %v1024_v12 }
  0x45   : > { %736 = vmatpush1.bf16.msra.mxu1 %v993_v3 }
  0x46   : > { %737 = vmatprep.subr.bf16.mxu1 %v994_v6 }
  0x47   : > { %777 = vmatpush1.bf16.msra.mxu0 %v1028_v15 }
  0x48   : > { %778 = vmatprep.subr.bf16.mxu0 %v1030_v16 }
  0x49   : > { %738 = vmatpush1.bf16.msra.mxu1 %v996_v9 }
  0x4a   : > { %739 = vmatprep.subr.bf16.mxu1 %v997_v10 }
  0x4b   : > { %779 = vmatpush1.bf16.msra.mxu0 %v1034_v19 }
  0x4c   : > { %780 = vmatprep.subr.bf16.mxu0 %v1036_v20 }
  0x4d   : > { %740 = vmatpush1.bf16.msra.mxu1 %v999_v13 }
  0x4e   : > { %741 = vmatprep.subr.bf16.mxu1 %v1002_v14 }
  0x4f   : > { %781 = vmatpush1.bf16.msra.mxu0 %v1040_v23 }
  0x50   : > { %782 = vmatprep.subr.bf16.mxu0 %v1042_v24 }
  0x51   : > { %742 = vmatpush1.bf16.msra.mxu1 %v1005_v17 }
  0x52   : > { %743 = vmatprep.subr.bf16.mxu1 %v1008_v18 }
  0x53   : > { %783 = vmatpush1.bf16.msra.mxu0 %v1046_v28 }
  0x54   : > { %942 = vmatprep.subr.msk.bf16.mxu0 %vm720_vm1, %v941_v29 }
  0x55   : > { %744 = vmatpush1.bf16.msra.mxu1 %v1011_v21 }
  0x56   : > { %745 = vmatprep.subr.bf16.mxu1 %v1014_v22 }
  0x57   : > { %785 = vmatpush1.bf16.msra.mxu0 %v722_v33 }
  0x59   : > { %746 = vmatpush1.bf16.msra.mxu1 %v1017_v25 }
  0x5a   : > { %747 = vmatprep.subr.bf16.mxu1 %v1020_v27  ;;  %801 = vmatmul.mubr.bf16.vlgmr.msra.gmra.mrb[0].mxu0 %v890_v36 }
  0x5d   : > { %748 = vmatpush1.bf16.msra.mxu1 %v1023_v31 }
  0x5e   : > { %749 = vmatprep.subr.bf16.mxu1 %v1026_v32 }
  0x61   : > { %750 = vmatpush1.bf16.msra.mxu1 %v1029_v34 }
  0x62   : > { %751 = vmatprep.subr.bf16.mxu1 %v1032_v35 }
  0x65   : > { %752 = vmatpush1.bf16.msra.mxu1 %v1035_v37 }
  0x66   : > { %753 = vmatprep.subr.bf16.mxu1 %v1038_v38 }
  0x69   : > { %754 = vmatpush1.bf16.msra.mxu1 %v1041_v39 }
  0x6a   : > { %755 = vmatprep.subr.bf16.mxu1 %v1044_v40 }
  0x6d   : > { %756 = vmatpush1.bf16.msra.mxu1 %v1047_v41 }
  0x6e   : > { %757 = vmatprep.subr.bf16.mxu1 %v1049_v42 }
  0x71   : > { %758 = vmatpush1.bf16.msra.mxu1 %v1052_v43 }
  0x74   : > { %760 = vmatmul.mubr.bf16.vlgmr.msra.gmra.mrb[0].mxu1 %v888_v44 }
  0xaf   : > { %v456_v49 = vpop.permute.xlu0 %455 }
 0x12d   : > { %v802_v45 = vpop.f32.mrb[0].mxu0 }
 0x12e   : > { %v804_v46 = vpop.f32.mrb[1].mxu0 }
 0x12f   : > { %v806_v47 = vpop.f32.mrb[2].mxu0 }
 0x130   : > { %v807_v48 = vpop.f32.mrb[3].mxu0 }
 0x147   : > { %v761_v51 = vpop.f32.mrb[0].mxu1 }
 0x148   : > { %v762_v52 = vadd.f32 %v761_v51, %v456_v49  ;;  %v763_v53 = vpop.f32.mrb[1].mxu1 }
 0x149   : > { %v764_v54 = vadd.f32 %v763_v53, %v456_v49  ;;  %v765_v55 = vpop.f32.mrb[2].mxu1 }
 0x14a   : > { %v803_v56 = vadd.f32 %v802_v45, %v762_v52  ;;  %v766_v57 = vpop.f32.mrb[3].mxu1 }
 0x14b   : > { %v805_v50 = vadd.f32 %v804_v46, %v764_v54 }
 0x14c   : > { %vm809_vm2 = vcmp.ge.f32.partialorder %v803_v56, 0.0  ;;  %v811_v58 = vmul.f32 0.1, %v803_v56 }
 0x14d   : > { %vm810_vm3 = vcmp.ge.f32.partialorder %v805_v50, 0.0  ;;  %v812_v59 = vmul.f32 0.1, %v805_v50 }
 0x14e   : > { %v813_v60 = vsel %vm809_vm2, %v803_v56, %v811_v58 }
 0x14f   : > { %815 = vst [vmem:[%s398_s17] sm:$0xff] %v813_v60  ;;  %v814_v61 = vsel %vm810_vm3, %v805_v50, %v812_v59 }
 0x150   : > { %816 = vst [vmem:[%s398_s17 + $0x8] sm:$0xff] %v814_v61 }
 0x151 PF: > { %p10_p9 = scmp.ge.s32.totalorder %s1119_s16, 4   ;;  %s1332_s12 = smov %s1075_s13 }
 0x152   : > { %s1333_s13 = smov %s1128_s19  ;;  %s1334_s14 = smov %s1119_s16 }
 0x153   :  { %12 = sbr.rel (!%p10_p9) target bundleno = 2 (0x2), region = 105 }

// kernel: _lambda_.52
= control target key start
LH: loop header
LB: loop body
LE: loop exit
PB: predicated region body
PF: predicated region fallthrough
CT: control target
= control target key end

     0   :  { %v233_v0 = vmov 0   ;;  %vm138_vm0 = vcmask 588800   ;;  %vm142_vm1 = vcmask 1043456   ;;  %s311_s1 = inlined_call_operand.vmem [shape: bf16[200,128], index: 1, kind: input, shape index: {}]   ;;  %s312_s0 = inlined_call_operand.vmem [shape: bf16[16,200], index: 0, kind: input, shape index: {}]   ;;  %s313_s2 = inlined_call_operand.vmem [shape: f32[16,1], index: 2, kind: input, shape index: {}]   ;;  %s314_s3 = inlined_call_operand.vmem [shape: f32[16,128], index: 3, kind: output, shape index: {}]  }
   0x1   :  { %146 = vmatprep.subr.bf16.mxu0 %v233_v0  ;;  %v217_v1 = vld [vmem:[%s311_s1] sm:$0xff]   ;;  %216 = vset.pattern.permute.xlu0 %v233_v0  ;;  %v218_v2 = vld [vmem:[%s311_s1 + $0x8] sm:$0xff]   ;;  %v219_v3 = vld [vmem:[%s311_s1 + $0x10] sm:$0xff]  }
   0x2   :  { %147 = vmatpush1.bf16.msra.mxu0 %v217_v1  ;;  %v220_v4 = vld [vmem:[%s311_s1 + $0x18] sm:$0xff]   ;;  %v232_v5 = vld [vmem:[%s312_s0 + $0x4] ss:$8 sps:$4 sm:$0xff]   ;;  %v223_v10 = vld [vmem:[%s311_s1 + $0x30] sm:$0xff]  }
   0x3   :  { %148 = vmatprep.subr.bf16.mxu0 %v233_v0  ;;  %v221_v6 = vld [vmem:[%s311_s1 + $0x20] sm:$0xff]   ;;  %214 = vmatprep.mubr.msk.bf16.mxu0 %vm138_vm0, %v232_v5  ;;  %v43_v8 = vld [vmem:[%s313_s2 + $0x8] sm:$0xff]  ;;  %v224_v11 = vld [vmem:[%s311_s1 + $0x38] sm:$0xff]  }
   0x4   :  { %v42_v7 = vld [vmem:[%s313_s2] sm:$0xff]  ;;  %v222_v9 = vld [vmem:[%s311_s1 + $0x28] sm:$0xff]   ;;  %v227_v14 = vld [vmem:[%s311_s1 + $0x50] sm:$0xff]  }
   0x5   :  { %46 = vperm.xlu0 %216, %v42_v7   ;;  %v225_v12 = vld [vmem:[%s311_s1 + $0x40] sm:$0xff]   ;;  %v226_v13 = vld [vmem:[%s311_s1 + $0x48] sm:$0xff]   ;;  %v228_v15 = vld [vmem:[%s311_s1 + $0x58] sm:$0xff]  }
   0x6   :  { %149 = vmatpush1.bf16.msra.mxu0 %v218_v2  ;;  %v229_v16 = vld [vmem:[%s311_s1 + $0x60] ss:$0 sps:$4 sm:$0xff]  }
   0x7   :  { %150 = vmatprep.subr.bf16.mxu0 %v233_v0  ;;  %v144_v17 = vsel %vm142_vm1, %v229_v16, 0  ;;  %v230_v18 = vld [vmem:[%s312_s0] ss:$8 sps:$4 sm:$0xff]  }
   0x9   :  { %51 = vperm.xlu0 %216, %v43_v8  }
   0xa   :  { %151 = vmatpush1.bf16.msra.mxu0 %v219_v3 }
   0xb   :  { %152 = vmatprep.subr.bf16.mxu0 %v233_v0 }
   0xe   :  { %153 = vmatpush1.bf16.msra.mxu0 %v220_v4 }
   0xf   :  { %154 = vmatprep.subr.bf16.mxu0 %v233_v0 }
  0x12   :  { %155 = vmatpush1.bf16.msra.mxu0 %v221_v6 }
  0x13   :  { %156 = vmatprep.subr.bf16.mxu0 %v233_v0 }
  0x16   :  { %157 = vmatpush1.bf16.msra.mxu0 %v222_v9 }
  0x17   :  { %158 = vmatprep.subr.bf16.mxu0 %v233_v0 }
  0x1a   :  { %159 = vmatpush1.bf16.msra.mxu0 %v223_v10 }
  0x1b   :  { %160 = vmatprep.subr.bf16.mxu0 %v233_v0 }
  0x1e   :  { %161 = vmatpush1.bf16.msra.mxu0 %v224_v11 }
  0x1f   :  { %162 = vmatprep.subr.bf16.mxu0 %v233_v0 }
  0x22   :  { %163 = vmatpush1.bf16.msra.mxu0 %v225_v12 }
  0x23   :  { %164 = vmatprep.subr.bf16.mxu0 %v233_v0 }
  0x26   :  { %165 = vmatpush1.bf16.msra.mxu0 %v226_v13 }
  0x27   :  { %166 = vmatprep.subr.bf16.mxu0 %v233_v0 }
  0x2a   :  { %167 = vmatpush1.bf16.msra.mxu0 %v227_v14 }
  0x2b   :  { %168 = vmatprep.subr.bf16.mxu0 %v233_v0 }
  0x2e   :  { %169 = vmatpush1.bf16.msra.mxu0 %v228_v15 }
  0x2f   :  { %170 = vmatprep.subr.bf16.mxu0 %v233_v0 }
  0x32   :  { %171 = vmatpush1.bf16.msra.mxu0 %v144_v17 }
  0x35   :  { %179 = vmatmul.mubr.bf16.vlgmr.msra.gmra.mrb[0].mxu0 %v230_v18 }
  0x84   :  { %v47_v19 = vpop.permute.xlu0 %46 }
  0x88   :  { %v52_v23 = vpop.permute.xlu0 %51 }
 0x108   :  { %v180_v20 = vpop.f32.mrb[0].mxu0 }
 0x109   :  { %v181_v21 = vadd.f32 %v180_v20, %v47_v19  ;;  %v182_v22 = vpop.f32.mrb[1].mxu0 }
 0x10a   :  { %v183_v24 = vpop.f32.mrb[2].mxu0 }
 0x10b   :  { %vm187_vm2 = vcmp.ge.f32.partialorder %v181_v21, 0.0  ;;  %v189_v25 = vmul.f32 0.1, %v181_v21  ;;  %v184_v26 = vadd.f32 %v183_v24, %v52_v23  ;;  %v185_v27 = vpop.f32.mrb[3].mxu0 }
 0x10d   :  { %v191_v28 = vsel %vm187_vm2, %v181_v21, %v189_v25  ;;  %vm188_vm3 = vcmp.ge.f32.partialorder %v184_v26, 0.0  ;;  %v190_v29 = vmul.f32 0.1, %v184_v26 }
 0x10e   :  { %193 = vst [vmem:[%s314_s3] sm:$0xff] %v191_v28 }
 0x10f   :  { %v192_v30 = vsel %vm188_vm3, %v184_v26, %v190_v29 }
 0x110   :  { %194 = vst [vmem:[%s314_s3 + $0x8] sm:$0xff] %v192_v30 }

// kernel: _lambda_.53
= control target key start
LH: loop header
LB: loop body
LE: loop exit
PB: predicated region body
PF: predicated region fallthrough
CT: control target
= control target key end

     0   :  { %v433_v0 = vmov 0   ;;  %vm250_vm0 = vcmask 130048   ;;  %s563_s1 = inlined_call_operand.vmem [shape: bf16[400,128], index: 1, kind: input, shape index: {}]   ;;  %s564_s0 = inlined_call_operand.vmem [shape: bf16[16,400], index: 0, kind: input, shape index: {}]   ;;  %s565_s2 = inlined_call_operand.vmem [shape: f32[16,1], index: 2, kind: input, shape index: {}]   ;;  %s566_s3 = inlined_call_operand.vmem [shape: f32[16,128], index: 3, kind: output, shape index: {}]  }
   0x1   :  { %295 = vmatprep.subr.bf16.mxu1 %v433_v0  ;;  %v402_v1 = vld [vmem:[%s563_s1 + $0x40] sm:$0xff]   ;;  %401 = vset.pattern.permute.xlu0 %v433_v0  ;;  %v405_v4 = vld [vmem:[%s563_s1 + $0x48] sm:$0xff]   ;;  %v408_v7 = vld [vmem:[%s563_s1 + $0x50] sm:$0xff]  }
   0x2   :  { %v403_v2 = vld [vmem:[%s563_s1 + $0x80] sm:$0xff]   ;;  %378 = vmatprep.subr.bf16.mxu0 %v402_v1  ;;  %v406_v5 = vld [vmem:[%s563_s1 + $0x88] sm:$0xff]   ;;  %v409_v8 = vld [vmem:[%s563_s1 + $0x90] sm:$0xff]  }
   0x3   :  { %v404_v3 = vld [vmem:[%s563_s1] sm:$0xff]   ;;  %296 = vmatpush1.bf16.msra.mxu1 %v403_v2  ;;  %v407_v6 = vld [vmem:[%s563_s1 + $0x8] sm:$0xff]   ;;  %v410_v9 = vld [vmem:[%s563_s1 + $0x10] sm:$0xff]  }
   0x4   :  { %379 = vmatpush3.bf16.msra.mxu0 %v404_v3  ;;  %297 = vmatprep.subr.bf16.mxu1 %v433_v0  ;;  %v411_v10 = vld [vmem:[%s563_s1 + $0x58] sm:$0xff]   ;;  %v414_v13 = vld [vmem:[%s563_s1 + $0x60] sm:$0xff]   ;;  %v417_v16 = vld [vmem:[%s563_s1 + $0x68] sm:$0xff]  }
   0x5   :  { %380 = vmatprep.subr.bf16.mxu0 %v405_v4  ;;  %v412_v11 = vld [vmem:[%s563_s1 + $0x98] sm:$0xff]   ;;  %v415_v14 = vld [vmem:[%s563_s1 + $0xa0] sm:$0xff]   ;;  %v418_v17 = vld [vmem:[%s563_s1 + $0xa8] sm:$0xff]  }
   0x6   :  { %v413_v12 = vld [vmem:[%s563_s1 + $0x18] sm:$0xff]   ;;  %v416_v15 = vld [vmem:[%s563_s1 + $0x20] sm:$0xff]   ;;  %v419_v18 = vld [vmem:[%s563_s1 + $0x28] sm:$0xff]  }
   0x7   :  { %298 = vmatpush1.bf16.msra.mxu1 %v406_v5  ;;  %v420_v19 = vld [vmem:[%s563_s1 + $0x70] sm:$0xff]   ;;  %v423_v22 = vld [vmem:[%s563_s1 + $0x78] sm:$0xff]   ;;  %v69_v26 = vld [vmem:[%s565_s2] sm:$0xff] }
   0x8   :  { %381 = vmatpush3.bf16.msra.mxu0 %v407_v6  ;;  %299 = vmatprep.subr.bf16.mxu1 %v433_v0  ;;  %v421_v20 = vld [vmem:[%s563_s1 + $0xb0] sm:$0xff]   ;;  %v424_v24 = vld [vmem:[%s563_s1 + $0xb8] sm:$0xff]   ;;  %v429_v29 = vld [vmem:[%s563_s1 + $0xc0] sm:$0xff]  }
   0x9   :  { %382 = vmatprep.subr.bf16.mxu0 %v408_v7  ;;  %v422_v21 = vld [vmem:[%s563_s1 + $0x30] sm:$0xff]   ;;  %v432_v25 = vld [vmem:[%s564_s0 + $0xc] ss:$16 sps:$4 sm:$0xff]   ;;  %73 = vperm.xlu0 %401, %v69_v26   ;;  %v430_v31 = vld [vmem:[%s564_s0 + $0x8] ss:$16 sps:$4 sm:$0xff]  }
   0xa   :  { %v428_v23 = vld [vmem:[%s564_s0 + $0x4] ss:$16 sps:$4 sm:$0xff]   ;;  %v425_v27 = vld [vmem:[%s563_s1 + $0x38] sm:$0xff]   ;;  %377 = vmatprep.mubr.msk.bf16.mxu1 %vm250_vm0, %v432_v25  ;;  %v426_v28 = vld [vmem:[%s564_s0] ss:$16 sps:$4 sm:$0xff]  }
   0xb   :  { %300 = vmatpush1.bf16.msra.mxu1 %v409_v8  ;;  %286 = vmatprep.mubr.bf16.mxu0 %v428_v23  ;;  %v70_v30 = vld [vmem:[%s565_s2 + $0x8] sm:$0xff] }
   0xc   :  { %383 = vmatpush3.bf16.msra.mxu0 %v410_v9  ;;  %301 = vmatprep.subr.bf16.mxu1 %v433_v0 }
   0xd   :  { %384 = vmatprep.subr.bf16.mxu0 %v411_v10  ;;  %78 = vperm.xlu0 %401, %v70_v30  }
   0xf   :  { %302 = vmatpush1.bf16.msra.mxu1 %v412_v11 }
  0x10   :  { %385 = vmatpush3.bf16.msra.mxu0 %v413_v12  ;;  %303 = vmatprep.subr.bf16.mxu1 %v433_v0 }
  0x11   :  { %386 = vmatprep.subr.bf16.mxu0 %v414_v13 }
  0x13   :  { %304 = vmatpush1.bf16.msra.mxu1 %v415_v14 }
  0x14   :  { %387 = vmatpush3.bf16.msra.mxu0 %v416_v15  ;;  %305 = vmatprep.subr.bf16.mxu1 %v433_v0 }
  0x15   :  { %388 = vmatprep.subr.bf16.mxu0 %v417_v16 }
  0x17   :  { %306 = vmatpush1.bf16.msra.mxu1 %v418_v17 }
  0x18   :  { %389 = vmatpush3.bf16.msra.mxu0 %v419_v18  ;;  %307 = vmatprep.subr.bf16.mxu1 %v433_v0 }
  0x19   :  { %390 = vmatprep.subr.bf16.mxu0 %v420_v19 }
  0x1b   :  { %308 = vmatpush1.bf16.msra.mxu1 %v421_v20 }
  0x1c   :  { %391 = vmatpush3.bf16.msra.mxu0 %v422_v21  ;;  %309 = vmatprep.subr.bf16.mxu1 %v433_v0 }
  0x1d   :  { %392 = vmatprep.subr.bf16.mxu0 %v423_v22 }
  0x1f   :  { %310 = vmatpush1.bf16.msra.mxu1 %v424_v24 }
  0x20   :  { %393 = vmatpush3.bf16.msra.mxu0 %v425_v27  ;;  %311 = vmatprep.subr.bf16.mxu1 %v433_v0 }
  0x23   :  { %287 = vmatmul.mubr.bf16.vlgmr.msra.gmra.mrb[0].mxu0 %v426_v28  ;;  %312 = vmatpush1.bf16.msra.mxu1 %v429_v29 }
  0x26   :  { %328 = vmatmul.mubr.bf16.vlgmr.msra.gmra.mrb[0].mxu1 %v430_v31 }
  0x88   :  { %v74_v32 = vpop.permute.xlu0 %73 }
  0x8c   :  { %v79_v42 = vpop.permute.xlu0 %78 }
  0xf6   :  { %v394_v33 = vpop.f32.mrb[0].mxu0 }
  0xf7   :  { %v395_v34 = vpop.f32.mrb[1].mxu0 }
  0xf8   :  { %v396_v35 = vadd.f32 %v395_v34, %v394_v33  ;;  %v397_v36 = vpop.f32.mrb[2].mxu0 }
  0xf9   :  { %v398_v37 = vpop.f32.mrb[3].mxu0  ;;  %v329_v38 = vpop.f32.mrb[0].mxu1 }
  0xfa   :  { %v399_v39 = vadd.f32 %v398_v37, %v397_v36  ;;  %v289_v40 = vadd.f32 %v396_v35, %v74_v32  ;;  %v331_v41 = vpop.f32.mrb[1].mxu1 }
  0xfb   :  { %v332_v43 = vpop.f32.mrb[2].mxu1 }
  0xfc   :  { %v330_v44 = vadd.f32 %v329_v38, %v289_v40  ;;  %v292_v45 = vadd.f32 %v399_v39, %v79_v42  ;;  %v334_v46 = vpop.f32.mrb[3].mxu1 }
  0xfe   :  { %vm336_vm1 = vcmp.ge.f32.partialorder %v330_v44, 0.0  ;;  %v338_v47 = vmul.f32 0.1, %v330_v44  ;;  %v333_v48 = vadd.f32 %v332_v43, %v292_v45 }
 0x100   :  { %v340_v49 = vsel %vm336_vm1, %v330_v44, %v338_v47  ;;  %vm337_vm2 = vcmp.ge.f32.partialorder %v333_v48, 0.0  ;;  %v339_v50 = vmul.f32 0.1, %v333_v48 }
 0x101   :  { %342 = vst [vmem:[%s566_s3] sm:$0xff] %v340_v49 }
 0x102   :  { %v341_v51 = vsel %vm337_vm2, %v333_v48, %v339_v50 }
 0x103   :  { %343 = vst [vmem:[%s566_s3 + $0x8] sm:$0xff] %v341_v51 }

// kernel: _lambda_.54
= control target key start
LH: loop header
LB: loop body
LE: loop exit
PB: predicated region body
PF: predicated region fallthrough
CT: control target
= control target key end

     0   :  { %v260_v0 = vmov 0   ;;  %vm133_vm0 = vcmask 130048   ;;  %s344_s1 = inlined_call_operand.vmem [shape: bf16[144,128], index: 1, kind: input, shape index: {}]   ;;  %s345_s0 = inlined_call_operand.vmem [shape: bf16[32,144], index: 0, kind: input, shape index: {}]   ;;  %s346_s2 = inlined_call_operand.vmem [shape: f32[32,1], index: 2, kind: input, shape index: {}]   ;;  %s347_s3 = inlined_call_operand.vmem [shape: f32[32,128], index: 3, kind: output, shape index: {}]  }
   0x1   :  { %140 = vmatprep.subr.bf16.mxu0 %v260_v0  ;;  %224 = vmatprep.subr.bf16.mxu1 %v260_v0  ;;  %v245_v1 = vld [vmem:[%s344_s1] sm:$0xff]   ;;  %v246_v2 = vld [vmem:[%s344_s1 + $0x8] sm:$0xff]   ;;  %v247_v3 = vld [vmem:[%s344_s1 + $0x10] sm:$0xff]  }
   0x2   :  { %244 = vset.pattern.permute.xlu1 %v260_v0  ;;  %243 = vset.pattern.permute.xlu0 %v260_v0  ;;  %v248_v4 = vld [vmem:[%s344_s1 + $0x18] sm:$0xff]   ;;  %v256_v5 = vld [vmem:[%s345_s0 + $0x4] ss:$8 sps:$4 sm:$0xff]   ;;  %v39_v7 = vld [vmem:[%s346_s2 + $0x10] sm:$0xff] }
   0x3   :  { %141 = vmatpush1.bf16.msra.mxu0 %v245_v1  ;;  %233 = vmatpush1.bf16.msra.mxu1 %v245_v1  ;;  %v259_v6 = vld [vmem:[%s345_s0 + $0x14] ss:$8 sps:$4 sm:$0xff]   ;;  %v37_v8 = vld [vmem:[%s346_s2] sm:$0xff]  ;;  %v38_v11 = vld [vmem:[%s346_s2 + $0x8] sm:$0xff] }
   0x4   :  { %142 = vmatprep.subr.bf16.mxu0 %v260_v0  ;;  %225 = vmatprep.subr.bf16.mxu1 %v260_v0  ;;  %v40_v9 = vld [vmem:[%s346_s2 + $0x18] sm:$0xff]  ;;  %v249_v10 = vld [vmem:[%s344_s1 + $0x20] sm:$0xff]   ;;  %v250_v12 = vld [vmem:[%s344_s1 + $0x28] sm:$0xff]  }
   0x5   :  { %222 = vmatprep.mubr.msk.bf16.mxu0 %vm133_vm0, %v256_v5  ;;  %53 = vperm.xlu1 %244, %v39_v7   ;;  %v251_v13 = vld [vmem:[%s344_s1 + $0x30] sm:$0xff]   ;;  %v252_v14 = vld [vmem:[%s344_s1 + $0x38] sm:$0xff]   ;;  %v253_v15 = vld [vmem:[%s344_s1 + $0x40] sm:$0xff]  }
   0x6   :  { %223 = vmatprep.mubr.msk.bf16.mxu1 %vm133_vm0, %v259_v6  ;;  %43 = vperm.xlu0 %243, %v37_v8   ;;  %v254_v16 = vld [vmem:[%s345_s0] ss:$8 sps:$4 sm:$0xff]   ;;  %v257_v17 = vld [vmem:[%s345_s0 + $0x10] ss:$8 sps:$4 sm:$0xff]  }
   0x7   :  { %143 = vmatpush1.bf16.msra.mxu0 %v246_v2  ;;  %234 = vmatpush1.bf16.msra.mxu1 %v246_v2 }
   0x8   :  { %144 = vmatprep.subr.bf16.mxu0 %v260_v0  ;;  %226 = vmatprep.subr.bf16.mxu1 %v260_v0 }
   0x9   :  { %58 = vperm.xlu1 %244, %v40_v9  }
   0xa   :  { %48 = vperm.xlu0 %243, %v38_v11  }
   0xb   :  { %145 = vmatpush1.bf16.msra.mxu0 %v247_v3  ;;  %235 = vmatpush1.bf16.msra.mxu1 %v247_v3 }
   0xc   :  { %146 = vmatprep.subr.bf16.mxu0 %v260_v0  ;;  %227 = vmatprep.subr.bf16.mxu1 %v260_v0 }
   0xf   :  { %147 = vmatpush1.bf16.msra.mxu0 %v248_v4  ;;  %236 = vmatpush1.bf16.msra.mxu1 %v248_v4 }
  0x10   :  { %148 = vmatprep.subr.bf16.mxu0 %v260_v0  ;;  %228 = vmatprep.subr.bf16.mxu1 %v260_v0 }
  0x13   :  { %149 = vmatpush1.bf16.msra.mxu0 %v249_v10  ;;  %237 = vmatpush1.bf16.msra.mxu1 %v249_v10 }
  0x14   :  { %150 = vmatprep.subr.bf16.mxu0 %v260_v0  ;;  %229 = vmatprep.subr.bf16.mxu1 %v260_v0 }
  0x17   :  { %151 = vmatpush1.bf16.msra.mxu0 %v250_v12  ;;  %238 = vmatpush1.bf16.msra.mxu1 %v250_v12 }
  0x18   :  { %152 = vmatprep.subr.bf16.mxu0 %v260_v0  ;;  %230 = vmatprep.subr.bf16.mxu1 %v260_v0 }
  0x1b   :  { %153 = vmatpush1.bf16.msra.mxu0 %v251_v13  ;;  %239 = vmatpush1.bf16.msra.mxu1 %v251_v13 }
  0x1c   :  { %154 = vmatprep.subr.bf16.mxu0 %v260_v0  ;;  %231 = vmatprep.subr.bf16.mxu1 %v260_v0 }
  0x1f   :  { %155 = vmatpush1.bf16.msra.mxu0 %v252_v14  ;;  %240 = vmatpush1.bf16.msra.mxu1 %v252_v14 }
  0x20   :  { %156 = vmatprep.subr.bf16.mxu0 %v260_v0  ;;  %232 = vmatprep.subr.bf16.mxu1 %v260_v0 }
  0x23   :  { %157 = vmatpush1.bf16.msra.mxu0 %v253_v15  ;;  %241 = vmatpush1.bf16.msra.mxu1 %v253_v15 }
  0x26   :  { %173 = vmatmul.mubr.bf16.vlgmr.msra.gmra.mrb[0].mxu0 %v254_v16  ;;  %181 = vmatmul.mubr.bf16.vlgmr.msra.gmra.mrb[0].mxu1 %v257_v17 }
  0x84   :  { %v54_v18 = vpop.permute.xlu1 %53 }
  0x85   :  { %v44_v19 = vpop.permute.xlu0 %43 }
  0x88   :  { %v59_v28 = vpop.permute.xlu1 %58 }
  0x89   :  { %v49_v29 = vpop.permute.xlu0 %48 }
  0xf9   :  { %v174_v20 = vpop.f32.mrb[0].mxu0  ;;  %v182_v21 = vpop.f32.mrb[0].mxu1 }
  0xfa   :  { %v175_v22 = vadd.f32 %v174_v20, %v44_v19  ;;  %v183_v23 = vadd.f32 %v182_v21, %v54_v18  ;;  %v176_v24 = vpop.f32.mrb[1].mxu0  ;;  %v184_v25 = vpop.f32.mrb[1].mxu1 }
  0xfb   :  { %v177_v26 = vpop.f32.mrb[2].mxu0  ;;  %v185_v27 = vpop.f32.mrb[2].mxu1 }
  0xfc   :  { %vm189_vm1 = vcmp.ge.f32.partialorder %v175_v22, 0.0  ;;  %v193_v30 = vmul.f32 0.1, %v175_v22  ;;  %vm191_vm2 = vcmp.ge.f32.partialorder %v183_v23, 0.0  ;;  %v195_v31 = vmul.f32 0.1, %v183_v23 }
  0xfd   :  { %v178_v32 = vadd.f32 %v177_v26, %v49_v29  ;;  %v186_v33 = vadd.f32 %v185_v27, %v59_v28  ;;  %v179_v34 = vpop.f32.mrb[3].mxu0  ;;  %v187_v35 = vpop.f32.mrb[3].mxu1 }
  0xfe   :  { %v197_v36 = vsel %vm189_vm1, %v175_v22, %v193_v30  ;;  %v199_v37 = vsel %vm191_vm2, %v183_v23, %v195_v31 }
  0xff   :  { %201 = vst [vmem:[%s347_s3] sm:$0xff] %v197_v36  ;;  %203 = vst [vmem:[%s347_s3 + $0x10] sm:$0xff] %v199_v37  ;;  %vm190_vm3 = vcmp.ge.f32.partialorder %v178_v32, 0.0  ;;  %v194_v38 = vmul.f32 0.1, %v178_v32  ;;  %vm192_vm4 = vcmp.ge.f32.partialorder %v186_v33, 0.0 }
 0x100   :  { %v196_v39 = vmul.f32 0.1, %v186_v33 }
 0x101   :  { %v198_v40 = vsel %vm190_vm3, %v178_v32, %v194_v38 }
 0x102   :  { %v200_v41 = vsel %vm192_vm4, %v186_v33, %v196_v39  ;;  %202 = vst [vmem:[%s347_s3 + $0x8] sm:$0xff] %v198_v40 }
 0x103   :  { %204 = vst [vmem:[%s347_s3 + $0x18] sm:$0xff] %v200_v41 }

// kernel: _lambda_.55
= control target key start
LH: loop header
LB: loop body
LE: loop exit
PB: predicated region body
PF: predicated region fallthrough
CT: control target
= control target key end

     0   :  { %v441_v1 = vmov 0   ;;  %vm221_vm0 = vcmask 261120   ;;  %s560_s1 = inlined_call_operand.vmem [shape: bf16[288,128], index: 1, kind: input, shape index: {}]   ;;  %s561_s0 = inlined_call_operand.vmem [shape: bf16[32,288], index: 0, kind: input, shape index: {}]   ;;  %s562_s2 = inlined_call_operand.vmem [shape: f32[32,1], index: 2, kind: input, shape index: {}]   ;;  %s563_s3 = inlined_call_operand.vmem [shape: f32[32,128], index: 3, kind: output, shape index: {}]  }
   0x1   :  { %v415_v0 = vld [vmem:[%s560_s1 + $0x40] sm:$0xff]   ;;  %413 = vset.pattern.permute.xlu0 %v441_v1  ;;  %414 = vset.pattern.permute.xlu1 %v441_v1  ;;  %v417_v3 = vld [vmem:[%s560_s1 + $0x48] sm:$0xff]   ;;  %v419_v5 = vld [vmem:[%s560_s1 + $0x50] sm:$0xff]  }
   0x2   :  { %v416_v2 = vld [vmem:[%s560_s1] sm:$0xff]   ;;  %372 = vmatprep.subr.bf16.mxu0 %v415_v0  ;;  %v418_v4 = vld [vmem:[%s560_s1 + $0x8] sm:$0xff]   ;;  %v420_v6 = vld [vmem:[%s560_s1 + $0x10] sm:$0xff]  }
   0x3   :  { %373 = vmatpush3.bf16.msra.mxu0 %v416_v2  ;;  %v421_v7 = vld [vmem:[%s560_s1 + $0x58] sm:$0xff]   ;;  %v423_v9 = vld [vmem:[%s560_s1 + $0x60] sm:$0xff]   ;;  %v425_v12 = vld [vmem:[%s560_s1 + $0x68] sm:$0xff]  }
   0x4   :  { %374 = vmatprep.subr.bf16.mxu0 %v417_v3  ;;  %v422_v8 = vld [vmem:[%s560_s1 + $0x18] sm:$0xff]   ;;  %v424_v10 = vld [vmem:[%s560_s1 + $0x20] sm:$0xff]   ;;  %v426_v13 = vld [vmem:[%s560_s1 + $0x28] sm:$0xff]  }
   0x5   :  { %v430_v11 = vld [vmem:[%s560_s1 + $0x80] sm:$0xff]   ;;  %v427_v14 = vld [vmem:[%s560_s1 + $0x70] sm:$0xff]   ;;  %v435_v16 = vld [vmem:[%s560_s1 + $0x88] sm:$0xff]  }
   0x6   :  { %404 = vmatprep.subr.bf16.mxu1 %v430_v11  ;;  %v434_v15 = vld [vmem:[%s561_s0 + $0x4] ss:$12 sps:$4 sm:$0xff]   ;;  %v436_v17 = vld [vmem:[%s561_s0 + $0x8] ss:$12 sps:$4 sm:$0xff]   ;;  %v437_v18 = vld [vmem:[%s561_s0 + $0x20] ss:$12 sps:$4 sm:$0xff]  }
   0x7   :  { %375 = vmatpush3.bf16.msra.mxu0 %v418_v4  ;;  %405 = vmatpush3.bf16.msra.mxu1 %v430_v11  ;;  %v59_v19 = vld [vmem:[%s562_s2] sm:$0xff]  ;;  %v428_v20 = vld [vmem:[%s560_s1 + $0x30] sm:$0xff]   ;;  %v429_v22 = vld [vmem:[%s560_s1 + $0x78] sm:$0xff]  }
   0x8   :  { %376 = vmatprep.subr.bf16.mxu0 %v419_v5  ;;  %260 = vmatprep.mubr.bf16.mxu0 %v434_v15  ;;  %v61_v21 = vld [vmem:[%s562_s2 + $0x10] sm:$0xff]  ;;  %v60_v23 = vld [vmem:[%s562_s2 + $0x8] sm:$0xff]  ;;  %v62_v24 = vld [vmem:[%s562_s2 + $0x18] sm:$0xff] }
   0x9   :  { %406 = vmatprep.subr.bf16.mxu1 %v435_v16  ;;  %408 = vmatprep.mubr.msk.bf16.mxu1 %vm221_vm0, %v436_v17  ;;  %v431_v25 = vld [vmem:[%s560_s1 + $0x38] sm:$0xff]   ;;  %v432_v26 = vld [vmem:[%s561_s0] ss:$12 sps:$4 sm:$0xff]  }
   0xa   :  { %65 = vperm.xlu0 %413, %v59_v19   ;;  %75 = vperm.xlu1 %414, %v61_v21   ;;  %v438_v27 = vld [vmem:[%s561_s0 + $0x1c] ss:$12 sps:$4 sm:$0xff]   ;;  %v440_v28 = vld [vmem:[%s561_s0 + $0x18] ss:$12 sps:$4 sm:$0xff]  }
   0xb   :  { %377 = vmatpush3.bf16.msra.mxu0 %v420_v6  ;;  %407 = vmatpush3.bf16.msra.mxu1 %v435_v16 }
   0xc   :  { %378 = vmatprep.subr.bf16.mxu0 %v421_v7 }
   0xe   :  { %409 = vmatmul.mubr.msk.bf16.vlgmr.msra.gmra.mrb[0].mxu1 %vm221_vm0, %v437_v18  ;;  %70 = vperm.xlu0 %413, %v60_v23  }
   0xf   :  { %379 = vmatpush3.bf16.msra.mxu0 %v422_v8  ;;  %80 = vperm.xlu1 %414, %v62_v24  }
  0x10   :  { %380 = vmatprep.subr.bf16.mxu0 %v423_v9 }
  0x13   :  { %381 = vmatpush3.bf16.msra.mxu0 %v424_v10 }
  0x14   :  { %382 = vmatprep.subr.bf16.mxu0 %v425_v12 }
  0x17   :  { %383 = vmatpush3.bf16.msra.mxu0 %v426_v13 }
  0x18   :  { %384 = vmatprep.subr.bf16.mxu0 %v427_v14 }
  0x1b   :  { %385 = vmatpush3.bf16.msra.mxu0 %v428_v20 }
  0x1c   :  { %386 = vmatprep.subr.bf16.mxu0 %v429_v22 }
  0x1f   :  { %387 = vmatpush3.bf16.msra.mxu0 %v431_v25 }
  0x22   :  { %261 = vmatmul.mubr.bf16.vlgmr.msra.gmra.mrb[0].mxu0 %v432_v26 }
  0x23   :  { %268 = vmatprep.mubr.bf16.mxu0 %v438_v27 }
  0x2a   :  { %269 = vmatmul.mubr.bf16.gmra.mrb[4].mxu0 %v440_v28 }
  0x89   :  { %v66_v33 = vpop.permute.xlu0 %65  ;;  %v76_v44 = vpop.permute.xlu1 %75 }
  0x8d   :  { %v71_v39 = vpop.permute.xlu0 %70 }
  0x8e   :  { %v81_v57 = vpop.permute.xlu1 %80 }
  0xe1   :  { %v410_v29 = vpop.f32.mrb[0].mxu1 }
  0xe2   :  { %v311_v30 = vpop.f32.mrb[1].mxu1 }
  0xe3   :  { %v411_v31 = vpop.f32.mrb[2].mxu1 }
  0xe4   :  { %v314_v32 = vpop.f32.mrb[3].mxu1 }
  0xf5   :  { %v388_v34 = vpop.f32.mrb[0].mxu0 }
  0xf6   :  { %v389_v35 = vpop.f32.mrb[1].mxu0 }
  0xf7   :  { %v390_v36 = vadd.f32 %v389_v35, %v388_v34  ;;  %v391_v37 = vpop.f32.mrb[2].mxu0 }
  0xf8   :  { %v392_v38 = vpop.f32.mrb[3].mxu0 }
  0xf9   :  { %v393_v40 = vadd.f32 %v392_v38, %v391_v37  ;;  %v263_v41 = vadd.f32 %v390_v36, %v66_v33 }
  0xfb   :  { %v266_v42 = vadd.f32 %v393_v40, %v71_v39  ;;  %v312_v43 = vadd.f32 %v311_v30, %v263_v41 }
  0xfd   :  { %vm326_vm1 = vcmp.ge.f32.partialorder %v312_v43, 0.0  ;;  %v330_v45 = vmul.f32 0.1, %v312_v43  ;;  %v315_v46 = vadd.f32 %v314_v32, %v266_v42  ;;  %v394_v47 = vpop.f32.mrb[4].mxu0 }
  0xfe   :  { %v395_v48 = vpop.f32.mrb[5].mxu0 }
  0xff   :  { %v334_v49 = vsel %vm326_vm1, %v312_v43, %v330_v45  ;;  %vm327_vm2 = vcmp.ge.f32.partialorder %v315_v46, 0.0  ;;  %v331_v50 = vmul.f32 0.1, %v315_v46  ;;  %v396_v51 = vadd.f32 %v395_v48, %v394_v47  ;;  %v397_v52 = vpop.f32.mrb[6].mxu0 }
 0x100   :  { %338 = vst [vmem:[%s563_s3] sm:$0xff] %v334_v49  ;;  %v398_v53 = vpop.f32.mrb[7].mxu0 }
 0x101   :  { %v335_v54 = vsel %vm327_vm2, %v315_v46, %v331_v50  ;;  %v271_v55 = vadd.f32 %v396_v51, %v76_v44  ;;  %v399_v56 = vadd.f32 %v398_v53, %v397_v52 }
 0x102   :  { %339 = vst [vmem:[%s563_s3 + $0x8] sm:$0xff] %v335_v54 }
 0x103   :  { %v320_v58 = vadd.f32 %v410_v29, %v271_v55  ;;  %v274_v59 = vadd.f32 %v399_v56, %v81_v57 }
 0x105   :  { %vm328_vm3 = vcmp.ge.f32.partialorder %v320_v58, 0.0  ;;  %v332_v60 = vmul.f32 0.1, %v320_v58  ;;  %v323_v61 = vadd.f32 %v411_v31, %v274_v59 }
 0x107   :  { %v336_v62 = vsel %vm328_vm3, %v320_v58, %v332_v60  ;;  %vm329_vm4 = vcmp.ge.f32.partialorder %v323_v61, 0.0  ;;  %v333_v63 = vmul.f32 0.1, %v323_v61 }
 0x108   :  { %340 = vst [vmem:[%s563_s3 + $0x10] sm:$0xff] %v336_v62 }
 0x109   :  { %v337_v0 = vsel %vm329_vm4, %v323_v61, %v333_v63 }
 0x10a   :  { %341 = vst [vmem:[%s563_s3 + $0x18] sm:$0xff] %v337_v0 }

// kernel: _lambda_.56
= control target key start
LH: loop header
LB: loop body
LE: loop exit
PB: predicated region body
PF: predicated region fallthrough
CT: control target
= control target key end

     0   :  { %v369_v1 = vmov 0.0   ;;  %vm370_vm0 = vmmov 0   ;;  %v371_v3 = vmov 0   ;;  %vm190_vm1 = vcmask 261120   ;;  %s467_s1 = inlined_call_operand.vmem [shape: bf16[288,128], index: 1, kind: input, shape index: {}]   ;;  %s468_s0 = inlined_call_operand.vmem [shape: bf16[16,288], index: 0, kind: input, shape index: {}]   ;;  %s469_s2 = inlined_call_operand.vmem [shape: f32[16,1], index: 2, kind: input, shape index: {}]   ;;  %s470_s3 = inlined_call_operand.vmem [shape: f32[16,128], index: 3, kind: output, shape index: {}]  }
   0x1   :  { %v347_v0 = vld [vmem:[%s467_s1 + $0x40] sm:$0xff]   ;;  %335 = vmatprep.subr.bf16.mxu1 %v369_v1  ;;  %339 = vmatprep.mubr.msk.bf16.mxu1 %vm370_vm0, %v369_v1  ;;  %v349_v4 = vld [vmem:[%s467_s1 + $0x48] sm:$0xff]   ;;  %v351_v6 = vld [vmem:[%s467_s1 + $0x50] sm:$0xff]  }
   0x2   :  { %v348_v2 = vld [vmem:[%s467_s1] sm:$0xff]   ;;  %346 = vset.pattern.permute.xlu0 %v371_v3  ;;  %310 = vmatprep.subr.bf16.mxu0 %v347_v0  ;;  %v350_v5 = vld [vmem:[%s467_s1 + $0x8] sm:$0xff]   ;;  %v352_v7 = vld [vmem:[%s467_s1 + $0x10] sm:$0xff]  }
   0x3   :  { %311 = vmatpush3.bf16.msra.mxu0 %v348_v2  ;;  %v353_v8 = vld [vmem:[%s467_s1 + $0x58] sm:$0xff]   ;;  %v355_v10 = vld [vmem:[%s467_s1 + $0x60] sm:$0xff]   ;;  %v357_v13 = vld [vmem:[%s467_s1 + $0x68] sm:$0xff]  }
   0x4   :  { %312 = vmatprep.subr.bf16.mxu0 %v349_v4  ;;  %v354_v9 = vld [vmem:[%s467_s1 + $0x18] sm:$0xff]   ;;  %v361_v11 = vld [vmem:[%s467_s1 + $0x80] sm:$0xff]   ;;  %v358_v14 = vld [vmem:[%s467_s1 + $0x28] sm:$0xff]  }
   0x5   :  { %v356_v12 = vld [vmem:[%s467_s1 + $0x20] sm:$0xff]   ;;  %336 = vmatpush3.bf16.msra.mxu1 %v361_v11  ;;  %v367_v16 = vld [vmem:[%s467_s1 + $0x88] sm:$0xff]   ;;  %v359_v17 = vld [vmem:[%s467_s1 + $0x70] sm:$0xff]  }
   0x6   :  { %337 = vmatprep.subr.bf16.mxu1 %v369_v1  ;;  %v366_v15 = vld [vmem:[%s468_s0 + $0x4] ss:$12 sps:$4 sm:$0xff]   ;;  %v368_v18 = vld [vmem:[%s468_s0 + $0x8] ss:$12 sps:$4 sm:$0xff]   ;;  %v362_v22 = vld [vmem:[%s467_s1 + $0x78] sm:$0xff]  }
   0x7   :  { %313 = vmatpush3.bf16.msra.mxu0 %v350_v5  ;;  %226 = vmatprep.mubr.bf16.mxu0 %v366_v15  ;;  %v55_v19 = vld [vmem:[%s469_s2] sm:$0xff]  ;;  %v56_v20 = vld [vmem:[%s469_s2 + $0x8] sm:$0xff]  ;;  %v360_v21 = vld [vmem:[%s467_s1 + $0x30] sm:$0xff]  }
   0x8   :  { %314 = vmatprep.subr.bf16.mxu0 %v351_v6  ;;  %59 = vperm.xlu0 %346, %v55_v19   ;;  %v363_v23 = vld [vmem:[%s467_s1 + $0x38] sm:$0xff]   ;;  %v364_v24 = vld [vmem:[%s468_s0] ss:$12 sps:$4 sm:$0xff]  }
   0x9   :  { %338 = vmatpush3.bf16.msra.mxu1 %v367_v16 }
   0xb   :  { %315 = vmatpush3.bf16.msra.mxu0 %v352_v7 }
   0xc   :  { %316 = vmatprep.subr.bf16.mxu0 %v353_v8  ;;  %340 = vmatmul.mubr.msk.bf16.vlgmr.msra.gmra.mrb[0].mxu1 %vm190_vm1, %v368_v18 }
   0xd   :  { %64 = vperm.xlu0 %346, %v56_v20  }
   0xf   :  { %317 = vmatpush3.bf16.msra.mxu0 %v354_v9 }
  0x10   :  { %318 = vmatprep.subr.bf16.mxu0 %v355_v10 }
  0x13   :  { %319 = vmatpush3.bf16.msra.mxu0 %v356_v12 }
  0x14   :  { %320 = vmatprep.subr.bf16.mxu0 %v357_v13 }
  0x17   :  { %321 = vmatpush3.bf16.msra.mxu0 %v358_v14 }
  0x18   :  { %322 = vmatprep.subr.bf16.mxu0 %v359_v17 }
  0x1b   :  { %323 = vmatpush3.bf16.msra.mxu0 %v360_v21 }
  0x1c   :  { %324 = vmatprep.subr.bf16.mxu0 %v362_v22 }
  0x1f   :  { %325 = vmatpush3.bf16.msra.mxu0 %v363_v23 }
  0x22   :  { %227 = vmatmul.mubr.bf16.vlgmr.msra.gmra.mrb[0].mxu0 %v364_v24 }
  0x87   :  { %v60_v29 = vpop.permute.xlu0 %59 }
  0x8c   :  { %v65_v37 = vpop.permute.xlu0 %64 }
  0xdf   :  { %v269_v25 = vpop.f32.mrb[0].mxu1 }
  0xe0   :  { %v341_v26 = vpop.f32.mrb[1].mxu1 }
  0xe1   :  { %v272_v27 = vpop.f32.mrb[2].mxu1 }
  0xe2   :  { %v342_v28 = vpop.f32.mrb[3].mxu1 }
  0xf5   :  { %v326_v30 = vpop.f32.mrb[0].mxu0 }
  0xf6   :  { %v327_v31 = vpop.f32.mrb[1].mxu0 }
  0xf7   :  { %v328_v32 = vadd.f32 %v327_v31, %v326_v30  ;;  %v329_v33 = vpop.f32.mrb[2].mxu0 }
  0xf8   :  { %v330_v34 = vpop.f32.mrb[3].mxu0 }
  0xf9   :  { %v229_v35 = vadd.f32 %v328_v32, %v60_v29  ;;  %v331_v36 = vadd.f32 %v330_v34, %v329_v33 }
  0xfb   :  { %v270_v38 = vadd.f32 %v269_v25, %v229_v35  ;;  %v232_v39 = vadd.f32 %v331_v36, %v65_v37 }
  0xfd   :  { %vm276_vm2 = vcmp.ge.f32.partialorder %v270_v38, 0.0  ;;  %v278_v40 = vmul.f32 0.1, %v270_v38  ;;  %v273_v41 = vadd.f32 %v272_v27, %v232_v39 }
  0xff   :  { %v280_v42 = vsel %vm276_vm2, %v270_v38, %v278_v40  ;;  %vm277_vm3 = vcmp.ge.f32.partialorder %v273_v41, 0.0  ;;  %v279_v43 = vmul.f32 0.1, %v273_v41 }
 0x100   :  { %282 = vst [vmem:[%s470_s3] sm:$0xff] %v280_v42 }
 0x101   :  { %v281_v44 = vsel %vm277_vm3, %v273_v41, %v279_v43 }
 0x102   :  { %283 = vst [vmem:[%s470_s3 + $0x8] sm:$0xff] %v281_v44 }

// kernel: _lambda_.58
= control target key start
LH: loop header
LB: loop body
LE: loop exit
PB: predicated region body
PF: predicated region fallthrough
CT: control target
= control target key end

     0   :  { %s648_s12 = smov 0   ;;  %s650_s13 = smov 0   ;;  %s746_s0 = inlined_call_operand.vmem [shape: bf16[8,144], index: 0, kind: input, shape index: {}]   ;;  %s747_s1 = inlined_call_operand.vmem [shape: bf16[144,512], index: 1, kind: input, shape index: {}]   ;;  %s748_s2 = inlined_call_operand.vmem [shape: f32[8,1], index: 2, kind: input, shape index: {}]   ;;  %s749_s3 = inlined_call_operand.vmem [shape: f32[8,512], index: 3, kind: output, shape index: {}]  }
   0x1   :  { %s652_s14 = smov 0  }
   0x2 LB: > { %s513_s15 = sadd.s32 4294967295, %s625_s14   ;;  %s665_s16 = sadd.s32 1, %s625_s14   ;;  %s625_s14 = sphi %s652_s14, %s752_s14   ;;  %s621_s13 = sphi %s650_s13, %s751_s13   ;;  %s617_s12 = sphi %s648_s12, %s750_s12  }
   0x3   : > { %s38_s17 = ssub.s32 %s625_s14, %s665_s16  ;;  %s41_s18 = sadd.s32 1, %s621_s13 }
   0x4   : > { %p39_p0 = scmp.eq.s32.totalorder %s38_s17, 0  ;;  %p48_p1 = scmp.ne.s32.totalorder %s621_s13, %s617_s12 }
   0x5   : > { %p49_p2 = scmp.eq.s32.totalorder %s625_s14, 0  ;;  %p516_p4 = scmp.ge.s32.totalorder %s625_s14, 2 }
   0x6   : > { %s674_s19 = scalar_select %p39_p0, %s621_s13, %s41_s18  }
   0x7   : > { %p50_p3 = por %p49_p2, %p48_p1  ;;  %127 = sbr.rel (%p516_p4) target bundleno = 27 (0x1b), region = 24 }
   0xe   : > { %130 = sbr.rel (!%p50_p3) target bundleno = 27 (0x1b), region = 28  ;;  %s132_s20 = sand.u32 (%p50_p3), 1, %s621_s13  }
   0xf   : > { %s545_s21 = sshll.u32 (%p50_p3), %s625_s14, 3  ;;  %s546_s22 = smul.u32 (%p50_p3), 144, %s132_s20 }
  0x10   : > { %s682_s25 = scalar_lea.vmem (%p50_p3), %s747_s1, %s545_s21 }
  0x11   : > { %v199_v0 = vld [vmem:[%s682_s25] sm:$0xff] (%p50_p3)  ;;  %v201_v1 = vld [vmem:[%s682_s25 + $0x10] sm:$0xff] (%p50_p3)  ;;  %s134_s26 = scalar_lea.vmem (%p50_p3), [#allocation2], %s546_s22 }
  0x12   : > { %v203_v2 = vld [vmem:[%s682_s25 + $0x20] sm:$0xff] (%p50_p3)  ;;  %v205_v3 = vld [vmem:[%s682_s25 + $0x30] sm:$0xff] (%p50_p3)  ;;  %200 = vst [vmem:[%s134_s26] sm:$0xff] (%p50_p3), %v199_v0  ;;  %202 = vst [vmem:[%s134_s26 + $0x8] sm:$0xff] (%p50_p3), %v201_v1 }
  0x13   : > { %v207_v4 = vld [vmem:[%s682_s25 + $0x40] sm:$0xff] (%p50_p3)  ;;  %v209_v5 = vld [vmem:[%s682_s25 + $0x50] sm:$0xff] (%p50_p3)  ;;  %204 = vst [vmem:[%s134_s26 + $0x10] sm:$0xff] (%p50_p3), %v203_v2  ;;  %206 = vst [vmem:[%s134_s26 + $0x18] sm:$0xff] (%p50_p3), %v205_v3 }
  0x14   : > { %208 = vst [vmem:[%s134_s26 + $0x20] sm:$0xff] (%p50_p3), %v207_v4  ;;  %210 = vst [vmem:[%s134_s26 + $0x28] sm:$0xff] (%p50_p3), %v209_v5  ;;  %v211_v6 = vld [vmem:[%s682_s25 + $0x60] sm:$0xff] (%p50_p3)  ;;  %v213_v7 = vld [vmem:[%s682_s25 + $0x70] sm:$0xff] (%p50_p3) }
  0x15   : > { %v215_v8 = vld [vmem:[%s682_s25 + $0x80] sm:$0xff]  ;;  %212 = vst [vmem:[%s134_s26 + $0x30] sm:$0xff] %v211_v6  ;;  %214 = vst [vmem:[%s134_s26 + $0x38] sm:$0xff] %v213_v7  ;;  %v217_v9 = vld [vmem:[%s682_s25 + $0x90] sm:$0xff] }
  0x16   : > { %216 = vst [vmem:[%s134_s26 + $0x40] sm:$0xff] %v215_v8  ;;  %v219_v10 = vld [vmem:[%s682_s25 + $0xa0] sm:$0xff]  ;;  %v221_v11 = vld [vmem:[%s682_s25 + $0xb0] sm:$0xff]  ;;  %218 = vst [vmem:[%s134_s26 + $0x48] sm:$0xff] %v217_v9 }
  0x17   : > { %220 = vst [vmem:[%s134_s26 + $0x50] sm:$0xff] %v219_v10  ;;  %222 = vst [vmem:[%s134_s26 + $0x58] sm:$0xff] %v221_v11  ;;  %v223_v12 = vld [vmem:[%s682_s25 + $0xc0] sm:$0xff]  ;;  %v225_v13 = vld [vmem:[%s682_s25 + $0xd0] sm:$0xff] }
  0x18   : > { %v227_v14 = vld [vmem:[%s682_s25 + $0xe0] sm:$0xff]  ;;  %224 = vst [vmem:[%s134_s26 + $0x60] sm:$0xff] %v223_v12  ;;  %226 = vst [vmem:[%s134_s26 + $0x68] sm:$0xff] %v225_v13  ;;  %v229_v15 = vld [vmem:[%s682_s25 + $0xf0] sm:$0xff] }
  0x19   : > { %228 = vst [vmem:[%s134_s26 + $0x70] sm:$0xff] %v227_v14  ;;  %v231_v16 = vld [vmem:[%s682_s25 + $0x100] sm:$0xff]  ;;  %v233_v17 = vld [vmem:[%s682_s25 + $0x110] sm:$0xff]  ;;  %230 = vst [vmem:[%s134_s26 + $0x78] sm:$0xff] %v229_v15 }
  0x1a   : > { %232 = vst [vmem:[%s134_s26 + $0x80] sm:$0xff] %v231_v16  ;;  %234 = vst [vmem:[%s134_s26 + $0x88] sm:$0xff] %v233_v17 }
  0x1b PF: > { %p519_p5 = scmp.ge.s32.totalorder %s625_s14, 1  ;;  %p239_p6 = scmp.lt.s32.totalorder %s625_s14, 3 }
  0x1d   : > { %p240_p7 = pnand %p519_p5, %p239_p6 }
  0x1e   : > { %s246_s27 = sand.u32 (!%p240_p7), 1, %s617_s12   ;;  %v277_v18 = vld [vmem:[%s746_s0] sm:$0xff] (!%p240_p7)  ;;  %vm398_vm0 = vcmask (!%p240_p7), 130048   ;;  %v627_v21 = vmov (!%p240_p7), 0   ;;  %s520_s7 = sshll.u32 (!%p240_p7), %s513_s15, 1 }
  0x1f   : > { %243 = sbr.rel (%p240_p7) target bundleno = 291 (0x123), region = 66  ;;  %v296_v19 = vld [vmem:[%s748_s2] sm:$0xff] (!%p240_p7)  ;;  %v523_v20 = vcombine.high (!%p240_p7), %v277_v18, %v277_v18  ;;  %573 = vset.pattern.permute.xlu0 (!%p240_p7), %v627_v21  ;;  %v522_v40 = vcombine.low (!%p240_p7), %v277_v18, %v277_v18  ;;  %p271_p8 = scmp.lt.s32.totalorder (!%p240_p7), %s520_s7, 3 }
  0x20   : > { %s547_s5 = smul.u32 (!%p240_p7), 144, %s246_s27  ;;  %299 = vperm.xlu0 (!%p240_p7), %573, %v296_v19  }
  0x21   : > { %542 = vmatprep.mubr.msk.bf16.mxu0 (!%p240_p7), %vm398_vm0, %v523_v20 }
  0x22   : > { %s711_s6 = scalar_lea.vmem (!%p240_p7), [#allocation2], %s547_s5 }
  0x23   : > { %v574_v22 = vld [vmem:[%s711_s6 + $0x4] ss:$8 sps:$4 sm:$0xff] (!%p240_p7)   ;;  %v576_v23 = vld [vmem:[%s711_s6] ss:$8 sps:$4 sm:$0xff] (!%p240_p7)   ;;  %v577_v24 = vld [vmem:[%s711_s6 + $0x14] ss:$8 sps:$4 sm:$0xff] (!%p240_p7)  }
  0x24   : > { %402 = vmatprep.subr.bf16.mxu0 (!%p240_p7), %v574_v22  ;;  %v579_v25 = vld [vmem:[%s711_s6 + $0x10] ss:$8 sps:$4 sm:$0xff] (!%p240_p7)   ;;  %v580_v26 = vld [vmem:[%s711_s6 + $0x24] ss:$8 sps:$4 sm:$0xff] (!%p240_p7)   ;;  %v582_v27 = vld [vmem:[%s711_s6 + $0x20] ss:$8 sps:$4 sm:$0xff] (!%p240_p7)  }
  0x25   : > { %403 = vmatpush1.bf16.msra.mxu0 (!%p240_p7), %v576_v23  ;;  %v583_v28 = vld [vmem:[%s711_s6 + $0x34] ss:$8 sps:$4 sm:$0xff] (!%p240_p7)   ;;  %v585_v29 = vld [vmem:[%s711_s6 + $0x30] ss:$8 sps:$4 sm:$0xff] (!%p240_p7)   ;;  %v586_v30 = vld [vmem:[%s711_s6 + $0x44] ss:$8 sps:$4 sm:$0xff] (!%p240_p7)  }
  0x26   : > { %404 = vmatprep.subr.bf16.mxu0 %v577_v24  ;;  %v588_v31 = vld [vmem:[%s711_s6 + $0x40] ss:$8 sps:$4 sm:$0xff]   ;;  %v589_v32 = vld [vmem:[%s711_s6 + $0x54] ss:$8 sps:$4 sm:$0xff]   ;;  %v591_v33 = vld [vmem:[%s711_s6 + $0x50] ss:$8 sps:$4 sm:$0xff]  }
  0x27   : > { %v592_v34 = vld [vmem:[%s711_s6 + $0x64] ss:$8 sps:$4 sm:$0xff]   ;;  %v594_v35 = vld [vmem:[%s711_s6 + $0x60] ss:$8 sps:$4 sm:$0xff]   ;;  %v595_v36 = vld [vmem:[%s711_s6 + $0x74] ss:$8 sps:$4 sm:$0xff]  }
  0x28   : > { %v597_v37 = vld [vmem:[%s711_s6 + $0x70] ss:$8 sps:$4 sm:$0xff]   ;;  %v598_v38 = vld [vmem:[%s711_s6 + $0x84] ss:$8 sps:$4 sm:$0xff]   ;;  %v600_v39 = vld [vmem:[%s711_s6 + $0x80] ss:$8 sps:$4 sm:$0xff]  }
  0x29   : > { %405 = vmatpush1.bf16.msra.mxu0 %v579_v25  ;;  %s754_s7 = smov (!%p271_p8, %s520_s7), 3 }
  0x2a   : > { %406 = vmatprep.subr.bf16.mxu0 %v580_v26  ;;  %s521_s8 = sshll.u32 %s754_s7, 3 }
  0x2b   : > { %s274_s11 = scalar_lea.vmem %s749_s3, %s521_s8 }
  0x2d   : > { %407 = vmatpush1.bf16.msra.mxu0 %v582_v27 }
  0x2e   : > { %408 = vmatprep.subr.bf16.mxu0 %v583_v28 }
  0x31   : > { %409 = vmatpush1.bf16.msra.mxu0 %v585_v29 }
  0x32   : > { %410 = vmatprep.subr.bf16.mxu0 %v586_v30 }
  0x35   : > { %411 = vmatpush1.bf16.msra.mxu0 %v588_v31 }
  0x36   : > { %412 = vmatprep.subr.bf16.mxu0 %v589_v32 }
  0x39   : > { %413 = vmatpush1.bf16.msra.mxu0 %v591_v33 }
  0x3a   : > { %414 = vmatprep.subr.bf16.mxu0 %v592_v34 }
  0x3d   : > { %415 = vmatpush1.bf16.msra.mxu0 %v594_v35 }
  0x3e   : > { %416 = vmatprep.subr.bf16.mxu0 %v595_v36 }
  0x41   : > { %417 = vmatpush1.bf16.msra.mxu0 %v597_v37 }
  0x42   : > { %418 = vmatprep.subr.bf16.mxu0 %v598_v38 }
  0x45   : > { %419 = vmatpush1.bf16.msra.mxu0 %v600_v39 }
  0x48   : > { %435 = vmatmul.mubr.bf16.vlgmr.msra.gmra.mrb[0].mxu0 %v522_v40 }
  0x9f   : > { %v300_v41 = vpop.permute.xlu0 %299 }
 0x11b   : > { %v436_v42 = vpop.f32.mrb[0].mxu0 }
 0x11c   : > { %v437_v43 = vadd.f32 %v436_v42, %v300_v41  ;;  %v438_v44 = vpop.f32.mrb[1].mxu0 }
 0x11d   : > { %v439_v45 = vadd.f32 %v438_v44, %v300_v41  ;;  %v440_v46 = vpop.f32.mrb[2].mxu0 }
 0x11e   : > { %vm443_vm1 = vcmp.ge.f32.partialorder %v437_v43, 0.0  ;;  %v445_v47 = vmul.f32 0.1, %v437_v43  ;;  %v441_v48 = vpop.f32.mrb[3].mxu0 }
 0x11f   : > { %vm444_vm2 = vcmp.ge.f32.partialorder %v439_v45, 0.0  ;;  %v446_v49 = vmul.f32 0.1, %v439_v45 }
 0x120   : > { %v447_v50 = vsel %vm443_vm1, %v437_v43, %v445_v47 }
 0x121   : > { %449 = vst [vmem:[%s274_s11] sm:$0xff] %v447_v50  ;;  %v448_v51 = vsel %vm444_vm2, %v439_v45, %v446_v49 }
 0x122   : > { %450 = vst [vmem:[%s274_s11 + $0x8] sm:$0xff] %v448_v51 }
 0x123 PF: > { %p10_p9 = scmp.ge.s32.totalorder %s665_s16, 4   ;;  %s750_s12 = smov %s621_s13 }
 0x124   : > { %s751_s13 = smov %s674_s19  ;;  %s752_s14 = smov %s665_s16 }
 0x125   :  { %12 = sbr.rel (!%p10_p9) target bundleno = 2 (0x2), region = 105 }

// kernel: _lambda_.60
= control target key start
LH: loop header
LB: loop body
LE: loop exit
PB: predicated region body
PF: predicated region fallthrough
CT: control target
= control target key end

     0   :  { %s538_s12 = smov 0   ;;  %s540_s13 = smov 0   ;;  %s596_s0 = inlined_call_operand.vmem [shape: bf16[4,72], index: 0, kind: input, shape index: {}]   ;;  %s597_s1 = inlined_call_operand.vmem [shape: bf16[72,512], index: 1, kind: input, shape index: {}]   ;;  %s598_s2 = inlined_call_operand.vmem [shape: f32[4,1], index: 2, kind: input, shape index: {}]   ;;  %s599_s3 = inlined_call_operand.vmem [shape: f32[4,512], index: 3, kind: output, shape index: {}]  }
   0x1   :  { %s542_s14 = smov 0  }
   0x2 LB: > { %s427_s15 = sadd.s32 4294967295, %s515_s14   ;;  %s555_s16 = sadd.s32 1, %s515_s14   ;;  %s515_s14 = sphi %s542_s14, %s602_s14   ;;  %s511_s13 = sphi %s540_s13, %s601_s13   ;;  %s507_s12 = sphi %s538_s12, %s600_s12  }
   0x3   : > { %s38_s17 = ssub.s32 %s515_s14, %s555_s16  ;;  %s41_s18 = sadd.s32 1, %s511_s13 }
   0x4   : > { %p39_p0 = scmp.eq.s32.totalorder %s38_s17, 0  ;;  %p48_p1 = scmp.ne.s32.totalorder %s511_s13, %s507_s12 }
   0x5   : > { %p49_p2 = scmp.eq.s32.totalorder %s515_s14, 0  ;;  %p430_p4 = scmp.ge.s32.totalorder %s515_s14, 2 }
   0x6   : > { %s564_s19 = scalar_select %p39_p0, %s511_s13, %s41_s18  }
   0x7   : > { %p50_p3 = por %p49_p2, %p48_p1  ;;  %127 = sbr.rel (%p430_p4) target bundleno = 23 (0x17), region = 24 }
   0xe   : > { %130 = sbr.rel (!%p50_p3) target bundleno = 23 (0x17), region = 28  ;;  %s132_s20 = sand.u32 (%p50_p3), 1, %s511_s13  }
   0xf   : > { %s450_s21 = sshll.u32 (%p50_p3), %s515_s14, 3  ;;  %s451_s22 = smul.u32 (%p50_p3), 72, %s132_s20 }
  0x10   : > { %s137_s25 = scalar_lea.vmem (%p50_p3), %s597_s1, %s450_s21 }
  0x11   : > { %v181_v0 = vld [vmem:[%s137_s25] sm:$0xff] (%p50_p3)  ;;  %v183_v1 = vld [vmem:[%s137_s25 + $0x10] sm:$0xff] (%p50_p3)  ;;  %s134_s26 = scalar_lea.vmem (%p50_p3), [#allocation2], %s451_s22 }
  0x12   : > { %v185_v2 = vld [vmem:[%s137_s25 + $0x20] sm:$0xff] (%p50_p3)  ;;  %v187_v3 = vld [vmem:[%s137_s25 + $0x30] sm:$0xff] (%p50_p3)  ;;  %182 = vst [vmem:[%s134_s26] sm:$0xff] (%p50_p3), %v181_v0  ;;  %184 = vst [vmem:[%s134_s26 + $0x8] sm:$0xff] (%p50_p3), %v183_v1 }
  0x13   : > { %v189_v4 = vld [vmem:[%s137_s25 + $0x40] sm:$0xff] (%p50_p3)  ;;  %v191_v5 = vld [vmem:[%s137_s25 + $0x50] sm:$0xff] (%p50_p3)  ;;  %186 = vst [vmem:[%s134_s26 + $0x10] sm:$0xff] (%p50_p3), %v185_v2  ;;  %188 = vst [vmem:[%s134_s26 + $0x18] sm:$0xff] (%p50_p3), %v187_v3 }
  0x14   : > { %190 = vst [vmem:[%s134_s26 + $0x20] sm:$0xff] (%p50_p3), %v189_v4  ;;  %192 = vst [vmem:[%s134_s26 + $0x28] sm:$0xff] (%p50_p3), %v191_v5  ;;  %v193_v6 = vld [vmem:[%s137_s25 + $0x60] sm:$0xff] (%p50_p3)  ;;  %v195_v7 = vld [vmem:[%s137_s25 + $0x70] sm:$0xff] (%p50_p3) }
  0x15   : > { %v197_v8 = vld [vmem:[%s137_s25 + $0x80] sm:$0xff]  ;;  %194 = vst [vmem:[%s134_s26 + $0x30] sm:$0xff] %v193_v6  ;;  %196 = vst [vmem:[%s134_s26 + $0x38] sm:$0xff] %v195_v7 }
  0x16   : > { %198 = vst [vmem:[%s134_s26 + $0x40] sm:$0xff] %v197_v8 }
  0x17 PF: > { %p433_p5 = scmp.ge.s32.totalorder %s515_s14, 1  ;;  %p203_p6 = scmp.lt.s32.totalorder %s515_s14, 3 }
  0x19   : > { %p204_p7 = pnand %p433_p5, %p203_p6 }
  0x1a   : > { %s210_s27 = sand.u32 (!%p204_p7), 1, %s507_s12   ;;  %v517_v9 = vmov (!%p204_p7), 0   ;;  %v251_v10 = vld [vmem:[%s598_s2] sm:$0xf] (!%p204_p7)  ;;  %vm306_vm0 = vcmask (!%p204_p7), 1043456   ;;  %vm302_vm1 = vcmask (!%p204_p7), 588800  }
  0x1b   : > { %207 = sbr.rel (%p204_p7) target bundleno = 273 (0x111), region = 66  ;;  %345 = vmatprep.mubr.bf16.mxu0 (!%p204_p7), %v517_v9  ;;  %478 = vset.pattern.permute.xlu0 (!%p204_p7), %v517_v9  ;;  %v241_v23 = vld [vmem:[%s596_s0] sm:$0x3] (!%p204_p7)  ;;  %s434_s7 = sshll.u32 (!%p204_p7), %s427_s15, 1 }
  0x1c   : > { %s452_s28 = smul.u32 (!%p204_p7), 72, %s210_s27  ;;  %254 = vperm.xlu0 (!%p204_p7), %478, %v251_v10   ;;  %p235_p8 = scmp.lt.s32.totalorder (!%p204_p7), %s434_s7, 3 }
  0x1e   : > { %s212_s4 = scalar_lea.vmem (!%p204_p7), [#allocation2], %s452_s28 }
  0x1f   : > { %v479_v11 = vld [vmem:[%s212_s4 + $0x4] ss:$8 sps:$4 sm:$0xff] (!%p204_p7)   ;;  %v481_v12 = vld [vmem:[%s212_s4] ss:$8 sps:$4 sm:$0xff] (!%p204_p7)   ;;  %v482_v13 = vld [vmem:[%s212_s4 + $0x14] ss:$8 sps:$4 sm:$0xff] (!%p204_p7)  }
  0x20   : > { %313 = vmatprep.subr.bf16.mxu0 (!%p204_p7), %v479_v11  ;;  %v484_v14 = vld [vmem:[%s212_s4 + $0x10] ss:$8 sps:$4 sm:$0xff] (!%p204_p7)   ;;  %v485_v15 = vld [vmem:[%s212_s4 + $0x24] ss:$8 sps:$4 sm:$0xff] (!%p204_p7)   ;;  %v487_v16 = vld [vmem:[%s212_s4 + $0x20] ss:$8 sps:$4 sm:$0xff] (!%p204_p7)  }
  0x21   : > { %314 = vmatpush1.bf16.msra.mxu0 (!%p204_p7), %v481_v12  ;;  %v488_v17 = vld [vmem:[%s212_s4 + $0x34] ss:$8 sps:$4 sm:$0xff] (!%p204_p7)   ;;  %v250_v18 = vld [vmem:[%s212_s4 + $0x40] sm:$0xff] (!%p204_p7)  ;;  %v490_v19 = vld [vmem:[%s212_s4 + $0x30] ss:$8 sps:$4 sm:$0xff] (!%p204_p7)  }
  0x22   : > { %315 = vmatprep.subr.bf16.mxu0 %v482_v13  ;;  %v445_v20 = vcombine.high %v250_v18, %v250_v18  ;;  %v444_v21 = vcombine.low %v250_v18, %v250_v18  ;;  %s604_s7 = smov (!%p235_p8, %s434_s7), 3 }
  0x23   : > { %s435_s8 = sshll.u32 %s604_s7, 2 }
  0x24   : > { %v308_v22 = vsel %vm306_vm0, %v444_v21, 0  ;;  %s238_s11 = scalar_lea.vmem %s599_s3, %s435_s8 }
  0x25   : > { %316 = vmatpush1.bf16.msra.mxu0 %v484_v14 }
  0x26   : > { %317 = vmatprep.subr.bf16.mxu0 %v485_v15 }
  0x29   : > { %318 = vmatpush1.bf16.msra.mxu0 %v487_v16 }
  0x2a   : > { %319 = vmatprep.subr.bf16.mxu0 %v488_v17 }
  0x2d   : > { %320 = vmatpush1.bf16.msra.mxu0 %v490_v19 }
  0x2e   : > { %446 = vmatprep.subr.msk.bf16.mxu0 %vm306_vm0, %v445_v20 }
  0x31   : > { %322 = vmatpush1.bf16.msra.mxu0 %v308_v22 }
  0x34   : > { %447 = vmatmul.mubr.msk.bf16.vlgmr.msra.gmra.mrb[0].mxu0 %vm302_vm1, %v241_v23 }
  0x9b   : > { %v255_v24 = vpop.permute.xlu0 %254 }
 0x107   : > { %v347_v25 = vpop.f32.mrb[0].mxu0 }
 0x108   : > { %v348_v26 = vadd.f32 %v347_v25, %v255_v24  ;;  %v349_v27 = vpop.f32.mrb[1].mxu0 }
 0x109   : > { %v350_v28 = vadd.f32 %v349_v27, %v255_v24  ;;  %v351_v29 = vpop.f32.mrb[2].mxu0 }
 0x10a   : > { %vm354_vm2 = vcmp.ge.f32.partialorder %v348_v26, 0.0  ;;  %v356_v30 = vmul.f32 0.1, %v348_v26  ;;  %v352_v31 = vpop.f32.mrb[3].mxu0 }
 0x10b   : > { %vm355_vm3 = vcmp.ge.f32.partialorder %v350_v28, 0.0  ;;  %v357_v32 = vmul.f32 0.1, %v350_v28 }
 0x10c   : > { %v358_v33 = vsel %vm354_vm2, %v348_v26, %v356_v30 }
 0x10d   : > { %v359_v34 = vsel %vm355_vm3, %v350_v28, %v357_v32 }
 0x10e   : > { %v362_v35 = vcombine.low %v358_v33, %v359_v34 }
 0x110   : > { %364 = vst [vmem:[%s238_s11] sm:$0xff] %v362_v35 }
 0x111 PF: > { %p10_p9 = scmp.ge.s32.totalorder %s555_s16, 4   ;;  %s600_s12 = smov %s511_s13 }
 0x112   : > { %s601_s13 = smov %s564_s19  ;;  %s602_s14 = smov %s555_s16 }
 0x113   :  { %12 = sbr.rel (!%p10_p9) target bundleno = 2 (0x2), region = 105 }

// kernel: _lambda_.87
= control target key start
LH: loop header
LB: loop body
LE: loop exit
PB: predicated region body
PF: predicated region fallthrough
CT: control target
= control target key end

     0   :  { %10 = vsyncpa [#allocation3], 0  ;;  %s115_s0 = inlined_call_operand.vmem [shape: f32[4], index: 0, kind: input, shape index: {}]   ;;  %s116_s1 = inlined_call_operand.vmem [shape: f32[2,512], index: 1, kind: input, shape index: {}]   ;;  %s117_s2 = inlined_call_operand.vmem [shape: f32[2,512], index: 2, kind: input, shape index: {}]   ;;  %s118_s3 = inlined_call_operand.vmem [shape: f32[2,512], index: 3, kind: output, shape index: {0}]   ;;  %s119_s4 = inlined_call_operand.vmem [shape: f32[2,512], index: 4, kind: output, shape index: {1}]  }
   0x1   :  { %s17_s17 = sshll.u32 %s115_s0, 4  ;;  %s18_s17 = int_to_ptr.vmem [resolvable:$true] %s17_s17 }
   0x2   :  { %s60_s18 = scalar_lea.vmem %s18_s17, 16  ;;  %p65_p1 = scmp.lt.s32.totalorder %s18_s17, %s18_s17 }
   0x3   :  { %p61_p0 = scmp.ne.s32.totalorder %s18_s17, %s60_s18  ;;  %p66_p2 = scmp.lt.s32.totalorder %s60_s18, %s60_s18 }
   0x5   :  { %p67_p3 = por %p66_p2, %p65_p1 }
   0x7   :  { %p68_p4 = pnand %p67_p3, %p61_p0 }
   0x9   :  { %71 = shalt.err (!%p68_p4)
}
   0xa   :  { %s74_s19 = smov [#allocation2]  }
   0xb   :  { %20 = dma.vmem_to_smem %s18_s17, 16, %s74_s19, [#allocation3]  }
   0xc   :  { %72 = dma.done.wait [#allocation3], 16  }
   0xd   :  { %73 = vsyncadd [#allocation3], 4294967280 }
   0xe   :  { %28 = sfence }
   0xf   :  { %s31_s20 = sld [smem:[#allocation2]]  ;;  %s56_s21 = sld [smem:[#allocation2 + $0x1]]  ;;  %v29_v0 = vld [vmem:[%s116_s1] sm:$0xff] }
  0x10   :  { %s57_s22 = sld [smem:[#allocation2 + $0x2]]  ;;  %s58_s23 = sld [smem:[#allocation2 + $0x3]]  ;;  %v30_v1 = vld [vmem:[%s117_s2] sm:$0xff] }
  0x15   :  { %v32_v2 = vstv %s31_s20  ;;  %v35_v3 = vstv %s56_s21 }
  0x16   :  { %v33_v4 = vmul.f32 %v32_v2, %v29_v0  ;;  %v36_v5 = vmul.f32 %v35_v3, %v30_v1  ;;  %v40_v6 = vstv %s57_s22  ;;  %v43_v7 = vstv %s58_s23 }
  0x17   :  { %v41_v8 = vmul.f32 %v40_v6, %v29_v0  ;;  %v44_v9 = vmul.f32 %v43_v7, %v30_v1 }
  0x18   :  { %v37_v10 = vadd.f32 %v36_v5, %v33_v4 }
  0x19   :  { %v45_v11 = vadd.f32 %v44_v9, %v41_v8 }
  0x1a   :  { %38 = vst [vmem:[%s118_s3] sm:$0xff] %v37_v10 }
  0x1b   :  { %46 = vst [vmem:[%s119_s4] sm:$0xff] %v45_v11 }
  0x1c   :  { %55 = vsyncpa [#allocation3], 1 }

// kernel: _lambda_.88
= control target key start
LH: loop header
LB: loop body
LE: loop exit
PB: predicated region body
PF: predicated region fallthrough
CT: control target
= control target key end

     0   :  { %8 = vsyncpa [#allocation4], 0  ;;  %s2212_s12 = smov 0   ;;  %s2214_s13 = smov 0   ;;  %s2709_s0 = inlined_call_operand.vmem [shape: bf16[8,980], index: 0, kind: input, shape index: {}]   ;;  %s2710_s1 = inlined_call_operand.vmem [shape: bf16[980,512], index: 1, kind: input, shape index: {}]   ;;  %s2711_s2 = inlined_call_operand.hbm [shape: f32[8,1], index: 2, kind: input, shape index: {}]   ;;  %s2712_s3 = inlined_call_operand.vmem [shape: f32[8,512], index: 3, kind: output, shape index: {}]  }
   0x1   :  { %s2216_s14 = smov 0  }
   0x2 LB: > { %s1742_s15 = sadd.s32 4294967295, %s2188_s14   ;;  %s2229_s16 = sadd.s32 1, %s2188_s14   ;;  %s2188_s14 = sphi %s2216_s14, %s2725_s14   ;;  %s2184_s13 = sphi %s2214_s13, %s2724_s13   ;;  %s2180_s12 = sphi %s2212_s12, %s2723_s12  }
   0x3   : > { %s39_s17 = ssub.s32 %s2188_s14, %s2229_s16  ;;  %s42_s18 = sadd.s32 1, %s2184_s13 }
   0x4   : > { %p40_p0 = scmp.eq.s32.totalorder %s39_s17, 0  ;;  %p49_p1 = scmp.ne.s32.totalorder %s2184_s13, %s2180_s12 }
   0x5   : > { %p50_p2 = scmp.eq.s32.totalorder %s2188_s14, 0  ;;  %p1744_p3 = scmp.ge.s32.totalorder %s2188_s14, 1 }
   0x6   : > { %s2239_s19 = scalar_select %p40_p0, %s2184_s13, %s42_s18  }
   0x7   : > { %p2241_p4 = por %p50_p2, %p49_p1  ;;  %p113_p5 = scmp.lt.s32.totalorder %s2188_s14, 3 }
   0x8   : > { %p2248_p6 = scmp.eq.s32.totalorder %s1742_s15, 0  ;;  %s2190_s23 = smov [#allocation3]  }
   0x9   : > { %s2716_s20 = scalar_select %p2241_p4, 1, 0 }
   0xa   : > { %s2717_s21 = scalar_select %p2248_p6, 1, 0 }
   0xb   : > { %p2252_p7 = pnand %p1744_p3, %p113_p5  ;;  %s129_s24 = sshll.u32 %s2190_s23, 4  ;;  %s130_s24 = int_to_ptr.vmem [resolvable:$true] %s129_s24 }
   0xc   : > { %s2134_s28 = scalar_lea.hbm %s2711_s2, 128 }
   0xd   : > { %s2718_s22 = scalar_select %p2252_p7, 1, 0 }
   0xe   : > { %p1908_p8 = pneg %p2252_p7  ;;  %p2135_p10 = scmp.ne.s32.totalorder %s2711_s2, %s2134_s28 }
   0xf   : > { %p2141_p0 = scmp.lt.u32.totalorder %s2134_s28, %s2711_s2 }
  0x10   : > { %p2260_p9 = pnand %p2248_p6, %p1908_p8 }
  0x12   : > { %p2136_p11 = pneg %p2260_p9 }
  0x14   : > { %p2137_p12 = pnand %p2136_p11, %p2135_p10 }
  0x16   : > { %p2138_p13 = pneg %p2137_p12 }
  0x18   : > { %p2143_p1 = pnand %p2141_p0, %p2138_p13 }
  0x1a   : > { %2146 = shalt.err (!%p2143_p1)
}
  0x1b   : > { %s2147_s6 = scalar_lea.vmem %s130_s24, 128  ;;  %p2155_p8 = scmp.lt.s32.totalorder %s130_s24, %s130_s24 }
  0x1c   : > { %p2148_p2 = scmp.ne.s32.totalorder %s130_s24, %s2147_s6  ;;  %p2156_p6 = scmp.lt.s32.totalorder %s2147_s6, %s2147_s6 }
  0x1e   : > { %p2150_p3 = pnand %p2148_p2, %p2136_p11  ;;  %p2157_p7 = por %p2156_p6, %p2155_p8 }
  0x20   : > { %p2151_p5 = pneg %p2150_p3 }
  0x22   : > { %p2158_p4 = pnand %p2157_p7, %p2151_p5 }
  0x24   : > { %2161 = shalt.err (!%p2158_p4)
}
  0x25   : > { %1911 = dma.hbm_to_vmem [thread:$0]  (!%p2260_p9), %s2711_s2, 128, %s130_s24, [#allocation4]  }
  0x26   : > { %p1746_p10 = scmp.ge.s32.totalorder %s2188_s14, 2 }
  0x27   : > { %p2720_p12 = scmp.ne.s32.totalorder (!%p1746_p10), %s2716_s20, 0 }
  0x28   : > { %136 = sbr.rel (%p1746_p10) target bundleno = 113 (0x71), region = 24 }
  0x2f   : > { %139 = sbr.rel (!%p2720_p12) target bundleno = 113 (0x71), region = 28  ;;  %s141_s9 = sand.u32 (%p2720_p12), 1, %s2184_s13  }
  0x30   : > { %s1889_s10 = sshll.u32 (%p2720_p12), %s2188_s14, 3  ;;  %s1902_s11 = smul.u32 (%p2720_p12), 984, %s141_s9 }
  0x31   : > { %s2288_s23 = scalar_lea.vmem (%p2720_p12), %s2710_s1, %s1889_s10 }
  0x32   : > { %v418_v0 = vld [vmem:[%s2288_s23] sm:$0xff] (%p2720_p12)  ;;  %v420_v1 = vld [vmem:[%s2288_s23 + $0x10] sm:$0xff] (%p2720_p12)  ;;  %s2296_s20 = scalar_lea.vmem (%p2720_p12), [#allocation2], %s1902_s11 }
  0x33   : > { %v422_v2 = vld [vmem:[%s2288_s23 + $0x20] sm:$0xff] (%p2720_p12)  ;;  %v424_v3 = vld [vmem:[%s2288_s23 + $0x30] sm:$0xff] (%p2720_p12)  ;;  %419 = vst [vmem:[%s2296_s20] sm:$0xff] (%p2720_p12), %v418_v0  ;;  %421 = vst [vmem:[%s2296_s20 + $0x8] sm:$0xff] (%p2720_p12), %v420_v1 }
  0x34   : > { %v426_v4 = vld [vmem:[%s2288_s23 + $0x40] sm:$0xff] (%p2720_p12)  ;;  %v428_v5 = vld [vmem:[%s2288_s23 + $0x50] sm:$0xff] (%p2720_p12)  ;;  %423 = vst [vmem:[%s2296_s20 + $0x10] sm:$0xff] (%p2720_p12), %v422_v2  ;;  %425 = vst [vmem:[%s2296_s20 + $0x18] sm:$0xff] (%p2720_p12), %v424_v3 }
  0x35   : > { %427 = vst [vmem:[%s2296_s20 + $0x20] sm:$0xff] (%p2720_p12), %v426_v4  ;;  %429 = vst [vmem:[%s2296_s20 + $0x28] sm:$0xff] (%p2720_p12), %v428_v5  ;;  %v430_v6 = vld [vmem:[%s2288_s23 + $0x60] sm:$0xff] (%p2720_p12)  ;;  %v432_v7 = vld [vmem:[%s2288_s23 + $0x70] sm:$0xff] (%p2720_p12) }
  0x36   : > { %v434_v8 = vld [vmem:[%s2288_s23 + $0x80] sm:$0xff]  ;;  %431 = vst [vmem:[%s2296_s20 + $0x30] sm:$0xff] %v430_v6  ;;  %433 = vst [vmem:[%s2296_s20 + $0x38] sm:$0xff] %v432_v7  ;;  %v436_v9 = vld [vmem:[%s2288_s23 + $0x90] sm:$0xff] }
  0x37   : > { %435 = vst [vmem:[%s2296_s20 + $0x40] sm:$0xff] %v434_v8  ;;  %v438_v10 = vld [vmem:[%s2288_s23 + $0xa0] sm:$0xff]  ;;  %v440_v11 = vld [vmem:[%s2288_s23 + $0xb0] sm:$0xff]  ;;  %437 = vst [vmem:[%s2296_s20 + $0x48] sm:$0xff] %v436_v9 }
  0x38   : > { %439 = vst [vmem:[%s2296_s20 + $0x50] sm:$0xff] %v438_v10  ;;  %441 = vst [vmem:[%s2296_s20 + $0x58] sm:$0xff] %v440_v11  ;;  %v442_v12 = vld [vmem:[%s2288_s23 + $0xc0] sm:$0xff]  ;;  %v444_v13 = vld [vmem:[%s2288_s23 + $0xd0] sm:$0xff] }
  0x39   : > { %v446_v14 = vld [vmem:[%s2288_s23 + $0xe0] sm:$0xff]  ;;  %443 = vst [vmem:[%s2296_s20 + $0x60] sm:$0xff] %v442_v12  ;;  %445 = vst [vmem:[%s2296_s20 + $0x68] sm:$0xff] %v444_v13  ;;  %v448_v15 = vld [vmem:[%s2288_s23 + $0xf0] sm:$0xff] }
  0x3a   : > { %447 = vst [vmem:[%s2296_s20 + $0x70] sm:$0xff] %v446_v14  ;;  %v450_v16 = vld [vmem:[%s2288_s23 + $0x100] sm:$0xff]  ;;  %v452_v17 = vld [vmem:[%s2288_s23 + $0x110] sm:$0xff]  ;;  %449 = vst [vmem:[%s2296_s20 + $0x78] sm:$0xff] %v448_v15 }
  0x3b   : > { %451 = vst [vmem:[%s2296_s20 + $0x80] sm:$0xff] %v450_v16  ;;  %453 = vst [vmem:[%s2296_s20 + $0x88] sm:$0xff] %v452_v17  ;;  %v454_v18 = vld [vmem:[%s2288_s23 + $0x120] sm:$0xff]  ;;  %v456_v19 = vld [vmem:[%s2288_s23 + $0x130] sm:$0xff] }
  0x3c   : > { %v458_v20 = vld [vmem:[%s2288_s23 + $0x140] sm:$0xff]  ;;  %455 = vst [vmem:[%s2296_s20 + $0x90] sm:$0xff] %v454_v18  ;;  %457 = vst [vmem:[%s2296_s20 + $0x98] sm:$0xff] %v456_v19  ;;  %v460_v21 = vld [vmem:[%s2288_s23 + $0x150] sm:$0xff] }
  0x3d   : > { %459 = vst [vmem:[%s2296_s20 + $0xa0] sm:$0xff] %v458_v20  ;;  %v462_v22 = vld [vmem:[%s2288_s23 + $0x160] sm:$0xff]  ;;  %v464_v23 = vld [vmem:[%s2288_s23 + $0x170] sm:$0xff]  ;;  %461 = vst [vmem:[%s2296_s20 + $0xa8] sm:$0xff] %v460_v21 }
  0x3e   : > { %463 = vst [vmem:[%s2296_s20 + $0xb0] sm:$0xff] %v462_v22  ;;  %465 = vst [vmem:[%s2296_s20 + $0xb8] sm:$0xff] %v464_v23  ;;  %v466_v24 = vld [vmem:[%s2288_s23 + $0x180] sm:$0xff]  ;;  %v468_v25 = vld [vmem:[%s2288_s23 + $0x190] sm:$0xff] }
  0x3f   : > { %v470_v26 = vld [vmem:[%s2288_s23 + $0x1a0] sm:$0xff]  ;;  %467 = vst [vmem:[%s2296_s20 + $0xc0] sm:$0xff] %v466_v24  ;;  %469 = vst [vmem:[%s2296_s20 + $0xc8] sm:$0xff] %v468_v25  ;;  %v472_v27 = vld [vmem:[%s2288_s23 + $0x1b0] sm:$0xff] }
  0x40   : > { %471 = vst [vmem:[%s2296_s20 + $0xd0] sm:$0xff] %v470_v26  ;;  %v474_v28 = vld [vmem:[%s2288_s23 + $0x1c0] sm:$0xff]  ;;  %v476_v29 = vld [vmem:[%s2288_s23 + $0x1d0] sm:$0xff]  ;;  %473 = vst [vmem:[%s2296_s20 + $0xd8] sm:$0xff] %v472_v27 }
  0x41   : > { %475 = vst [vmem:[%s2296_s20 + $0xe0] sm:$0xff] %v474_v28  ;;  %477 = vst [vmem:[%s2296_s20 + $0xe8] sm:$0xff] %v476_v29  ;;  %v478_v30 = vld [vmem:[%s2288_s23 + $0x1e0] sm:$0xff]  ;;  %v480_v31 = vld [vmem:[%s2288_s23 + $0x1f0] sm:$0xff] }
  0x42   : > { %v482_v32 = vld [vmem:[%s2288_s23 + $0x200] sm:$0xff]  ;;  %479 = vst [vmem:[%s2296_s20 + $0xf0] sm:$0xff] %v478_v30  ;;  %481 = vst [vmem:[%s2296_s20 + $0xf8] sm:$0xff] %v480_v31  ;;  %v484_v33 = vld [vmem:[%s2288_s23 + $0x210] sm:$0xff] }
  0x43   : > { %483 = vst [vmem:[%s2296_s20 + $0x100] sm:$0xff] %v482_v32  ;;  %v486_v34 = vld [vmem:[%s2288_s23 + $0x220] sm:$0xff]  ;;  %v488_v35 = vld [vmem:[%s2288_s23 + $0x230] sm:$0xff]  ;;  %485 = vst [vmem:[%s2296_s20 + $0x108] sm:$0xff] %v484_v33 }
  0x44   : > { %487 = vst [vmem:[%s2296_s20 + $0x110] sm:$0xff] %v486_v34  ;;  %489 = vst [vmem:[%s2296_s20 + $0x118] sm:$0xff] %v488_v35  ;;  %v490_v36 = vld [vmem:[%s2288_s23 + $0x240] sm:$0xff]  ;;  %v492_v37 = vld [vmem:[%s2288_s23 + $0x250] sm:$0xff] }
  0x45   : > { %v494_v38 = vld [vmem:[%s2288_s23 + $0x260] sm:$0xff]  ;;  %491 = vst [vmem:[%s2296_s20 + $0x120] sm:$0xff] %v490_v36  ;;  %493 = vst [vmem:[%s2296_s20 + $0x128] sm:$0xff] %v492_v37  ;;  %v496_v39 = vld [vmem:[%s2288_s23 + $0x270] sm:$0xff] }
  0x46   : > { %495 = vst [vmem:[%s2296_s20 + $0x130] sm:$0xff] %v494_v38  ;;  %v498_v40 = vld [vmem:[%s2288_s23 + $0x280] sm:$0xff]  ;;  %v500_v41 = vld [vmem:[%s2288_s23 + $0x290] sm:$0xff]  ;;  %497 = vst [vmem:[%s2296_s20 + $0x138] sm:$0xff] %v496_v39 }
  0x47   : > { %499 = vst [vmem:[%s2296_s20 + $0x140] sm:$0xff] %v498_v40  ;;  %501 = vst [vmem:[%s2296_s20 + $0x148] sm:$0xff] %v500_v41  ;;  %v502_v42 = vld [vmem:[%s2288_s23 + $0x2a0] sm:$0xff]  ;;  %v504_v43 = vld [vmem:[%s2288_s23 + $0x2b0] sm:$0xff] }
  0x48   : > { %v506_v44 = vld [vmem:[%s2288_s23 + $0x2c0] sm:$0xff]  ;;  %503 = vst [vmem:[%s2296_s20 + $0x150] sm:$0xff] %v502_v42  ;;  %505 = vst [vmem:[%s2296_s20 + $0x158] sm:$0xff] %v504_v43  ;;  %v508_v45 = vld [vmem:[%s2288_s23 + $0x2d0] sm:$0xff] }
  0x49   : > { %507 = vst [vmem:[%s2296_s20 + $0x160] sm:$0xff] %v506_v44  ;;  %v510_v46 = vld [vmem:[%s2288_s23 + $0x2e0] sm:$0xff]  ;;  %v512_v47 = vld [vmem:[%s2288_s23 + $0x2f0] sm:$0xff]  ;;  %509 = vst [vmem:[%s2296_s20 + $0x168] sm:$0xff] %v508_v45 }
  0x4a   : > { %511 = vst [vmem:[%s2296_s20 + $0x170] sm:$0xff] %v510_v46  ;;  %513 = vst [vmem:[%s2296_s20 + $0x178] sm:$0xff] %v512_v47  ;;  %v514_v48 = vld [vmem:[%s2288_s23 + $0x300] sm:$0xff]  ;;  %v516_v49 = vld [vmem:[%s2288_s23 + $0x310] sm:$0xff] }
  0x4b   : > { %v518_v50 = vld [vmem:[%s2288_s23 + $0x320] sm:$0xff]  ;;  %515 = vst [vmem:[%s2296_s20 + $0x180] sm:$0xff] %v514_v48  ;;  %517 = vst [vmem:[%s2296_s20 + $0x188] sm:$0xff] %v516_v49  ;;  %v520_v51 = vld [vmem:[%s2288_s23 + $0x330] sm:$0xff] }
  0x4c   : > { %519 = vst [vmem:[%s2296_s20 + $0x190] sm:$0xff] %v518_v50  ;;  %v522_v52 = vld [vmem:[%s2288_s23 + $0x340] sm:$0xff]  ;;  %v524_v53 = vld [vmem:[%s2288_s23 + $0x350] sm:$0xff]  ;;  %521 = vst [vmem:[%s2296_s20 + $0x198] sm:$0xff] %v520_v51 }
  0x4d   : > { %523 = vst [vmem:[%s2296_s20 + $0x1a0] sm:$0xff] %v522_v52  ;;  %525 = vst [vmem:[%s2296_s20 + $0x1a8] sm:$0xff] %v524_v53  ;;  %v526_v54 = vld [vmem:[%s2288_s23 + $0x360] sm:$0xff]  ;;  %v528_v55 = vld [vmem:[%s2288_s23 + $0x370] sm:$0xff] }
  0x4e   : > { %v530_v56 = vld [vmem:[%s2288_s23 + $0x380] sm:$0xff]  ;;  %527 = vst [vmem:[%s2296_s20 + $0x1b0] sm:$0xff] %v526_v54  ;;  %529 = vst [vmem:[%s2296_s20 + $0x1b8] sm:$0xff] %v528_v55  ;;  %v532_v57 = vld [vmem:[%s2288_s23 + $0x390] sm:$0xff] }
  0x4f   : > { %531 = vst [vmem:[%s2296_s20 + $0x1c0] sm:$0xff] %v530_v56  ;;  %v534_v58 = vld [vmem:[%s2288_s23 + $0x3a0] sm:$0xff]  ;;  %v536_v59 = vld [vmem:[%s2288_s23 + $0x3b0] sm:$0xff]  ;;  %533 = vst [vmem:[%s2296_s20 + $0x1c8] sm:$0xff] %v532_v57 }
  0x50   : > { %535 = vst [vmem:[%s2296_s20 + $0x1d0] sm:$0xff] %v534_v58  ;;  %537 = vst [vmem:[%s2296_s20 + $0x1d8] sm:$0xff] %v536_v59  ;;  %v538_v60 = vld [vmem:[%s2288_s23 + $0x3c0] sm:$0xff]  ;;  %v540_v61 = vld [vmem:[%s2288_s23 + $0x3d0] sm:$0xff] }
  0x51   : > { %v542_v62 = vld [vmem:[%s2288_s23 + $0x3e0] sm:$0xff]  ;;  %539 = vst [vmem:[%s2296_s20 + $0x1e0] sm:$0xff] %v538_v60  ;;  %541 = vst [vmem:[%s2296_s20 + $0x1e8] sm:$0xff] %v540_v61  ;;  %v544_v63 = vld [vmem:[%s2288_s23 + $0x3f0] sm:$0xff] }
  0x52   : > { %543 = vst [vmem:[%s2296_s20 + $0x1f0] sm:$0xff] %v542_v62  ;;  %v546_v0 = vld [vmem:[%s2288_s23 + $0x400] sm:$0xff]  ;;  %v548_v1 = vld [vmem:[%s2288_s23 + $0x410] sm:$0xff]  ;;  %545 = vst [vmem:[%s2296_s20 + $0x1f8] sm:$0xff] %v544_v63 }
  0x53   : > { %547 = vst [vmem:[%s2296_s20 + $0x200] sm:$0xff] %v546_v0  ;;  %549 = vst [vmem:[%s2296_s20 + $0x208] sm:$0xff] %v548_v1  ;;  %v550_v2 = vld [vmem:[%s2288_s23 + $0x420] sm:$0xff]  ;;  %v552_v3 = vld [vmem:[%s2288_s23 + $0x430] sm:$0xff] }
  0x54   : > { %v554_v4 = vld [vmem:[%s2288_s23 + $0x440] sm:$0xff]  ;;  %551 = vst [vmem:[%s2296_s20 + $0x210] sm:$0xff] %v550_v2  ;;  %553 = vst [vmem:[%s2296_s20 + $0x218] sm:$0xff] %v552_v3  ;;  %v556_v5 = vld [vmem:[%s2288_s23 + $0x450] sm:$0xff] }
  0x55   : > { %555 = vst [vmem:[%s2296_s20 + $0x220] sm:$0xff] %v554_v4  ;;  %v558_v6 = vld [vmem:[%s2288_s23 + $0x460] sm:$0xff]  ;;  %v560_v7 = vld [vmem:[%s2288_s23 + $0x470] sm:$0xff]  ;;  %557 = vst [vmem:[%s2296_s20 + $0x228] sm:$0xff] %v556_v5 }
  0x56   : > { %559 = vst [vmem:[%s2296_s20 + $0x230] sm:$0xff] %v558_v6  ;;  %561 = vst [vmem:[%s2296_s20 + $0x238] sm:$0xff] %v560_v7  ;;  %v562_v8 = vld [vmem:[%s2288_s23 + $0x480] sm:$0xff]  ;;  %v564_v9 = vld [vmem:[%s2288_s23 + $0x490] sm:$0xff] }
  0x57   : > { %v566_v10 = vld [vmem:[%s2288_s23 + $0x4a0] sm:$0xff]  ;;  %563 = vst [vmem:[%s2296_s20 + $0x240] sm:$0xff] %v562_v8  ;;  %565 = vst [vmem:[%s2296_s20 + $0x248] sm:$0xff] %v564_v9  ;;  %v568_v11 = vld [vmem:[%s2288_s23 + $0x4b0] sm:$0xff] }
  0x58   : > { %567 = vst [vmem:[%s2296_s20 + $0x250] sm:$0xff] %v566_v10  ;;  %v570_v12 = vld [vmem:[%s2288_s23 + $0x4c0] sm:$0xff]  ;;  %v572_v13 = vld [vmem:[%s2288_s23 + $0x4d0] sm:$0xff]  ;;  %569 = vst [vmem:[%s2296_s20 + $0x258] sm:$0xff] %v568_v11 }
  0x59   : > { %571 = vst [vmem:[%s2296_s20 + $0x260] sm:$0xff] %v570_v12  ;;  %573 = vst [vmem:[%s2296_s20 + $0x268] sm:$0xff] %v572_v13  ;;  %v574_v14 = vld [vmem:[%s2288_s23 + $0x4e0] sm:$0xff]  ;;  %v576_v15 = vld [vmem:[%s2288_s23 + $0x4f0] sm:$0xff] }
  0x5a   : > { %v578_v16 = vld [vmem:[%s2288_s23 + $0x500] sm:$0xff]  ;;  %575 = vst [vmem:[%s2296_s20 + $0x270] sm:$0xff] %v574_v14  ;;  %577 = vst [vmem:[%s2296_s20 + $0x278] sm:$0xff] %v576_v15  ;;  %v580_v17 = vld [vmem:[%s2288_s23 + $0x510] sm:$0xff] }
  0x5b   : > { %579 = vst [vmem:[%s2296_s20 + $0x280] sm:$0xff] %v578_v16  ;;  %v582_v18 = vld [vmem:[%s2288_s23 + $0x520] sm:$0xff]  ;;  %v584_v19 = vld [vmem:[%s2288_s23 + $0x530] sm:$0xff]  ;;  %581 = vst [vmem:[%s2296_s20 + $0x288] sm:$0xff] %v580_v17 }
  0x5c   : > { %583 = vst [vmem:[%s2296_s20 + $0x290] sm:$0xff] %v582_v18  ;;  %585 = vst [vmem:[%s2296_s20 + $0x298] sm:$0xff] %v584_v19  ;;  %v586_v20 = vld [vmem:[%s2288_s23 + $0x540] sm:$0xff]  ;;  %v588_v21 = vld [vmem:[%s2288_s23 + $0x550] sm:$0xff] }
  0x5d   : > { %v590_v22 = vld [vmem:[%s2288_s23 + $0x560] sm:$0xff]  ;;  %587 = vst [vmem:[%s2296_s20 + $0x2a0] sm:$0xff] %v586_v20  ;;  %589 = vst [vmem:[%s2296_s20 + $0x2a8] sm:$0xff] %v588_v21  ;;  %v592_v23 = vld [vmem:[%s2288_s23 + $0x570] sm:$0xff] }
  0x5e   : > { %591 = vst [vmem:[%s2296_s20 + $0x2b0] sm:$0xff] %v590_v22  ;;  %v594_v24 = vld [vmem:[%s2288_s23 + $0x580] sm:$0xff]  ;;  %v596_v25 = vld [vmem:[%s2288_s23 + $0x590] sm:$0xff]  ;;  %593 = vst [vmem:[%s2296_s20 + $0x2b8] sm:$0xff] %v592_v23 }
  0x5f   : > { %595 = vst [vmem:[%s2296_s20 + $0x2c0] sm:$0xff] %v594_v24  ;;  %597 = vst [vmem:[%s2296_s20 + $0x2c8] sm:$0xff] %v596_v25  ;;  %v598_v26 = vld [vmem:[%s2288_s23 + $0x5a0] sm:$0xff]  ;;  %v600_v27 = vld [vmem:[%s2288_s23 + $0x5b0] sm:$0xff] }
  0x60   : > { %v602_v28 = vld [vmem:[%s2288_s23 + $0x5c0] sm:$0xff]  ;;  %599 = vst [vmem:[%s2296_s20 + $0x2d0] sm:$0xff] %v598_v26  ;;  %601 = vst [vmem:[%s2296_s20 + $0x2d8] sm:$0xff] %v600_v27  ;;  %v604_v29 = vld [vmem:[%s2288_s23 + $0x5d0] sm:$0xff] }
  0x61   : > { %603 = vst [vmem:[%s2296_s20 + $0x2e0] sm:$0xff] %v602_v28  ;;  %v606_v30 = vld [vmem:[%s2288_s23 + $0x5e0] sm:$0xff]  ;;  %v608_v31 = vld [vmem:[%s2288_s23 + $0x5f0] sm:$0xff]  ;;  %605 = vst [vmem:[%s2296_s20 + $0x2e8] sm:$0xff] %v604_v29 }
  0x62   : > { %607 = vst [vmem:[%s2296_s20 + $0x2f0] sm:$0xff] %v606_v30  ;;  %609 = vst [vmem:[%s2296_s20 + $0x2f8] sm:$0xff] %v608_v31  ;;  %v610_v32 = vld [vmem:[%s2288_s23 + $0x600] sm:$0xff]  ;;  %v612_v33 = vld [vmem:[%s2288_s23 + $0x610] sm:$0xff] }
  0x63   : > { %v614_v34 = vld [vmem:[%s2288_s23 + $0x620] sm:$0xff]  ;;  %611 = vst [vmem:[%s2296_s20 + $0x300] sm:$0xff] %v610_v32  ;;  %613 = vst [vmem:[%s2296_s20 + $0x308] sm:$0xff] %v612_v33  ;;  %v616_v35 = vld [vmem:[%s2288_s23 + $0x630] sm:$0xff] }
  0x64   : > { %615 = vst [vmem:[%s2296_s20 + $0x310] sm:$0xff] %v614_v34  ;;  %v618_v36 = vld [vmem:[%s2288_s23 + $0x640] sm:$0xff]  ;;  %v620_v37 = vld [vmem:[%s2288_s23 + $0x650] sm:$0xff]  ;;  %617 = vst [vmem:[%s2296_s20 + $0x318] sm:$0xff] %v616_v35 }
  0x65   : > { %619 = vst [vmem:[%s2296_s20 + $0x320] sm:$0xff] %v618_v36  ;;  %621 = vst [vmem:[%s2296_s20 + $0x328] sm:$0xff] %v620_v37  ;;  %v622_v38 = vld [vmem:[%s2288_s23 + $0x660] sm:$0xff]  ;;  %v624_v39 = vld [vmem:[%s2288_s23 + $0x670] sm:$0xff] }
  0x66   : > { %v626_v40 = vld [vmem:[%s2288_s23 + $0x680] sm:$0xff]  ;;  %623 = vst [vmem:[%s2296_s20 + $0x330] sm:$0xff] %v622_v38  ;;  %625 = vst [vmem:[%s2296_s20 + $0x338] sm:$0xff] %v624_v39  ;;  %v628_v41 = vld [vmem:[%s2288_s23 + $0x690] sm:$0xff] }
  0x67   : > { %627 = vst [vmem:[%s2296_s20 + $0x340] sm:$0xff] %v626_v40  ;;  %v630_v42 = vld [vmem:[%s2288_s23 + $0x6a0] sm:$0xff]  ;;  %v632_v43 = vld [vmem:[%s2288_s23 + $0x6b0] sm:$0xff]  ;;  %629 = vst [vmem:[%s2296_s20 + $0x348] sm:$0xff] %v628_v41 }
  0x68   : > { %631 = vst [vmem:[%s2296_s20 + $0x350] sm:$0xff] %v630_v42  ;;  %633 = vst [vmem:[%s2296_s20 + $0x358] sm:$0xff] %v632_v43  ;;  %v634_v44 = vld [vmem:[%s2288_s23 + $0x6c0] sm:$0xff]  ;;  %v636_v45 = vld [vmem:[%s2288_s23 + $0x6d0] sm:$0xff] }
  0x69   : > { %v638_v46 = vld [vmem:[%s2288_s23 + $0x6e0] sm:$0xff]  ;;  %635 = vst [vmem:[%s2296_s20 + $0x360] sm:$0xff] %v634_v44  ;;  %637 = vst [vmem:[%s2296_s20 + $0x368] sm:$0xff] %v636_v45  ;;  %v640_v47 = vld [vmem:[%s2288_s23 + $0x6f0] sm:$0xff] }
  0x6a   : > { %639 = vst [vmem:[%s2296_s20 + $0x370] sm:$0xff] %v638_v46  ;;  %v642_v48 = vld [vmem:[%s2288_s23 + $0x700] sm:$0xff]  ;;  %v644_v49 = vld [vmem:[%s2288_s23 + $0x710] sm:$0xff]  ;;  %641 = vst [vmem:[%s2296_s20 + $0x378] sm:$0xff] %v640_v47 }
  0x6b   : > { %643 = vst [vmem:[%s2296_s20 + $0x380] sm:$0xff] %v642_v48  ;;  %645 = vst [vmem:[%s2296_s20 + $0x388] sm:$0xff] %v644_v49  ;;  %v646_v50 = vld [vmem:[%s2288_s23 + $0x720] sm:$0xff]  ;;  %v648_v51 = vld [vmem:[%s2288_s23 + $0x730] sm:$0xff] }
  0x6c   : > { %v650_v52 = vld [vmem:[%s2288_s23 + $0x740] sm:$0xff]  ;;  %647 = vst [vmem:[%s2296_s20 + $0x390] sm:$0xff] %v646_v50  ;;  %649 = vst [vmem:[%s2296_s20 + $0x398] sm:$0xff] %v648_v51  ;;  %v652_v53 = vld [vmem:[%s2288_s23 + $0x750] sm:$0xff] }
  0x6d   : > { %651 = vst [vmem:[%s2296_s20 + $0x3a0] sm:$0xff] %v650_v52  ;;  %v654_v54 = vld [vmem:[%s2288_s23 + $0x760] sm:$0xff]  ;;  %v656_v55 = vld [vmem:[%s2288_s23 + $0x770] sm:$0xff]  ;;  %653 = vst [vmem:[%s2296_s20 + $0x3a8] sm:$0xff] %v652_v53 }
  0x6e   : > { %655 = vst [vmem:[%s2296_s20 + $0x3b0] sm:$0xff] %v654_v54  ;;  %657 = vst [vmem:[%s2296_s20 + $0x3b8] sm:$0xff] %v656_v55  ;;  %v658_v56 = vld [vmem:[%s2288_s23 + $0x780] sm:$0xff]  ;;  %v660_v57 = vld [vmem:[%s2288_s23 + $0x790] sm:$0xff] }
  0x6f   : > { %v662_v58 = vld [vmem:[%s2288_s23 + $0x7a0] sm:$0xff]  ;;  %659 = vst [vmem:[%s2296_s20 + $0x3c0] sm:$0xff] %v658_v56  ;;  %661 = vst [vmem:[%s2296_s20 + $0x3c8] sm:$0xff] %v660_v57 }
  0x70   : > { %663 = vst [vmem:[%s2296_s20 + $0x3d0] sm:$0xff] %v662_v58 }
  0x71 PF: > { %p2721_p4 = scmp.ne.s32.totalorder %s2718_s22, 0 }
  0x72   : > { %s675_s24 = sand.u32 (!%p2721_p4), 1, %s2180_s12   ;;  %p2722_p6 = scmp.ne.s32.totalorder (!%p2721_p4), %s2717_s21, 0 }
  0x73   : > { %672 = sbr.rel (%p2721_p4) target bundleno = 473 (0x1d9), region = 66 }
  0x74   : > { %s1903_s25 = smul.u32 (!%p2721_p4), 984, %s675_s24 }
  0x76   : > { %s2541_s26 = scalar_lea.vmem (!%p2721_p4), [#allocation2], %s1903_s25 }
  0x7a   : > { %2175 = dma.done.wait (%p2722_p6), [#allocation4], 128  }
  0x7b   : > { %2177 = vsyncadd (%p2722_p6), [#allocation4], 4294967168  ;;  %v1941_v59 = vld [vmem:[%s2541_s26 + $0x4] ss:$8 sps:$4 sm:$0xff]   ;;  %v1945_v61 = vld [vmem:[%s2541_s26] ss:$8 sps:$4 sm:$0xff]  }
  0x7c   : > { %v1943_v60 = vld [vmem:[%s2541_s26 + $0x204] ss:$8 sps:$4 sm:$0xff]   ;;  %1496 = vmatprep.subr.bf16.mxu1 %v1941_v59  ;;  %v1946_v62 = vld [vmem:[%s2541_s26 + $0x200] ss:$8 sps:$4 sm:$0xff]   ;;  %v1947_v63 = vld [vmem:[%s2541_s26 + $0x14] ss:$8 sps:$4 sm:$0xff]  }
  0x7d   : > { %1578 = vmatprep.subr.bf16.mxu0 %v1943_v60  ;;  %1497 = vmatpush1.bf16.msra.mxu1 %v1945_v61  ;;  %v1949_v0 = vld [vmem:[%s2541_s26 + $0x214] ss:$8 sps:$4 sm:$0xff]   ;;  %v1951_v1 = vld [vmem:[%s2541_s26 + $0x10] ss:$8 sps:$4 sm:$0xff]   ;;  %v2191_v3 = vmov 0   ;;  %v710_v42 = vld [vmem:[%s2709_s0] sm:$0xff] }
  0x7e   : > { %1579 = vmatpush1.bf16.msra.mxu0 %v1946_v62  ;;  %1498 = vmatprep.subr.bf16.mxu1 %v1947_v63  ;;  %v1952_v2 = vld [vmem:[%s2541_s26 + $0x210] ss:$8 sps:$4 sm:$0xff]   ;;  %v1953_v4 = vld [vmem:[%s2541_s26 + $0x24] ss:$8 sps:$4 sm:$0xff]   ;;  %v1957_v6 = vld [vmem:[%s2541_s26 + $0x20] ss:$8 sps:$4 sm:$0xff]   ;;  %v1754_v44 = vcombine.high %v710_v42, %v710_v42 }
  0x7f   : > { %1940 = vset.pattern.permute.xlu0 %v2191_v3  ;;  %1580 = vmatprep.subr.bf16.mxu0 %v1949_v0  ;;  %v1955_v5 = vld [vmem:[%s2541_s26 + $0x224] ss:$8 sps:$4 sm:$0xff]   ;;  %v1958_v7 = vld [vmem:[%s2541_s26 + $0x220] ss:$8 sps:$4 sm:$0xff]   ;;  %v1959_v8 = vld [vmem:[%s2541_s26 + $0x34] ss:$8 sps:$4 sm:$0xff]  }
  0x80   : > { %v1961_v9 = vld [vmem:[%s2541_s26 + $0x234] ss:$8 sps:$4 sm:$0xff]   ;;  %v1963_v10 = vld [vmem:[%s2541_s26 + $0x30] ss:$8 sps:$4 sm:$0xff]   ;;  %v1965_v12 = vld [vmem:[%s2541_s26 + $0x44] ss:$8 sps:$4 sm:$0xff]   ;;  %1528 = vmatprep.mubr.bf16.mxu1 %v1754_v44 }
  0x81   : > { %1499 = vmatpush1.bf16.msra.mxu1 %v1951_v1  ;;  %v1964_v11 = vld [vmem:[%s2541_s26 + $0x230] ss:$8 sps:$4 sm:$0xff]   ;;  %v1967_v13 = vld [vmem:[%s2541_s26 + $0x244] ss:$8 sps:$4 sm:$0xff]   ;;  %v1969_v14 = vld [vmem:[%s2541_s26 + $0x40] ss:$8 sps:$4 sm:$0xff]  }
  0x82   : > { %1581 = vmatpush1.bf16.msra.mxu0 %v1952_v2  ;;  %1500 = vmatprep.subr.bf16.mxu1 %v1953_v4  ;;  %v1970_v15 = vld [vmem:[%s2541_s26 + $0x240] ss:$8 sps:$4 sm:$0xff]   ;;  %v1971_v16 = vld [vmem:[%s2541_s26 + $0x54] ss:$8 sps:$4 sm:$0xff]   ;;  %v1975_v18 = vld [vmem:[%s2541_s26 + $0x50] ss:$8 sps:$4 sm:$0xff]   ;;  %v1753_v2 = vcombine.low %v710_v42, %v710_v42 }
  0x83   : > { %1582 = vmatprep.subr.bf16.mxu0 %v1955_v5  ;;  %v1973_v17 = vld [vmem:[%s2541_s26 + $0x254] ss:$8 sps:$4 sm:$0xff]   ;;  %v1976_v19 = vld [vmem:[%s2541_s26 + $0x250] ss:$8 sps:$4 sm:$0xff]   ;;  %v1977_v20 = vld [vmem:[%s2541_s26 + $0x64] ss:$8 sps:$4 sm:$0xff]  }
  0x84   : > { %v1979_v21 = vld [vmem:[%s2541_s26 + $0x264] ss:$8 sps:$4 sm:$0xff]   ;;  %v1981_v22 = vld [vmem:[%s2541_s26 + $0x60] ss:$8 sps:$4 sm:$0xff]   ;;  %v1983_v24 = vld [vmem:[%s2541_s26 + $0x74] ss:$8 sps:$4 sm:$0xff]  }
  0x85   : > { %1501 = vmatpush1.bf16.msra.mxu1 %v1957_v6  ;;  %v1982_v23 = vld [vmem:[%s2541_s26 + $0x260] ss:$8 sps:$4 sm:$0xff]   ;;  %v1985_v25 = vld [vmem:[%s2541_s26 + $0x274] ss:$8 sps:$4 sm:$0xff]   ;;  %v1987_v26 = vld [vmem:[%s2541_s26 + $0x70] ss:$8 sps:$4 sm:$0xff]  }
  0x86   : > { %1583 = vmatpush1.bf16.msra.mxu0 %v1958_v7  ;;  %1502 = vmatprep.subr.bf16.mxu1 %v1959_v8  ;;  %v1988_v27 = vld [vmem:[%s2541_s26 + $0x270] ss:$8 sps:$4 sm:$0xff]   ;;  %v1989_v28 = vld [vmem:[%s2541_s26 + $0x84] ss:$8 sps:$4 sm:$0xff]   ;;  %v1993_v30 = vld [vmem:[%s2541_s26 + $0x80] ss:$8 sps:$4 sm:$0xff]  }
  0x87   : > { %1584 = vmatprep.subr.bf16.mxu0 %v1961_v9  ;;  %v1991_v29 = vld [vmem:[%s2541_s26 + $0x284] ss:$8 sps:$4 sm:$0xff]   ;;  %v1994_v31 = vld [vmem:[%s2541_s26 + $0x280] ss:$8 sps:$4 sm:$0xff]   ;;  %v1995_v32 = vld [vmem:[%s2541_s26 + $0x94] ss:$8 sps:$4 sm:$0xff]  }
  0x88   : > { %v1997_v33 = vld [vmem:[%s2541_s26 + $0x294] ss:$8 sps:$4 sm:$0xff]   ;;  %v1999_v34 = vld [vmem:[%s2541_s26 + $0x90] ss:$8 sps:$4 sm:$0xff]   ;;  %v2001_v36 = vld [vmem:[%s2541_s26 + $0xa4] ss:$8 sps:$4 sm:$0xff]  }
  0x89   : > { %1503 = vmatpush1.bf16.msra.mxu1 %v1963_v10  ;;  %v2000_v35 = vld [vmem:[%s2541_s26 + $0x290] ss:$8 sps:$4 sm:$0xff]   ;;  %v2003_v37 = vld [vmem:[%s2541_s26 + $0x2a4] ss:$8 sps:$4 sm:$0xff]   ;;  %v2005_v38 = vld [vmem:[%s2541_s26 + $0xa0] ss:$8 sps:$4 sm:$0xff]  }
  0x8a   : > { %1585 = vmatpush1.bf16.msra.mxu0 %v1964_v11  ;;  %1504 = vmatprep.subr.bf16.mxu1 %v1965_v12  ;;  %v2006_v39 = vld [vmem:[%s2541_s26 + $0x2a0] ss:$8 sps:$4 sm:$0xff]   ;;  %v2007_v40 = vld [vmem:[%s2541_s26 + $0xb4] ss:$8 sps:$4 sm:$0xff]   ;;  %v2011_v43 = vld [vmem:[%s2541_s26 + $0xb0] ss:$8 sps:$4 sm:$0xff]  }
  0x8b   : > { %1586 = vmatprep.subr.bf16.mxu0 %v1967_v13  ;;  %v2009_v41 = vld [vmem:[%s2541_s26 + $0x2b4] ss:$8 sps:$4 sm:$0xff]   ;;  %v2012_v45 = vld [vmem:[%s2541_s26 + $0x2b0] ss:$8 sps:$4 sm:$0xff]   ;;  %v2013_v47 = vld [vmem:[%s2541_s26 + $0xc4] ss:$8 sps:$4 sm:$0xff]  }
  0x8c   : > { %v712_v46 = vld [vmem:[%s2709_s0 + $0x10] sm:$0xff]  ;;  %v2015_v48 = vld [vmem:[%s2541_s26 + $0x2c4] ss:$8 sps:$4 sm:$0xff]   ;;  %v2017_v50 = vld [vmem:[%s2541_s26 + $0xc0] ss:$8 sps:$4 sm:$0xff]   ;;  %vm1485_vm0 = vcmask 687104  }
  0x8d   : > { %1505 = vmatpush1.bf16.msra.mxu1 %v1969_v14  ;;  %v1758_v49 = vcombine.high %v712_v46, %v712_v46  ;;  %v2018_v51 = vld [vmem:[%s2541_s26 + $0x2c0] ss:$8 sps:$4 sm:$0xff]   ;;  %v2019_v52 = vld [vmem:[%s2541_s26 + $0xd4] ss:$8 sps:$4 sm:$0xff]   ;;  %v2023_v54 = vld [vmem:[%s2541_s26 + $0xd0] ss:$8 sps:$4 sm:$0xff]   ;;  %v1757_v3 = vcombine.low %v712_v46, %v712_v46 }
  0x8e   : > { %1587 = vmatpush1.bf16.msra.mxu0 %v1970_v15  ;;  %1506 = vmatprep.subr.bf16.mxu1 %v1971_v16  ;;  %v2021_v53 = vld [vmem:[%s2541_s26 + $0x2d4] ss:$8 sps:$4 sm:$0xff]   ;;  %v2024_v55 = vld [vmem:[%s2541_s26 + $0x2d0] ss:$8 sps:$4 sm:$0xff]   ;;  %v2025_v56 = vld [vmem:[%s2541_s26 + $0xe4] ss:$8 sps:$4 sm:$0xff]  }
  0x8f   : > { %1588 = vmatprep.subr.bf16.mxu0 %v1973_v17  ;;  %1610 = vmatprep.mubr.bf16.mxu0 %v1758_v49  ;;  %v2027_v57 = vld [vmem:[%s2541_s26 + $0x2e4] ss:$8 sps:$4 sm:$0xff]   ;;  %v2029_v58 = vld [vmem:[%s2541_s26 + $0xe0] ss:$8 sps:$4 sm:$0xff]   ;;  %v2031_v60 = vld [vmem:[%s2541_s26 + $0xf4] ss:$8 sps:$4 sm:$0xff]  }
  0x90   : > { %v2030_v59 = vld [vmem:[%s2541_s26 + $0x2e0] ss:$8 sps:$4 sm:$0xff]   ;;  %v2033_v61 = vld [vmem:[%s2541_s26 + $0x2f4] ss:$8 sps:$4 sm:$0xff]   ;;  %v2035_v62 = vld [vmem:[%s2541_s26 + $0xf0] ss:$8 sps:$4 sm:$0xff]  }
  0x91   : > { %1507 = vmatpush1.bf16.msra.mxu1 %v1975_v18  ;;  %v2036_v63 = vld [vmem:[%s2541_s26 + $0x2f0] ss:$8 sps:$4 sm:$0xff]   ;;  %v2041_v0 = vld [vmem:[%s2541_s26 + $0x104] ss:$8 sps:$4 sm:$0xff]   ;;  %v2039_v4 = vld [vmem:[%s2541_s26 + $0x100] ss:$8 sps:$4 sm:$0xff]  }
  0x92   : > { %1589 = vmatpush1.bf16.msra.mxu0 %v1976_v19  ;;  %1508 = vmatprep.subr.bf16.mxu1 %v1977_v20  ;;  %v2046_v1 = vld [vmem:[%s2541_s26 + $0x304] ss:$8 sps:$4 sm:$0xff]   ;;  %v2044_v5 = vld [vmem:[%s2541_s26 + $0x300] ss:$8 sps:$4 sm:$0xff]   ;;  %v2049_v6 = vld [vmem:[%s2541_s26 + $0x114] ss:$8 sps:$4 sm:$0xff]  }
  0x93   : > { %1590 = vmatprep.subr.bf16.mxu0 %v1979_v21  ;;  %v2052_v7 = vld [vmem:[%s2541_s26 + $0x314] ss:$8 sps:$4 sm:$0xff]   ;;  %v2047_v8 = vld [vmem:[%s2541_s26 + $0x110] ss:$8 sps:$4 sm:$0xff]   ;;  %v2055_v10 = vld [vmem:[%s2541_s26 + $0x124] ss:$8 sps:$4 sm:$0xff]  }
  0x94   : > { %v2050_v9 = vld [vmem:[%s2541_s26 + $0x310] ss:$8 sps:$4 sm:$0xff]   ;;  %v2058_v11 = vld [vmem:[%s2541_s26 + $0x324] ss:$8 sps:$4 sm:$0xff]   ;;  %v2053_v12 = vld [vmem:[%s2541_s26 + $0x120] ss:$8 sps:$4 sm:$0xff]  }
  0x95   : > { %1509 = vmatpush1.bf16.msra.mxu1 %v1981_v22  ;;  %v2056_v13 = vld [vmem:[%s2541_s26 + $0x320] ss:$8 sps:$4 sm:$0xff]   ;;  %v2061_v14 = vld [vmem:[%s2541_s26 + $0x134] ss:$8 sps:$4 sm:$0xff]   ;;  %v2059_v16 = vld [vmem:[%s2541_s26 + $0x130] ss:$8 sps:$4 sm:$0xff]  }
  0x96   : > { %1591 = vmatpush1.bf16.msra.mxu0 %v1982_v23  ;;  %1510 = vmatprep.subr.bf16.mxu1 %v1983_v24  ;;  %v2064_v15 = vld [vmem:[%s2541_s26 + $0x334] ss:$8 sps:$4 sm:$0xff]   ;;  %v2062_v17 = vld [vmem:[%s2541_s26 + $0x330] ss:$8 sps:$4 sm:$0xff]   ;;  %v2067_v18 = vld [vmem:[%s2541_s26 + $0x144] ss:$8 sps:$4 sm:$0xff]  }
  0x97   : > { %1592 = vmatprep.subr.bf16.mxu0 %v1985_v25  ;;  %v2070_v19 = vld [vmem:[%s2541_s26 + $0x344] ss:$8 sps:$4 sm:$0xff]   ;;  %v2065_v20 = vld [vmem:[%s2541_s26 + $0x140] ss:$8 sps:$4 sm:$0xff]   ;;  %v2073_v23 = vld [vmem:[%s2541_s26 + $0x154] ss:$8 sps:$4 sm:$0xff]  }
  0x98   : > { %v2068_v21 = vld [vmem:[%s2541_s26 + $0x340] ss:$8 sps:$4 sm:$0xff]   ;;  %v2076_v25 = vld [vmem:[%s2541_s26 + $0x354] ss:$8 sps:$4 sm:$0xff]   ;;  %v2098_v46 = vld [vmem:[%s2541_s26 + $0x390] ss:$8 sps:$4 sm:$0xff]  }
  0x99   : > { %1511 = vmatpush1.bf16.msra.mxu1 %v1987_v26  ;;  %v2640_v22 = vld [vmem:[%s2709_s0 + $0x18] sm:$0xff]  ;;  %v2649_v26 = vld [vmem:[%s2709_s0 + $0x8] sm:$0xff]  ;;  %vm1489_vm1 = vcmask 1041408   ;;  %s1751_s5 = sshll.u32 %s1742_s15, 1 }
  0x9a   : > { %1593 = vmatpush1.bf16.msra.mxu0 %v1988_v27  ;;  %1512 = vmatprep.subr.bf16.mxu1 %v1989_v28  ;;  %v1760_v24 = vcombine.high %v2640_v22, %v2640_v22  ;;  %v1756_v27 = vcombine.high %v2649_v26, %v2649_v26  ;;  %v837_v28 = vld [vmem:[#allocation3] sm:$0xff]  ;;  %v2092_v42 = vld [vmem:[%s2541_s26 + $0x380] ss:$8 sps:$4 sm:$0xff]   ;;  %p704_p7 = scmp.lt.s32.totalorder %s1751_s5, 3 }
  0x9b   : > { %1594 = vmatprep.subr.bf16.mxu0 %v1991_v29  ;;  %v2071_v29 = vld [vmem:[%s2541_s26 + $0x150] ss:$8 sps:$4 sm:$0xff]   ;;  %840 = vperm.xlu0 %1940, %v837_v28   ;;  %v2100_v44 = vld [vmem:[%s2541_s26 + $0x394] ss:$8 sps:$4 sm:$0xff]   ;;  %v2101_v49 = vld [vmem:[%s2541_s26 + $0x1a0] ss:$8 sps:$4 sm:$0xff]  }
  0x9c   : > { %s2727_s5 = smov (!%p704_p7, %s1751_s5), 3 }
  0x9d   : > { %1513 = vmatpush1.bf16.msra.mxu1 %v1993_v30  ;;  %v2074_v30 = vld [vmem:[%s2541_s26 + $0x350] ss:$8 sps:$4 sm:$0xff]   ;;  %s1752_s6 = sshll.u32 %s2727_s5, 3 }
  0x9e   : > { %1595 = vmatpush1.bf16.msra.mxu0 %v1994_v31  ;;  %1514 = vmatprep.subr.bf16.mxu1 %v1995_v32  ;;  %v2079_v31 = vld [vmem:[%s2541_s26 + $0x164] ss:$8 sps:$4 sm:$0xff]   ;;  %s707_s14 = scalar_lea.vmem %s2712_s3, %s1752_s6 }
  0x9f   : > { %1596 = vmatprep.subr.bf16.mxu0 %v1997_v33  ;;  %v2082_v32 = vld [vmem:[%s2541_s26 + $0x364] ss:$8 sps:$4 sm:$0xff]   ;;  %v2077_v33 = vld [vmem:[%s2541_s26 + $0x160] ss:$8 sps:$4 sm:$0xff]  }
  0xa1   : > { %1515 = vmatpush1.bf16.msra.mxu1 %v1999_v34  ;;  %v2080_v34 = vld [vmem:[%s2541_s26 + $0x360] ss:$8 sps:$4 sm:$0xff]  }
  0xa2   : > { %1597 = vmatpush1.bf16.msra.mxu0 %v2000_v35  ;;  %1516 = vmatprep.subr.bf16.mxu1 %v2001_v36  ;;  %v2085_v35 = vld [vmem:[%s2541_s26 + $0x174] ss:$8 sps:$4 sm:$0xff]  }
  0xa3   : > { %1598 = vmatprep.subr.bf16.mxu0 %v2003_v37  ;;  %v2088_v36 = vld [vmem:[%s2541_s26 + $0x374] ss:$8 sps:$4 sm:$0xff]   ;;  %v2083_v37 = vld [vmem:[%s2541_s26 + $0x170] ss:$8 sps:$4 sm:$0xff]  }
  0xa5   : > { %1517 = vmatpush1.bf16.msra.mxu1 %v2005_v38  ;;  %v2086_v38 = vld [vmem:[%s2541_s26 + $0x370] ss:$8 sps:$4 sm:$0xff]  }
  0xa6   : > { %1599 = vmatpush1.bf16.msra.mxu0 %v2006_v39  ;;  %1518 = vmatprep.subr.bf16.mxu1 %v2007_v40  ;;  %v2091_v39 = vld [vmem:[%s2541_s26 + $0x184] ss:$8 sps:$4 sm:$0xff]  }
  0xa7   : > { %1600 = vmatprep.subr.bf16.mxu0 %v2009_v41  ;;  %v2094_v40 = vld [vmem:[%s2541_s26 + $0x384] ss:$8 sps:$4 sm:$0xff]   ;;  %v2089_v41 = vld [vmem:[%s2541_s26 + $0x180] ss:$8 sps:$4 sm:$0xff]  }
  0xa9   : > { %1519 = vmatpush1.bf16.msra.mxu1 %v2011_v43  ;;  %v2097_v43 = vld [vmem:[%s2541_s26 + $0x194] ss:$8 sps:$4 sm:$0xff]  }
  0xaa   : > { %1601 = vmatpush1.bf16.msra.mxu0 %v2012_v45  ;;  %1520 = vmatprep.subr.bf16.mxu1 %v2013_v47  ;;  %v2095_v45 = vld [vmem:[%s2541_s26 + $0x190] ss:$8 sps:$4 sm:$0xff]   ;;  %v2103_v47 = vld [vmem:[%s2541_s26 + $0x1a4] ss:$8 sps:$4 sm:$0xff]  }
  0xab   : > { %1602 = vmatprep.subr.bf16.mxu0 %v2015_v48  ;;  %v2106_v48 = vld [vmem:[%s2541_s26 + $0x3a4] ss:$8 sps:$4 sm:$0xff]  }
  0xad   : > { %1521 = vmatpush1.bf16.msra.mxu1 %v2017_v50  ;;  %v2104_v50 = vld [vmem:[%s2541_s26 + $0x3a0] ss:$8 sps:$4 sm:$0xff]  }
  0xae   : > { %1603 = vmatpush1.bf16.msra.mxu0 %v2018_v51  ;;  %1522 = vmatprep.subr.bf16.mxu1 %v2019_v52  ;;  %v2109_v51 = vld [vmem:[%s2541_s26 + $0x1b4] ss:$8 sps:$4 sm:$0xff]  }
  0xaf   : > { %1604 = vmatprep.subr.bf16.mxu0 %v2021_v53  ;;  %v2112_v52 = vld [vmem:[%s2541_s26 + $0x3b4] ss:$8 sps:$4 sm:$0xff]   ;;  %v2107_v53 = vld [vmem:[%s2541_s26 + $0x1b0] ss:$8 sps:$4 sm:$0xff]  }
  0xb1   : > { %1523 = vmatpush1.bf16.msra.mxu1 %v2023_v54  ;;  %v2110_v54 = vld [vmem:[%s2541_s26 + $0x3b0] ss:$8 sps:$4 sm:$0xff]  }
  0xb2   : > { %1605 = vmatpush1.bf16.msra.mxu0 %v2024_v55  ;;  %1524 = vmatprep.subr.bf16.mxu1 %v2025_v56  ;;  %v2115_v55 = vld [vmem:[%s2541_s26 + $0x1c4] ss:$8 sps:$4 sm:$0xff]  }
  0xb3   : > { %1606 = vmatprep.subr.bf16.mxu0 %v2027_v57  ;;  %v2118_v56 = vld [vmem:[%s2541_s26 + $0x3c4] ss:$8 sps:$4 sm:$0xff]   ;;  %v836_v57 = vld [vmem:[%s2541_s26 + $0x3d0] sm:$0x33] }
  0xb5   : > { %1525 = vmatpush1.bf16.msra.mxu1 %v2029_v58  ;;  %v2113_v58 = vld [vmem:[%s2541_s26 + $0x1c0] ss:$8 sps:$4 sm:$0xff]  }
  0xb6   : > { %1607 = vmatpush1.bf16.msra.mxu0 %v2030_v59  ;;  %1526 = vmatprep.subr.bf16.mxu1 %v2031_v60  ;;  %v2116_v59 = vld [vmem:[%s2541_s26 + $0x3c0] ss:$8 sps:$4 sm:$0xff]   ;;  %v2121_v60 = vld [vmem:[%s2541_s26 + $0x1d4] ss:$8 sps:$4 sm:$0xff]  }
  0xb7   : > { %1608 = vmatprep.subr.bf16.mxu0 %v2033_v61  ;;  %v1884_v61 = vcombine.high %v836_v57, %v836_v57 }
  0xb9   : > { %1527 = vmatpush1.bf16.msra.mxu1 %v2035_v62  ;;  %v1883_v62 = vcombine.low %v836_v57, %v836_v57 }
  0xba   : > { %1609 = vmatpush1.bf16.msra.mxu0 %v2036_v63  ;;  %1537 = vmatprep.subr.bf16.mxu1 %v2041_v0  ;;  %v2119_v63 = vld [vmem:[%s2541_s26 + $0x1d0] ss:$8 sps:$4 sm:$0xff]  }
  0xbb   : > { %1619 = vmatprep.subr.bf16.mxu0 %v2046_v1  ;;  %v1491_v0 = vsel %vm1489_vm1, %v1883_v62, 0  ;;  %v2127_v1 = vld [vmem:[%s2541_s26 + $0x1e4] ss:$8 sps:$4 sm:$0xff]  }
  0xbc   : > { %1529 = vmatmul.mubr.bf16.vlgmr.msra.gmra.mrb[0].mxu1 %v1753_v2  ;;  %v1759_v2 = vcombine.low %v2640_v22, %v2640_v22 }
  0xbd   : > { %1611 = vmatmul.mubr.bf16.vlgmr.msra.gmra.mrb[0].mxu0 %v1757_v3  ;;  %1538 = vmatpush1.bf16.msra.mxu1 %v2039_v4  ;;  %v2125_v3 = vld [vmem:[%s2541_s26 + $0x1e0] ss:$8 sps:$4 sm:$0xff]   ;;  %v2131_v4 = vld [vmem:[%s2541_s26 + $0x1f4] ss:$8 sps:$4 sm:$0xff]  }
  0xbe   : > { %1620 = vmatpush1.bf16.msra.mxu0 %v2044_v5  ;;  %1539 = vmatprep.subr.bf16.mxu1 %v2049_v6  ;;  %v2129_v5 = vld [vmem:[%s2541_s26 + $0x1f0] ss:$8 sps:$4 sm:$0xff]   ;;  %v1755_v6 = vcombine.low %v2649_v26, %v2649_v26 }
  0xbf   : > { %1621 = vmatprep.subr.bf16.mxu0 %v2052_v7  ;;  %1886 = vmatprep.mubr.msk.bf16.mxu0 %vm1485_vm0, %v1760_v24 }
  0xc0   : > { %1569 = vmatprep.mubr.bf16.mxu1 %v1756_v27 }
  0xc1   : > { %1540 = vmatpush1.bf16.msra.mxu1 %v2047_v8 }
  0xc2   : > { %1622 = vmatpush1.bf16.msra.mxu0 %v2050_v9  ;;  %1541 = vmatprep.subr.bf16.mxu1 %v2055_v10 }
  0xc3   : > { %1623 = vmatprep.subr.bf16.mxu0 %v2058_v11 }
  0xc5   : > { %1542 = vmatpush1.bf16.msra.mxu1 %v2053_v12 }
  0xc6   : > { %1624 = vmatpush1.bf16.msra.mxu0 %v2056_v13  ;;  %1543 = vmatprep.subr.bf16.mxu1 %v2061_v14 }
  0xc7   : > { %1625 = vmatprep.subr.bf16.mxu0 %v2064_v15 }
  0xc9   : > { %1544 = vmatpush1.bf16.msra.mxu1 %v2059_v16 }
  0xca   : > { %1626 = vmatpush1.bf16.msra.mxu0 %v2062_v17  ;;  %1545 = vmatprep.subr.bf16.mxu1 %v2067_v18 }
  0xcb   : > { %1627 = vmatprep.subr.bf16.mxu0 %v2070_v19 }
  0xcd   : > { %1546 = vmatpush1.bf16.msra.mxu1 %v2065_v20 }
  0xce   : > { %1628 = vmatpush1.bf16.msra.mxu0 %v2068_v21  ;;  %1547 = vmatprep.subr.bf16.mxu1 %v2073_v23 }
  0xcf   : > { %1629 = vmatprep.subr.bf16.mxu0 %v2076_v25 }
  0xd1   : > { %1548 = vmatpush1.bf16.msra.mxu1 %v2071_v29 }
  0xd2   : > { %1630 = vmatpush1.bf16.msra.mxu0 %v2074_v30  ;;  %1549 = vmatprep.subr.bf16.mxu1 %v2079_v31 }
  0xd3   : > { %1631 = vmatprep.subr.bf16.mxu0 %v2082_v32 }
  0xd5   : > { %1550 = vmatpush1.bf16.msra.mxu1 %v2077_v33 }
  0xd6   : > { %1632 = vmatpush1.bf16.msra.mxu0 %v2080_v34  ;;  %1551 = vmatprep.subr.bf16.mxu1 %v2085_v35 }
  0xd7   : > { %1633 = vmatprep.subr.bf16.mxu0 %v2088_v36 }
  0xd9   : > { %1552 = vmatpush1.bf16.msra.mxu1 %v2083_v37 }
  0xda   : > { %1634 = vmatpush1.bf16.msra.mxu0 %v2086_v38  ;;  %1553 = vmatprep.subr.bf16.mxu1 %v2091_v39 }
  0xdb   : > { %1635 = vmatprep.subr.bf16.mxu0 %v2094_v40 }
  0xdd   : > { %1554 = vmatpush1.bf16.msra.mxu1 %v2089_v41 }
  0xde   : > { %1636 = vmatpush1.bf16.msra.mxu0 %v2092_v42  ;;  %1555 = vmatprep.subr.bf16.mxu1 %v2097_v43 }
  0xdf   : > { %1637 = vmatprep.subr.bf16.mxu0 %v2100_v44 }
  0xe1   : > { %1556 = vmatpush1.bf16.msra.mxu1 %v2095_v45 }
  0xe2   : > { %1638 = vmatpush1.bf16.msra.mxu0 %v2098_v46  ;;  %1557 = vmatprep.subr.bf16.mxu1 %v2103_v47 }
  0xe3   : > { %1639 = vmatprep.subr.bf16.mxu0 %v2106_v48 }
  0xe5   : > { %1558 = vmatpush1.bf16.msra.mxu1 %v2101_v49 }
  0xe6   : > { %1640 = vmatpush1.bf16.msra.mxu0 %v2104_v50  ;;  %1559 = vmatprep.subr.bf16.mxu1 %v2109_v51 }
  0xe7   : > { %1641 = vmatprep.subr.bf16.mxu0 %v2112_v52 }
  0xe9   : > { %1560 = vmatpush1.bf16.msra.mxu1 %v2107_v53 }
  0xea   : > { %1642 = vmatpush1.bf16.msra.mxu0 %v2110_v54  ;;  %1561 = vmatprep.subr.bf16.mxu1 %v2115_v55 }
  0xeb   : > { %1643 = vmatprep.subr.bf16.mxu0 %v2118_v56 }
  0xed   : > { %1562 = vmatpush1.bf16.msra.mxu1 %v2113_v58 }
  0xee   : > { %1644 = vmatpush1.bf16.msra.mxu0 %v2116_v59  ;;  %1563 = vmatprep.subr.bf16.mxu1 %v2121_v60 }
  0xef   : > { %1885 = vmatprep.subr.msk.bf16.mxu0 %vm1489_vm1, %v1884_v61 }
  0xf1   : > { %1564 = vmatpush1.bf16.msra.mxu1 %v2119_v63 }
  0xf2   : > { %1646 = vmatpush1.bf16.msra.mxu0 %v1491_v0  ;;  %1565 = vmatprep.subr.bf16.mxu1 %v2127_v1 }
  0xf5   : > { %1652 = vmatmul.mubr.bf16.vlgmr.msra.gmra.mrb[0].mxu0 %v1759_v2  ;;  %1566 = vmatpush1.bf16.msra.mxu1 %v2125_v3 }
  0xf6   : > { %1567 = vmatprep.subr.bf16.mxu1 %v2131_v4 }
  0xf9   : > { %1568 = vmatpush1.bf16.msra.mxu1 %v2129_v5 }
  0xfc   : > { %1570 = vmatmul.mubr.bf16.vlgmr.msra.gmra.mrb[0].mxu1 %v1755_v6 }
 0x11a   : > { %v841_v11 = vpop.permute.xlu0 %840 }
 0x1c8   : > { %v1653_v7 = vpop.f32.mrb[0].mxu0 }
 0x1c9   : > { %v1655_v8 = vpop.f32.mrb[1].mxu0 }
 0x1ca   : > { %v1657_v9 = vpop.f32.mrb[2].mxu0 }
 0x1cb   : > { %v1658_v10 = vpop.f32.mrb[3].mxu0 }
 0x1cf   : > { %v1571_v12 = vpop.f32.mrb[0].mxu1 }
 0x1d0   : > { %v1890_v13 = vadd.f32 %v1571_v12, %v841_v11  ;;  %v1573_v14 = vpop.f32.mrb[1].mxu1 }
 0x1d1   : > { %v1892_v15 = vadd.f32 %v1573_v14, %v841_v11  ;;  %v1575_v16 = vpop.f32.mrb[2].mxu1 }
 0x1d2   : > { %v1891_v17 = vadd.f32 %v1890_v13, %v1653_v7  ;;  %v1576_v18 = vpop.f32.mrb[3].mxu1 }
 0x1d3   : > { %v1893_v19 = vadd.f32 %v1892_v15, %v1655_v8 }
 0x1d4   : > { %vm1660_vm2 = vcmp.ge.f32.partialorder %v1891_v17, 0.0  ;;  %v1662_v20 = vmul.f32 0.1, %v1891_v17 }
 0x1d5   : > { %vm1661_vm3 = vcmp.ge.f32.partialorder %v1893_v19, 0.0  ;;  %v1663_v21 = vmul.f32 0.1, %v1893_v19 }
 0x1d6   : > { %v1664_v22 = vsel %vm1660_vm2, %v1891_v17, %v1662_v20 }
 0x1d7   : > { %1666 = vst [vmem:[%s707_s14] sm:$0xff] %v1664_v22  ;;  %v1665_v23 = vsel %vm1661_vm3, %v1893_v19, %v1663_v21 }
 0x1d8   : > { %1667 = vst [vmem:[%s707_s14 + $0x8] sm:$0xff] %v1665_v23 }
 0x1d9 PF: > { %p11_p9 = scmp.ge.s32.totalorder %s2229_s16, 4   ;;  %s2723_s12 = smov %s2184_s13 }
 0x1da   : > { %s2724_s13 = smov %s2239_s19  ;;  %s2725_s14 = smov %s2229_s16 }
 0x1db   :  { %13 = sbr.rel (!%p11_p9) target bundleno = 2 (0x2), region = 110 }
 0x1e2   :  { %1690 = vsyncpa [#allocation4], 1 }
 0x1e3   :  { %1692 = vsyncpa [#allocation4 + $0x1], 1 }

// kernel: _lambda_.89
= control target key start
LH: loop header
LB: loop body
LE: loop exit
PB: predicated region body
PF: predicated region fallthrough
CT: control target
= control target key end

     0   :  { %8 = vsyncpa [#allocation4], 0  ;;  %s1173_s12 = smov 0   ;;  %s1175_s13 = smov 0   ;;  %s1430_s0 = inlined_call_operand.vmem [shape: bf16[8,392], index: 0, kind: input, shape index: {}]   ;;  %s1431_s1 = inlined_call_operand.vmem [shape: bf16[392,512], index: 1, kind: input, shape index: {}]   ;;  %s1432_s2 = inlined_call_operand.hbm [shape: f32[8,1], index: 2, kind: input, shape index: {}]   ;;  %s1433_s3 = inlined_call_operand.vmem [shape: f32[8,512], index: 3, kind: output, shape index: {}]  }
   0x1   :  { %s1177_s14 = smov 0  }
   0x2 LB: > { %s904_s15 = sadd.s32 4294967295, %s1149_s14   ;;  %s1190_s16 = sadd.s32 1, %s1149_s14   ;;  %s1149_s14 = sphi %s1177_s14, %s1446_s14   ;;  %s1145_s13 = sphi %s1175_s13, %s1445_s13   ;;  %s1141_s12 = sphi %s1173_s12, %s1444_s12  }
   0x3   : > { %s39_s17 = ssub.s32 %s1149_s14, %s1190_s16  ;;  %s42_s18 = sadd.s32 1, %s1145_s13 }
   0x4   : > { %p40_p0 = scmp.eq.s32.totalorder %s39_s17, 0  ;;  %p49_p1 = scmp.ne.s32.totalorder %s1145_s13, %s1141_s12 }
   0x5   : > { %p50_p2 = scmp.eq.s32.totalorder %s1149_s14, 0  ;;  %p906_p3 = scmp.ge.s32.totalorder %s1149_s14, 1 }
   0x6   : > { %s1200_s19 = scalar_select %p40_p0, %s1145_s13, %s42_s18  }
   0x7   : > { %p1202_p4 = por %p50_p2, %p49_p1  ;;  %p113_p5 = scmp.lt.s32.totalorder %s1149_s14, 3 }
   0x8   : > { %p1209_p6 = scmp.eq.s32.totalorder %s904_s15, 0  ;;  %s1151_s23 = smov [#allocation3]  }
   0x9   : > { %s1437_s20 = scalar_select %p1202_p4, 1, 0 }
   0xa   : > { %s1438_s21 = scalar_select %p1209_p6, 1, 0 }
   0xb   : > { %p1213_p7 = pnand %p906_p3, %p113_p5  ;;  %s129_s24 = sshll.u32 %s1151_s23, 4  ;;  %s130_s24 = int_to_ptr.vmem [resolvable:$true] %s129_s24 }
   0xc   : > { %s1095_s28 = scalar_lea.hbm %s1432_s2, 128 }
   0xd   : > { %s1439_s22 = scalar_select %p1213_p7, 1, 0 }
   0xe   : > { %p984_p8 = pneg %p1213_p7  ;;  %p1096_p10 = scmp.ne.s32.totalorder %s1432_s2, %s1095_s28 }
   0xf   : > { %p1102_p0 = scmp.lt.u32.totalorder %s1095_s28, %s1432_s2 }
  0x10   : > { %p1221_p9 = pnand %p1209_p6, %p984_p8 }
  0x12   : > { %p1097_p11 = pneg %p1221_p9 }
  0x14   : > { %p1098_p12 = pnand %p1097_p11, %p1096_p10 }
  0x16   : > { %p1099_p13 = pneg %p1098_p12 }
  0x18   : > { %p1104_p1 = pnand %p1102_p0, %p1099_p13 }
  0x1a   : > { %1107 = shalt.err (!%p1104_p1)
}
  0x1b   : > { %s1108_s6 = scalar_lea.vmem %s130_s24, 128  ;;  %p1116_p8 = scmp.lt.s32.totalorder %s130_s24, %s130_s24 }
  0x1c   : > { %p1109_p2 = scmp.ne.s32.totalorder %s130_s24, %s1108_s6  ;;  %p1117_p6 = scmp.lt.s32.totalorder %s1108_s6, %s1108_s6 }
  0x1e   : > { %p1111_p3 = pnand %p1109_p2, %p1097_p11  ;;  %p1118_p7 = por %p1117_p6, %p1116_p8 }
  0x20   : > { %p1112_p5 = pneg %p1111_p3 }
  0x22   : > { %p1119_p4 = pnand %p1118_p7, %p1112_p5 }
  0x24   : > { %1122 = shalt.err (!%p1119_p4)
}
  0x25   : > { %987 = dma.hbm_to_vmem [thread:$0]  (!%p1221_p9), %s1432_s2, 128, %s130_s24, [#allocation4]  }
  0x26   : > { %p908_p10 = scmp.ge.s32.totalorder %s1149_s14, 2 }
  0x27   : > { %p1441_p12 = scmp.ne.s32.totalorder (!%p908_p10), %s1437_s20, 0 }
  0x28   : > { %136 = sbr.rel (%p908_p10) target bundleno = 76 (0x4c), region = 24 }
  0x2f   : > { %139 = sbr.rel (!%p1441_p12) target bundleno = 76 (0x4c), region = 28  ;;  %s141_s9 = sand.u32 (%p1441_p12), 1, %s1145_s13  }
  0x30   : > { %s973_s10 = sshll.u32 (%p1441_p12), %s1149_s14, 3  ;;  %s978_s11 = smul.u32 (%p1441_p12), 392, %s141_s9 }
  0x31   : > { %s1249_s23 = scalar_lea.vmem (%p1441_p12), %s1431_s1, %s973_s10 }
  0x32   : > { %v270_v0 = vld [vmem:[%s1249_s23] sm:$0xff] (%p1441_p12)  ;;  %v272_v1 = vld [vmem:[%s1249_s23 + $0x10] sm:$0xff] (%p1441_p12)  ;;  %s1257_s20 = scalar_lea.vmem (%p1441_p12), [#allocation2], %s978_s11 }
  0x33   : > { %v274_v2 = vld [vmem:[%s1249_s23 + $0x20] sm:$0xff] (%p1441_p12)  ;;  %v276_v3 = vld [vmem:[%s1249_s23 + $0x30] sm:$0xff] (%p1441_p12)  ;;  %271 = vst [vmem:[%s1257_s20] sm:$0xff] (%p1441_p12), %v270_v0  ;;  %273 = vst [vmem:[%s1257_s20 + $0x8] sm:$0xff] (%p1441_p12), %v272_v1 }
  0x34   : > { %v278_v4 = vld [vmem:[%s1249_s23 + $0x40] sm:$0xff] (%p1441_p12)  ;;  %v280_v5 = vld [vmem:[%s1249_s23 + $0x50] sm:$0xff] (%p1441_p12)  ;;  %275 = vst [vmem:[%s1257_s20 + $0x10] sm:$0xff] (%p1441_p12), %v274_v2  ;;  %277 = vst [vmem:[%s1257_s20 + $0x18] sm:$0xff] (%p1441_p12), %v276_v3 }
  0x35   : > { %279 = vst [vmem:[%s1257_s20 + $0x20] sm:$0xff] (%p1441_p12), %v278_v4  ;;  %281 = vst [vmem:[%s1257_s20 + $0x28] sm:$0xff] (%p1441_p12), %v280_v5  ;;  %v282_v6 = vld [vmem:[%s1249_s23 + $0x60] sm:$0xff] (%p1441_p12)  ;;  %v284_v7 = vld [vmem:[%s1249_s23 + $0x70] sm:$0xff] (%p1441_p12) }
  0x36   : > { %v286_v8 = vld [vmem:[%s1249_s23 + $0x80] sm:$0xff]  ;;  %283 = vst [vmem:[%s1257_s20 + $0x30] sm:$0xff] %v282_v6  ;;  %285 = vst [vmem:[%s1257_s20 + $0x38] sm:$0xff] %v284_v7  ;;  %v288_v9 = vld [vmem:[%s1249_s23 + $0x90] sm:$0xff] }
  0x37   : > { %287 = vst [vmem:[%s1257_s20 + $0x40] sm:$0xff] %v286_v8  ;;  %v290_v10 = vld [vmem:[%s1249_s23 + $0xa0] sm:$0xff]  ;;  %v292_v11 = vld [vmem:[%s1249_s23 + $0xb0] sm:$0xff]  ;;  %289 = vst [vmem:[%s1257_s20 + $0x48] sm:$0xff] %v288_v9 }
  0x38   : > { %291 = vst [vmem:[%s1257_s20 + $0x50] sm:$0xff] %v290_v10  ;;  %293 = vst [vmem:[%s1257_s20 + $0x58] sm:$0xff] %v292_v11  ;;  %v294_v12 = vld [vmem:[%s1249_s23 + $0xc0] sm:$0xff]  ;;  %v296_v13 = vld [vmem:[%s1249_s23 + $0xd0] sm:$0xff] }
  0x39   : > { %v298_v14 = vld [vmem:[%s1249_s23 + $0xe0] sm:$0xff]  ;;  %295 = vst [vmem:[%s1257_s20 + $0x60] sm:$0xff] %v294_v12  ;;  %297 = vst [vmem:[%s1257_s20 + $0x68] sm:$0xff] %v296_v13  ;;  %v300_v15 = vld [vmem:[%s1249_s23 + $0xf0] sm:$0xff] }
  0x3a   : > { %299 = vst [vmem:[%s1257_s20 + $0x70] sm:$0xff] %v298_v14  ;;  %v302_v16 = vld [vmem:[%s1249_s23 + $0x100] sm:$0xff]  ;;  %v304_v17 = vld [vmem:[%s1249_s23 + $0x110] sm:$0xff]  ;;  %301 = vst [vmem:[%s1257_s20 + $0x78] sm:$0xff] %v300_v15 }
  0x3b   : > { %303 = vst [vmem:[%s1257_s20 + $0x80] sm:$0xff] %v302_v16  ;;  %305 = vst [vmem:[%s1257_s20 + $0x88] sm:$0xff] %v304_v17  ;;  %v306_v18 = vld [vmem:[%s1249_s23 + $0x120] sm:$0xff]  ;;  %v308_v19 = vld [vmem:[%s1249_s23 + $0x130] sm:$0xff] }
  0x3c   : > { %v310_v20 = vld [vmem:[%s1249_s23 + $0x140] sm:$0xff]  ;;  %307 = vst [vmem:[%s1257_s20 + $0x90] sm:$0xff] %v306_v18  ;;  %309 = vst [vmem:[%s1257_s20 + $0x98] sm:$0xff] %v308_v19  ;;  %v312_v21 = vld [vmem:[%s1249_s23 + $0x150] sm:$0xff] }
  0x3d   : > { %311 = vst [vmem:[%s1257_s20 + $0xa0] sm:$0xff] %v310_v20  ;;  %v314_v22 = vld [vmem:[%s1249_s23 + $0x160] sm:$0xff]  ;;  %v316_v23 = vld [vmem:[%s1249_s23 + $0x170] sm:$0xff]  ;;  %313 = vst [vmem:[%s1257_s20 + $0xa8] sm:$0xff] %v312_v21 }
  0x3e   : > { %315 = vst [vmem:[%s1257_s20 + $0xb0] sm:$0xff] %v314_v22  ;;  %317 = vst [vmem:[%s1257_s20 + $0xb8] sm:$0xff] %v316_v23  ;;  %v318_v24 = vld [vmem:[%s1249_s23 + $0x180] sm:$0xff]  ;;  %v320_v25 = vld [vmem:[%s1249_s23 + $0x190] sm:$0xff] }
  0x3f   : > { %v322_v26 = vld [vmem:[%s1249_s23 + $0x1a0] sm:$0xff]  ;;  %319 = vst [vmem:[%s1257_s20 + $0xc0] sm:$0xff] %v318_v24  ;;  %321 = vst [vmem:[%s1257_s20 + $0xc8] sm:$0xff] %v320_v25  ;;  %v324_v27 = vld [vmem:[%s1249_s23 + $0x1b0] sm:$0xff] }
  0x40   : > { %323 = vst [vmem:[%s1257_s20 + $0xd0] sm:$0xff] %v322_v26  ;;  %v326_v28 = vld [vmem:[%s1249_s23 + $0x1c0] sm:$0xff]  ;;  %v328_v29 = vld [vmem:[%s1249_s23 + $0x1d0] sm:$0xff]  ;;  %325 = vst [vmem:[%s1257_s20 + $0xd8] sm:$0xff] %v324_v27 }
  0x41   : > { %327 = vst [vmem:[%s1257_s20 + $0xe0] sm:$0xff] %v326_v28  ;;  %329 = vst [vmem:[%s1257_s20 + $0xe8] sm:$0xff] %v328_v29  ;;  %v330_v30 = vld [vmem:[%s1249_s23 + $0x1e0] sm:$0xff]  ;;  %v332_v31 = vld [vmem:[%s1249_s23 + $0x1f0] sm:$0xff] }
  0x42   : > { %v334_v32 = vld [vmem:[%s1249_s23 + $0x200] sm:$0xff]  ;;  %331 = vst [vmem:[%s1257_s20 + $0xf0] sm:$0xff] %v330_v30  ;;  %333 = vst [vmem:[%s1257_s20 + $0xf8] sm:$0xff] %v332_v31  ;;  %v336_v33 = vld [vmem:[%s1249_s23 + $0x210] sm:$0xff] }
  0x43   : > { %335 = vst [vmem:[%s1257_s20 + $0x100] sm:$0xff] %v334_v32  ;;  %v338_v34 = vld [vmem:[%s1249_s23 + $0x220] sm:$0xff]  ;;  %v340_v35 = vld [vmem:[%s1249_s23 + $0x230] sm:$0xff]  ;;  %337 = vst [vmem:[%s1257_s20 + $0x108] sm:$0xff] %v336_v33 }
  0x44   : > { %339 = vst [vmem:[%s1257_s20 + $0x110] sm:$0xff] %v338_v34  ;;  %341 = vst [vmem:[%s1257_s20 + $0x118] sm:$0xff] %v340_v35  ;;  %v342_v36 = vld [vmem:[%s1249_s23 + $0x240] sm:$0xff]  ;;  %v344_v37 = vld [vmem:[%s1249_s23 + $0x250] sm:$0xff] }
  0x45   : > { %v346_v38 = vld [vmem:[%s1249_s23 + $0x260] sm:$0xff]  ;;  %343 = vst [vmem:[%s1257_s20 + $0x120] sm:$0xff] %v342_v36  ;;  %345 = vst [vmem:[%s1257_s20 + $0x128] sm:$0xff] %v344_v37  ;;  %v348_v39 = vld [vmem:[%s1249_s23 + $0x270] sm:$0xff] }
  0x46   : > { %347 = vst [vmem:[%s1257_s20 + $0x130] sm:$0xff] %v346_v38  ;;  %v350_v40 = vld [vmem:[%s1249_s23 + $0x280] sm:$0xff]  ;;  %v352_v41 = vld [vmem:[%s1249_s23 + $0x290] sm:$0xff]  ;;  %349 = vst [vmem:[%s1257_s20 + $0x138] sm:$0xff] %v348_v39 }
  0x47   : > { %351 = vst [vmem:[%s1257_s20 + $0x140] sm:$0xff] %v350_v40  ;;  %353 = vst [vmem:[%s1257_s20 + $0x148] sm:$0xff] %v352_v41  ;;  %v354_v42 = vld [vmem:[%s1249_s23 + $0x2a0] sm:$0xff]  ;;  %v356_v43 = vld [vmem:[%s1249_s23 + $0x2b0] sm:$0xff] }
  0x48   : > { %v358_v44 = vld [vmem:[%s1249_s23 + $0x2c0] sm:$0xff]  ;;  %355 = vst [vmem:[%s1257_s20 + $0x150] sm:$0xff] %v354_v42  ;;  %357 = vst [vmem:[%s1257_s20 + $0x158] sm:$0xff] %v356_v43  ;;  %v360_v45 = vld [vmem:[%s1249_s23 + $0x2d0] sm:$0xff] }
  0x49   : > { %359 = vst [vmem:[%s1257_s20 + $0x160] sm:$0xff] %v358_v44  ;;  %v362_v46 = vld [vmem:[%s1249_s23 + $0x2e0] sm:$0xff]  ;;  %v364_v47 = vld [vmem:[%s1249_s23 + $0x2f0] sm:$0xff]  ;;  %361 = vst [vmem:[%s1257_s20 + $0x168] sm:$0xff] %v360_v45 }
  0x4a   : > { %363 = vst [vmem:[%s1257_s20 + $0x170] sm:$0xff] %v362_v46  ;;  %365 = vst [vmem:[%s1257_s20 + $0x178] sm:$0xff] %v364_v47  ;;  %v366_v48 = vld [vmem:[%s1249_s23 + $0x300] sm:$0xff] }
  0x4b   : > { %367 = vst [vmem:[%s1257_s20 + $0x180] sm:$0xff] %v366_v48 }
  0x4c PF: > { %p1442_p4 = scmp.ne.s32.totalorder %s1439_s22, 0 }
  0x4d   : > { %s379_s24 = sand.u32 (!%p1442_p4), 1, %s1141_s12   ;;  %p1443_p6 = scmp.ne.s32.totalorder (!%p1442_p4), %s1438_s21, 0 }
  0x4e   : > { %376 = sbr.rel (%p1442_p4) target bundleno = 372 (0x174), region = 66 }
  0x4f   : > { %s979_s25 = smul.u32 (!%p1442_p4), 392, %s379_s24 }
  0x51   : > { %s1354_s26 = scalar_lea.vmem (!%p1442_p4), [#allocation2], %s979_s25 }
  0x55   : > { %1136 = dma.done.wait (%p1443_p6), [#allocation4], 128  }
  0x56   : > { %1138 = vsyncadd (%p1443_p6), [#allocation4], 4294967168  ;;  %v1152_v49 = vmov 0   ;;  %v1017_v50 = vld [vmem:[%s1354_s26 + $0x4] ss:$8 sps:$4 sm:$0xff]   ;;  %vm729_vm0 = vcmask 64512  }
  0x57   : > { %1016 = vset.pattern.permute.xlu0 %v1152_v49  ;;  %v1019_v51 = vld [vmem:[%s1354_s26] ss:$8 sps:$4 sm:$0xff]   ;;  %740 = vmatprep.subr.bf16.mxu1 %v1017_v50  ;;  %v1020_v52 = vld [vmem:[%s1354_s26 + $0x14] ss:$8 sps:$4 sm:$0xff]   ;;  %v1022_v53 = vld [vmem:[%s1354_s26 + $0x10] ss:$8 sps:$4 sm:$0xff]  }
  0x58   : > { %741 = vmatpush1.bf16.msra.mxu1 %v1019_v51  ;;  %v1023_v54 = vld [vmem:[%s1354_s26 + $0x24] ss:$8 sps:$4 sm:$0xff]   ;;  %v1025_v55 = vld [vmem:[%s1354_s26 + $0x20] ss:$8 sps:$4 sm:$0xff]   ;;  %v1026_v56 = vld [vmem:[%s1354_s26 + $0x34] ss:$8 sps:$4 sm:$0xff]  }
  0x59   : > { %742 = vmatprep.subr.bf16.mxu1 %v1020_v52  ;;  %v1038_v57 = vld [vmem:[%s1354_s26 + $0x104] ss:$8 sps:$4 sm:$0xff]   ;;  %v1028_v58 = vld [vmem:[%s1354_s26 + $0x30] ss:$8 sps:$4 sm:$0xff]   ;;  %v1042_v60 = vld [vmem:[%s1354_s26 + $0x100] ss:$8 sps:$4 sm:$0xff]  }
  0x5a   : > { %v1029_v59 = vld [vmem:[%s1354_s26 + $0x44] ss:$8 sps:$4 sm:$0xff]   ;;  %781 = vmatprep.subr.bf16.mxu0 %v1038_v57  ;;  %v1044_v61 = vld [vmem:[%s1354_s26 + $0x114] ss:$8 sps:$4 sm:$0xff]   ;;  %v1031_v62 = vld [vmem:[%s1354_s26 + $0x40] ss:$8 sps:$4 sm:$0xff]  }
  0x5b   : > { %782 = vmatpush1.bf16.msra.mxu0 %v1042_v60  ;;  %v1048_v63 = vld [vmem:[%s1354_s26 + $0x110] ss:$8 sps:$4 sm:$0xff]   ;;  %v1050_v0 = vld [vmem:[%s1354_s26 + $0x124] ss:$8 sps:$4 sm:$0xff]   ;;  %v1032_v1 = vld [vmem:[%s1354_s26 + $0x54] ss:$8 sps:$4 sm:$0xff]  }
  0x5c   : > { %743 = vmatpush1.bf16.msra.mxu1 %v1022_v53  ;;  %783 = vmatprep.subr.bf16.mxu0 %v1044_v61  ;;  %v1054_v2 = vld [vmem:[%s1354_s26 + $0x120] ss:$8 sps:$4 sm:$0xff]   ;;  %v1056_v3 = vld [vmem:[%s1354_s26 + $0x134] ss:$8 sps:$4 sm:$0xff]   ;;  %v1034_v4 = vld [vmem:[%s1354_s26 + $0x50] ss:$8 sps:$4 sm:$0xff]  }
  0x5d   : > { %744 = vmatprep.subr.bf16.mxu1 %v1023_v54  ;;  %v1035_v5 = vld [vmem:[%s1354_s26 + $0x64] ss:$8 sps:$4 sm:$0xff]   ;;  %v1060_v6 = vld [vmem:[%s1354_s26 + $0x130] ss:$8 sps:$4 sm:$0xff]   ;;  %v1037_v8 = vld [vmem:[%s1354_s26 + $0x60] ss:$8 sps:$4 sm:$0xff]  }
  0x5e   : > { %v1062_v7 = vld [vmem:[%s1354_s26 + $0x144] ss:$8 sps:$4 sm:$0xff]   ;;  %v1040_v9 = vld [vmem:[%s1354_s26 + $0x74] ss:$8 sps:$4 sm:$0xff]   ;;  %v1066_v10 = vld [vmem:[%s1354_s26 + $0x140] ss:$8 sps:$4 sm:$0xff]  }
  0x5f   : > { %784 = vmatpush1.bf16.msra.mxu0 %v1048_v63  ;;  %v1068_v11 = vld [vmem:[%s1354_s26 + $0x154] ss:$8 sps:$4 sm:$0xff]   ;;  %v1043_v12 = vld [vmem:[%s1354_s26 + $0x70] ss:$8 sps:$4 sm:$0xff]   ;;  %v1046_v13 = vld [vmem:[%s1354_s26 + $0x84] ss:$8 sps:$4 sm:$0xff]  }
  0x60   : > { %745 = vmatpush1.bf16.msra.mxu1 %v1025_v55  ;;  %785 = vmatprep.subr.bf16.mxu0 %v1050_v0  ;;  %v1072_v14 = vld [vmem:[%s1354_s26 + $0x150] ss:$8 sps:$4 sm:$0xff]   ;;  %v1074_v15 = vld [vmem:[%s1354_s26 + $0x164] ss:$8 sps:$4 sm:$0xff]   ;;  %v1049_v16 = vld [vmem:[%s1354_s26 + $0x80] ss:$8 sps:$4 sm:$0xff]  }
  0x61   : > { %746 = vmatprep.subr.bf16.mxu1 %v1026_v56  ;;  %v1052_v17 = vld [vmem:[%s1354_s26 + $0x94] ss:$8 sps:$4 sm:$0xff]   ;;  %v415_v18 = vld [vmem:[%s1430_s0 + $0x8] sm:$0xff]  ;;  %v1055_v25 = vld [vmem:[%s1354_s26 + $0x90] ss:$8 sps:$4 sm:$0xff]   ;;  %vm733_vm1 = vcmask 1043456  }
  0x62   : > { %v414_v19 = vld [vmem:[%s1430_s0] sm:$0xff]  ;;  %v918_v21 = vcombine.high %v415_v18, %v415_v18  ;;  %v465_v22 = vld [vmem:[#allocation3] sm:$0xff]  ;;  %v917_v36 = vcombine.low %v415_v18, %v415_v18  ;;  %s913_s28 = sshll.u32 %s904_s15, 1 }
  0x63   : > { %786 = vmatpush1.bf16.msra.mxu0 %v1054_v2  ;;  %v1078_v20 = vld [vmem:[%s1354_s26 + $0x160] ss:$8 sps:$4 sm:$0xff]   ;;  %v1080_v23 = vld [vmem:[%s1354_s26 + $0x174] ss:$8 sps:$4 sm:$0xff]   ;;  %v916_v24 = vcombine.high %v414_v19, %v414_v19  ;;  %468 = vperm.xlu0 %1016, %v465_v22   ;;  %v1058_v27 = vld [vmem:[%s1354_s26 + $0xa4] ss:$8 sps:$4 sm:$0xff]   ;;  %v915_v44 = vcombine.low %v414_v19, %v414_v19 }
  0x64   : > { %747 = vmatpush1.bf16.msra.mxu1 %v1028_v58  ;;  %787 = vmatprep.subr.bf16.mxu0 %v1056_v3  ;;  %v464_v26 = vld [vmem:[%s1354_s26 + $0x180] sm:$0xff]  ;;  %v1084_v28 = vld [vmem:[%s1354_s26 + $0x170] ss:$8 sps:$4 sm:$0xff]   ;;  %v1064_v32 = vld [vmem:[%s1354_s26 + $0xb4] ss:$8 sps:$4 sm:$0xff]   ;;  %p408_p7 = scmp.lt.s32.totalorder %s913_s28, 3 }
  0x65   : > { %748 = vmatprep.subr.bf16.mxu1 %v1029_v59  ;;  %970 = vmatprep.mubr.msk.bf16.mxu0 %vm729_vm0, %v918_v21  ;;  %v968_v29 = vcombine.high %v464_v26, %v464_v26  ;;  %v967_v30 = vcombine.low %v464_v26, %v464_v26  ;;  %v1061_v31 = vld [vmem:[%s1354_s26 + $0xa0] ss:$8 sps:$4 sm:$0xff]   ;;  %v1067_v34 = vld [vmem:[%s1354_s26 + $0xb0] ss:$8 sps:$4 sm:$0xff]   ;;  %v1070_v35 = vld [vmem:[%s1354_s26 + $0xc4] ss:$8 sps:$4 sm:$0xff]  }
  0x66   : > { %772 = vmatprep.mubr.bf16.mxu1 %v916_v24  ;;  %v1073_v37 = vld [vmem:[%s1354_s26 + $0xc0] ss:$8 sps:$4 sm:$0xff]   ;;  %v1076_v38 = vld [vmem:[%s1354_s26 + $0xd4] ss:$8 sps:$4 sm:$0xff]   ;;  %v1079_v39 = vld [vmem:[%s1354_s26 + $0xd0] ss:$8 sps:$4 sm:$0xff]  }
  0x67   : > { %788 = vmatpush1.bf16.msra.mxu0 %v1060_v6  ;;  %v735_v33 = vsel %vm733_vm1, %v967_v30, 0  ;;  %v1082_v40 = vld [vmem:[%s1354_s26 + $0xe4] ss:$8 sps:$4 sm:$0xff]   ;;  %v1085_v41 = vld [vmem:[%s1354_s26 + $0xe0] ss:$8 sps:$4 sm:$0xff]   ;;  %s1448_s28 = smov (!%p408_p7, %s913_s28), 3 }
  0x68   : > { %749 = vmatpush1.bf16.msra.mxu1 %v1031_v62  ;;  %789 = vmatprep.subr.bf16.mxu0 %v1062_v7  ;;  %v1087_v42 = vld [vmem:[%s1354_s26 + $0xf4] ss:$8 sps:$4 sm:$0xff]   ;;  %v1090_v43 = vld [vmem:[%s1354_s26 + $0xf0] ss:$8 sps:$4 sm:$0xff]   ;;  %s914_s29 = sshll.u32 %s1448_s28, 3 }
  0x69   : > { %750 = vmatprep.subr.bf16.mxu1 %v1032_v1  ;;  %s411_s5 = scalar_lea.vmem %s1433_s3, %s914_s29 }
  0x6b   : > { %790 = vmatpush1.bf16.msra.mxu0 %v1066_v10 }
  0x6c   : > { %751 = vmatpush1.bf16.msra.mxu1 %v1034_v4  ;;  %791 = vmatprep.subr.bf16.mxu0 %v1068_v11 }
  0x6d   : > { %752 = vmatprep.subr.bf16.mxu1 %v1035_v5 }
  0x6f   : > { %792 = vmatpush1.bf16.msra.mxu0 %v1072_v14 }
  0x70   : > { %753 = vmatpush1.bf16.msra.mxu1 %v1037_v8  ;;  %793 = vmatprep.subr.bf16.mxu0 %v1074_v15 }
  0x71   : > { %754 = vmatprep.subr.bf16.mxu1 %v1040_v9 }
  0x73   : > { %794 = vmatpush1.bf16.msra.mxu0 %v1078_v20 }
  0x74   : > { %755 = vmatpush1.bf16.msra.mxu1 %v1043_v12  ;;  %795 = vmatprep.subr.bf16.mxu0 %v1080_v23 }
  0x75   : > { %756 = vmatprep.subr.bf16.mxu1 %v1046_v13 }
  0x77   : > { %796 = vmatpush1.bf16.msra.mxu0 %v1084_v28 }
  0x78   : > { %757 = vmatpush1.bf16.msra.mxu1 %v1049_v16  ;;  %969 = vmatprep.subr.msk.bf16.mxu0 %vm733_vm1, %v968_v29 }
  0x79   : > { %758 = vmatprep.subr.bf16.mxu1 %v1052_v17 }
  0x7b   : > { %798 = vmatpush1.bf16.msra.mxu0 %v735_v33 }
  0x7c   : > { %759 = vmatpush1.bf16.msra.mxu1 %v1055_v25 }
  0x7d   : > { %760 = vmatprep.subr.bf16.mxu1 %v1058_v27 }
  0x7e   : > { %814 = vmatmul.mubr.bf16.vlgmr.msra.gmra.mrb[0].mxu0 %v917_v36 }
  0x80   : > { %761 = vmatpush1.bf16.msra.mxu1 %v1061_v31 }
  0x81   : > { %762 = vmatprep.subr.bf16.mxu1 %v1064_v32 }
  0x84   : > { %763 = vmatpush1.bf16.msra.mxu1 %v1067_v34 }
  0x85   : > { %764 = vmatprep.subr.bf16.mxu1 %v1070_v35 }
  0x88   : > { %765 = vmatpush1.bf16.msra.mxu1 %v1073_v37 }
  0x89   : > { %766 = vmatprep.subr.bf16.mxu1 %v1076_v38 }
  0x8c   : > { %767 = vmatpush1.bf16.msra.mxu1 %v1079_v39 }
  0x8d   : > { %768 = vmatprep.subr.bf16.mxu1 %v1082_v40 }
  0x90   : > { %769 = vmatpush1.bf16.msra.mxu1 %v1085_v41 }
  0x91   : > { %770 = vmatprep.subr.bf16.mxu1 %v1087_v42 }
  0x94   : > { %771 = vmatpush1.bf16.msra.mxu1 %v1090_v43 }
  0x97   : > { %773 = vmatmul.mubr.bf16.vlgmr.msra.gmra.mrb[0].mxu1 %v915_v44 }
  0xe2   : > { %v469_v49 = vpop.permute.xlu0 %468 }
 0x151   : > { %v815_v45 = vpop.f32.mrb[0].mxu0 }
 0x152   : > { %v817_v46 = vpop.f32.mrb[1].mxu0 }
 0x153   : > { %v819_v47 = vpop.f32.mrb[2].mxu0 }
 0x154   : > { %v820_v48 = vpop.f32.mrb[3].mxu0 }
 0x16a   : > { %v774_v50 = vpop.f32.mrb[0].mxu1 }
 0x16b   : > { %v775_v51 = vadd.f32 %v774_v50, %v469_v49  ;;  %v776_v52 = vpop.f32.mrb[1].mxu1 }
 0x16c   : > { %v777_v53 = vadd.f32 %v776_v52, %v469_v49  ;;  %v778_v54 = vpop.f32.mrb[2].mxu1 }
 0x16d   : > { %v816_v55 = vadd.f32 %v815_v45, %v775_v51  ;;  %v779_v56 = vpop.f32.mrb[3].mxu1 }
 0x16e   : > { %v818_v57 = vadd.f32 %v817_v46, %v777_v53 }
 0x16f   : > { %vm822_vm2 = vcmp.ge.f32.partialorder %v816_v55, 0.0  ;;  %v824_v58 = vmul.f32 0.1, %v816_v55 }
 0x170   : > { %vm823_vm3 = vcmp.ge.f32.partialorder %v818_v57, 0.0  ;;  %v825_v59 = vmul.f32 0.1, %v818_v57 }
 0x171   : > { %v826_v60 = vsel %vm822_vm2, %v816_v55, %v824_v58 }
 0x172   : > { %828 = vst [vmem:[%s411_s5] sm:$0xff] %v826_v60  ;;  %v827_v61 = vsel %vm823_vm3, %v818_v57, %v825_v59 }
 0x173   : > { %829 = vst [vmem:[%s411_s5 + $0x8] sm:$0xff] %v827_v61 }
 0x174 PF: > { %p11_p9 = scmp.ge.s32.totalorder %s1190_s16, 4   ;;  %s1444_s12 = smov %s1145_s13 }
 0x175   : > { %s1445_s13 = smov %s1200_s19  ;;  %s1446_s14 = smov %s1190_s16 }
 0x176   :  { %13 = sbr.rel (!%p11_p9) target bundleno = 2 (0x2), region = 110 }
 0x17d   :  { %852 = vsyncpa [#allocation4], 1 }
 0x17e   :  { %854 = vsyncpa [#allocation4 + $0x1], 1 }

// kernel: _lambda_.90
= control target key start
LH: loop header
LB: loop body
LE: loop exit
PB: predicated region body
PF: predicated region fallthrough
CT: control target
= control target key end

     0   :  { %8 = vsyncpa [#allocation3], 0  ;;  %s275_s12 = smov [#allocation2]   ;;  %s362_s0 = inlined_call_operand.vmem [shape: bf16[16,200], index: 0, kind: input, shape index: {}]   ;;  %s363_s1 = inlined_call_operand.vmem [shape: bf16[200,128], index: 1, kind: input, shape index: {}]   ;;  %s364_s2 = inlined_call_operand.hbm [shape: f32[16,1], index: 2, kind: input, shape index: {}]   ;;  %s365_s3 = inlined_call_operand.vmem [shape: f32[16,128], index: 3, kind: output, shape index: {}]  }
   0x1   :  { %s18_s13 = sshll.u32 %s275_s12, 4  ;;  %s251_s16 = scalar_lea.hbm %s364_s2, 256  ;;  %s19_s13 = int_to_ptr.vmem [resolvable:$true] %s18_s13 }
   0x2   :  { %p252_p0 = scmp.ne.s32.totalorder %s364_s2, %s251_s16  ;;  %p255_p1 = scmp.lt.u32.totalorder %s251_s16, %s364_s2 }
   0x4   :  { %p257_p2 = pnand %p255_p1, %p252_p0 }
   0x6   :  { %260 = shalt.err (!%p257_p2)
}
   0x7   :  { %s261_s21 = scalar_lea.vmem %s19_s13, 256  ;;  %p266_p4 = scmp.lt.s32.totalorder %s19_s13, %s19_s13 }
   0x8   :  { %p262_p3 = scmp.ne.s32.totalorder %s19_s13, %s261_s21  ;;  %p267_p5 = scmp.lt.s32.totalorder %s261_s21, %s261_s21 }
   0xa   :  { %p268_p6 = por %p267_p5, %p266_p4 }
   0xc   :  { %p269_p7 = pnand %p268_p6, %p262_p3 }
   0xe   :  { %272 = shalt.err (!%p269_p7)
}
   0xf   :  { %s276_s22 = smov 128   ;;  %s277_s23 = smov 8  }
  0x10   :  { %24 = dma.hbm_to_vmem [thread:$0]  %s364_s2, 256, %s19_s13, [#allocation3], %s276_s22, %s276_s22, %s277_s23  }
  0x11   :  { %273 = dma.done.wait [#allocation3], 256  }
  0x12   :  { %274 = vsyncadd [#allocation3], 4294967040  ;;  %v278_v0 = vmov 0   ;;  %v235_v1 = vld [vmem:[%s363_s1] sm:$0xff]   ;;  %v236_v2 = vld [vmem:[%s363_s1 + $0x8] sm:$0xff]   ;;  %vm152_vm0 = vcmask 588800  }
  0x13   :  { %160 = vmatprep.subr.bf16.mxu0 %v278_v0  ;;  %234 = vset.pattern.permute.xlu0 %v278_v0  ;;  %v237_v3 = vld [vmem:[%s363_s1 + $0x10] sm:$0xff]   ;;  %v238_v4 = vld [vmem:[%s363_s1 + $0x18] sm:$0xff]   ;;  %v250_v5 = vld [vmem:[%s362_s0 + $0x4] ss:$8 sps:$4 sm:$0xff]   ;;  %vm156_vm1 = vcmask 1043456  }
  0x14   :  { %161 = vmatpush1.bf16.msra.mxu0 %v235_v1  ;;  %v239_v6 = vld [vmem:[%s363_s1 + $0x20] sm:$0xff]   ;;  %229 = vmatprep.mubr.msk.bf16.mxu0 %vm152_vm0, %v250_v5  ;;  %v57_v8 = vld [vmem:[#allocation2 + $0x8] sm:$0xff]  ;;  %v241_v10 = vld [vmem:[%s363_s1 + $0x30] sm:$0xff]  }
  0x15   :  { %162 = vmatprep.subr.bf16.mxu0 %v278_v0  ;;  %v56_v7 = vld [vmem:[#allocation2] sm:$0xff]  ;;  %v240_v9 = vld [vmem:[%s363_s1 + $0x28] sm:$0xff]   ;;  %v242_v11 = vld [vmem:[%s363_s1 + $0x38] sm:$0xff]  }
  0x16   :  { %60 = vperm.xlu0 %234, %v56_v7   ;;  %v243_v12 = vld [vmem:[%s363_s1 + $0x40] sm:$0xff]   ;;  %v244_v13 = vld [vmem:[%s363_s1 + $0x48] sm:$0xff]   ;;  %v245_v14 = vld [vmem:[%s363_s1 + $0x50] sm:$0xff]  }
  0x17   :  { %v246_v15 = vld [vmem:[%s363_s1 + $0x58] sm:$0xff]   ;;  %v247_v16 = vld [vmem:[%s363_s1 + $0x60] ss:$0 sps:$4 sm:$0xff]  }
  0x18   :  { %163 = vmatpush1.bf16.msra.mxu0 %v236_v2  ;;  %v158_v17 = vsel %vm156_vm1, %v247_v16, 0  ;;  %v248_v18 = vld [vmem:[%s362_s0] ss:$8 sps:$4 sm:$0xff]  }
  0x19   :  { %164 = vmatprep.subr.bf16.mxu0 %v278_v0 }
  0x1a   :  { %65 = vperm.xlu0 %234, %v57_v8  }
  0x1c   :  { %165 = vmatpush1.bf16.msra.mxu0 %v237_v3 }
  0x1d   :  { %166 = vmatprep.subr.bf16.mxu0 %v278_v0 }
  0x20   :  { %167 = vmatpush1.bf16.msra.mxu0 %v238_v4 }
  0x21   :  { %168 = vmatprep.subr.bf16.mxu0 %v278_v0 }
  0x24   :  { %169 = vmatpush1.bf16.msra.mxu0 %v239_v6 }
  0x25   :  { %170 = vmatprep.subr.bf16.mxu0 %v278_v0 }
  0x28   :  { %171 = vmatpush1.bf16.msra.mxu0 %v240_v9 }
  0x29   :  { %172 = vmatprep.subr.bf16.mxu0 %v278_v0 }
  0x2c   :  { %173 = vmatpush1.bf16.msra.mxu0 %v241_v10 }
  0x2d   :  { %174 = vmatprep.subr.bf16.mxu0 %v278_v0 }
  0x30   :  { %175 = vmatpush1.bf16.msra.mxu0 %v242_v11 }
  0x31   :  { %176 = vmatprep.subr.bf16.mxu0 %v278_v0 }
  0x34   :  { %177 = vmatpush1.bf16.msra.mxu0 %v243_v12 }
  0x35   :  { %178 = vmatprep.subr.bf16.mxu0 %v278_v0 }
  0x38   :  { %179 = vmatpush1.bf16.msra.mxu0 %v244_v13 }
  0x39   :  { %180 = vmatprep.subr.bf16.mxu0 %v278_v0 }
  0x3c   :  { %181 = vmatpush1.bf16.msra.mxu0 %v245_v14 }
  0x3d   :  { %182 = vmatprep.subr.bf16.mxu0 %v278_v0 }
  0x40   :  { %183 = vmatpush1.bf16.msra.mxu0 %v246_v15 }
  0x41   :  { %184 = vmatprep.subr.bf16.mxu0 %v278_v0 }
  0x44   :  { %185 = vmatpush1.bf16.msra.mxu0 %v158_v17 }
  0x47   :  { %193 = vmatmul.mubr.bf16.vlgmr.msra.gmra.mrb[0].mxu0 %v248_v18 }
  0x95   :  { %v61_v19 = vpop.permute.xlu0 %60 }
  0x99   :  { %v66_v23 = vpop.permute.xlu0 %65 }
 0x11a   :  { %v194_v20 = vpop.f32.mrb[0].mxu0 }
 0x11b   :  { %v195_v21 = vadd.f32 %v194_v20, %v61_v19  ;;  %v196_v22 = vpop.f32.mrb[1].mxu0 }
 0x11c   :  { %v197_v24 = vpop.f32.mrb[2].mxu0 }
 0x11d   :  { %vm201_vm2 = vcmp.ge.f32.partialorder %v195_v21, 0.0  ;;  %v203_v25 = vmul.f32 0.1, %v195_v21  ;;  %v198_v26 = vadd.f32 %v197_v24, %v66_v23  ;;  %v199_v27 = vpop.f32.mrb[3].mxu0 }
 0x11f   :  { %v205_v28 = vsel %vm201_vm2, %v195_v21, %v203_v25  ;;  %vm202_vm3 = vcmp.ge.f32.partialorder %v198_v26, 0.0  ;;  %v204_v29 = vmul.f32 0.1, %v198_v26 }
 0x120   :  { %207 = vst [vmem:[%s365_s3] sm:$0xff] %v205_v28 }
 0x121   :  { %v206_v30 = vsel %vm202_vm3, %v198_v26, %v204_v29 }
 0x122   :  { %208 = vst [vmem:[%s365_s3 + $0x8] sm:$0xff] %v206_v30 }
 0x123   :  { %213 = vsyncpa [#allocation3], 1 }

// kernel: _lambda_.91
= control target key start
LH: loop header
LB: loop body
LE: loop exit
PB: predicated region body
PF: predicated region fallthrough
CT: control target
= control target key end

     0   :  { %8 = vsyncpa [#allocation3], 0  ;;  %s475_s12 = smov [#allocation2]   ;;  %s614_s0 = inlined_call_operand.vmem [shape: bf16[16,400], index: 0, kind: input, shape index: {}]   ;;  %s615_s1 = inlined_call_operand.vmem [shape: bf16[400,128], index: 1, kind: input, shape index: {}]   ;;  %s616_s2 = inlined_call_operand.hbm [shape: f32[16,1], index: 2, kind: input, shape index: {}]   ;;  %s617_s3 = inlined_call_operand.vmem [shape: f32[16,128], index: 3, kind: output, shape index: {}]  }
   0x1   :  { %s18_s13 = sshll.u32 %s475_s12, 4  ;;  %s451_s16 = scalar_lea.hbm %s616_s2, 256  ;;  %s19_s13 = int_to_ptr.vmem [resolvable:$true] %s18_s13 }
   0x2   :  { %p452_p0 = scmp.ne.s32.totalorder %s616_s2, %s451_s16  ;;  %p455_p1 = scmp.lt.u32.totalorder %s451_s16, %s616_s2 }
   0x4   :  { %p457_p2 = pnand %p455_p1, %p452_p0 }
   0x6   :  { %460 = shalt.err (!%p457_p2)
}
   0x7   :  { %s461_s21 = scalar_lea.vmem %s19_s13, 256  ;;  %p466_p4 = scmp.lt.s32.totalorder %s19_s13, %s19_s13 }
   0x8   :  { %p462_p3 = scmp.ne.s32.totalorder %s19_s13, %s461_s21  ;;  %p467_p5 = scmp.lt.s32.totalorder %s461_s21, %s461_s21 }
   0xa   :  { %p468_p6 = por %p467_p5, %p466_p4 }
   0xc   :  { %p469_p7 = pnand %p468_p6, %p462_p3 }
   0xe   :  { %472 = shalt.err (!%p469_p7)
}
   0xf   :  { %s476_s22 = smov 128   ;;  %s477_s23 = smov 8  }
  0x10   :  { %24 = dma.hbm_to_vmem [thread:$0]  %s616_s2, 256, %s19_s13, [#allocation3], %s476_s22, %s476_s22, %s477_s23  }
  0x11   :  { %473 = dma.done.wait [#allocation3], 256  }
  0x12   :  { %474 = vsyncadd [#allocation3], 4294967040  ;;  %v478_v0 = vmov 0   ;;  %v420_v1 = vld [vmem:[%s615_s1 + $0x40] sm:$0xff]   ;;  %v423_v4 = vld [vmem:[%s615_s1 + $0x48] sm:$0xff]   ;;  %vm264_vm0 = vcmask 130048  }
  0x13   :  { %309 = vmatprep.subr.bf16.mxu1 %v478_v0  ;;  %419 = vset.pattern.permute.xlu0 %v478_v0  ;;  %v421_v2 = vld [vmem:[%s615_s1 + $0x80] sm:$0xff]   ;;  %v424_v5 = vld [vmem:[%s615_s1 + $0x88] sm:$0xff]   ;;  %v426_v7 = vld [vmem:[%s615_s1 + $0x50] sm:$0xff]  }
  0x14   :  { %393 = vmatprep.subr.bf16.mxu0 %v420_v1  ;;  %v422_v3 = vld [vmem:[%s615_s1] sm:$0xff]   ;;  %310 = vmatpush1.bf16.msra.mxu1 %v421_v2  ;;  %v425_v6 = vld [vmem:[%s615_s1 + $0x8] sm:$0xff]   ;;  %v427_v8 = vld [vmem:[%s615_s1 + $0x90] sm:$0xff]  }
  0x15   :  { %394 = vmatpush3.bf16.msra.mxu0 %v422_v3  ;;  %311 = vmatprep.subr.bf16.mxu1 %v478_v0  ;;  %v428_v9 = vld [vmem:[%s615_s1 + $0x10] sm:$0xff]   ;;  %v429_v10 = vld [vmem:[%s615_s1 + $0x58] sm:$0xff]   ;;  %v432_v13 = vld [vmem:[%s615_s1 + $0x60] sm:$0xff]  }
  0x16   :  { %395 = vmatprep.subr.bf16.mxu0 %v423_v4  ;;  %v430_v11 = vld [vmem:[%s615_s1 + $0x98] sm:$0xff]   ;;  %v433_v14 = vld [vmem:[%s615_s1 + $0xa0] sm:$0xff]   ;;  %v435_v16 = vld [vmem:[%s615_s1 + $0x68] sm:$0xff]  }
  0x17   :  { %v431_v12 = vld [vmem:[%s615_s1 + $0x18] sm:$0xff]   ;;  %v434_v15 = vld [vmem:[%s615_s1 + $0x20] sm:$0xff]   ;;  %v436_v17 = vld [vmem:[%s615_s1 + $0xa8] sm:$0xff]  }
  0x18   :  { %312 = vmatpush1.bf16.msra.mxu1 %v424_v5  ;;  %v437_v18 = vld [vmem:[%s615_s1 + $0x28] sm:$0xff]   ;;  %v438_v19 = vld [vmem:[%s615_s1 + $0x70] sm:$0xff]   ;;  %v441_v22 = vld [vmem:[%s615_s1 + $0x78] sm:$0xff]  }
  0x19   :  { %396 = vmatpush3.bf16.msra.mxu0 %v425_v6  ;;  %313 = vmatprep.subr.bf16.mxu1 %v478_v0  ;;  %v439_v20 = vld [vmem:[%s615_s1 + $0xb0] sm:$0xff]   ;;  %v442_v24 = vld [vmem:[%s615_s1 + $0xb8] sm:$0xff]   ;;  %v83_v26 = vld [vmem:[#allocation2] sm:$0xff] }
  0x1a   :  { %397 = vmatprep.subr.bf16.mxu0 %v426_v7  ;;  %v440_v21 = vld [vmem:[%s615_s1 + $0x30] sm:$0xff]   ;;  %v450_v25 = vld [vmem:[%s614_s0 + $0xc] ss:$16 sps:$4 sm:$0xff]   ;;  %87 = vperm.xlu0 %419, %v83_v26   ;;  %v447_v29 = vld [vmem:[%s615_s1 + $0xc0] sm:$0xff]  }
  0x1b   :  { %v446_v23 = vld [vmem:[%s614_s0 + $0x4] ss:$16 sps:$4 sm:$0xff]   ;;  %v443_v27 = vld [vmem:[%s615_s1 + $0x38] sm:$0xff]   ;;  %392 = vmatprep.mubr.msk.bf16.mxu1 %vm264_vm0, %v450_v25  ;;  %v444_v28 = vld [vmem:[%s614_s0] ss:$16 sps:$4 sm:$0xff]  }
  0x1c   :  { %314 = vmatpush1.bf16.msra.mxu1 %v427_v8  ;;  %300 = vmatprep.mubr.bf16.mxu0 %v446_v23  ;;  %v84_v30 = vld [vmem:[#allocation2 + $0x8] sm:$0xff] }
  0x1d   :  { %398 = vmatpush3.bf16.msra.mxu0 %v428_v9  ;;  %315 = vmatprep.subr.bf16.mxu1 %v478_v0  ;;  %v448_v31 = vld [vmem:[%s614_s0 + $0x8] ss:$16 sps:$4 sm:$0xff]  }
  0x1e   :  { %399 = vmatprep.subr.bf16.mxu0 %v429_v10  ;;  %92 = vperm.xlu0 %419, %v84_v30  }
  0x20   :  { %316 = vmatpush1.bf16.msra.mxu1 %v430_v11 }
  0x21   :  { %400 = vmatpush3.bf16.msra.mxu0 %v431_v12  ;;  %317 = vmatprep.subr.bf16.mxu1 %v478_v0 }
  0x22   :  { %401 = vmatprep.subr.bf16.mxu0 %v432_v13 }
  0x24   :  { %318 = vmatpush1.bf16.msra.mxu1 %v433_v14 }
  0x25   :  { %402 = vmatpush3.bf16.msra.mxu0 %v434_v15  ;;  %319 = vmatprep.subr.bf16.mxu1 %v478_v0 }
  0x26   :  { %403 = vmatprep.subr.bf16.mxu0 %v435_v16 }
  0x28   :  { %320 = vmatpush1.bf16.msra.mxu1 %v436_v17 }
  0x29   :  { %404 = vmatpush3.bf16.msra.mxu0 %v437_v18  ;;  %321 = vmatprep.subr.bf16.mxu1 %v478_v0 }
  0x2a   :  { %405 = vmatprep.subr.bf16.mxu0 %v438_v19 }
  0x2c   :  { %322 = vmatpush1.bf16.msra.mxu1 %v439_v20 }
  0x2d   :  { %406 = vmatpush3.bf16.msra.mxu0 %v440_v21  ;;  %323 = vmatprep.subr.bf16.mxu1 %v478_v0 }
  0x2e   :  { %407 = vmatprep.subr.bf16.mxu0 %v441_v22 }
  0x30   :  { %324 = vmatpush1.bf16.msra.mxu1 %v442_v24 }
  0x31   :  { %408 = vmatpush3.bf16.msra.mxu0 %v443_v27  ;;  %325 = vmatprep.subr.bf16.mxu1 %v478_v0 }
  0x34   :  { %301 = vmatmul.mubr.bf16.vlgmr.msra.gmra.mrb[0].mxu0 %v444_v28  ;;  %326 = vmatpush1.bf16.msra.mxu1 %v447_v29 }
  0x37   :  { %342 = vmatmul.mubr.bf16.vlgmr.msra.gmra.mrb[0].mxu1 %v448_v31 }
  0x99   :  { %v88_v32 = vpop.permute.xlu0 %87 }
  0x9d   :  { %v93_v42 = vpop.permute.xlu0 %92 }
 0x107   :  { %v409_v33 = vpop.f32.mrb[0].mxu0 }
 0x108   :  { %v410_v34 = vpop.f32.mrb[1].mxu0 }
 0x109   :  { %v411_v35 = vadd.f32 %v410_v34, %v409_v33  ;;  %v412_v36 = vpop.f32.mrb[2].mxu0 }
 0x10a   :  { %v413_v37 = vpop.f32.mrb[3].mxu0  ;;  %v343_v38 = vpop.f32.mrb[0].mxu1 }
 0x10b   :  { %v414_v39 = vadd.f32 %v413_v37, %v412_v36  ;;  %v303_v40 = vadd.f32 %v411_v35, %v88_v32  ;;  %v345_v41 = vpop.f32.mrb[1].mxu1 }
 0x10c   :  { %v346_v43 = vpop.f32.mrb[2].mxu1 }
 0x10d   :  { %v344_v44 = vadd.f32 %v343_v38, %v303_v40  ;;  %v306_v45 = vadd.f32 %v414_v39, %v93_v42  ;;  %v348_v46 = vpop.f32.mrb[3].mxu1 }
 0x10f   :  { %vm350_vm1 = vcmp.ge.f32.partialorder %v344_v44, 0.0  ;;  %v352_v47 = vmul.f32 0.1, %v344_v44  ;;  %v347_v48 = vadd.f32 %v346_v43, %v306_v45 }
 0x111   :  { %v354_v49 = vsel %vm350_vm1, %v344_v44, %v352_v47  ;;  %vm351_vm2 = vcmp.ge.f32.partialorder %v347_v48, 0.0  ;;  %v353_v50 = vmul.f32 0.1, %v347_v48 }
 0x112   :  { %356 = vst [vmem:[%s617_s3] sm:$0xff] %v354_v49 }
 0x113   :  { %v355_v51 = vsel %vm351_vm2, %v347_v48, %v353_v50 }
 0x114   :  { %357 = vst [vmem:[%s617_s3 + $0x8] sm:$0xff] %v355_v51 }
 0x115   :  { %362 = vsyncpa [#allocation3], 1 }

// kernel: _lambda_.92
= control target key start
LH: loop header
LB: loop body
LE: loop exit
PB: predicated region body
PF: predicated region fallthrough
CT: control target
= control target key end

     0   :  { %8 = vsyncpa [#allocation3], 0  ;;  %s302_s12 = smov [#allocation2]   ;;  %s389_s0 = inlined_call_operand.vmem [shape: bf16[32,144], index: 0, kind: input, shape index: {}]   ;;  %s390_s1 = inlined_call_operand.vmem [shape: bf16[144,128], index: 1, kind: input, shape index: {}]   ;;  %s391_s2 = inlined_call_operand.hbm [shape: f32[32,1], index: 2, kind: input, shape index: {}]   ;;  %s392_s3 = inlined_call_operand.vmem [shape: f32[32,128], index: 3, kind: output, shape index: {}]  }
   0x1   :  { %s18_s13 = sshll.u32 %s302_s12, 4  ;;  %s278_s16 = scalar_lea.hbm %s391_s2, 512  ;;  %s19_s13 = int_to_ptr.vmem [resolvable:$true] %s18_s13 }
   0x2   :  { %p279_p0 = scmp.ne.s32.totalorder %s391_s2, %s278_s16  ;;  %p282_p1 = scmp.lt.u32.totalorder %s278_s16, %s391_s2 }
   0x4   :  { %p284_p2 = pnand %p282_p1, %p279_p0 }
   0x6   :  { %287 = shalt.err (!%p284_p2)
}
   0x7   :  { %s288_s21 = scalar_lea.vmem %s19_s13, 512  ;;  %p293_p4 = scmp.lt.s32.totalorder %s19_s13, %s19_s13 }
   0x8   :  { %p289_p3 = scmp.ne.s32.totalorder %s19_s13, %s288_s21  ;;  %p294_p5 = scmp.lt.s32.totalorder %s288_s21, %s288_s21 }
   0xa   :  { %p295_p6 = por %p294_p5, %p293_p4 }
   0xc   :  { %p296_p7 = pnand %p295_p6, %p289_p3 }
   0xe   :  { %299 = shalt.err (!%p296_p7)
}
   0xf   :  { %s303_s22 = smov 128   ;;  %s304_s23 = smov 8  }
  0x10   :  { %24 = dma.hbm_to_vmem [thread:$0]  %s391_s2, 512, %s19_s13, [#allocation3], %s303_s22, %s303_s22, %s304_s23  }
  0x11   :  { %300 = dma.done.wait [#allocation3], 512  }
  0x12   :  { %301 = vsyncadd [#allocation3], 4294966784  ;;  %v305_v0 = vmov 0   ;;  %v263_v1 = vld [vmem:[%s390_s1] sm:$0xff]   ;;  %v264_v2 = vld [vmem:[%s390_s1 + $0x8] sm:$0xff]   ;;  %vm147_vm0 = vcmask 130048  }
  0x13   :  { %154 = vmatprep.subr.bf16.mxu0 %v305_v0  ;;  %239 = vmatprep.subr.bf16.mxu1 %v305_v0  ;;  %v265_v3 = vld [vmem:[%s390_s1 + $0x10] sm:$0xff]   ;;  %v266_v4 = vld [vmem:[%s390_s1 + $0x18] sm:$0xff]   ;;  %v274_v5 = vld [vmem:[%s389_s0 + $0x4] ss:$8 sps:$4 sm:$0xff]  }
  0x14   :  { %262 = vset.pattern.permute.xlu1 %v305_v0  ;;  %261 = vset.pattern.permute.xlu0 %v305_v0  ;;  %v277_v6 = vld [vmem:[%s389_s0 + $0x14] ss:$8 sps:$4 sm:$0xff]   ;;  %v51_v8 = vld [vmem:[#allocation2] sm:$0xff]  ;;  %v52_v11 = vld [vmem:[#allocation2 + $0x8] sm:$0xff] }
  0x15   :  { %155 = vmatpush1.bf16.msra.mxu0 %v263_v1  ;;  %248 = vmatpush1.bf16.msra.mxu1 %v263_v1  ;;  %v53_v7 = vld [vmem:[#allocation2 + $0x10] sm:$0xff]  ;;  %v54_v9 = vld [vmem:[#allocation2 + $0x18] sm:$0xff]  ;;  %v267_v10 = vld [vmem:[%s390_s1 + $0x20] sm:$0xff]  }
  0x16   :  { %156 = vmatprep.subr.bf16.mxu0 %v305_v0  ;;  %240 = vmatprep.subr.bf16.mxu1 %v305_v0  ;;  %v268_v12 = vld [vmem:[%s390_s1 + $0x28] sm:$0xff]   ;;  %v269_v13 = vld [vmem:[%s390_s1 + $0x30] sm:$0xff]   ;;  %v270_v14 = vld [vmem:[%s390_s1 + $0x38] sm:$0xff]  }
  0x17   :  { %237 = vmatprep.mubr.msk.bf16.mxu0 %vm147_vm0, %v274_v5  ;;  %67 = vperm.xlu1 %262, %v53_v7   ;;  %v271_v15 = vld [vmem:[%s390_s1 + $0x40] sm:$0xff]   ;;  %v275_v17 = vld [vmem:[%s389_s0 + $0x10] ss:$8 sps:$4 sm:$0xff]  }
  0x18   :  { %238 = vmatprep.mubr.msk.bf16.mxu1 %vm147_vm0, %v277_v6  ;;  %57 = vperm.xlu0 %261, %v51_v8   ;;  %v272_v16 = vld [vmem:[%s389_s0] ss:$8 sps:$4 sm:$0xff]  }
  0x19   :  { %157 = vmatpush1.bf16.msra.mxu0 %v264_v2  ;;  %249 = vmatpush1.bf16.msra.mxu1 %v264_v2 }
  0x1a   :  { %158 = vmatprep.subr.bf16.mxu0 %v305_v0  ;;  %241 = vmatprep.subr.bf16.mxu1 %v305_v0 }
  0x1b   :  { %72 = vperm.xlu1 %262, %v54_v9  }
  0x1c   :  { %62 = vperm.xlu0 %261, %v52_v11  }
  0x1d   :  { %159 = vmatpush1.bf16.msra.mxu0 %v265_v3  ;;  %250 = vmatpush1.bf16.msra.mxu1 %v265_v3 }
  0x1e   :  { %160 = vmatprep.subr.bf16.mxu0 %v305_v0  ;;  %242 = vmatprep.subr.bf16.mxu1 %v305_v0 }
  0x21   :  { %161 = vmatpush1.bf16.msra.mxu0 %v266_v4  ;;  %251 = vmatpush1.bf16.msra.mxu1 %v266_v4 }
  0x22   :  { %162 = vmatprep.subr.bf16.mxu0 %v305_v0  ;;  %243 = vmatprep.subr.bf16.mxu1 %v305_v0 }
  0x25   :  { %163 = vmatpush1.bf16.msra.mxu0 %v267_v10  ;;  %252 = vmatpush1.bf16.msra.mxu1 %v267_v10 }
  0x26   :  { %164 = vmatprep.subr.bf16.mxu0 %v305_v0  ;;  %244 = vmatprep.subr.bf16.mxu1 %v305_v0 }
  0x29   :  { %165 = vmatpush1.bf16.msra.mxu0 %v268_v12  ;;  %253 = vmatpush1.bf16.msra.mxu1 %v268_v12 }
  0x2a   :  { %166 = vmatprep.subr.bf16.mxu0 %v305_v0  ;;  %245 = vmatprep.subr.bf16.mxu1 %v305_v0 }
  0x2d   :  { %167 = vmatpush1.bf16.msra.mxu0 %v269_v13  ;;  %254 = vmatpush1.bf16.msra.mxu1 %v269_v13 }
  0x2e   :  { %168 = vmatprep.subr.bf16.mxu0 %v305_v0  ;;  %246 = vmatprep.subr.bf16.mxu1 %v305_v0 }
  0x31   :  { %169 = vmatpush1.bf16.msra.mxu0 %v270_v14  ;;  %255 = vmatpush1.bf16.msra.mxu1 %v270_v14 }
  0x32   :  { %170 = vmatprep.subr.bf16.mxu0 %v305_v0  ;;  %247 = vmatprep.subr.bf16.mxu1 %v305_v0 }
  0x35   :  { %171 = vmatpush1.bf16.msra.mxu0 %v271_v15  ;;  %256 = vmatpush1.bf16.msra.mxu1 %v271_v15 }
  0x38   :  { %187 = vmatmul.mubr.bf16.vlgmr.msra.gmra.mrb[0].mxu0 %v272_v16  ;;  %195 = vmatmul.mubr.bf16.vlgmr.msra.gmra.mrb[0].mxu1 %v275_v17 }
  0x96   :  { %v68_v18 = vpop.permute.xlu1 %67 }
  0x97   :  { %v58_v19 = vpop.permute.xlu0 %57 }
  0x9a   :  { %v73_v28 = vpop.permute.xlu1 %72 }
  0x9b   :  { %v63_v29 = vpop.permute.xlu0 %62 }
 0x10b   :  { %v188_v20 = vpop.f32.mrb[0].mxu0  ;;  %v196_v21 = vpop.f32.mrb[0].mxu1 }
 0x10c   :  { %v189_v22 = vadd.f32 %v188_v20, %v58_v19  ;;  %v197_v23 = vadd.f32 %v196_v21, %v68_v18  ;;  %v190_v24 = vpop.f32.mrb[1].mxu0  ;;  %v198_v25 = vpop.f32.mrb[1].mxu1 }
 0x10d   :  { %v191_v26 = vpop.f32.mrb[2].mxu0  ;;  %v199_v27 = vpop.f32.mrb[2].mxu1 }
 0x10e   :  { %vm203_vm1 = vcmp.ge.f32.partialorder %v189_v22, 0.0  ;;  %v207_v30 = vmul.f32 0.1, %v189_v22  ;;  %vm205_vm2 = vcmp.ge.f32.partialorder %v197_v23, 0.0  ;;  %v209_v31 = vmul.f32 0.1, %v197_v23 }
 0x10f   :  { %v192_v32 = vadd.f32 %v191_v26, %v63_v29  ;;  %v200_v33 = vadd.f32 %v199_v27, %v73_v28  ;;  %v193_v34 = vpop.f32.mrb[3].mxu0  ;;  %v201_v35 = vpop.f32.mrb[3].mxu1 }
 0x110   :  { %v211_v36 = vsel %vm203_vm1, %v189_v22, %v207_v30  ;;  %v213_v37 = vsel %vm205_vm2, %v197_v23, %v209_v31 }
 0x111   :  { %215 = vst [vmem:[%s392_s3] sm:$0xff] %v211_v36  ;;  %217 = vst [vmem:[%s392_s3 + $0x10] sm:$0xff] %v213_v37  ;;  %vm204_vm3 = vcmp.ge.f32.partialorder %v192_v32, 0.0  ;;  %v208_v38 = vmul.f32 0.1, %v192_v32  ;;  %vm206_vm4 = vcmp.ge.f32.partialorder %v200_v33, 0.0 }
 0x112   :  { %v210_v39 = vmul.f32 0.1, %v200_v33 }
 0x113   :  { %v212_v40 = vsel %vm204_vm3, %v192_v32, %v208_v38 }
 0x114   :  { %v214_v41 = vsel %vm206_vm4, %v200_v33, %v210_v39  ;;  %216 = vst [vmem:[%s392_s3 + $0x8] sm:$0xff] %v212_v40 }
 0x115   :  { %218 = vst [vmem:[%s392_s3 + $0x18] sm:$0xff] %v214_v41 }
 0x116   :  { %223 = vsyncpa [#allocation3], 1 }

// kernel: _lambda_.93
= control target key start
LH: loop header
LB: loop body
LE: loop exit
PB: predicated region body
PF: predicated region fallthrough
CT: control target
= control target key end

     0   :  { %8 = vsyncpa [#allocation3], 0  ;;  %s483_s12 = smov [#allocation2]   ;;  %s605_s0 = inlined_call_operand.vmem [shape: bf16[32,288], index: 0, kind: input, shape index: {}]   ;;  %s606_s1 = inlined_call_operand.vmem [shape: bf16[288,128], index: 1, kind: input, shape index: {}]   ;;  %s607_s2 = inlined_call_operand.hbm [shape: f32[32,1], index: 2, kind: input, shape index: {}]   ;;  %s608_s3 = inlined_call_operand.vmem [shape: f32[32,128], index: 3, kind: output, shape index: {}]  }
   0x1   :  { %s18_s13 = sshll.u32 %s483_s12, 4  ;;  %s459_s16 = scalar_lea.hbm %s607_s2, 512  ;;  %s19_s13 = int_to_ptr.vmem [resolvable:$true] %s18_s13 }
   0x2   :  { %p460_p0 = scmp.ne.s32.totalorder %s607_s2, %s459_s16  ;;  %p463_p1 = scmp.lt.u32.totalorder %s459_s16, %s607_s2 }
   0x4   :  { %p465_p2 = pnand %p463_p1, %p460_p0 }
   0x6   :  { %468 = shalt.err (!%p465_p2)
}
   0x7   :  { %s469_s21 = scalar_lea.vmem %s19_s13, 512  ;;  %p474_p4 = scmp.lt.s32.totalorder %s19_s13, %s19_s13 }
   0x8   :  { %p470_p3 = scmp.ne.s32.totalorder %s19_s13, %s469_s21  ;;  %p475_p5 = scmp.lt.s32.totalorder %s469_s21, %s469_s21 }
   0xa   :  { %p476_p6 = por %p475_p5, %p474_p4 }
   0xc   :  { %p477_p7 = pnand %p476_p6, %p470_p3 }
   0xe   :  { %480 = shalt.err (!%p477_p7)
}
   0xf   :  { %s484_s22 = smov 128   ;;  %s485_s23 = smov 8  }
  0x10   :  { %24 = dma.hbm_to_vmem [thread:$0]  %s607_s2, 512, %s19_s13, [#allocation3], %s484_s22, %s484_s22, %s485_s23  }
  0x11   :  { %481 = dma.done.wait [#allocation3], 512  }
  0x12   :  { %482 = vsyncadd [#allocation3], 4294966784  ;;  %v486_v0 = vmov 0   ;;  %v433_v1 = vld [vmem:[%s606_s1 + $0x40] sm:$0xff]   ;;  %v435_v3 = vld [vmem:[%s606_s1 + $0x48] sm:$0xff]   ;;  %vm235_vm0 = vcmask 261120  }
  0x13   :  { %431 = vset.pattern.permute.xlu0 %v486_v0  ;;  %432 = vset.pattern.permute.xlu1 %v486_v0  ;;  %v434_v2 = vld [vmem:[%s606_s1] sm:$0xff]   ;;  %v436_v4 = vld [vmem:[%s606_s1 + $0x8] sm:$0xff]   ;;  %v437_v5 = vld [vmem:[%s606_s1 + $0x50] sm:$0xff]  }
  0x14   :  { %387 = vmatprep.subr.bf16.mxu0 %v433_v1  ;;  %v438_v6 = vld [vmem:[%s606_s1 + $0x10] sm:$0xff]   ;;  %v439_v7 = vld [vmem:[%s606_s1 + $0x58] sm:$0xff]   ;;  %v441_v9 = vld [vmem:[%s606_s1 + $0x60] sm:$0xff]  }
  0x15   :  { %388 = vmatpush3.bf16.msra.mxu0 %v434_v2  ;;  %v440_v8 = vld [vmem:[%s606_s1 + $0x18] sm:$0xff]   ;;  %v442_v10 = vld [vmem:[%s606_s1 + $0x20] sm:$0xff]   ;;  %v443_v12 = vld [vmem:[%s606_s1 + $0x68] sm:$0xff]  }
  0x16   :  { %389 = vmatprep.subr.bf16.mxu0 %v435_v3  ;;  %v448_v11 = vld [vmem:[%s606_s1 + $0x80] sm:$0xff]   ;;  %v444_v13 = vld [vmem:[%s606_s1 + $0x28] sm:$0xff]   ;;  %v445_v14 = vld [vmem:[%s606_s1 + $0x70] sm:$0xff]  }
  0x17   :  { %419 = vmatprep.subr.bf16.mxu1 %v448_v11  ;;  %v452_v15 = vld [vmem:[%s605_s0 + $0x4] ss:$12 sps:$4 sm:$0xff]   ;;  %v453_v16 = vld [vmem:[%s606_s1 + $0x88] sm:$0xff]   ;;  %v447_v22 = vld [vmem:[%s606_s1 + $0x78] sm:$0xff]  }
  0x18   :  { %420 = vmatpush3.bf16.msra.mxu1 %v448_v11  ;;  %274 = vmatprep.mubr.bf16.mxu0 %v452_v15  ;;  %v454_v17 = vld [vmem:[%s605_s0 + $0x8] ss:$12 sps:$4 sm:$0xff]   ;;  %v455_v18 = vld [vmem:[%s605_s0 + $0x20] ss:$12 sps:$4 sm:$0xff]   ;;  %v76_v24 = vld [vmem:[#allocation2 + $0x18] sm:$0xff] }
  0x19   :  { %390 = vmatpush3.bf16.msra.mxu0 %v436_v4  ;;  %421 = vmatprep.subr.bf16.mxu1 %v453_v16  ;;  %v73_v19 = vld [vmem:[#allocation2] sm:$0xff]  ;;  %v446_v20 = vld [vmem:[%s606_s1 + $0x30] sm:$0xff]   ;;  %v74_v23 = vld [vmem:[#allocation2 + $0x8] sm:$0xff] }
  0x1a   :  { %391 = vmatprep.subr.bf16.mxu0 %v437_v5  ;;  %423 = vmatprep.mubr.msk.bf16.mxu1 %vm235_vm0, %v454_v17  ;;  %v75_v21 = vld [vmem:[#allocation2 + $0x10] sm:$0xff]  ;;  %v449_v25 = vld [vmem:[%s606_s1 + $0x38] sm:$0xff]   ;;  %v450_v26 = vld [vmem:[%s605_s0] ss:$12 sps:$4 sm:$0xff]  }
  0x1b   :  { %79 = vperm.xlu0 %431, %v73_v19   ;;  %89 = vperm.xlu1 %432, %v75_v21   ;;  %v456_v27 = vld [vmem:[%s605_s0 + $0x1c] ss:$12 sps:$4 sm:$0xff]   ;;  %v458_v28 = vld [vmem:[%s605_s0 + $0x18] ss:$12 sps:$4 sm:$0xff]  }
  0x1c   :  { %422 = vmatpush3.bf16.msra.mxu1 %v453_v16 }
  0x1d   :  { %392 = vmatpush3.bf16.msra.mxu0 %v438_v6 }
  0x1e   :  { %393 = vmatprep.subr.bf16.mxu0 %v439_v7 }
  0x1f   :  { %424 = vmatmul.mubr.msk.bf16.vlgmr.msra.gmra.mrb[0].mxu1 %vm235_vm0, %v455_v18  ;;  %84 = vperm.xlu0 %431, %v74_v23  }
  0x20   :  { %94 = vperm.xlu1 %432, %v76_v24  }
  0x21   :  { %394 = vmatpush3.bf16.msra.mxu0 %v440_v8 }
  0x22   :  { %395 = vmatprep.subr.bf16.mxu0 %v441_v9 }
  0x25   :  { %396 = vmatpush3.bf16.msra.mxu0 %v442_v10 }
  0x26   :  { %397 = vmatprep.subr.bf16.mxu0 %v443_v12 }
  0x29   :  { %398 = vmatpush3.bf16.msra.mxu0 %v444_v13 }
  0x2a   :  { %399 = vmatprep.subr.bf16.mxu0 %v445_v14 }
  0x2d   :  { %400 = vmatpush3.bf16.msra.mxu0 %v446_v20 }
  0x2e   :  { %401 = vmatprep.subr.bf16.mxu0 %v447_v22 }
  0x31   :  { %402 = vmatpush3.bf16.msra.mxu0 %v449_v25 }
  0x34   :  { %275 = vmatmul.mubr.bf16.vlgmr.msra.gmra.mrb[0].mxu0 %v450_v26 }
  0x35   :  { %282 = vmatprep.mubr.bf16.mxu0 %v456_v27 }
  0x3c   :  { %283 = vmatmul.mubr.bf16.gmra.mrb[4].mxu0 %v458_v28 }
  0x9a   :  { %v80_v33 = vpop.permute.xlu0 %79  ;;  %v90_v44 = vpop.permute.xlu1 %89 }
  0x9e   :  { %v85_v39 = vpop.permute.xlu0 %84 }
  0x9f   :  { %v95_v57 = vpop.permute.xlu1 %94 }
  0xf2   :  { %v425_v29 = vpop.f32.mrb[0].mxu1 }
  0xf3   :  { %v325_v30 = vpop.f32.mrb[1].mxu1 }
  0xf4   :  { %v426_v31 = vpop.f32.mrb[2].mxu1 }
  0xf5   :  { %v328_v32 = vpop.f32.mrb[3].mxu1 }
 0x107   :  { %v403_v34 = vpop.f32.mrb[0].mxu0 }
 0x108   :  { %v404_v35 = vpop.f32.mrb[1].mxu0 }
 0x109   :  { %v405_v36 = vadd.f32 %v404_v35, %v403_v34  ;;  %v406_v37 = vpop.f32.mrb[2].mxu0 }
 0x10a   :  { %v407_v38 = vpop.f32.mrb[3].mxu0 }
 0x10b   :  { %v408_v40 = vadd.f32 %v407_v38, %v406_v37  ;;  %v277_v41 = vadd.f32 %v405_v36, %v80_v33 }
 0x10d   :  { %v280_v42 = vadd.f32 %v408_v40, %v85_v39  ;;  %v326_v43 = vadd.f32 %v325_v30, %v277_v41 }
 0x10f   :  { %vm340_vm1 = vcmp.ge.f32.partialorder %v326_v43, 0.0  ;;  %v344_v45 = vmul.f32 0.1, %v326_v43  ;;  %v329_v46 = vadd.f32 %v328_v32, %v280_v42  ;;  %v409_v47 = vpop.f32.mrb[4].mxu0 }
 0x110   :  { %v410_v48 = vpop.f32.mrb[5].mxu0 }
 0x111   :  { %v348_v49 = vsel %vm340_vm1, %v326_v43, %v344_v45  ;;  %vm341_vm2 = vcmp.ge.f32.partialorder %v329_v46, 0.0  ;;  %v345_v50 = vmul.f32 0.1, %v329_v46  ;;  %v411_v51 = vadd.f32 %v410_v48, %v409_v47  ;;  %v412_v52 = vpop.f32.mrb[6].mxu0 }
 0x112   :  { %352 = vst [vmem:[%s608_s3] sm:$0xff] %v348_v49  ;;  %v413_v53 = vpop.f32.mrb[7].mxu0 }
 0x113   :  { %v349_v54 = vsel %vm341_vm2, %v329_v46, %v345_v50  ;;  %v285_v55 = vadd.f32 %v411_v51, %v90_v44  ;;  %v414_v56 = vadd.f32 %v413_v53, %v412_v52 }
 0x114   :  { %353 = vst [vmem:[%s608_s3 + $0x8] sm:$0xff] %v349_v54 }
 0x115   :  { %v334_v58 = vadd.f32 %v425_v29, %v285_v55  ;;  %v288_v59 = vadd.f32 %v414_v56, %v95_v57 }
 0x117   :  { %vm342_vm3 = vcmp.ge.f32.partialorder %v334_v58, 0.0  ;;  %v346_v60 = vmul.f32 0.1, %v334_v58  ;;  %v337_v61 = vadd.f32 %v426_v31, %v288_v59 }
 0x119   :  { %v350_v62 = vsel %vm342_vm3, %v334_v58, %v346_v60  ;;  %vm343_vm4 = vcmp.ge.f32.partialorder %v337_v61, 0.0  ;;  %v347_v63 = vmul.f32 0.1, %v337_v61 }
 0x11a   :  { %354 = vst [vmem:[%s608_s3 + $0x10] sm:$0xff] %v350_v62 }
 0x11b   :  { %v351_v0 = vsel %vm343_vm4, %v337_v61, %v347_v63 }
 0x11c   :  { %355 = vst [vmem:[%s608_s3 + $0x18] sm:$0xff] %v351_v0 }
 0x11d   :  { %360 = vsyncpa [#allocation3], 1 }

// kernel: _lambda_.96
= control target key start
LH: loop header
LB: loop body
LE: loop exit
PB: predicated region body
PF: predicated region fallthrough
CT: control target
= control target key end

     0   :  { %8 = vsyncpa [#allocation4], 0  ;;  %s719_s12 = smov 0   ;;  %s721_s13 = smov 0   ;;  %s860_s0 = inlined_call_operand.vmem [shape: bf16[8,144], index: 0, kind: input, shape index: {}]   ;;  %s861_s1 = inlined_call_operand.vmem [shape: bf16[144,512], index: 1, kind: input, shape index: {}]   ;;  %s862_s2 = inlined_call_operand.hbm [shape: f32[8,1], index: 2, kind: input, shape index: {}]   ;;  %s863_s3 = inlined_call_operand.vmem [shape: f32[8,512], index: 3, kind: output, shape index: {}]  }
   0x1   :  { %s723_s14 = smov 0  }
   0x2 LB: > { %s538_s15 = sadd.s32 4294967295, %s695_s14   ;;  %s736_s16 = sadd.s32 1, %s695_s14   ;;  %s695_s14 = sphi %s723_s14, %s876_s14   ;;  %s691_s13 = sphi %s721_s13, %s875_s13   ;;  %s687_s12 = sphi %s719_s12, %s874_s12  }
   0x3   : > { %s39_s17 = ssub.s32 %s695_s14, %s736_s16  ;;  %s42_s18 = sadd.s32 1, %s691_s13 }
   0x4   : > { %p40_p0 = scmp.eq.s32.totalorder %s39_s17, 0  ;;  %p49_p1 = scmp.ne.s32.totalorder %s691_s13, %s687_s12 }
   0x5   : > { %p50_p2 = scmp.eq.s32.totalorder %s695_s14, 0  ;;  %p540_p3 = scmp.ge.s32.totalorder %s695_s14, 1 }
   0x6   : > { %s746_s19 = scalar_select %p40_p0, %s691_s13, %s42_s18  }
   0x7   : > { %p748_p4 = por %p50_p2, %p49_p1  ;;  %p113_p5 = scmp.lt.s32.totalorder %s695_s14, 3 }
   0x8   : > { %p755_p6 = scmp.eq.s32.totalorder %s538_s15, 0  ;;  %s697_s23 = smov [#allocation3]  }
   0x9   : > { %s867_s20 = scalar_select %p748_p4, 1, 0 }
   0xa   : > { %s868_s21 = scalar_select %p755_p6, 1, 0 }
   0xb   : > { %p759_p7 = pnand %p540_p3, %p113_p5  ;;  %s129_s24 = sshll.u32 %s697_s23, 4  ;;  %s130_s24 = int_to_ptr.vmem [resolvable:$true] %s129_s24 }
   0xc   : > { %s641_s28 = scalar_lea.hbm %s862_s2, 128 }
   0xd   : > { %s869_s22 = scalar_select %p759_p7, 1, 0 }
   0xe   : > { %p579_p8 = pneg %p759_p7  ;;  %p642_p10 = scmp.ne.s32.totalorder %s862_s2, %s641_s28 }
   0xf   : > { %p648_p0 = scmp.lt.u32.totalorder %s641_s28, %s862_s2 }
  0x10   : > { %p767_p9 = pnand %p755_p6, %p579_p8 }
  0x12   : > { %p643_p11 = pneg %p767_p9 }
  0x14   : > { %p644_p12 = pnand %p643_p11, %p642_p10 }
  0x16   : > { %p645_p13 = pneg %p644_p12 }
  0x18   : > { %p650_p1 = pnand %p648_p0, %p645_p13 }
  0x1a   : > { %653 = shalt.err (!%p650_p1)
}
  0x1b   : > { %s654_s6 = scalar_lea.vmem %s130_s24, 128  ;;  %p662_p8 = scmp.lt.s32.totalorder %s130_s24, %s130_s24 }
  0x1c   : > { %p655_p2 = scmp.ne.s32.totalorder %s130_s24, %s654_s6  ;;  %p663_p6 = scmp.lt.s32.totalorder %s654_s6, %s654_s6 }
  0x1e   : > { %p657_p3 = pnand %p655_p2, %p643_p11  ;;  %p664_p7 = por %p663_p6, %p662_p8 }
  0x20   : > { %p658_p5 = pneg %p657_p3 }
  0x22   : > { %p665_p4 = pnand %p664_p7, %p658_p5 }
  0x24   : > { %668 = shalt.err (!%p665_p4)
}
  0x25   : > { %582 = dma.hbm_to_vmem [thread:$0]  (!%p767_p9), %s862_s2, 128, %s130_s24, [#allocation4]  }
  0x26   : > { %p542_p10 = scmp.ge.s32.totalorder %s695_s14, 2 }
  0x27   : > { %p871_p12 = scmp.ne.s32.totalorder (!%p542_p10), %s867_s20, 0 }
  0x28   : > { %136 = sbr.rel (%p542_p10) target bundleno = 60 (0x3c), region = 24 }
  0x2f   : > { %139 = sbr.rel (!%p871_p12) target bundleno = 60 (0x3c), region = 28  ;;  %s141_s9 = sand.u32 (%p871_p12), 1, %s691_s13  }
  0x30   : > { %s572_s10 = sshll.u32 (%p871_p12), %s695_s14, 3  ;;  %s573_s11 = smul.u32 (%p871_p12), 144, %s141_s9 }
  0x31   : > { %s795_s23 = scalar_lea.vmem (%p871_p12), %s861_s1, %s572_s10 }
  0x32   : > { %v208_v0 = vld [vmem:[%s795_s23] sm:$0xff] (%p871_p12)  ;;  %v210_v1 = vld [vmem:[%s795_s23 + $0x10] sm:$0xff] (%p871_p12)  ;;  %s143_s20 = scalar_lea.vmem (%p871_p12), [#allocation2], %s573_s11 }
  0x33   : > { %v212_v2 = vld [vmem:[%s795_s23 + $0x20] sm:$0xff] (%p871_p12)  ;;  %v214_v3 = vld [vmem:[%s795_s23 + $0x30] sm:$0xff] (%p871_p12)  ;;  %209 = vst [vmem:[%s143_s20] sm:$0xff] (%p871_p12), %v208_v0  ;;  %211 = vst [vmem:[%s143_s20 + $0x8] sm:$0xff] (%p871_p12), %v210_v1 }
  0x34   : > { %v216_v4 = vld [vmem:[%s795_s23 + $0x40] sm:$0xff] (%p871_p12)  ;;  %v218_v5 = vld [vmem:[%s795_s23 + $0x50] sm:$0xff] (%p871_p12)  ;;  %213 = vst [vmem:[%s143_s20 + $0x10] sm:$0xff] (%p871_p12), %v212_v2  ;;  %215 = vst [vmem:[%s143_s20 + $0x18] sm:$0xff] (%p871_p12), %v214_v3 }
  0x35   : > { %217 = vst [vmem:[%s143_s20 + $0x20] sm:$0xff] (%p871_p12), %v216_v4  ;;  %219 = vst [vmem:[%s143_s20 + $0x28] sm:$0xff] (%p871_p12), %v218_v5  ;;  %v220_v6 = vld [vmem:[%s795_s23 + $0x60] sm:$0xff] (%p871_p12)  ;;  %v222_v7 = vld [vmem:[%s795_s23 + $0x70] sm:$0xff] (%p871_p12) }
  0x36   : > { %v224_v8 = vld [vmem:[%s795_s23 + $0x80] sm:$0xff]  ;;  %221 = vst [vmem:[%s143_s20 + $0x30] sm:$0xff] %v220_v6  ;;  %223 = vst [vmem:[%s143_s20 + $0x38] sm:$0xff] %v222_v7  ;;  %v226_v9 = vld [vmem:[%s795_s23 + $0x90] sm:$0xff] }
  0x37   : > { %225 = vst [vmem:[%s143_s20 + $0x40] sm:$0xff] %v224_v8  ;;  %v228_v10 = vld [vmem:[%s795_s23 + $0xa0] sm:$0xff]  ;;  %v230_v11 = vld [vmem:[%s795_s23 + $0xb0] sm:$0xff]  ;;  %227 = vst [vmem:[%s143_s20 + $0x48] sm:$0xff] %v226_v9 }
  0x38   : > { %229 = vst [vmem:[%s143_s20 + $0x50] sm:$0xff] %v228_v10  ;;  %231 = vst [vmem:[%s143_s20 + $0x58] sm:$0xff] %v230_v11  ;;  %v232_v12 = vld [vmem:[%s795_s23 + $0xc0] sm:$0xff]  ;;  %v234_v13 = vld [vmem:[%s795_s23 + $0xd0] sm:$0xff] }
  0x39   : > { %v236_v14 = vld [vmem:[%s795_s23 + $0xe0] sm:$0xff]  ;;  %233 = vst [vmem:[%s143_s20 + $0x60] sm:$0xff] %v232_v12  ;;  %235 = vst [vmem:[%s143_s20 + $0x68] sm:$0xff] %v234_v13  ;;  %v238_v15 = vld [vmem:[%s795_s23 + $0xf0] sm:$0xff] }
  0x3a   : > { %237 = vst [vmem:[%s143_s20 + $0x70] sm:$0xff] %v236_v14  ;;  %v240_v16 = vld [vmem:[%s795_s23 + $0x100] sm:$0xff]  ;;  %v242_v17 = vld [vmem:[%s795_s23 + $0x110] sm:$0xff]  ;;  %239 = vst [vmem:[%s143_s20 + $0x78] sm:$0xff] %v238_v15 }
  0x3b   : > { %241 = vst [vmem:[%s143_s20 + $0x80] sm:$0xff] %v240_v16  ;;  %243 = vst [vmem:[%s143_s20 + $0x88] sm:$0xff] %v242_v17 }
  0x3c PF: > { %p872_p4 = scmp.ne.s32.totalorder %s869_s22, 0 }
  0x3d   : > { %s255_s24 = sand.u32 (!%p872_p4), 1, %s687_s12   ;;  %p873_p6 = scmp.ne.s32.totalorder (!%p872_p4), %s868_s21, 0 }
  0x3e   : > { %252 = sbr.rel (%p872_p4) target bundleno = 326 (0x146), region = 66 }
  0x3f   : > { %s574_s25 = smul.u32 (!%p872_p4), 144, %s255_s24 }
  0x41   : > { %s818_s26 = scalar_lea.vmem (!%p872_p4), [#allocation2], %s574_s25 }
  0x45   : > { %682 = dma.done.wait (%p873_p6), [#allocation4], 128  }
  0x46   : > { %684 = vsyncadd (%p873_p6), [#allocation4], 4294967168  ;;  %v698_v18 = vmov 0   ;;  %v612_v19 = vld [vmem:[%s818_s26 + $0x4] ss:$8 sps:$4 sm:$0xff]   ;;  %vm411_vm0 = vcmask 130048  }
  0x47   : > { %611 = vset.pattern.permute.xlu0 %v698_v18  ;;  %v614_v20 = vld [vmem:[%s818_s26] ss:$8 sps:$4 sm:$0xff]   ;;  %415 = vmatprep.subr.bf16.mxu0 %v612_v19  ;;  %v615_v21 = vld [vmem:[%s818_s26 + $0x14] ss:$8 sps:$4 sm:$0xff]   ;;  %v617_v22 = vld [vmem:[%s818_s26 + $0x10] ss:$8 sps:$4 sm:$0xff]  }
  0x48   : > { %416 = vmatpush1.bf16.msra.mxu0 %v614_v20  ;;  %v618_v23 = vld [vmem:[%s818_s26 + $0x24] ss:$8 sps:$4 sm:$0xff]   ;;  %v620_v24 = vld [vmem:[%s818_s26 + $0x20] ss:$8 sps:$4 sm:$0xff]   ;;  %v621_v25 = vld [vmem:[%s818_s26 + $0x34] ss:$8 sps:$4 sm:$0xff]  }
  0x49   : > { %417 = vmatprep.subr.bf16.mxu0 %v615_v21  ;;  %v623_v26 = vld [vmem:[%s818_s26 + $0x30] ss:$8 sps:$4 sm:$0xff]   ;;  %v624_v27 = vld [vmem:[%s818_s26 + $0x44] ss:$8 sps:$4 sm:$0xff]   ;;  %v626_v31 = vld [vmem:[%s818_s26 + $0x40] ss:$8 sps:$4 sm:$0xff]  }
  0x4a   : > { %v290_v28 = vld [vmem:[%s860_s0] sm:$0xff]  ;;  %s547_s22 = sshll.u32 %s538_s15, 1 }
  0x4b   : > { %v309_v29 = vld [vmem:[#allocation3] sm:$0xff]  ;;  %v550_v30 = vcombine.high %v290_v28, %v290_v28  ;;  %v549_v40 = vcombine.low %v290_v28, %v290_v28  ;;  %p284_p7 = scmp.lt.s32.totalorder %s547_s22, 3 }
  0x4c   : > { %418 = vmatpush1.bf16.msra.mxu0 %v617_v22  ;;  %312 = vperm.xlu0 %611, %v309_v29   ;;  %v627_v32 = vld [vmem:[%s818_s26 + $0x54] ss:$8 sps:$4 sm:$0xff]   ;;  %v629_v33 = vld [vmem:[%s818_s26 + $0x50] ss:$8 sps:$4 sm:$0xff]   ;;  %v630_v34 = vld [vmem:[%s818_s26 + $0x64] ss:$8 sps:$4 sm:$0xff]  }
  0x4d   : > { %419 = vmatprep.subr.bf16.mxu0 %v618_v23  ;;  %569 = vmatprep.mubr.msk.bf16.mxu0 %vm411_vm0, %v550_v30  ;;  %v632_v35 = vld [vmem:[%s818_s26 + $0x60] ss:$8 sps:$4 sm:$0xff]   ;;  %v633_v36 = vld [vmem:[%s818_s26 + $0x74] ss:$8 sps:$4 sm:$0xff]   ;;  %v635_v37 = vld [vmem:[%s818_s26 + $0x70] ss:$8 sps:$4 sm:$0xff]  }
  0x4e   : > { %v636_v38 = vld [vmem:[%s818_s26 + $0x84] ss:$8 sps:$4 sm:$0xff]   ;;  %v638_v39 = vld [vmem:[%s818_s26 + $0x80] ss:$8 sps:$4 sm:$0xff]   ;;  %s878_s22 = smov (!%p284_p7, %s547_s22), 3 }
  0x4f   : > { %s548_s27 = sshll.u32 %s878_s22, 3 }
  0x50   : > { %420 = vmatpush1.bf16.msra.mxu0 %v620_v24  ;;  %s287_s30 = scalar_lea.vmem %s863_s3, %s548_s27 }
  0x51   : > { %421 = vmatprep.subr.bf16.mxu0 %v621_v25 }
  0x54   : > { %422 = vmatpush1.bf16.msra.mxu0 %v623_v26 }
  0x55   : > { %423 = vmatprep.subr.bf16.mxu0 %v624_v27 }
  0x58   : > { %424 = vmatpush1.bf16.msra.mxu0 %v626_v31 }
  0x59   : > { %425 = vmatprep.subr.bf16.mxu0 %v627_v32 }
  0x5c   : > { %426 = vmatpush1.bf16.msra.mxu0 %v629_v33 }
  0x5d   : > { %427 = vmatprep.subr.bf16.mxu0 %v630_v34 }
  0x60   : > { %428 = vmatpush1.bf16.msra.mxu0 %v632_v35 }
  0x61   : > { %429 = vmatprep.subr.bf16.mxu0 %v633_v36 }
  0x64   : > { %430 = vmatpush1.bf16.msra.mxu0 %v635_v37 }
  0x65   : > { %431 = vmatprep.subr.bf16.mxu0 %v636_v38 }
  0x68   : > { %432 = vmatpush1.bf16.msra.mxu0 %v638_v39 }
  0x6b   : > { %448 = vmatmul.mubr.bf16.vlgmr.msra.gmra.mrb[0].mxu0 %v549_v40 }
  0xcb   : > { %v313_v41 = vpop.permute.xlu0 %312 }
 0x13e   : > { %v449_v42 = vpop.f32.mrb[0].mxu0 }
 0x13f   : > { %v450_v43 = vadd.f32 %v449_v42, %v313_v41  ;;  %v451_v44 = vpop.f32.mrb[1].mxu0 }
 0x140   : > { %v452_v45 = vadd.f32 %v451_v44, %v313_v41  ;;  %v453_v46 = vpop.f32.mrb[2].mxu0 }
 0x141   : > { %vm456_vm1 = vcmp.ge.f32.partialorder %v450_v43, 0.0  ;;  %v458_v47 = vmul.f32 0.1, %v450_v43  ;;  %v454_v48 = vpop.f32.mrb[3].mxu0 }
 0x142   : > { %vm457_vm2 = vcmp.ge.f32.partialorder %v452_v45, 0.0  ;;  %v459_v49 = vmul.f32 0.1, %v452_v45 }
 0x143   : > { %v460_v50 = vsel %vm456_vm1, %v450_v43, %v458_v47 }
 0x144   : > { %462 = vst [vmem:[%s287_s30] sm:$0xff] %v460_v50  ;;  %v461_v51 = vsel %vm457_vm2, %v452_v45, %v459_v49 }
 0x145   : > { %463 = vst [vmem:[%s287_s30 + $0x8] sm:$0xff] %v461_v51 }
 0x146 PF: > { %p11_p9 = scmp.ge.s32.totalorder %s736_s16, 4   ;;  %s874_s12 = smov %s691_s13 }
 0x147   : > { %s875_s13 = smov %s746_s19  ;;  %s876_s14 = smov %s736_s16 }
 0x148   :  { %13 = sbr.rel (!%p11_p9) target bundleno = 2 (0x2), region = 110 }
 0x14f   :  { %486 = vsyncpa [#allocation4], 1 }
 0x150   :  { %488 = vsyncpa [#allocation4 + $0x1], 1 }

// kernel: _lambda_.94
= control target key start
LH: loop header
LB: loop body
LE: loop exit
PB: predicated region body
PF: predicated region fallthrough
CT: control target
= control target key end

     0   :  { %8 = vsyncpa [#allocation3], 0  ;;  %s411_s12 = smov [#allocation2]   ;;  %s518_s0 = inlined_call_operand.vmem [shape: bf16[16,288], index: 0, kind: input, shape index: {}]   ;;  %s519_s1 = inlined_call_operand.vmem [shape: bf16[288,128], index: 1, kind: input, shape index: {}]   ;;  %s520_s2 = inlined_call_operand.hbm [shape: f32[16,1], index: 2, kind: input, shape index: {}]   ;;  %s521_s3 = inlined_call_operand.vmem [shape: f32[16,128], index: 3, kind: output, shape index: {}]  }
   0x1   :  { %s18_s13 = sshll.u32 %s411_s12, 4  ;;  %s387_s16 = scalar_lea.hbm %s520_s2, 256  ;;  %s19_s13 = int_to_ptr.vmem [resolvable:$true] %s18_s13 }
   0x2   :  { %p388_p0 = scmp.ne.s32.totalorder %s520_s2, %s387_s16  ;;  %p391_p1 = scmp.lt.u32.totalorder %s387_s16, %s520_s2 }
   0x4   :  { %p393_p2 = pnand %p391_p1, %p388_p0 }
   0x6   :  { %396 = shalt.err (!%p393_p2)
}
   0x7   :  { %s397_s21 = scalar_lea.vmem %s19_s13, 256  ;;  %p402_p4 = scmp.lt.s32.totalorder %s19_s13, %s19_s13 }
   0x8   :  { %p398_p3 = scmp.ne.s32.totalorder %s19_s13, %s397_s21  ;;  %p403_p5 = scmp.lt.s32.totalorder %s397_s21, %s397_s21 }
   0xa   :  { %p404_p6 = por %p403_p5, %p402_p4 }
   0xc   :  { %p405_p7 = pnand %p404_p6, %p398_p3 }
   0xe   :  { %408 = shalt.err (!%p405_p7)
}
   0xf   :  { %s412_s22 = smov 128   ;;  %s413_s23 = smov 8  }
  0x10   :  { %24 = dma.hbm_to_vmem [thread:$0]  %s520_s2, 256, %s19_s13, [#allocation3], %s412_s22, %s412_s22, %s413_s23  }
  0x11   :  { %409 = dma.done.wait [#allocation3], 256  }
  0x12   :  { %410 = vsyncadd [#allocation3], 4294967040  ;;  %v414_v0 = vmov 0.0   ;;  %vm415_vm0 = vmmov 0   ;;  %v416_v1 = vmov 0   ;;  %v365_v2 = vld [vmem:[%s519_s1 + $0x40] sm:$0xff]  }
  0x13   :  { %350 = vmatprep.subr.bf16.mxu1 %v414_v0  ;;  %354 = vmatprep.mubr.msk.bf16.mxu1 %vm415_vm0, %v414_v0  ;;  %v366_v3 = vld [vmem:[%s519_s1] sm:$0xff]   ;;  %v367_v4 = vld [vmem:[%s519_s1 + $0x48] sm:$0xff]   ;;  %v369_v6 = vld [vmem:[%s519_s1 + $0x50] sm:$0xff]   ;;  %vm204_vm1 = vcmask 261120  }
  0x14   :  { %364 = vset.pattern.permute.xlu0 %v416_v1  ;;  %325 = vmatprep.subr.bf16.mxu0 %v365_v2  ;;  %v368_v5 = vld [vmem:[%s519_s1 + $0x8] sm:$0xff]   ;;  %v370_v7 = vld [vmem:[%s519_s1 + $0x10] sm:$0xff]   ;;  %v371_v8 = vld [vmem:[%s519_s1 + $0x58] sm:$0xff]  }
  0x15   :  { %326 = vmatpush3.bf16.msra.mxu0 %v366_v3  ;;  %v372_v9 = vld [vmem:[%s519_s1 + $0x18] sm:$0xff]   ;;  %v373_v10 = vld [vmem:[%s519_s1 + $0x60] sm:$0xff]   ;;  %v375_v13 = vld [vmem:[%s519_s1 + $0x68] sm:$0xff]  }
  0x16   :  { %327 = vmatprep.subr.bf16.mxu0 %v367_v4  ;;  %v379_v11 = vld [vmem:[%s519_s1 + $0x80] sm:$0xff]   ;;  %v376_v14 = vld [vmem:[%s519_s1 + $0x28] sm:$0xff]   ;;  %v377_v17 = vld [vmem:[%s519_s1 + $0x70] sm:$0xff]  }
  0x17   :  { %v374_v12 = vld [vmem:[%s519_s1 + $0x20] sm:$0xff]   ;;  %351 = vmatpush3.bf16.msra.mxu1 %v379_v11  ;;  %v385_v16 = vld [vmem:[%s519_s1 + $0x88] sm:$0xff]   ;;  %v378_v21 = vld [vmem:[%s519_s1 + $0x30] sm:$0xff]  }
  0x18   :  { %352 = vmatprep.subr.bf16.mxu1 %v414_v0  ;;  %v384_v15 = vld [vmem:[%s518_s0 + $0x4] ss:$12 sps:$4 sm:$0xff]   ;;  %v386_v18 = vld [vmem:[%s518_s0 + $0x8] ss:$12 sps:$4 sm:$0xff]   ;;  %v380_v22 = vld [vmem:[%s519_s1 + $0x78] sm:$0xff]  }
  0x19   :  { %328 = vmatpush3.bf16.msra.mxu0 %v368_v5  ;;  %240 = vmatprep.mubr.bf16.mxu0 %v384_v15  ;;  %v69_v19 = vld [vmem:[#allocation2] sm:$0xff]  ;;  %v70_v20 = vld [vmem:[#allocation2 + $0x8] sm:$0xff]  ;;  %v381_v23 = vld [vmem:[%s519_s1 + $0x38] sm:$0xff]  }
  0x1a   :  { %329 = vmatprep.subr.bf16.mxu0 %v369_v6  ;;  %73 = vperm.xlu0 %364, %v69_v19   ;;  %v382_v24 = vld [vmem:[%s518_s0] ss:$12 sps:$4 sm:$0xff]  }
  0x1b   :  { %353 = vmatpush3.bf16.msra.mxu1 %v385_v16 }
  0x1d   :  { %330 = vmatpush3.bf16.msra.mxu0 %v370_v7 }
  0x1e   :  { %331 = vmatprep.subr.bf16.mxu0 %v371_v8  ;;  %355 = vmatmul.mubr.msk.bf16.vlgmr.msra.gmra.mrb[0].mxu1 %vm204_vm1, %v386_v18 }
  0x1f   :  { %78 = vperm.xlu0 %364, %v70_v20  }
  0x21   :  { %332 = vmatpush3.bf16.msra.mxu0 %v372_v9 }
  0x22   :  { %333 = vmatprep.subr.bf16.mxu0 %v373_v10 }
  0x25   :  { %334 = vmatpush3.bf16.msra.mxu0 %v374_v12 }
  0x26   :  { %335 = vmatprep.subr.bf16.mxu0 %v375_v13 }
  0x29   :  { %336 = vmatpush3.bf16.msra.mxu0 %v376_v14 }
  0x2a   :  { %337 = vmatprep.subr.bf16.mxu0 %v377_v17 }
  0x2d   :  { %338 = vmatpush3.bf16.msra.mxu0 %v378_v21 }
  0x2e   :  { %339 = vmatprep.subr.bf16.mxu0 %v380_v22 }
  0x31   :  { %340 = vmatpush3.bf16.msra.mxu0 %v381_v23 }
  0x34   :  { %241 = vmatmul.mubr.bf16.vlgmr.msra.gmra.mrb[0].mxu0 %v382_v24 }
  0x99   :  { %v74_v29 = vpop.permute.xlu0 %73 }
  0x9e   :  { %v79_v37 = vpop.permute.xlu0 %78 }
  0xf1   :  { %v283_v25 = vpop.f32.mrb[0].mxu1 }
  0xf2   :  { %v356_v26 = vpop.f32.mrb[1].mxu1 }
  0xf3   :  { %v286_v27 = vpop.f32.mrb[2].mxu1 }
  0xf4   :  { %v357_v28 = vpop.f32.mrb[3].mxu1 }
 0x107   :  { %v341_v30 = vpop.f32.mrb[0].mxu0 }
 0x108   :  { %v342_v31 = vpop.f32.mrb[1].mxu0 }
 0x109   :  { %v343_v32 = vadd.f32 %v342_v31, %v341_v30  ;;  %v344_v33 = vpop.f32.mrb[2].mxu0 }
 0x10a   :  { %v345_v34 = vpop.f32.mrb[3].mxu0 }
 0x10b   :  { %v243_v35 = vadd.f32 %v343_v32, %v74_v29  ;;  %v346_v36 = vadd.f32 %v345_v34, %v344_v33 }
 0x10d   :  { %v284_v38 = vadd.f32 %v283_v25, %v243_v35  ;;  %v246_v39 = vadd.f32 %v346_v36, %v79_v37 }
 0x10f   :  { %vm290_vm2 = vcmp.ge.f32.partialorder %v284_v38, 0.0  ;;  %v292_v40 = vmul.f32 0.1, %v284_v38  ;;  %v287_v41 = vadd.f32 %v286_v27, %v246_v39 }
 0x111   :  { %v294_v42 = vsel %vm290_vm2, %v284_v38, %v292_v40  ;;  %vm291_vm3 = vcmp.ge.f32.partialorder %v287_v41, 0.0  ;;  %v293_v43 = vmul.f32 0.1, %v287_v41 }
 0x112   :  { %296 = vst [vmem:[%s521_s3] sm:$0xff] %v294_v42 }
 0x113   :  { %v295_v44 = vsel %vm291_vm3, %v287_v41, %v293_v43 }
 0x114   :  { %297 = vst [vmem:[%s521_s3 + $0x8] sm:$0xff] %v295_v44 }
 0x115   :  { %302 = vsyncpa [#allocation3], 1 }

// kernel: _lambda_.98
= control target key start
LH: loop header
LB: loop body
LE: loop exit
PB: predicated region body
PF: predicated region fallthrough
CT: control target
= control target key end

     0   :  { %8 = vsyncpa [#allocation4], 0  ;;  %s606_s12 = smov 0   ;;  %s608_s13 = smov 0   ;;  %s707_s0 = inlined_call_operand.vmem [shape: bf16[5,72], index: 0, kind: input, shape index: {}]   ;;  %s708_s1 = inlined_call_operand.vmem [shape: bf16[72,512], index: 1, kind: input, shape index: {}]   ;;  %s709_s2 = inlined_call_operand.hbm [shape: f32[5,1], index: 2, kind: input, shape index: {}]   ;;  %s710_s3 = inlined_call_operand.vmem [shape: f32[5,512], index: 3, kind: output, shape index: {}]  }
   0x1   :  { %s610_s14 = smov 0  }
   0x2 LB: > { %s449_s15 = sadd.s32 4294967295, %s582_s14   ;;  %s623_s16 = sadd.s32 1, %s582_s14   ;;  %s582_s14 = sphi %s610_s14, %s723_s14   ;;  %s578_s13 = sphi %s608_s13, %s722_s13   ;;  %s574_s12 = sphi %s606_s12, %s721_s12  }
   0x3   : > { %s39_s17 = ssub.s32 %s582_s14, %s623_s16  ;;  %s42_s18 = sadd.s32 1, %s578_s13 }
   0x4   : > { %p40_p0 = scmp.eq.s32.totalorder %s39_s17, 0  ;;  %p49_p1 = scmp.ne.s32.totalorder %s578_s13, %s574_s12 }
   0x5   : > { %p50_p2 = scmp.eq.s32.totalorder %s582_s14, 0  ;;  %p451_p3 = scmp.ge.s32.totalorder %s582_s14, 1 }
   0x6   : > { %s633_s19 = scalar_select %p40_p0, %s578_s13, %s42_s18  }
   0x7   : > { %p635_p4 = por %p50_p2, %p49_p1  ;;  %p113_p5 = scmp.lt.s32.totalorder %s582_s14, 3 }
   0x8   : > { %p642_p6 = scmp.eq.s32.totalorder %s449_s15, 0  ;;  %s584_s23 = smov [#allocation3]  }
   0x9   : > { %s714_s20 = scalar_select %p635_p4, 1, 0 }
   0xa   : > { %s715_s21 = scalar_select %p642_p6, 1, 0 }
   0xb   : > { %p646_p7 = pnand %p451_p3, %p113_p5  ;;  %s129_s24 = sshll.u32 %s584_s23, 4  ;;  %s130_s24 = int_to_ptr.vmem [resolvable:$true] %s129_s24 }
   0xc   : > { %s528_s28 = scalar_lea.hbm %s709_s2, 128 }
   0xd   : > { %s716_s22 = scalar_select %p646_p7, 1, 0 }
   0xe   : > { %p481_p8 = pneg %p646_p7  ;;  %p529_p10 = scmp.ne.s32.totalorder %s709_s2, %s528_s28 }
   0xf   : > { %p535_p0 = scmp.lt.u32.totalorder %s528_s28, %s709_s2 }
  0x10   : > { %p654_p9 = pnand %p642_p6, %p481_p8 }
  0x12   : > { %p530_p11 = pneg %p654_p9 }
  0x14   : > { %p531_p12 = pnand %p530_p11, %p529_p10 }
  0x16   : > { %p532_p13 = pneg %p531_p12 }
  0x18   : > { %p537_p1 = pnand %p535_p0, %p532_p13 }
  0x1a   : > { %540 = shalt.err (!%p537_p1)
}
  0x1b   : > { %s541_s6 = scalar_lea.vmem %s130_s24, 128  ;;  %p549_p8 = scmp.lt.s32.totalorder %s130_s24, %s130_s24 }
  0x1c   : > { %p542_p2 = scmp.ne.s32.totalorder %s130_s24, %s541_s6  ;;  %p550_p6 = scmp.lt.s32.totalorder %s541_s6, %s541_s6 }
  0x1e   : > { %p544_p3 = pnand %p542_p2, %p530_p11  ;;  %p551_p7 = por %p550_p6, %p549_p8 }
  0x20   : > { %p545_p5 = pneg %p544_p3 }
  0x22   : > { %p552_p4 = pnand %p551_p7, %p545_p5 }
  0x24   : > { %555 = shalt.err (!%p552_p4)
}
  0x25   : > { %484 = dma.hbm_to_vmem [thread:$0]  (!%p654_p9), %s709_s2, 128, %s130_s24, [#allocation4]  }
  0x26   : > { %p453_p10 = scmp.ge.s32.totalorder %s582_s14, 2 }
  0x27   : > { %p718_p12 = scmp.ne.s32.totalorder (!%p453_p10), %s714_s20, 0 }
  0x28   : > { %136 = sbr.rel (%p453_p10) target bundleno = 56 (0x38), region = 24 }
  0x2f   : > { %139 = sbr.rel (!%p718_p12) target bundleno = 56 (0x38), region = 28  ;;  %s141_s9 = sand.u32 (%p718_p12), 1, %s578_s13  }
  0x30   : > { %s474_s10 = sshll.u32 (%p718_p12), %s582_s14, 3  ;;  %s475_s11 = smul.u32 (%p718_p12), 72, %s141_s9 }
  0x31   : > { %s146_s23 = scalar_lea.vmem (%p718_p12), %s708_s1, %s474_s10 }
  0x32   : > { %v190_v0 = vld [vmem:[%s146_s23] sm:$0xff] (%p718_p12)  ;;  %v192_v1 = vld [vmem:[%s146_s23 + $0x10] sm:$0xff] (%p718_p12)  ;;  %s143_s24 = scalar_lea.vmem (%p718_p12), [#allocation2], %s475_s11 }
  0x33   : > { %v194_v2 = vld [vmem:[%s146_s23 + $0x20] sm:$0xff] (%p718_p12)  ;;  %v196_v3 = vld [vmem:[%s146_s23 + $0x30] sm:$0xff] (%p718_p12)  ;;  %191 = vst [vmem:[%s143_s24] sm:$0xff] (%p718_p12), %v190_v0  ;;  %193 = vst [vmem:[%s143_s24 + $0x8] sm:$0xff] (%p718_p12), %v192_v1 }
  0x34   : > { %v198_v4 = vld [vmem:[%s146_s23 + $0x40] sm:$0xff] (%p718_p12)  ;;  %v200_v5 = vld [vmem:[%s146_s23 + $0x50] sm:$0xff] (%p718_p12)  ;;  %195 = vst [vmem:[%s143_s24 + $0x10] sm:$0xff] (%p718_p12), %v194_v2  ;;  %197 = vst [vmem:[%s143_s24 + $0x18] sm:$0xff] (%p718_p12), %v196_v3 }
  0x35   : > { %199 = vst [vmem:[%s143_s24 + $0x20] sm:$0xff] (%p718_p12), %v198_v4  ;;  %201 = vst [vmem:[%s143_s24 + $0x28] sm:$0xff] (%p718_p12), %v200_v5  ;;  %v202_v6 = vld [vmem:[%s146_s23 + $0x60] sm:$0xff] (%p718_p12)  ;;  %v204_v7 = vld [vmem:[%s146_s23 + $0x70] sm:$0xff] (%p718_p12) }
  0x36   : > { %v206_v8 = vld [vmem:[%s146_s23 + $0x80] sm:$0xff]  ;;  %203 = vst [vmem:[%s143_s24 + $0x30] sm:$0xff] %v202_v6  ;;  %205 = vst [vmem:[%s143_s24 + $0x38] sm:$0xff] %v204_v7 }
  0x37   : > { %207 = vst [vmem:[%s143_s24 + $0x40] sm:$0xff] %v206_v8 }
  0x38 PF: > { %p719_p4 = scmp.ne.s32.totalorder %s716_s22, 0 }
  0x39   : > { %s219_s20 = sand.u32 (!%p719_p4), 1, %s574_s12   ;;  %p720_p6 = scmp.ne.s32.totalorder (!%p719_p4), %s715_s21, 0 }
  0x3a   : > { %216 = sbr.rel (%p719_p4) target bundleno = 307 (0x133), region = 66 }
  0x3b   : > { %s476_s25 = smul.u32 (!%p719_p4), 72, %s219_s20 }
  0x3d   : > { %s221_s26 = scalar_lea.vmem (!%p719_p4), [#allocation2], %s476_s25 }
  0x41   : > { %569 = dma.done.wait (%p720_p6), [#allocation4], 128  }
  0x42   : > { %571 = vsyncadd (%p720_p6), [#allocation4], 4294967168  ;;  %v585_v9 = vmov 0   ;;  %v514_v10 = vld [vmem:[%s221_s26 + $0x4] ss:$8 sps:$4 sm:$0xff]   ;;  %vm319_vm0 = vcmask 1043456  }
  0x43   : > { %358 = vmatprep.mubr.bf16.mxu0 %v585_v9  ;;  %513 = vset.pattern.permute.xlu0 %v585_v9  ;;  %v516_v11 = vld [vmem:[%s221_s26] ss:$8 sps:$4 sm:$0xff]   ;;  %v517_v12 = vld [vmem:[%s221_s26 + $0x14] ss:$8 sps:$4 sm:$0xff]   ;;  %v519_v13 = vld [vmem:[%s221_s26 + $0x10] ss:$8 sps:$4 sm:$0xff]  }
  0x44   : > { %326 = vmatprep.subr.bf16.mxu0 %v514_v10  ;;  %v520_v14 = vld [vmem:[%s221_s26 + $0x24] ss:$8 sps:$4 sm:$0xff]   ;;  %v522_v16 = vld [vmem:[%s221_s26 + $0x20] ss:$8 sps:$4 sm:$0xff]   ;;  %v523_v17 = vld [vmem:[%s221_s26 + $0x34] ss:$8 sps:$4 sm:$0xff]  }
  0x45   : > { %327 = vmatpush1.bf16.msra.mxu0 %v516_v11  ;;  %v264_v15 = vld [vmem:[#allocation3] sm:$0x1f]  ;;  %v263_v18 = vld [vmem:[%s221_s26 + $0x40] sm:$0xff]  ;;  %vm315_vm1 = vcmask 588800   ;;  %s458_s22 = sshll.u32 %s449_s15, 1 }
  0x46   : > { %328 = vmatprep.subr.bf16.mxu0 %v517_v12  ;;  %267 = vperm.xlu0 %513, %v264_v15   ;;  %v525_v19 = vld [vmem:[%s221_s26 + $0x30] ss:$8 sps:$4 sm:$0xff]   ;;  %v469_v20 = vcombine.high %v263_v18, %v263_v18  ;;  %v468_v21 = vcombine.low %v263_v18, %v263_v18  ;;  %p248_p7 = scmp.lt.s32.totalorder %s458_s22, 3 }
  0x47   : > { %v254_v23 = vld [vmem:[%s707_s0] sm:$0x7] }
  0x48   : > { %v321_v22 = vsel %vm319_vm0, %v468_v21, 0  ;;  %s725_s22 = smov (!%p248_p7, %s458_s22), 3 }
  0x49   : > { %329 = vmatpush1.bf16.msra.mxu0 %v519_v13  ;;  %s459_s27 = sshll.u32 %s725_s22, 3 }
  0x4a   : > { %330 = vmatprep.subr.bf16.mxu0 %v520_v14  ;;  %s251_s30 = scalar_lea.vmem %s710_s3, %s459_s27 }
  0x4d   : > { %331 = vmatpush1.bf16.msra.mxu0 %v522_v16 }
  0x4e   : > { %332 = vmatprep.subr.bf16.mxu0 %v523_v17 }
  0x51   : > { %333 = vmatpush1.bf16.msra.mxu0 %v525_v19 }
  0x52   : > { %470 = vmatprep.subr.msk.bf16.mxu0 %vm319_vm0, %v469_v20 }
  0x55   : > { %335 = vmatpush1.bf16.msra.mxu0 %v321_v22 }
  0x58   : > { %471 = vmatmul.mubr.msk.bf16.vlgmr.msra.gmra.mrb[0].mxu0 %vm315_vm1, %v254_v23 }
  0xc5   : > { %v268_v24 = vpop.permute.xlu0 %267 }
 0x12b   : > { %v360_v25 = vpop.f32.mrb[0].mxu0 }
 0x12c   : > { %v361_v26 = vadd.f32 %v360_v25, %v268_v24  ;;  %v362_v27 = vpop.f32.mrb[1].mxu0 }
 0x12d   : > { %v363_v28 = vadd.f32 %v362_v27, %v268_v24  ;;  %v364_v29 = vpop.f32.mrb[2].mxu0 }
 0x12e   : > { %vm367_vm2 = vcmp.ge.f32.partialorder %v361_v26, 0.0  ;;  %v369_v30 = vmul.f32 0.1, %v361_v26  ;;  %v365_v31 = vpop.f32.mrb[3].mxu0 }
 0x12f   : > { %vm368_vm3 = vcmp.ge.f32.partialorder %v363_v28, 0.0  ;;  %v370_v32 = vmul.f32 0.1, %v363_v28 }
 0x130   : > { %v371_v33 = vsel %vm367_vm2, %v361_v26, %v369_v30 }
 0x131   : > { %373 = vst [vmem:[%s251_s30] sm:$0x1f] %v371_v33  ;;  %v372_v34 = vsel %vm368_vm3, %v363_v28, %v370_v32 }
 0x132   : > { %374 = vst [vmem:[%s251_s30 + $0x8] sm:$0x1f] %v372_v34 }
 0x133 PF: > { %p11_p9 = scmp.ge.s32.totalorder %s623_s16, 4   ;;  %s721_s12 = smov %s578_s13 }
 0x134   : > { %s722_s13 = smov %s633_s19  ;;  %s723_s14 = smov %s623_s16 }
 0x135   :  { %13 = sbr.rel (!%p11_p9) target bundleno = 2 (0x2), region = 110 }
 0x13c   :  { %397 = vsyncpa [#allocation4], 1 }
 0x13d   :  { %399 = vsyncpa [#allocation4 + $0x1], 1 }

// kernel: _lambda_.99
= control target key start
LH: loop header
LB: loop body
LE: loop exit
PB: predicated region body
PF: predicated region fallthrough
CT: control target
= control target key end

     0   :  { %v178_v0 = vmov 0   ;;  %v38_v8 = vlaneseq  ;;  %s239_s1 = inlined_call_operand.vmem [shape: f32[3,1], index: 1, kind: input, shape index: {}]   ;;  %s240_s2 = inlined_call_operand.vmem [shape: f32[1,512], index: 2, kind: input, shape index: {}]   ;;  %s241_s0 = inlined_call_operand.<no memory space> [shape: f32[1], index: 0, kind: input, shape index: {}]   ;;  %s242_s3 = inlined_call_operand.vmem [shape: f32[3,512], index: 3, kind: input, shape index: {}]   ;;  %s243_s4 = inlined_call_operand.vmem [shape: f32[3,512], index: 4, kind: input, shape index: {}]   ;;  %s244_s5 = inlined_call_operand.vmem [shape: f32[3,512], index: 5, kind: output, shape index: {}]  }
   0x1   :  { %161 = vset.pattern.permute.xlu0 %v178_v0  ;;  %v135_v1 = vld [vmem:[%s239_s1] sm:$0x7]  ;;  %s30_s24 = ssub.f32 1.0, %s241_s0  ;;  %v33_v10 = vstv %s241_s0  ;;  %v36_v22 = vld [vmem:[%s242_s3 + $0x8] sm:$0x77] }
   0x2   :  { %138 = vperm.xlu0 %161, %v135_v1   ;;  %v22_v2 = vld [vmem:[%s240_s2] sm:$0xf]  ;;  %v39_v11 = vshrl.u32 %v38_v8, 7  ;;  %v69_v25 = vld [vmem:[%s243_s4 + $0x8] sm:$0x77]  ;;  %v61_v28 = vcombine.high %v36_v22, %v36_v22 }
   0x3   :  { %v159_v3 = vmul.f32 -1.442695, %v22_v2  ;;  %v31_v9 = vstv %s30_s24  ;;  %v35_v21 = vld [vmem:[%s242_s3] sm:$0x77]  ;;  %v94_v30 = vcombine.high %v69_v25, %v69_v25 }
   0x4   :  { %v40_v14 = vsub.s32 0, %v39_v11  ;;  %v44_v16 = vsub.s32 1, %v39_v11  ;;  %v48_v17 = vsub.s32 2, %v39_v11  ;;  %v52_v18 = vsub.s32 3, %v39_v11  ;;  %v68_v24 = vld [vmem:[%s243_s4] sm:$0x77] }
   0x5   :  { %166 = vpow2.f32 %v159_v3  ;;  %v60_v27 = vcombine.high %v35_v21, %v35_v21  ;;  %v93_v29 = vcombine.high %v68_v24, %v68_v24 }
   0xf   :  { %v167_v4 = vpop.eup %166 }
  0x10   :  { %v26_v5 = vadd.f32 1.0, %v167_v4 }
  0x12   :  { %168 = vrcp.f32 %v26_v5 }
  0x1c   :  { %v169_v6 = vpop.eup %168 }
  0x1d   :  { %v29_v7 = vsub.f32 1.0, %v169_v6  ;;  %v32_v12 = vmul.f32 %v169_v6, %v31_v9 }
  0x1f   :  { %v34_v13 = vmul.f32 %v33_v10, %v29_v7  ;;  %v41_v31 = vrot.slane %v32_v12, %v40_v14  ;;  %v45_v32 = vrot.slane %v32_v12, %v44_v16  ;;  %v49_v33 = vrot.slane %v32_v12, %v48_v17 }
  0x20   :  { %v53_v34 = vrot.slane %v32_v12, %v52_v18 }
  0x21   :  { %v105_v15 = vadd.f32 %v34_v13, %v32_v12  ;;  %v74_v35 = vrot.slane %v34_v13, %v40_v14  ;;  %v78_v36 = vrot.slane %v34_v13, %v44_v16  ;;  %v82_v37 = vrot.slane %v34_v13, %v48_v17 }
  0x22   :  { %v86_v38 = vrot.slane %v34_v13, %v52_v18  ;;  %v64_v39 = vmul.f32 %v41_v31, %v35_v21  ;;  %v65_v40 = vmul.f32 %v60_v27, %v45_v32  ;;  %v66_v41 = vmul.f32 %v49_v33, %v36_v22 }
  0x23   :  { %v110_v19 = vrot.slane %v105_v15, %v40_v14  ;;  %v114_v20 = vrot.slane %v105_v15, %v44_v16  ;;  %v118_v23 = vrot.slane %v105_v15, %v48_v17  ;;  %v122_v26 = vrot.slane %v105_v15, %v52_v18 }
  0x24   :  { %v67_v42 = vmul.f32 %v61_v28, %v53_v34  ;;  %v97_v43 = vmul.f32 %v74_v35, %v68_v24  ;;  %v98_v44 = vmul.f32 %v93_v29, %v78_v36  ;;  %v99_v45 = vmul.f32 %v82_v37, %v69_v25 }
  0x25   :  { %170 = vrcp.f32 %v110_v19  ;;  %v100_v46 = vmul.f32 %v94_v30, %v86_v38 }
  0x26   :  { %172 = vrcp.f32 %v114_v20  ;;  %v101_v50 = vadd.f32 %v97_v43, %v64_v39  ;;  %v102_v51 = vadd.f32 %v98_v44, %v65_v40  ;;  %v103_v52 = vadd.f32 %v99_v45, %v66_v41 }
  0x27   :  { %174 = vrcp.f32 %v118_v23  ;;  %v104_v53 = vadd.f32 %v100_v46, %v67_v42 }
  0x28   :  { %176 = vrcp.f32 %v122_v26 }
  0x2f   :  { %v171_v47 = vpop.eup %170 }
  0x30   :  { %v173_v48 = vpop.eup %172  ;;  %v128_v55 = vmul.f32 %v171_v47, %v101_v50 }
  0x31   :  { %v175_v49 = vpop.eup %174  ;;  %v130_v56 = vmul.f32 %v173_v48, %v102_v51 }
  0x32   :  { %v177_v54 = vpop.eup %176  ;;  %v132_v57 = vmul.f32 %v175_v49, %v103_v52 }
  0x33   :  { %v134_v58 = vmul.f32 %v177_v54, %v104_v53 }
  0x81   :  { %v139_v59 = vpop.permute.xlu0 %138 }
  0x82   :  { %v141_v60 = vadd.f32 %v139_v59, %v128_v55  ;;  %v142_v61 = vadd.f32 %v139_v59, %v130_v56  ;;  %v143_v62 = vadd.f32 %v139_v59, %v132_v57  ;;  %v144_v63 = vadd.f32 %v139_v59, %v134_v58 }
  0x84   :  { %v149_v0 = vcombine.low %v141_v60, %v142_v61  ;;  %v150_v1 = vcombine.low %v143_v62, %v144_v63 }
  0x86   :  { %153 = vst [vmem:[%s244_s5] sm:$0x77] %v149_v0  ;;  %154 = vst [vmem:[%s244_s5 + $0x8] sm:$0x77] %v150_v1 }

</bundles_post_ra>
